<compile_context>
chip_gen: v6e
topology: v6e:2x2x1
jax: 0.10.0
libtpu: 0.0.40
codegen_flags: <defaults>
</compile_context>

<pallas_src>
import math
import numpy as np
import jax
import jax.numpy as jnp
from jax import lax
from jax.experimental import pallas as pl
from jax.experimental.pallas import tpu as pltpu

# ----------------------------- configuration --------------------------------
B = 2              # batch
IMG = 64           # image H = W
IN_CH = 3          # image channels
PATCH = 16         # patch size -> 4x4 feature map
EMBED = 32         # embedding dim
NUM_HEADS = 4      # attention heads
HEAD_DIM = EMBED // NUM_HEADS
MLP_HIDDEN = 64    # transformer MLP hidden
FEAT = IMG // PATCH            # 4   (low-res feature side)
N_TOK = FEAT * FEAT            # 16  (image tokens)
C1 = EMBED // 4                # 8   (first upscale channels)
C2 = EMBED // 8                # 4   (second upscale channels)
H2 = 2 * FEAT                  # 8   (after first 2x upscale)
H4 = 4 * FEAT                  # 16  (low-res mask side)
PATCH_DIM = IN_CH * PATCH * PATCH   # 768
SCALE = 1.0 / math.sqrt(HEAD_DIM)

# Ordered list of weight/constant arrays handed to the fused kernel.
_WEIGHT_ORDER = (
    # image encoder
    "patch_w", "patch_b", "pos_embed",
    "enc_wqkv", "enc_bqkv", "enc_wo", "enc_bo",
    "enc_ln_g", "enc_ln_b",
    "enc_mlp_w1", "enc_mlp_b1", "enc_mlp_w2", "enc_mlp_b2",
    "neck_w", "neck_b",
    # prompt encoder (frozen)
    "no_mask_embed", "dense_pe",
    # mask-decoder two-way transformer
    "dec_wqkv", "dec_bqkv", "dec_wo", "dec_bo",
    "dec_ln_g", "dec_ln_b",
    "dec_mlp_w1", "dec_mlp_b1", "dec_mlp_w2", "dec_mlp_b2",
    # hypernetwork (last layer pre-expanded to the upscale lane layout)
    "hyp_w1", "hyp_b1", "hyp_w2", "hyp_b2", "hyp_w3big", "hyp_b3big",
    # upscaling / bilinear constants
    "w1cmp", "b1c", "selx", "cpx", "w2r", "pdy", "b2row", "se", "pe2",
    "awt", "ahp", "cph",
)


# -------------------------- in-kernel building blocks ------------------------
def _layernorm(x, g, b):
    mu = jnp.mean(x, axis=-1, keepdims=True)
    var = jnp.mean(jnp.square(x - mu), axis=-1, keepdims=True)
    return (x - mu) * lax.rsqrt(var + 1e-5) * g + b


def _attention_core(q, k, v, wo, bo, head_masks):
    """Multi-head attention over lane-masked heads (no reshapes / transposes).
    Only K and V are masked (sufficient for the score contraction)."""
    o = jnp.zeros((q.shape[0], EMBED), jnp.float32)
    for m in head_masks:
        s = lax.dot_general(q, k * m, (((1,), (1,)), ((), ())),
                            preferred_element_type=jnp.float32) * SCALE
        s = s - jnp.max(s, axis=-1, keepdims=True)
        p = jnp.exp(s)
        p = p / jnp.sum(p, axis=-1, keepdims=True)
        o = o + jnp.dot(p, v * m, preferred_element_type=jnp.float32)
    return jnp.dot(o, wo, preferred_element_type=jnp.float32) + bo


def _mha_self(x, wqkv, bqkv, wo, bo, head_masks):
    """Self-attention with a single fused (E, 3E) QKV projection."""
    qkv = jnp.dot(x, wqkv, preferred_element_type=jnp.float32) + bqkv
    q = qkv[:, 0:EMBED]
    k = qkv[:, EMBED:2 * EMBED]
    v = qkv[:, 2 * EMBED:3 * EMBED]
    return _attention_core(q, k, v, wo, bo, head_masks)


def _mha(xq, xk, xv, wq, wk, wv, bq, bk, bv, wo, bo, head_masks):
    """Cross-attention with distinct Q/K/V inputs (SAM semantics: V has no PE)."""
    q = jnp.dot(xq, wq, preferred_element_type=jnp.float32) + bq
    k = jnp.dot(xk, wk, preferred_element_type=jnp.float32) + bk
    v = jnp.dot(xv, wv, preferred_element_type=jnp.float32) + bv
    return _attention_core(q, k, v, wo, bo, head_masks)


# ------------------------------ the fused kernel ------------------------------
def _medsam_kernel(*refs):
    patches_ref, tokens_ref = refs[0], refs[1]
    out_ref = refs[-1]
    # Load every weight / constant once into VMEM-resident values (all tiny).
    w = {name: ref[...] for name, ref in zip(_WEIGHT_ORDER, refs[2:-1])}

    # head masks hoisted: built once per kernel invocation
    lane = lax.broadcasted_iota(jnp.int32, (1, EMBED), 1)
    head_masks = [((lane >= h * HEAD_DIM) & (lane < (h + 1) * HEAD_DIM))
                  .astype(jnp.float32) for h in range(NUM_HEADS)]

    # ---------------- image encoder (patch embed + ViT block + neck) ----------
    x = jnp.dot(patches_ref[0], w["patch_w"],
                preferred_element_type=jnp.float32)          # bf16 x bf16 -> f32
    x = x + w["patch_b"] + w["pos_embed"]

    h = _layernorm(x, w["enc_ln_g"][0], w["enc_ln_b"][0])
    x = x + _mha_self(h, w["enc_wqkv"], w["enc_bqkv"],
                      w["enc_wo"], w["enc_bo"], head_masks)
    h = _layernorm(x, w["enc_ln_g"][1], w["enc_ln_b"][1])
    h = jax.nn.gelu(jnp.dot(h, w["enc_mlp_w1"],
                            preferred_element_type=jnp.float32) + w["enc_mlp_b1"])
    h = jnp.dot(h, w["enc_mlp_w2"],
                preferred_element_type=jnp.float32) + w["enc_mlp_b2"]
    x = x + h
    # neck: 1x1 conv (linear over channels) + channel LayerNorm
    x = jnp.dot(x, w["neck_w"], preferred_element_type=jnp.float32) + w["neck_b"]
    x = _layernorm(x, w["enc_ln_g"][2], w["enc_ln_b"][2])

    # dense "no mask" prompt embedding added to the image embedding
    src = x + w["no_mask_embed"]                              # (N_TOK, E)

    # ---------------- mask decoder: two-way transformer ----------------------
    tokens = tokens_ref[0]                                    # (4, E)
    qpe = tokens                                              # sparse-prompt PE (re-added per layer)
    kpe = w["dense_pe"]                                       # image PE (N_TOK, E)
    queries = tokens
    keys = src

    def dec_attn(i, xq, xk, xv):
        return _mha(xq, xk, xv,
                    w["dec_wqkv"][i, 0], w["dec_wqkv"][i, 1], w["dec_wqkv"][i, 2],
                    w["dec_bqkv"][i, 0], w["dec_bqkv"][i, 1], w["dec_bqkv"][i, 2],
                    w["dec_wo"][i], w["dec_bo"][i], head_masks)

    # layer 0: token self-attention (skip_first_layer_pe -> no residual, no PE)
    queries = dec_attn(0, queries, queries, queries)
    queries = _layernorm(queries, w["dec_ln_g"][0], w["dec_ln_b"][0])
    # cross attention: tokens -> image (V = keys without PE)
    q_in = queries + qpe
    k_in = keys + kpe
    queries = queries + dec_attn(1, q_in, k_in, keys)
    queries = _layernorm(queries, w["dec_ln_g"][1], w["dec_ln_b"][1])
    # MLP block
    m = jnp.maximum(jnp.dot(queries, w["dec_mlp_w1"],
                            preferred_element_type=jnp.float32) + w["dec_mlp_b1"], 0.0)
    m = jnp.dot(m, w["dec_mlp_w2"],
                preferred_element_type=jnp.float32) + w["dec_mlp_b2"]
    queries = _layernorm(queries + m, w["dec_ln_g"][2], w["dec_ln_b"][2])
    # cross attention: image -> tokens (V = queries without PE)
    q_in = queries + qpe
    k_in = keys + kpe
    keys = keys + dec_attn(2, k_in, q_in, queries)
    keys = _layernorm(keys, w["dec_ln_g"][3], w["dec_ln_b"][3])
    # final token -> image attention
    q_in = queries + qpe
    k_in = keys + kpe
    queries = queries + dec_attn(3, q_in, k_in, keys)
    queries = _layernorm(queries, w["dec_ln_g"][4], w["dec_ln_b"][4])

    # ---------------- hypernetwork MLP on the mask token ----------------------
    mask_tok = queries[1:2, :]                                # (1, E)
    hh = jnp.maximum(jnp.dot(mask_tok, w["hyp_w1"],
                             preferred_element_type=jnp.float32) + w["hyp_b1"], 0.0)
    hh = jnp.maximum(jnp.dot(hh, w["hyp_w2"],
                             preferred_element_type=jnp.float32) + w["hyp_b2"], 0.0)
    # last layer pre-expanded onto the (X, c2, subpix) lane layout of the upscaler
    hyp_row = jnp.dot(hh, w["hyp_w3big"],
                      preferred_element_type=jnp.float32) + w["hyp_b3big"]   # (1, 128)

    # ---------------- upscaling path (ConvT1 -> gelu -> ConvT2 -> gelu) -------
    # ConvT1 (k=2, s=2) in token-major layout: rows t=(y,x), cols (c1,dy,dx)
    v1 = jnp.dot(keys, w["w1cmp"], preferred_element_type=jnp.float32) + w["b1c"]
    g1 = jax.nn.gelu(v1)                                      # (16, 32)

    # pixel-shuffle #1 folded into constant matmuls: move x from rows to lanes
    # a1: rows y (4), cols x*32 + (c1,dy,dx)  -> (4, 128)
    a1 = jnp.zeros((FEAT, FEAT * C1 * 4), jnp.float32)
    for xi in range(FEAT):
        gx = jnp.dot(w["selx"][xi], g1, preferred_element_type=jnp.float32)   # (4, 32)
        a1 = a1 + jnp.dot(gx, w["cpx"][xi], preferred_element_type=jnp.float32)

    # ConvT2 (k=2, s=2): dy moves from lanes to rows via 2-term decomposition
    r0 = jnp.dot(a1, w["w2r"][0], preferred_element_type=jnp.float32)         # (4, 128)
    r1 = jnp.dot(a1, w["w2r"][1], preferred_element_type=jnp.float32)
    u2 = (jnp.dot(w["pdy"][0], r0, preferred_element_type=jnp.float32)
          + jnp.dot(w["pdy"][1], r1, preferred_element_type=jnp.float32)
          + w["b2row"])                                       # (8, 128): rows Y, cols X*16+(c2,ey,ex)
    g2 = jax.nn.gelu(u2)

    # hypernetwork-weighted channel reduction -> true (16,16) low-res mask
    gh = g2 * hyp_row                                         # (8, 128)
    q0 = jnp.dot(gh, w["se"][0], preferred_element_type=jnp.float32)          # (8, 16)
    q1 = jnp.dot(gh, w["se"][1], preferred_element_type=jnp.float32)
    lowres = (jnp.dot(w["pe2"][0], q0, preferred_element_type=jnp.float32)
              + jnp.dot(w["pe2"][1], q1, preferred_element_type=jnp.float32))  # (16, 16)

    # bilinear 16 -> 64 resize, packed lane-dense: row r holds image rows 2r, 2r+1
    t = jnp.dot(lowres, w["awt"], preferred_element_type=jnp.float32)          # (16, 64)
    half0 = jnp.dot(w["ahp"][0], t, preferred_element_type=jnp.float32)        # (32, 64)
    half1 = jnp.dot(w["ahp"][1], t, preferred_element_type=jnp.float32)
    out = (jnp.dot(half0, w["cph"][0], preferred_element_type=jnp.float32)
           + jnp.dot(half1, w["cph"][1], preferred_element_type=jnp.float32))  # (32, 128)
    out_ref[0] = out


# ----------------------------- BlockSpec helpers ------------------------------
def _full_spec(shape):
    nd = len(shape)
    return pl.BlockSpec(tuple(shape), lambda b, _nd=nd: (0,) * _nd)


def _batch_spec(shape):
    nd = len(shape)
    return pl.BlockSpec((1,) + tuple(shape[1:]),
                        lambda b, _nd=nd: (b,) + (0,) * (_nd - 1))


def _run_medsam_kernel(prep, patches, tokens):
    bn = patches.shape[0]
    weight_args = [prep[k] for k in _WEIGHT_ORDER]
    in_specs = ([_batch_spec(patches.shape), _batch_spec(tokens.shape)]
                + [_full_spec(a.shape) for a in weight_args])
    out_shape = jax.ShapeDtypeStruct((bn, IMG // 2, 2 * IMG), jnp.float32)
    return pl.pallas_call(
        _medsam_kernel,
        out_shape=out_shape,
        grid=(bn,),
        in_specs=in_specs,
        out_specs=_batch_spec((bn, IMG // 2, 2 * IMG)),
        compiler_params=pltpu.CompilerParams(dimension_semantics=("parallel",)),
    )(patches, tokens, *weight_args)


# ----------------------------- host-side constants ----------------------------
def _bilinear_matrix(out_size, in_size):
    """F.interpolate(mode='bilinear', align_corners=False) as a matrix."""
    A = np.zeros((out_size, in_size), dtype=np.float32)
    scale = in_size / out_size
    for i in range(out_size):
        real = max((i + 0.5) * scale - 0.5, 0.0)
        i0 = min(int(np.floor(real)), in_size - 1)
        i1 = min(i0 + 1, in_size - 1)
        w1 = real - i0
        A[i, i0] += 1.0 - w1
        A[i, i1] += w1
    return A


def prepare_params(params):
    """One-time preparation: fused layouts, bf16 casts, dense PE and all
    permutation / block-diag / bilinear constant matrices (hoisted out of forward)."""
    ie = params["image_encoder"]
    pe = params["prompt_encoder"]
    md = params["mask_decoder"]
    f32 = np.float32
    prep = {}

    # ---- image encoder ----
    prep["patch_w"] = ie["patch_w"].astype(jnp.bfloat16)     # bf16 MXU operand
    prep["patch_b"] = ie["patch_b"]
    prep["pos_embed"] = ie["pos_embed"]
    prep["enc_wqkv"] = ie["wqkv"]
    prep["enc_bqkv"] = ie["bqkv"]
    prep["enc_wo"] = ie["wo"]
    prep["enc_bo"] = ie["bo"]
    prep["enc_ln_g"] = ie["ln_g"]
    prep["enc_ln_b"] = ie["ln_b"]
    prep["enc_mlp_w1"] = ie["mlp_w1"]
    prep["enc_mlp_b1"] = ie["mlp_b1"]
    prep["enc_mlp_w2"] = ie["mlp_w2"]
    prep["enc_mlp_b2"] = ie["mlp_b2"]
    prep["neck_w"] = ie["neck_w"]
    prep["neck_b"] = ie["neck_b"]

    # ---- prompt encoder (frozen): dense positional encoding precomputed ----
    prep["no_mask_embed"] = pe["no_mask_embed"]
    prep["pe_gauss"] = pe["pe_gauss"]
    prep["point_embed"] = pe["point_embed"]
    gauss = np.asarray(pe["pe_gauss"], f32)                  # (2, E/2)
    ys = (np.arange(FEAT, dtype=f32) + 0.5) / FEAT
    xs = (np.arange(FEAT, dtype=f32) + 0.5) / FEAT
    xg, yg = np.meshgrid(xs, ys, indexing="xy")
    coords = np.stack([xg, yg], axis=-1).reshape(N_TOK, 2)
    proj = (2.0 * np.pi) * ((2.0 * coords - 1.0) @ gauss)
    prep["dense_pe"] = jnp.asarray(
        np.concatenate([np.sin(proj), np.cos(proj)], axis=-1).astype(f32))

    # ---- mask decoder transformer ----
    prep["dec_wqkv"] = md["attn_wqkv"]
    prep["dec_bqkv"] = md["attn_bqkv"]
    prep["dec_wo"] = md["attn_wo"]
    prep["dec_bo"] = md["attn_bo"]
    prep["dec_ln_g"] = md["ln_g"]
    prep["dec_ln_b"] = md["ln_b"]
    prep["dec_mlp_w1"] = md["mlp_w1"]
    prep["dec_mlp_b1"] = md["mlp_b1"]
    prep["dec_mlp_w2"] = md["mlp_w2"]
    prep["dec_mlp_b2"] = md["mlp_b2"]
    prep["output_tokens"] = jnp.concatenate([md["iou_token"], md["mask_token"]], axis=0)

    # ---- hypernetwork: expand last layer to the (X, c2, ey, ex) lane layout ----
    prep["hyp_w1"] = md["hyp_w1"]
    prep["hyp_b1"] = md["hyp_b1"]
    prep["hyp_w2"] = md["hyp_w2"]
    prep["hyp_b2"] = md["hyp_b2"]
    hw3 = np.asarray(md["hyp_w3"], f32)                      # (E, C2)
    hb3 = np.asarray(md["hyp_b3"], f32)                      # (1, C2)
    hw3big = np.zeros((EMBED, 128), f32)
    hb3big = np.zeros((1, 128), f32)
    for xx in range(H2):
        for c2 in range(C2):
            for j in range(4):
                col = xx * 16 + c2 * 4 + j
                hw3big[:, col] = hw3[:, c2]
                hb3big[0, col] = hb3[0, c2]
    prep["hyp_w3big"] = jnp.asarray(hw3big)
    prep["hyp_b3big"] = jnp.asarray(hb3big)

    # ---- upscaling constants ----
    up1_w = np.asarray(md["up1_w"], f32)                     # (E, C1, 2, 2)
    up1_b = np.asarray(md["up1_b"], f32)                     # (C1,)
    up2_w = np.asarray(md["up2_w"], f32)                     # (C1, C2, 2, 2)
    up2_b = np.asarray(md["up2_b"], f32)                     # (C2,)

    # ConvT1 as a token-major matmul: cols = c1*4 + dy*2 + dx
    w1cmp = np.zeros((EMBED, C1 * 4), f32)
    b1c = np.zeros((1, C1 * 4), f32)
    for c1 in range(C1):
        for dy in range(2):
            for dx in range(2):
                col = c1 * 4 + dy * 2 + dx
                w1cmp[:, col] = up1_w[:, c1, dy, dx]
                b1c[0, col] = up1_b[c1]

    # row selector per x (pixel-shuffle #1, part 1): selx[x][y, y*4+x] = 1
    selx = np.zeros((FEAT, FEAT, N_TOK), f32)
    for x in range(FEAT):
        for y in range(FEAT):
            selx[x, y, y * FEAT + x] = 1.0
    # lane placement per x (pixel-shuffle #1, part 2)
    cpx = np.zeros((FEAT, C1 * 4, FEAT * C1 * 4), f32)
    for x in range(FEAT):
        for j in range(C1 * 4):
            cpx[x, j, x * C1 * 4 + j] = 1.0

    # ConvT2, decomposed over dy: cols of a1 = x*32 + c1*4 + dy*2 + dx,
    # cols of result = X*16 + c2*4 + ey*2 + ex with X = 2x + dx
    w2r = np.zeros((2, 128, 128), f32)
    for dy in range(2):
        for x in range(FEAT):
            for c1 in range(C1):
                for dx in range(2):
                    row = x * 32 + c1 * 4 + dy * 2 + dx
                    xc = 2 * x + dx
                    for c2 in range(C2):
                        for ey in range(2):
                            for ex in range(2):
                                w2r[dy, row, xc * 16 + c2 * 4 + ey * 2 + ex] = \
                                    up2_w[c1, c2, ey, ex]
    pdy = np.zeros((2, H2, FEAT), f32)                       # row interleave by dy
    for dy in range(2):
        for y in range(FEAT):
            pdy[dy, 2 * y + dy, y] = 1.0
    b2row = np.zeros((1, 128), f32)
    for xx in range(H2):
        for c2 in range(C2):
            for j in range(4):
                b2row[0, xx * 16 + c2 * 4 + j] = up2_b[c2]

    # pixel-shuffle #2 + c2 reduction: cols X*16+c2*4+2ey+ex -> low-res column 2X+ex
    se = np.zeros((2, 128, H4), f32)
    for ey in range(2):
        for xx in range(H2):
            for c2 in range(C2):
                for ex in range(2):
                    se[ey, xx * 16 + c2 * 4 + ey * 2 + ex, 2 * xx + ex] = 1.0
    pe2 = np.zeros((2, H4, H2), f32)                         # row interleave by ey
    for ey in range(2):
        for yy in range(H2):
            pe2[ey, 2 * yy + ey, yy] = 1.0

    # bilinear resize matrices; Ah split by output-row parity for a lane-dense slab
    A = _bilinear_matrix(IMG, H4)                            # (64, 16)
    awt = A.T.copy()                                         # (16, 64)
    ahp = np.stack([A[0::2, :], A[1::2, :]], axis=0)         # (2, 32, 16)
    cph = np.zeros((2, IMG, 2 * IMG), f32)                   # place halves at lanes 0/64
    for p in range(2):
        for c in range(IMG):
            cph[p, c, p * IMG + c] = 1.0

    for name, arr in (("w1cmp", w1cmp), ("b1c", b1c), ("selx", selx), ("cpx", cpx),
                      ("w2r", w2r), ("pdy", pdy), ("b2row", b2row), ("se", se),
                      ("pe2", pe2), ("awt", awt), ("ahp", ahp), ("cph", cph)):
        prep[name] = jnp.asarray(arr)
    return prep


# ----------------------------------- forward ----------------------------------
def medsam_forward(prep, image, box, text_input=None):
    """MedSAM.forward(image, box, text_input) with use_clip=False."""
    bn = image.shape[0]

    # patchify (pure layout, single fused XLA copy) + bf16 cast for the MXU
    patches = image.reshape(bn, IN_CH, FEAT, PATCH, FEAT, PATCH)
    patches = patches.transpose(0, 2, 4, 1, 3, 5).reshape(bn, N_TOK, PATCH_DIM)
    patches = patches.astype(jnp.bfloat16)

    # frozen prompt encoder: box-corner Fourier embeddings (tiny, stays in XLA)
    corners = box.reshape(bn, 2, 2) + 0.5
    corners = corners / jnp.array([image.shape[3], image.shape[2]], jnp.float32)
    coords = 2.0 * corners - 1.0
    proj = (2.0 * jnp.pi) * jnp.matmul(coords, prep["pe_gauss"])
    sparse = jnp.concatenate([jnp.sin(proj), jnp.cos(proj)], axis=-1) \
        + prep["point_embed"][None]
    tokens = jnp.concatenate(
        [jnp.broadcast_to(prep["output_tokens"][None], (bn, 2, EMBED)), sparse], axis=1)

    # single fused kernel: image encoder -> two-way transformer -> hypernet ->
    # upscaling -> bilinear resize; output is a lane-dense (32, 128) slab per element
    masks = _run_medsam_kernel(prep, patches, tokens)        # (B, 32, 128)
    return masks.reshape(bn, 1, IMG, IMG)


# ----------------------------- parameter init ---------------------------------
def init_params(key):
    keys = iter(jax.random.split(key, 64))

    def w(shape, scale=0.02):
        return jax.random.normal(next(keys), shape, jnp.float32) * scale

    ie = dict(
        patch_w=w((PATCH_DIM, EMBED)),
        patch_b=jnp.zeros((1, EMBED), jnp.float32),
        pos_embed=w((N_TOK, EMBED)),
        wqkv=w((EMBED, 3 * EMBED)),                  # fused q|k|v
        bqkv=jnp.zeros((1, 3 * EMBED), jnp.float32),
        wo=w((EMBED, EMBED)),
        bo=jnp.zeros((1, EMBED), jnp.float32),
        ln_g=jnp.ones((3, 1, EMBED), jnp.float32),   # [ln1, ln2, neck_ln]
        ln_b=jnp.zeros((3, 1, EMBED), jnp.float32),
        mlp_w1=w((EMBED, MLP_HIDDEN)),
        mlp_b1=jnp.zeros((1, MLP_HIDDEN), jnp.float32),
        mlp_w2=w((MLP_HIDDEN, EMBED)),
        mlp_b2=jnp.zeros((1, EMBED), jnp.float32),
        neck_w=w((EMBED, EMBED)),
        neck_b=jnp.zeros((1, EMBED), jnp.float32),
    )

    pe = dict(
        pe_gauss=jax.random.normal(next(keys), (2, EMBED // 2), jnp.float32),
        point_embed=w((2, EMBED)),
        no_mask_embed=w((1, EMBED)),
    )

    md = dict(
        iou_token=w((1, EMBED)),
        mask_token=w((1, EMBED)),
        # stacked over [self_attn, cross_t2i, cross_i2t, final_attn] x [q, k, v]
        attn_wqkv=w((4, 3, EMBED, EMBED)),
        attn_bqkv=jnp.zeros((4, 3, 1, EMBED), jnp.float32),
        attn_wo=w((4, EMBED, EMBED)),
        attn_bo=jnp.zeros((4, 1, EMBED), jnp.float32),
        ln_g=jnp.ones((5, 1, EMBED), jnp.float32),
        ln_b=jnp.zeros((5, 1, EMBED), jnp.float32),
        mlp_w1=w((EMBED, MLP_HIDDEN)),
        mlp_b1=jnp.zeros((1, MLP_HIDDEN), jnp.float32),
        mlp_w2=w((MLP_HIDDEN, EMBED)),
        mlp_b2=jnp.zeros((1, EMBED), jnp.float32),
        hyp_w1=w((EMBED, EMBED)), hyp_b1=jnp.zeros((1, EMBED), jnp.float32),
        hyp_w2=w((EMBED, EMBED)), hyp_b2=jnp.zeros((1, EMBED), jnp.float32),
        hyp_w3=w((EMBED, C2)), hyp_b3=jnp.zeros((1, C2), jnp.float32),
        # ConvTranspose2d-style upscaling weights (k=2, s=2)
        up1_w=w((EMBED, C1, 2, 2)), up1_b=jnp.zeros((C1,), jnp.float32),
        up2_w=w((C1, C2, 2, 2)), up2_b=jnp.zeros((C2,), jnp.float32),
    )

    return {"image_encoder": ie, "prompt_encoder": pe, "mask_decoder": md}


# ----------------------------------- main --------------------------------------
if __name__ == "__main__":
    key = jax.random.PRNGKey(0)
    k_img, k_param = jax.random.split(key)
    image = jax.random.uniform(k_img, (B, IN_CH, IMG, IMG), jnp.float32)
    box = jnp.asarray([[4.0, 4.0, 40.0, 40.0],
                       [8.0, 8.0, 56.0, 56.0]], jnp.float32)     # (B, 4) xyxy
    text_input = None   # unused: use_clip=False

    params = init_params(k_param)
    prep = prepare_params(params)          # one-time: constants / layouts / dense PE
    fwd = jax.jit(medsam_forward)
    ori_res_masks = fwd(prep, image, box)
    ori_res_masks = jax.block_until_ready(ori_res_masks)

    assert ori_res_masks.shape == (B, 1, IMG, IMG)
    assert ori_res_masks.dtype == jnp.float32
    assert bool(jnp.all(jnp.isfinite(ori_res_masks)))
    print("KERNEL_OK")
</pallas_src>

<mosaic_0001>
module attributes {stable_mosaic.version = 11 : i64} {
  func.func @_medsam_kernel(%arg0: i32, %arg1: memref<1x16x768xbf16, #tpu.memory_space<vmem>>, %arg2: memref<1x4x32xf32, #tpu.memory_space<vmem>>, %arg3: memref<768x32xbf16, #tpu.memory_space<vmem>>, %arg4: memref<1x32xf32, #tpu.memory_space<vmem>>, %arg5: memref<16x32xf32, #tpu.memory_space<vmem>>, %arg6: memref<32x96xf32, #tpu.memory_space<vmem>>, %arg7: memref<1x96xf32, #tpu.memory_space<vmem>>, %arg8: memref<32x32xf32, #tpu.memory_space<vmem>>, %arg9: memref<1x32xf32, #tpu.memory_space<vmem>>, %arg10: memref<3x1x32xf32, #tpu.memory_space<vmem>>, %arg11: memref<3x1x32xf32, #tpu.memory_space<vmem>>, %arg12: memref<32x64xf32, #tpu.memory_space<vmem>>, %arg13: memref<1x64xf32, #tpu.memory_space<vmem>>, %arg14: memref<64x32xf32, #tpu.memory_space<vmem>>, %arg15: memref<1x32xf32, #tpu.memory_space<vmem>>, %arg16: memref<32x32xf32, #tpu.memory_space<vmem>>, %arg17: memref<1x32xf32, #tpu.memory_space<vmem>>, %arg18: memref<1x32xf32, #tpu.memory_space<vmem>>, %arg19: memref<16x32xf32, #tpu.memory_space<vmem>>, %arg20: memref<4x3x32x32xf32, #tpu.memory_space<vmem>>, %arg21: memref<4x3x1x32xf32, #tpu.memory_space<vmem>>, %arg22: memref<4x32x32xf32, #tpu.memory_space<vmem>>, %arg23: memref<4x1x32xf32, #tpu.memory_space<vmem>>, %arg24: memref<5x1x32xf32, #tpu.memory_space<vmem>>, %arg25: memref<5x1x32xf32, #tpu.memory_space<vmem>>, %arg26: memref<32x64xf32, #tpu.memory_space<vmem>>, %arg27: memref<1x64xf32, #tpu.memory_space<vmem>>, %arg28: memref<64x32xf32, #tpu.memory_space<vmem>>, %arg29: memref<1x32xf32, #tpu.memory_space<vmem>>, %arg30: memref<32x32xf32, #tpu.memory_space<vmem>>, %arg31: memref<1x32xf32, #tpu.memory_space<vmem>>, %arg32: memref<32x32xf32, #tpu.memory_space<vmem>>, %arg33: memref<1x32xf32, #tpu.memory_space<vmem>>, %arg34: memref<32x128xf32, #tpu.memory_space<vmem>>, %arg35: memref<1x128xf32, #tpu.memory_space<vmem>>, %arg36: memref<32x32xf32, #tpu.memory_space<vmem>>, %arg37: memref<1x32xf32, #tpu.memory_space<vmem>>, %arg38: memref<4x4x16xf32, #tpu.memory_space<vmem>>, %arg39: memref<4x32x128xf32, #tpu.memory_space<vmem>>, %arg40: memref<2x128x128xf32, #tpu.memory_space<vmem>>, %arg41: memref<2x8x4xf32, #tpu.memory_space<vmem>>, %arg42: memref<1x128xf32, #tpu.memory_space<vmem>>, %arg43: memref<2x128x16xf32, #tpu.memory_space<vmem>>, %arg44: memref<2x16x8xf32, #tpu.memory_space<vmem>>, %arg45: memref<16x64xf32, #tpu.memory_space<vmem>>, %arg46: memref<2x32x16xf32, #tpu.memory_space<vmem>>, %arg47: memref<2x64x128xf32, #tpu.memory_space<vmem>>, %arg48: memref<1x32x128xf32, #tpu.memory_space<vmem>>) attributes {dimension_semantics = [#tpu.dimension_semantics<parallel>], iteration_bounds = array<i64: 2>, scalar_prefetch = 0 : i64, scratch_operands = 0 : i64, tpu.core_type = #tpu.core_type<tc>, window_params = [{transform_indices = @transform_0, window_bounds = array<i64: 1, 16, 768>}, {transform_indices = @transform_1, window_bounds = array<i64: 1, 4, 32>}, {pipeline_mode = #tpu.pipeline_mode<synchronous>, transform_indices = @transform_2, window_bounds = array<i64: 768, 32>}, {pipeline_mode = #tpu.pipeline_mode<synchronous>, transform_indices = @transform_3, window_bounds = array<i64: 1, 32>}, {pipeline_mode = #tpu.pipeline_mode<synchronous>, transform_indices = @transform_4, window_bounds = array<i64: 16, 32>}, {pipeline_mode = #tpu.pipeline_mode<synchronous>, transform_indices = @transform_5, window_bounds = array<i64: 32, 96>}, {pipeline_mode = #tpu.pipeline_mode<synchronous>, transform_indices = @transform_6, window_bounds = array<i64: 1, 96>}, {pipeline_mode = #tpu.pipeline_mode<synchronous>, transform_indices = @transform_7, window_bounds = array<i64: 32, 32>}, {pipeline_mode = #tpu.pipeline_mode<synchronous>, transform_indices = @transform_8, window_bounds = array<i64: 1, 32>}, {pipeline_mode = #tpu.pipeline_mode<synchronous>, transform_indices = @transform_9, window_bounds = array<i64: 3, 1, 32>}, {pipeline_mode = #tpu.pipeline_mode<synchronous>, transform_indices = @transform_10, window_bounds = array<i64: 3, 1, 32>}, {pipeline_mode = #tpu.pipeline_mode<synchronous>, transform_indices = @transform_11, window_bounds = array<i64: 32, 64>}, {pipeline_mode = #tpu.pipeline_mode<synchronous>, transform_indices = @transform_12, window_bounds = array<i64: 1, 64>}, {pipeline_mode = #tpu.pipeline_mode<synchronous>, transform_indices = @transform_13, window_bounds = array<i64: 64, 32>}, {pipeline_mode = #tpu.pipeline_mode<synchronous>, transform_indices = @transform_14, window_bounds = array<i64: 1, 32>}, {pipeline_mode = #tpu.pipeline_mode<synchronous>, transform_indices = @transform_15, window_bounds = array<i64: 32, 32>}, {pipeline_mode = #tpu.pipeline_mode<synchronous>, transform_indices = @transform_16, window_bounds = array<i64: 1, 32>}, {pipeline_mode = #tpu.pipeline_mode<synchronous>, transform_indices = @transform_17, window_bounds = array<i64: 1, 32>}, {pipeline_mode = #tpu.pipeline_mode<synchronous>, transform_indices = @transform_18, window_bounds = array<i64: 16, 32>}, {pipeline_mode = #tpu.pipeline_mode<synchronous>, transform_indices = @transform_19, window_bounds = array<i64: 4, 3, 32, 32>}, {pipeline_mode = #tpu.pipeline_mode<synchronous>, transform_indices = @transform_20, window_bounds = array<i64: 4, 3, 1, 32>}, {pipeline_mode = #tpu.pipeline_mode<synchronous>, transform_indices = @transform_21, window_bounds = array<i64: 4, 32, 32>}, {pipeline_mode = #tpu.pipeline_mode<synchronous>, transform_indices = @transform_22, window_bounds = array<i64: 4, 1, 32>}, {pipeline_mode = #tpu.pipeline_mode<synchronous>, transform_indices = @transform_23, window_bounds = array<i64: 5, 1, 32>}, {pipeline_mode = #tpu.pipeline_mode<synchronous>, transform_indices = @transform_24, window_bounds = array<i64: 5, 1, 32>}, {pipeline_mode = #tpu.pipeline_mode<synchronous>, transform_indices = @transform_25, window_bounds = array<i64: 32, 64>}, {pipeline_mode = #tpu.pipeline_mode<synchronous>, transform_indices = @transform_26, window_bounds = array<i64: 1, 64>}, {pipeline_mode = #tpu.pipeline_mode<synchronous>, transform_indices = @transform_27, window_bounds = array<i64: 64, 32>}, {pipeline_mode = #tpu.pipeline_mode<synchronous>, transform_indices = @transform_28, window_bounds = array<i64: 1, 32>}, {pipeline_mode = #tpu.pipeline_mode<synchronous>, transform_indices = @transform_29, window_bounds = array<i64: 32, 32>}, {pipeline_mode = #tpu.pipeline_mode<synchronous>, transform_indices = @transform_30, window_bounds = array<i64: 1, 32>}, {pipeline_mode = #tpu.pipeline_mode<synchronous>, transform_indices = @transform_31, window_bounds = array<i64: 32, 32>}, {pipeline_mode = #tpu.pipeline_mode<synchronous>, transform_indices = @transform_32, window_bounds = array<i64: 1, 32>}, {pipeline_mode = #tpu.pipeline_mode<synchronous>, transform_indices = @transform_33, window_bounds = array<i64: 32, 128>}, {pipeline_mode = #tpu.pipeline_mode<synchronous>, transform_indices = @transform_34, window_bounds = array<i64: 1, 128>}, {pipeline_mode = #tpu.pipeline_mode<synchronous>, transform_indices = @transform_35, window_bounds = array<i64: 32, 32>}, {pipeline_mode = #tpu.pipeline_mode<synchronous>, transform_indices = @transform_36, window_bounds = array<i64: 1, 32>}, {pipeline_mode = #tpu.pipeline_mode<synchronous>, transform_indices = @transform_37, window_bounds = array<i64: 4, 4, 16>}, {pipeline_mode = #tpu.pipeline_mode<synchronous>, transform_indices = @transform_38, window_bounds = array<i64: 4, 32, 128>}, {pipeline_mode = #tpu.pipeline_mode<synchronous>, transform_indices = @transform_39, window_bounds = array<i64: 2, 128, 128>}, {pipeline_mode = #tpu.pipeline_mode<synchronous>, transform_indices = @transform_40, window_bounds = array<i64: 2, 8, 4>}, {pipeline_mode = #tpu.pipeline_mode<synchronous>, transform_indices = @transform_41, window_bounds = array<i64: 1, 128>}, {pipeline_mode = #tpu.pipeline_mode<synchronous>, transform_indices = @transform_42, window_bounds = array<i64: 2, 128, 16>}, {pipeline_mode = #tpu.pipeline_mode<synchronous>, transform_indices = @transform_43, window_bounds = array<i64: 2, 16, 8>}, {pipeline_mode = #tpu.pipeline_mode<synchronous>, transform_indices = @transform_44, window_bounds = array<i64: 16, 64>}, {pipeline_mode = #tpu.pipeline_mode<synchronous>, transform_indices = @transform_45, window_bounds = array<i64: 2, 32, 16>}, {pipeline_mode = #tpu.pipeline_mode<synchronous>, transform_indices = @transform_46, window_bounds = array<i64: 2, 64, 128>}, {transform_indices = @transform_47, window_bounds = array<i64: 1, 32, 128>}]} {
    %c0 = arith.constant 0 : index
    %c0_0 = arith.constant 0 : index
    %0 = vector.load %arg3[%c0, %c0_0] : memref<768x32xbf16, #tpu.memory_space<vmem>>, vector<768x32xbf16>
    %c0_1 = arith.constant 0 : index
    %c0_2 = arith.constant 0 : index
    %1 = vector.load %arg4[%c0_1, %c0_2] : memref<1x32xf32, #tpu.memory_space<vmem>>, vector<1x32xf32>
    %c0_3 = arith.constant 0 : index
    %c0_4 = arith.constant 0 : index
    %2 = vector.load %arg5[%c0_3, %c0_4] : memref<16x32xf32, #tpu.memory_space<vmem>>, vector<16x32xf32>
    %c0_5 = arith.constant 0 : index
    %c0_6 = arith.constant 0 : index
    %3 = vector.load %arg6[%c0_5, %c0_6] : memref<32x96xf32, #tpu.memory_space<vmem>>, vector<32x96xf32>
    %c0_7 = arith.constant 0 : index
    %c0_8 = arith.constant 0 : index
    %4 = vector.load %arg7[%c0_7, %c0_8] : memref<1x96xf32, #tpu.memory_space<vmem>>, vector<1x96xf32>
    %c0_9 = arith.constant 0 : index
    %c0_10 = arith.constant 0 : index
    %5 = vector.load %arg8[%c0_9, %c0_10] : memref<32x32xf32, #tpu.memory_space<vmem>>, vector<32x32xf32>
    %c0_11 = arith.constant 0 : index
    %c0_12 = arith.constant 0 : index
    %6 = vector.load %arg9[%c0_11, %c0_12] : memref<1x32xf32, #tpu.memory_space<vmem>>, vector<1x32xf32>
    %c0_13 = arith.constant 0 : index
    %c0_14 = arith.constant 0 : index
    %c0_15 = arith.constant 0 : index
    %7 = vector.load %arg10[%c0_13, %c0_14, %c0_15] : memref<3x1x32xf32, #tpu.memory_space<vmem>>, vector<3x1x32xf32>
    %c0_16 = arith.constant 0 : index
    %c0_17 = arith.constant 0 : index
    %c0_18 = arith.constant 0 : index
    %8 = vector.load %arg11[%c0_16, %c0_17, %c0_18] : memref<3x1x32xf32, #tpu.memory_space<vmem>>, vector<3x1x32xf32>
    %c0_19 = arith.constant 0 : index
    %c0_20 = arith.constant 0 : index
    %9 = vector.load %arg12[%c0_19, %c0_20] : memref<32x64xf32, #tpu.memory_space<vmem>>, vector<32x64xf32>
    %c0_21 = arith.constant 0 : index
    %c0_22 = arith.constant 0 : index
    %10 = vector.load %arg13[%c0_21, %c0_22] : memref<1x64xf32, #tpu.memory_space<vmem>>, vector<1x64xf32>
    %c0_23 = arith.constant 0 : index
    %c0_24 = arith.constant 0 : index
    %11 = vector.load %arg14[%c0_23, %c0_24] : memref<64x32xf32, #tpu.memory_space<vmem>>, vector<64x32xf32>
    %c0_25 = arith.constant 0 : index
    %c0_26 = arith.constant 0 : index
    %12 = vector.load %arg15[%c0_25, %c0_26] : memref<1x32xf32, #tpu.memory_space<vmem>>, vector<1x32xf32>
    %c0_27 = arith.constant 0 : index
    %c0_28 = arith.constant 0 : index
    %13 = vector.load %arg16[%c0_27, %c0_28] : memref<32x32xf32, #tpu.memory_space<vmem>>, vector<32x32xf32>
    %c0_29 = arith.constant 0 : index
    %c0_30 = arith.constant 0 : index
    %14 = vector.load %arg17[%c0_29, %c0_30] : memref<1x32xf32, #tpu.memory_space<vmem>>, vector<1x32xf32>
    %c0_31 = arith.constant 0 : index
    %c0_32 = arith.constant 0 : index
    %15 = vector.load %arg18[%c0_31, %c0_32] : memref<1x32xf32, #tpu.memory_space<vmem>>, vector<1x32xf32>
    %c0_33 = arith.constant 0 : index
    %c0_34 = arith.constant 0 : index
    %16 = vector.load %arg19[%c0_33, %c0_34] : memref<16x32xf32, #tpu.memory_space<vmem>>, vector<16x32xf32>
    %c0_35 = arith.constant 0 : index
    %c0_36 = arith.constant 0 : index
    %c0_37 = arith.constant 0 : index
    %c0_38 = arith.constant 0 : index
    %17 = vector.load %arg20[%c0_35, %c0_36, %c0_37, %c0_38] : memref<4x3x32x32xf32, #tpu.memory_space<vmem>>, vector<4x3x32x32xf32>
    %c0_39 = arith.constant 0 : index
    %c0_40 = arith.constant 0 : index
    %c0_41 = arith.constant 0 : index
    %c0_42 = arith.constant 0 : index
    %18 = vector.load %arg21[%c0_39, %c0_40, %c0_41, %c0_42] : memref<4x3x1x32xf32, #tpu.memory_space<vmem>>, vector<4x3x1x32xf32>
    %c0_43 = arith.constant 0 : index
    %c0_44 = arith.constant 0 : index
    %c0_45 = arith.constant 0 : index
    %19 = vector.load %arg22[%c0_43, %c0_44, %c0_45] : memref<4x32x32xf32, #tpu.memory_space<vmem>>, vector<4x32x32xf32>
    %c0_46 = arith.constant 0 : index
    %c0_47 = arith.constant 0 : index
    %c0_48 = arith.constant 0 : index
    %20 = vector.load %arg23[%c0_46, %c0_47, %c0_48] : memref<4x1x32xf32, #tpu.memory_space<vmem>>, vector<4x1x32xf32>
    %c0_49 = arith.constant 0 : index
    %c0_50 = arith.constant 0 : index
    %c0_51 = arith.constant 0 : index
    %21 = vector.load %arg24[%c0_49, %c0_50, %c0_51] : memref<5x1x32xf32, #tpu.memory_space<vmem>>, vector<5x1x32xf32>
    %c0_52 = arith.constant 0 : index
    %c0_53 = arith.constant 0 : index
    %c0_54 = arith.constant 0 : index
    %22 = vector.load %arg25[%c0_52, %c0_53, %c0_54] : memref<5x1x32xf32, #tpu.memory_space<vmem>>, vector<5x1x32xf32>
    %c0_55 = arith.constant 0 : index
    %c0_56 = arith.constant 0 : index
    %23 = vector.load %arg26[%c0_55, %c0_56] : memref<32x64xf32, #tpu.memory_space<vmem>>, vector<32x64xf32>
    %c0_57 = arith.constant 0 : index
    %c0_58 = arith.constant 0 : index
    %24 = vector.load %arg27[%c0_57, %c0_58] : memref<1x64xf32, #tpu.memory_space<vmem>>, vector<1x64xf32>
    %c0_59 = arith.constant 0 : index
    %c0_60 = arith.constant 0 : index
    %25 = vector.load %arg28[%c0_59, %c0_60] : memref<64x32xf32, #tpu.memory_space<vmem>>, vector<64x32xf32>
    %c0_61 = arith.constant 0 : index
    %c0_62 = arith.constant 0 : index
    %26 = vector.load %arg29[%c0_61, %c0_62] : memref<1x32xf32, #tpu.memory_space<vmem>>, vector<1x32xf32>
    %c0_63 = arith.constant 0 : index
    %c0_64 = arith.constant 0 : index
    %27 = vector.load %arg30[%c0_63, %c0_64] : memref<32x32xf32, #tpu.memory_space<vmem>>, vector<32x32xf32>
    %c0_65 = arith.constant 0 : index
    %c0_66 = arith.constant 0 : index
    %28 = vector.load %arg31[%c0_65, %c0_66] : memref<1x32xf32, #tpu.memory_space<vmem>>, vector<1x32xf32>
    %c0_67 = arith.constant 0 : index
    %c0_68 = arith.constant 0 : index
    %29 = vector.load %arg32[%c0_67, %c0_68] : memref<32x32xf32, #tpu.memory_space<vmem>>, vector<32x32xf32>
    %c0_69 = arith.constant 0 : index
    %c0_70 = arith.constant 0 : index
    %30 = vector.load %arg33[%c0_69, %c0_70] : memref<1x32xf32, #tpu.memory_space<vmem>>, vector<1x32xf32>
    %c0_71 = arith.constant 0 : index
    %c0_72 = arith.constant 0 : index
    %31 = vector.load %arg34[%c0_71, %c0_72] : memref<32x128xf32, #tpu.memory_space<vmem>>, vector<32x128xf32>
    %c0_73 = arith.constant 0 : index
    %c0_74 = arith.constant 0 : index
    %32 = vector.load %arg35[%c0_73, %c0_74] : memref<1x128xf32, #tpu.memory_space<vmem>>, vector<1x128xf32>
    %c0_75 = arith.constant 0 : index
    %c0_76 = arith.constant 0 : index
    %33 = vector.load %arg36[%c0_75, %c0_76] : memref<32x32xf32, #tpu.memory_space<vmem>>, vector<32x32xf32>
    %c0_77 = arith.constant 0 : index
    %c0_78 = arith.constant 0 : index
    %34 = vector.load %arg37[%c0_77, %c0_78] : memref<1x32xf32, #tpu.memory_space<vmem>>, vector<1x32xf32>
    %c0_79 = arith.constant 0 : index
    %c0_80 = arith.constant 0 : index
    %c0_81 = arith.constant 0 : index
    %35 = vector.load %arg38[%c0_79, %c0_80, %c0_81] : memref<4x4x16xf32, #tpu.memory_space<vmem>>, vector<4x4x16xf32>
    %c0_82 = arith.constant 0 : index
    %c0_83 = arith.constant 0 : index
    %c0_84 = arith.constant 0 : index
    %36 = vector.load %arg39[%c0_82, %c0_83, %c0_84] : memref<4x32x128xf32, #tpu.memory_space<vmem>>, vector<4x32x128xf32>
    %c0_85 = arith.constant 0 : index
    %c0_86 = arith.constant 0 : index
    %c0_87 = arith.constant 0 : index
    %37 = vector.load %arg40[%c0_85, %c0_86, %c0_87] : memref<2x128x128xf32, #tpu.memory_space<vmem>>, vector<2x128x128xf32>
    %c0_88 = arith.constant 0 : index
    %c0_89 = arith.constant 0 : index
    %c0_90 = arith.constant 0 : index
    %38 = vector.load %arg41[%c0_88, %c0_89, %c0_90] : memref<2x8x4xf32, #tpu.memory_space<vmem>>, vector<2x8x4xf32>
    %c0_91 = arith.constant 0 : index
    %c0_92 = arith.constant 0 : index
    %39 = vector.load %arg42[%c0_91, %c0_92] : memref<1x128xf32, #tpu.memory_space<vmem>>, vector<1x128xf32>
    %c0_93 = arith.constant 0 : index
    %c0_94 = arith.constant 0 : index
    %c0_95 = arith.constant 0 : index
    %40 = vector.load %arg43[%c0_93, %c0_94, %c0_95] : memref<2x128x16xf32, #tpu.memory_space<vmem>>, vector<2x128x16xf32>
    %c0_96 = arith.constant 0 : index
    %c0_97 = arith.constant 0 : index
    %c0_98 = arith.constant 0 : index
    %41 = vector.load %arg44[%c0_96, %c0_97, %c0_98] : memref<2x16x8xf32, #tpu.memory_space<vmem>>, vector<2x16x8xf32>
    %c0_99 = arith.constant 0 : index
    %c0_100 = arith.constant 0 : index
    %42 = vector.load %arg45[%c0_99, %c0_100] : memref<16x64xf32, #tpu.memory_space<vmem>>, vector<16x64xf32>
    %c0_101 = arith.constant 0 : index
    %c0_102 = arith.constant 0 : index
    %c0_103 = arith.constant 0 : index
    %43 = vector.load %arg46[%c0_101, %c0_102, %c0_103] : memref<2x32x16xf32, #tpu.memory_space<vmem>>, vector<2x32x16xf32>
    %c0_104 = arith.constant 0 : index
    %c0_105 = arith.constant 0 : index
    %c0_106 = arith.constant 0 : index
    %44 = vector.load %arg47[%c0_104, %c0_105, %c0_106] : memref<2x64x128xf32, #tpu.memory_space<vmem>>, vector<2x64x128xf32>
    %45 = tpu.iota {dimensions = array<i32: 1>} : vector<1x32xi32>
    %c0_i32 = arith.constant 0 : i32
    %46 = vector.broadcast %c0_i32 : i32 to vector<1x32xi32>
    %47 = arith.cmpi sge, %45, %46 : vector<1x32xi32>
    %c8_i32 = arith.constant 8 : i32
    %48 = vector.broadcast %c8_i32 : i32 to vector<1x32xi32>
    %49 = arith.cmpi slt, %45, %48 : vector<1x32xi32>
    %50 = arith.andi %47, %49 : vector<1x32xi1>
    %51 = arith.extui %50 : vector<1x32xi1> to vector<1x32xi32>
    %52 = arith.sitofp %51 : vector<1x32xi32> to vector<1x32xf32>
    %c8_i32_107 = arith.constant 8 : i32
    %53 = vector.broadcast %c8_i32_107 : i32 to vector<1x32xi32>
    %54 = arith.cmpi sge, %45, %53 : vector<1x32xi32>
    %c16_i32 = arith.constant 16 : i32
    %55 = vector.broadcast %c16_i32 : i32 to vector<1x32xi32>
    %56 = arith.cmpi slt, %45, %55 : vector<1x32xi32>
    %57 = arith.andi %54, %56 : vector<1x32xi1>
    %58 = arith.extui %57 : vector<1x32xi1> to vector<1x32xi32>
    %59 = arith.sitofp %58 : vector<1x32xi32> to vector<1x32xf32>
    %c16_i32_108 = arith.constant 16 : i32
    %60 = vector.broadcast %c16_i32_108 : i32 to vector<1x32xi32>
    %61 = arith.cmpi sge, %45, %60 : vector<1x32xi32>
    %c24_i32 = arith.constant 24 : i32
    %62 = vector.broadcast %c24_i32 : i32 to vector<1x32xi32>
    %63 = arith.cmpi slt, %45, %62 : vector<1x32xi32>
    %64 = arith.andi %61, %63 : vector<1x32xi1>
    %65 = arith.extui %64 : vector<1x32xi1> to vector<1x32xi32>
    %66 = arith.sitofp %65 : vector<1x32xi32> to vector<1x32xf32>
    %c24_i32_109 = arith.constant 24 : i32
    %67 = vector.broadcast %c24_i32_109 : i32 to vector<1x32xi32>
    %68 = arith.cmpi sge, %45, %67 : vector<1x32xi32>
    %c32_i32 = arith.constant 32 : i32
    %69 = vector.broadcast %c32_i32 : i32 to vector<1x32xi32>
    %70 = arith.cmpi slt, %45, %69 : vector<1x32xi32>
    %71 = arith.andi %68, %70 : vector<1x32xi1>
    %72 = arith.extui %71 : vector<1x32xi1> to vector<1x32xi32>
    %73 = arith.sitofp %72 : vector<1x32xi32> to vector<1x32xf32>
    %c0_110 = arith.constant 0 : index
    %c0_111 = arith.constant 0 : index
    %c0_112 = arith.constant 0 : index
    %74 = vector.load %arg1[%c0_110, %c0_111, %c0_112] : memref<1x16x768xbf16, #tpu.memory_space<vmem>>, vector<1x16x768xbf16>
    %75 = vector.shape_cast %74 : vector<1x16x768xbf16> to vector<16x768xbf16>
    %cst = arith.constant dense<0.000000e+00> : vector<16x32xf32>
    %76 = tpu.matmul %75, %0, %cst {dimension_numbers = #tpu.dot_dimension_numbers<[1], [0], [0], [1], [0, 0, 1, 1], [], []>} : vector<16x768xbf16>, vector<768x32xbf16>, vector<16x32xf32> -> vector<16x32xf32>
    %77 = vector.broadcast %1 : vector<1x32xf32> to vector<16x32xf32>
    %78 = arith.addf %76, %77 : vector<16x32xf32>
    %79 = arith.addf %78, %2 : vector<16x32xf32>
    %80 = vector.extract_strided_slice %7 {offsets = [0, 0, 0], sizes = [1, 1, 32], strides = [1, 1, 1]} : vector<3x1x32xf32> to vector<1x1x32xf32>
    %81 = vector.shape_cast %80 : vector<1x1x32xf32> to vector<1x32xf32>
    %82 = vector.extract_strided_slice %8 {offsets = [0, 0, 0], sizes = [1, 1, 32], strides = [1, 1, 1]} : vector<3x1x32xf32> to vector<1x1x32xf32>
    %83 = vector.shape_cast %82 : vector<1x1x32xf32> to vector<1x32xf32>
    %cst_113 = arith.constant dense<0.000000e+00> : vector<16xf32>
    %84 = vector.multi_reduction <add>, %79, %cst_113 [1] : vector<16x32xf32> to vector<16xf32>
    %85 = vector.shape_cast %84 : vector<16xf32> to vector<16x1xf32>
    %cst_114 = arith.constant 3.200000e+01 : f32
    %86 = vector.broadcast %cst_114 : f32 to vector<16x1xf32>
    %87 = arith.divf %85, %86 : vector<16x1xf32>
    %88 = vector.broadcast %87 : vector<16x1xf32> to vector<16x32xf32>
    %89 = arith.subf %79, %88 : vector<16x32xf32>
    %90 = arith.mulf %89, %89 : vector<16x32xf32>
    %cst_115 = arith.constant dense<0.000000e+00> : vector<16xf32>
    %91 = vector.multi_reduction <add>, %90, %cst_115 [1] : vector<16x32xf32> to vector<16xf32>
    %92 = vector.shape_cast %91 : vector<16xf32> to vector<16x1xf32>
    %cst_116 = arith.constant 3.200000e+01 : f32
    %93 = vector.broadcast %cst_116 : f32 to vector<16x1xf32>
    %94 = arith.divf %92, %93 : vector<16x1xf32>
    %95 = vector.broadcast %87 : vector<16x1xf32> to vector<16x32xf32>
    %96 = arith.subf %79, %95 : vector<16x32xf32>
    %cst_117 = arith.constant 9.99999974E-6 : f32
    %97 = vector.broadcast %cst_117 : f32 to vector<16x1xf32>
    %98 = arith.addf %94, %97 : vector<16x1xf32>
    %99 = math.rsqrt %98 : vector<16x1xf32>
    %100 = vector.broadcast %99 : vector<16x1xf32> to vector<16x32xf32>
    %101 = arith.mulf %96, %100 : vector<16x32xf32>
    %102 = vector.broadcast %81 : vector<1x32xf32> to vector<16x32xf32>
    %103 = arith.mulf %101, %102 : vector<16x32xf32>
    %104 = vector.broadcast %83 : vector<1x32xf32> to vector<16x32xf32>
    %105 = arith.addf %103, %104 : vector<16x32xf32>
    %cst_118 = arith.constant dense<0.000000e+00> : vector<16x96xf32>
    %106 = tpu.matmul %105, %3, %cst_118 {dimension_numbers = #tpu.dot_dimension_numbers<[1], [0], [0], [1], [0, 0, 1, 1], [], []>} : vector<16x32xf32>, vector<32x96xf32>, vector<16x96xf32> -> vector<16x96xf32>
    %107 = vector.broadcast %4 : vector<1x96xf32> to vector<16x96xf32>
    %108 = arith.addf %106, %107 : vector<16x96xf32>
    %109 = vector.extract_strided_slice %108 {offsets = [0, 0], sizes = [16, 32], strides = [1, 1]} : vector<16x96xf32> to vector<16x32xf32>
    %110 = vector.extract_strided_slice %108 {offsets = [0, 32], sizes = [16, 32], strides = [1, 1]} : vector<16x96xf32> to vector<16x32xf32>
    %111 = vector.extract_strided_slice %108 {offsets = [0, 64], sizes = [16, 32], strides = [1, 1]} : vector<16x96xf32> to vector<16x32xf32>
    %cst_119 = arith.constant 0.000000e+00 : f32
    %112 = vector.broadcast %cst_119 : f32 to vector<16x32xf32>
    %113 = vector.broadcast %52 : vector<1x32xf32> to vector<16x32xf32>
    %114 = arith.mulf %110, %113 : vector<16x32xf32>
    %cst_120 = arith.constant dense<0.000000e+00> : vector<16x16xf32>
    %115 = tpu.matmul %109, %114, %cst_120 {dimension_numbers = #tpu.dot_dimension_numbers<[1], [1], [0], [0], [0, 0, 1, 0], [], []>} : vector<16x32xf32>, vector<16x32xf32>, vector<16x16xf32> -> vector<16x16xf32>
    %cst_121 = arith.constant 0.353553385 : f32
    %116 = vector.broadcast %cst_121 : f32 to vector<16x16xf32>
    %117 = arith.mulf %115, %116 : vector<16x16xf32>
    %cst_122 = arith.constant dense<0xFF800000> : vector<16xf32>
    %118 = vector.multi_reduction <maximumf>, %117, %cst_122 [1] : vector<16x16xf32> to vector<16xf32>
    %119 = vector.shape_cast %118 : vector<16xf32> to vector<16x1xf32>
    %120 = vector.broadcast %119 : vector<16x1xf32> to vector<16x16xf32>
    %121 = arith.subf %117, %120 : vector<16x16xf32>
    %122 = math.exp %121 : vector<16x16xf32>
    %cst_123 = arith.constant dense<0.000000e+00> : vector<16xf32>
    %123 = vector.multi_reduction <add>, %122, %cst_123 [1] : vector<16x16xf32> to vector<16xf32>
    %124 = vector.shape_cast %123 : vector<16xf32> to vector<16x1xf32>
    %125 = vector.broadcast %124 : vector<16x1xf32> to vector<16x16xf32>
    %126 = arith.divf %122, %125 : vector<16x16xf32>
    %127 = vector.broadcast %52 : vector<1x32xf32> to vector<16x32xf32>
    %128 = arith.mulf %111, %127 : vector<16x32xf32>
    %cst_124 = arith.constant dense<0.000000e+00> : vector<16x32xf32>
    %129 = tpu.matmul %126, %128, %cst_124 {dimension_numbers = #tpu.dot_dimension_numbers<[1], [0], [0], [1], [0, 0, 1, 1], [], []>} : vector<16x16xf32>, vector<16x32xf32>, vector<16x32xf32> -> vector<16x32xf32>
    %130 = arith.addf %112, %129 : vector<16x32xf32>
    %131 = vector.broadcast %59 : vector<1x32xf32> to vector<16x32xf32>
    %132 = arith.mulf %110, %131 : vector<16x32xf32>
    %cst_125 = arith.constant dense<0.000000e+00> : vector<16x16xf32>
    %133 = tpu.matmul %109, %132, %cst_125 {dimension_numbers = #tpu.dot_dimension_numbers<[1], [1], [0], [0], [0, 0, 1, 0], [], []>} : vector<16x32xf32>, vector<16x32xf32>, vector<16x16xf32> -> vector<16x16xf32>
    %cst_126 = arith.constant 0.353553385 : f32
    %134 = vector.broadcast %cst_126 : f32 to vector<16x16xf32>
    %135 = arith.mulf %133, %134 : vector<16x16xf32>
    %cst_127 = arith.constant dense<0xFF800000> : vector<16xf32>
    %136 = vector.multi_reduction <maximumf>, %135, %cst_127 [1] : vector<16x16xf32> to vector<16xf32>
    %137 = vector.shape_cast %136 : vector<16xf32> to vector<16x1xf32>
    %138 = vector.broadcast %137 : vector<16x1xf32> to vector<16x16xf32>
    %139 = arith.subf %135, %138 : vector<16x16xf32>
    %140 = math.exp %139 : vector<16x16xf32>
    %cst_128 = arith.constant dense<0.000000e+00> : vector<16xf32>
    %141 = vector.multi_reduction <add>, %140, %cst_128 [1] : vector<16x16xf32> to vector<16xf32>
    %142 = vector.shape_cast %141 : vector<16xf32> to vector<16x1xf32>
    %143 = vector.broadcast %142 : vector<16x1xf32> to vector<16x16xf32>
    %144 = arith.divf %140, %143 : vector<16x16xf32>
    %145 = vector.broadcast %59 : vector<1x32xf32> to vector<16x32xf32>
    %146 = arith.mulf %111, %145 : vector<16x32xf32>
    %cst_129 = arith.constant dense<0.000000e+00> : vector<16x32xf32>
    %147 = tpu.matmul %144, %146, %cst_129 {dimension_numbers = #tpu.dot_dimension_numbers<[1], [0], [0], [1], [0, 0, 1, 1], [], []>} : vector<16x16xf32>, vector<16x32xf32>, vector<16x32xf32> -> vector<16x32xf32>
    %148 = arith.addf %130, %147 : vector<16x32xf32>
    %149 = vector.broadcast %66 : vector<1x32xf32> to vector<16x32xf32>
    %150 = arith.mulf %110, %149 : vector<16x32xf32>
    %cst_130 = arith.constant dense<0.000000e+00> : vector<16x16xf32>
    %151 = tpu.matmul %109, %150, %cst_130 {dimension_numbers = #tpu.dot_dimension_numbers<[1], [1], [0], [0], [0, 0, 1, 0], [], []>} : vector<16x32xf32>, vector<16x32xf32>, vector<16x16xf32> -> vector<16x16xf32>
    %cst_131 = arith.constant 0.353553385 : f32
    %152 = vector.broadcast %cst_131 : f32 to vector<16x16xf32>
    %153 = arith.mulf %151, %152 : vector<16x16xf32>
    %cst_132 = arith.constant dense<0xFF800000> : vector<16xf32>
    %154 = vector.multi_reduction <maximumf>, %153, %cst_132 [1] : vector<16x16xf32> to vector<16xf32>
    %155 = vector.shape_cast %154 : vector<16xf32> to vector<16x1xf32>
    %156 = vector.broadcast %155 : vector<16x1xf32> to vector<16x16xf32>
    %157 = arith.subf %153, %156 : vector<16x16xf32>
    %158 = math.exp %157 : vector<16x16xf32>
    %cst_133 = arith.constant dense<0.000000e+00> : vector<16xf32>
    %159 = vector.multi_reduction <add>, %158, %cst_133 [1] : vector<16x16xf32> to vector<16xf32>
    %160 = vector.shape_cast %159 : vector<16xf32> to vector<16x1xf32>
    %161 = vector.broadcast %160 : vector<16x1xf32> to vector<16x16xf32>
    %162 = arith.divf %158, %161 : vector<16x16xf32>
    %163 = vector.broadcast %66 : vector<1x32xf32> to vector<16x32xf32>
    %164 = arith.mulf %111, %163 : vector<16x32xf32>
    %cst_134 = arith.constant dense<0.000000e+00> : vector<16x32xf32>
    %165 = tpu.matmul %162, %164, %cst_134 {dimension_numbers = #tpu.dot_dimension_numbers<[1], [0], [0], [1], [0, 0, 1, 1], [], []>} : vector<16x16xf32>, vector<16x32xf32>, vector<16x32xf32> -> vector<16x32xf32>
    %166 = arith.addf %148, %165 : vector<16x32xf32>
    %167 = vector.broadcast %73 : vector<1x32xf32> to vector<16x32xf32>
    %168 = arith.mulf %110, %167 : vector<16x32xf32>
    %cst_135 = arith.constant dense<0.000000e+00> : vector<16x16xf32>
    %169 = tpu.matmul %109, %168, %cst_135 {dimension_numbers = #tpu.dot_dimension_numbers<[1], [1], [0], [0], [0, 0, 1, 0], [], []>} : vector<16x32xf32>, vector<16x32xf32>, vector<16x16xf32> -> vector<16x16xf32>
    %cst_136 = arith.constant 0.353553385 : f32
    %170 = vector.broadcast %cst_136 : f32 to vector<16x16xf32>
    %171 = arith.mulf %169, %170 : vector<16x16xf32>
    %cst_137 = arith.constant dense<0xFF800000> : vector<16xf32>
    %172 = vector.multi_reduction <maximumf>, %171, %cst_137 [1] : vector<16x16xf32> to vector<16xf32>
    %173 = vector.shape_cast %172 : vector<16xf32> to vector<16x1xf32>
    %174 = vector.broadcast %173 : vector<16x1xf32> to vector<16x16xf32>
    %175 = arith.subf %171, %174 : vector<16x16xf32>
    %176 = math.exp %175 : vector<16x16xf32>
    %cst_138 = arith.constant dense<0.000000e+00> : vector<16xf32>
    %177 = vector.multi_reduction <add>, %176, %cst_138 [1] : vector<16x16xf32> to vector<16xf32>
    %178 = vector.shape_cast %177 : vector<16xf32> to vector<16x1xf32>
    %179 = vector.broadcast %178 : vector<16x1xf32> to vector<16x16xf32>
    %180 = arith.divf %176, %179 : vector<16x16xf32>
    %181 = vector.broadcast %73 : vector<1x32xf32> to vector<16x32xf32>
    %182 = arith.mulf %111, %181 : vector<16x32xf32>
    %cst_139 = arith.constant dense<0.000000e+00> : vector<16x32xf32>
    %183 = tpu.matmul %180, %182, %cst_139 {dimension_numbers = #tpu.dot_dimension_numbers<[1], [0], [0], [1], [0, 0, 1, 1], [], []>} : vector<16x16xf32>, vector<16x32xf32>, vector<16x32xf32> -> vector<16x32xf32>
    %184 = arith.addf %166, %183 : vector<16x32xf32>
    %cst_140 = arith.constant dense<0.000000e+00> : vector<16x32xf32>
    %185 = tpu.matmul %184, %5, %cst_140 {dimension_numbers = #tpu.dot_dimension_numbers<[1], [0], [0], [1], [0, 0, 1, 1], [], []>} : vector<16x32xf32>, vector<32x32xf32>, vector<16x32xf32> -> vector<16x32xf32>
    %186 = vector.broadcast %6 : vector<1x32xf32> to vector<16x32xf32>
    %187 = arith.addf %185, %186 : vector<16x32xf32>
    %188 = arith.addf %79, %187 : vector<16x32xf32>
    %189 = vector.extract_strided_slice %7 {offsets = [1, 0, 0], sizes = [1, 1, 32], strides = [1, 1, 1]} : vector<3x1x32xf32> to vector<1x1x32xf32>
    %190 = vector.shape_cast %189 : vector<1x1x32xf32> to vector<1x32xf32>
    %191 = vector.extract_strided_slice %8 {offsets = [1, 0, 0], sizes = [1, 1, 32], strides = [1, 1, 1]} : vector<3x1x32xf32> to vector<1x1x32xf32>
    %192 = vector.shape_cast %191 : vector<1x1x32xf32> to vector<1x32xf32>
    %cst_141 = arith.constant dense<0.000000e+00> : vector<16xf32>
    %193 = vector.multi_reduction <add>, %188, %cst_141 [1] : vector<16x32xf32> to vector<16xf32>
    %194 = vector.shape_cast %193 : vector<16xf32> to vector<16x1xf32>
    %cst_142 = arith.constant 3.200000e+01 : f32
    %195 = vector.broadcast %cst_142 : f32 to vector<16x1xf32>
    %196 = arith.divf %194, %195 : vector<16x1xf32>
    %197 = vector.broadcast %196 : vector<16x1xf32> to vector<16x32xf32>
    %198 = arith.subf %188, %197 : vector<16x32xf32>
    %199 = arith.mulf %198, %198 : vector<16x32xf32>
    %cst_143 = arith.constant dense<0.000000e+00> : vector<16xf32>
    %200 = vector.multi_reduction <add>, %199, %cst_143 [1] : vector<16x32xf32> to vector<16xf32>
    %201 = vector.shape_cast %200 : vector<16xf32> to vector<16x1xf32>
    %cst_144 = arith.constant 3.200000e+01 : f32
    %202 = vector.broadcast %cst_144 : f32 to vector<16x1xf32>
    %203 = arith.divf %201, %202 : vector<16x1xf32>
    %204 = vector.broadcast %196 : vector<16x1xf32> to vector<16x32xf32>
    %205 = arith.subf %188, %204 : vector<16x32xf32>
    %cst_145 = arith.constant 9.99999974E-6 : f32
    %206 = vector.broadcast %cst_145 : f32 to vector<16x1xf32>
    %207 = arith.addf %203, %206 : vector<16x1xf32>
    %208 = math.rsqrt %207 : vector<16x1xf32>
    %209 = vector.broadcast %208 : vector<16x1xf32> to vector<16x32xf32>
    %210 = arith.mulf %205, %209 : vector<16x32xf32>
    %211 = vector.broadcast %190 : vector<1x32xf32> to vector<16x32xf32>
    %212 = arith.mulf %210, %211 : vector<16x32xf32>
    %213 = vector.broadcast %192 : vector<1x32xf32> to vector<16x32xf32>
    %214 = arith.addf %212, %213 : vector<16x32xf32>
    %cst_146 = arith.constant dense<0.000000e+00> : vector<16x64xf32>
    %215 = tpu.matmul %214, %9, %cst_146 {dimension_numbers = #tpu.dot_dimension_numbers<[1], [0], [0], [1], [0, 0, 1, 1], [], []>} : vector<16x32xf32>, vector<32x64xf32>, vector<16x64xf32> -> vector<16x64xf32>
    %216 = vector.broadcast %10 : vector<1x64xf32> to vector<16x64xf32>
    %217 = arith.addf %215, %216 : vector<16x64xf32>
    %218 = arith.mulf %217, %217 : vector<16x64xf32>
    %219 = arith.mulf %217, %218 : vector<16x64xf32>
    %cst_147 = arith.constant 4.471500e-02 : f32
    %220 = vector.broadcast %cst_147 : f32 to vector<16x64xf32>
    %221 = arith.mulf %220, %219 : vector<16x64xf32>
    %222 = arith.addf %217, %221 : vector<16x64xf32>
    %cst_148 = arith.constant 0.797884583 : f32
    %223 = vector.broadcast %cst_148 : f32 to vector<16x64xf32>
    %224 = arith.mulf %223, %222 : vector<16x64xf32>
    %225 = math.tanh %224 : vector<16x64xf32>
    %cst_149 = arith.constant 1.000000e+00 : f32
    %226 = vector.broadcast %cst_149 : f32 to vector<16x64xf32>
    %227 = arith.addf %226, %225 : vector<16x64xf32>
    %cst_150 = arith.constant 5.000000e-01 : f32
    %228 = vector.broadcast %cst_150 : f32 to vector<16x64xf32>
    %229 = arith.mulf %228, %227 : vector<16x64xf32>
    %230 = arith.mulf %217, %229 : vector<16x64xf32>
    %cst_151 = arith.constant dense<0.000000e+00> : vector<16x32xf32>
    %231 = tpu.matmul %230, %11, %cst_151 {dimension_numbers = #tpu.dot_dimension_numbers<[1], [0], [0], [1], [0, 0, 1, 1], [], []>} : vector<16x64xf32>, vector<64x32xf32>, vector<16x32xf32> -> vector<16x32xf32>
    %232 = vector.broadcast %12 : vector<1x32xf32> to vector<16x32xf32>
    %233 = arith.addf %231, %232 : vector<16x32xf32>
    %234 = arith.addf %188, %233 : vector<16x32xf32>
    %cst_152 = arith.constant dense<0.000000e+00> : vector<16x32xf32>
    %235 = tpu.matmul %234, %13, %cst_152 {dimension_numbers = #tpu.dot_dimension_numbers<[1], [0], [0], [1], [0, 0, 1, 1], [], []>} : vector<16x32xf32>, vector<32x32xf32>, vector<16x32xf32> -> vector<16x32xf32>
    %236 = vector.broadcast %14 : vector<1x32xf32> to vector<16x32xf32>
    %237 = arith.addf %235, %236 : vector<16x32xf32>
    %238 = vector.extract_strided_slice %7 {offsets = [2, 0, 0], sizes = [1, 1, 32], strides = [1, 1, 1]} : vector<3x1x32xf32> to vector<1x1x32xf32>
    %239 = vector.shape_cast %238 : vector<1x1x32xf32> to vector<1x32xf32>
    %240 = vector.extract_strided_slice %8 {offsets = [2, 0, 0], sizes = [1, 1, 32], strides = [1, 1, 1]} : vector<3x1x32xf32> to vector<1x1x32xf32>
    %241 = vector.shape_cast %240 : vector<1x1x32xf32> to vector<1x32xf32>
    %cst_153 = arith.constant dense<0.000000e+00> : vector<16xf32>
    %242 = vector.multi_reduction <add>, %237, %cst_153 [1] : vector<16x32xf32> to vector<16xf32>
    %243 = vector.shape_cast %242 : vector<16xf32> to vector<16x1xf32>
    %cst_154 = arith.constant 3.200000e+01 : f32
    %244 = vector.broadcast %cst_154 : f32 to vector<16x1xf32>
    %245 = arith.divf %243, %244 : vector<16x1xf32>
    %246 = vector.broadcast %245 : vector<16x1xf32> to vector<16x32xf32>
    %247 = arith.subf %237, %246 : vector<16x32xf32>
    %248 = arith.mulf %247, %247 : vector<16x32xf32>
    %cst_155 = arith.constant dense<0.000000e+00> : vector<16xf32>
    %249 = vector.multi_reduction <add>, %248, %cst_155 [1] : vector<16x32xf32> to vector<16xf32>
    %250 = vector.shape_cast %249 : vector<16xf32> to vector<16x1xf32>
    %cst_156 = arith.constant 3.200000e+01 : f32
    %251 = vector.broadcast %cst_156 : f32 to vector<16x1xf32>
    %252 = arith.divf %250, %251 : vector<16x1xf32>
    %253 = vector.broadcast %245 : vector<16x1xf32> to vector<16x32xf32>
    %254 = arith.subf %237, %253 : vector<16x32xf32>
    %cst_157 = arith.constant 9.99999974E-6 : f32
    %255 = vector.broadcast %cst_157 : f32 to vector<16x1xf32>
    %256 = arith.addf %252, %255 : vector<16x1xf32>
    %257 = math.rsqrt %256 : vector<16x1xf32>
    %258 = vector.broadcast %257 : vector<16x1xf32> to vector<16x32xf32>
    %259 = arith.mulf %254, %258 : vector<16x32xf32>
    %260 = vector.broadcast %239 : vector<1x32xf32> to vector<16x32xf32>
    %261 = arith.mulf %259, %260 : vector<16x32xf32>
    %262 = vector.broadcast %241 : vector<1x32xf32> to vector<16x32xf32>
    %263 = arith.addf %261, %262 : vector<16x32xf32>
    %264 = vector.broadcast %15 : vector<1x32xf32> to vector<16x32xf32>
    %265 = arith.addf %263, %264 : vector<16x32xf32>
    %c0_158 = arith.constant 0 : index
    %c0_159 = arith.constant 0 : index
    %c0_160 = arith.constant 0 : index
    %266 = vector.load %arg2[%c0_158, %c0_159, %c0_160] : memref<1x4x32xf32, #tpu.memory_space<vmem>>, vector<1x4x32xf32>
    %267 = vector.shape_cast %266 : vector<1x4x32xf32> to vector<4x32xf32>
    %268 = vector.extract_strided_slice %17 {offsets = [0, 0, 0, 0], sizes = [1, 1, 32, 32], strides = [1, 1, 1, 1]} : vector<4x3x32x32xf32> to vector<1x1x32x32xf32>
    %269 = vector.shape_cast %268 : vector<1x1x32x32xf32> to vector<32x32xf32>
    %270 = vector.extract_strided_slice %17 {offsets = [0, 1, 0, 0], sizes = [1, 1, 32, 32], strides = [1, 1, 1, 1]} : vector<4x3x32x32xf32> to vector<1x1x32x32xf32>
    %271 = vector.shape_cast %270 : vector<1x1x32x32xf32> to vector<32x32xf32>
    %272 = vector.extract_strided_slice %17 {offsets = [0, 2, 0, 0], sizes = [1, 1, 32, 32], strides = [1, 1, 1, 1]} : vector<4x3x32x32xf32> to vector<1x1x32x32xf32>
    %273 = vector.shape_cast %272 : vector<1x1x32x32xf32> to vector<32x32xf32>
    %274 = vector.extract_strided_slice %18 {offsets = [0, 0, 0, 0], sizes = [1, 1, 1, 32], strides = [1, 1, 1, 1]} : vector<4x3x1x32xf32> to vector<1x1x1x32xf32>
    %275 = vector.shape_cast %274 : vector<1x1x1x32xf32> to vector<1x32xf32>
    %276 = vector.extract_strided_slice %18 {offsets = [0, 1, 0, 0], sizes = [1, 1, 1, 32], strides = [1, 1, 1, 1]} : vector<4x3x1x32xf32> to vector<1x1x1x32xf32>
    %277 = vector.shape_cast %276 : vector<1x1x1x32xf32> to vector<1x32xf32>
    %278 = vector.extract_strided_slice %18 {offsets = [0, 2, 0, 0], sizes = [1, 1, 1, 32], strides = [1, 1, 1, 1]} : vector<4x3x1x32xf32> to vector<1x1x1x32xf32>
    %279 = vector.shape_cast %278 : vector<1x1x1x32xf32> to vector<1x32xf32>
    %280 = vector.extract_strided_slice %19 {offsets = [0, 0, 0], sizes = [1, 32, 32], strides = [1, 1, 1]} : vector<4x32x32xf32> to vector<1x32x32xf32>
    %281 = vector.shape_cast %280 : vector<1x32x32xf32> to vector<32x32xf32>
    %282 = vector.extract_strided_slice %20 {offsets = [0, 0, 0], sizes = [1, 1, 32], strides = [1, 1, 1]} : vector<4x1x32xf32> to vector<1x1x32xf32>
    %283 = vector.shape_cast %282 : vector<1x1x32xf32> to vector<1x32xf32>
    %cst_161 = arith.constant dense<0.000000e+00> : vector<4x32xf32>
    %284 = tpu.matmul %267, %269, %cst_161 {dimension_numbers = #tpu.dot_dimension_numbers<[1], [0], [0], [1], [0, 0, 1, 1], [], []>} : vector<4x32xf32>, vector<32x32xf32>, vector<4x32xf32> -> vector<4x32xf32>
    %285 = vector.broadcast %275 : vector<1x32xf32> to vector<4x32xf32>
    %286 = arith.addf %284, %285 : vector<4x32xf32>
    %cst_162 = arith.constant dense<0.000000e+00> : vector<4x32xf32>
    %287 = tpu.matmul %267, %271, %cst_162 {dimension_numbers = #tpu.dot_dimension_numbers<[1], [0], [0], [1], [0, 0, 1, 1], [], []>} : vector<4x32xf32>, vector<32x32xf32>, vector<4x32xf32> -> vector<4x32xf32>
    %288 = vector.broadcast %277 : vector<1x32xf32> to vector<4x32xf32>
    %289 = arith.addf %287, %288 : vector<4x32xf32>
    %cst_163 = arith.constant dense<0.000000e+00> : vector<4x32xf32>
    %290 = tpu.matmul %267, %273, %cst_163 {dimension_numbers = #tpu.dot_dimension_numbers<[1], [0], [0], [1], [0, 0, 1, 1], [], []>} : vector<4x32xf32>, vector<32x32xf32>, vector<4x32xf32> -> vector<4x32xf32>
    %291 = vector.broadcast %279 : vector<1x32xf32> to vector<4x32xf32>
    %292 = arith.addf %290, %291 : vector<4x32xf32>
    %cst_164 = arith.constant 0.000000e+00 : f32
    %293 = vector.broadcast %cst_164 : f32 to vector<4x32xf32>
    %294 = vector.broadcast %52 : vector<1x32xf32> to vector<4x32xf32>
    %295 = arith.mulf %289, %294 : vector<4x32xf32>
    %cst_165 = arith.constant dense<0.000000e+00> : vector<4x4xf32>
    %296 = tpu.matmul %286, %295, %cst_165 {dimension_numbers = #tpu.dot_dimension_numbers<[1], [1], [0], [0], [0, 0, 1, 0], [], []>} : vector<4x32xf32>, vector<4x32xf32>, vector<4x4xf32> -> vector<4x4xf32>
    %cst_166 = arith.constant 0.353553385 : f32
    %297 = vector.broadcast %cst_166 : f32 to vector<4x4xf32>
    %298 = arith.mulf %296, %297 : vector<4x4xf32>
    %cst_167 = arith.constant dense<0xFF800000> : vector<4xf32>
    %299 = vector.multi_reduction <maximumf>, %298, %cst_167 [1] : vector<4x4xf32> to vector<4xf32>
    %300 = vector.shape_cast %299 : vector<4xf32> to vector<4x1xf32>
    %301 = vector.broadcast %300 : vector<4x1xf32> to vector<4x4xf32>
    %302 = arith.subf %298, %301 : vector<4x4xf32>
    %303 = math.exp %302 : vector<4x4xf32>
    %cst_168 = arith.constant dense<0.000000e+00> : vector<4xf32>
    %304 = vector.multi_reduction <add>, %303, %cst_168 [1] : vector<4x4xf32> to vector<4xf32>
    %305 = vector.shape_cast %304 : vector<4xf32> to vector<4x1xf32>
    %306 = vector.broadcast %305 : vector<4x1xf32> to vector<4x4xf32>
    %307 = arith.divf %303, %306 : vector<4x4xf32>
    %308 = vector.broadcast %52 : vector<1x32xf32> to vector<4x32xf32>
    %309 = arith.mulf %292, %308 : vector<4x32xf32>
    %cst_169 = arith.constant dense<0.000000e+00> : vector<4x32xf32>
    %310 = tpu.matmul %307, %309, %cst_169 {dimension_numbers = #tpu.dot_dimension_numbers<[1], [0], [0], [1], [0, 0, 1, 1], [], []>} : vector<4x4xf32>, vector<4x32xf32>, vector<4x32xf32> -> vector<4x32xf32>
    %311 = arith.addf %293, %310 : vector<4x32xf32>
    %312 = vector.broadcast %59 : vector<1x32xf32> to vector<4x32xf32>
    %313 = arith.mulf %289, %312 : vector<4x32xf32>
    %cst_170 = arith.constant dense<0.000000e+00> : vector<4x4xf32>
    %314 = tpu.matmul %286, %313, %cst_170 {dimension_numbers = #tpu.dot_dimension_numbers<[1], [1], [0], [0], [0, 0, 1, 0], [], []>} : vector<4x32xf32>, vector<4x32xf32>, vector<4x4xf32> -> vector<4x4xf32>
    %cst_171 = arith.constant 0.353553385 : f32
    %315 = vector.broadcast %cst_171 : f32 to vector<4x4xf32>
    %316 = arith.mulf %314, %315 : vector<4x4xf32>
    %cst_172 = arith.constant dense<0xFF800000> : vector<4xf32>
    %317 = vector.multi_reduction <maximumf>, %316, %cst_172 [1] : vector<4x4xf32> to vector<4xf32>
    %318 = vector.shape_cast %317 : vector<4xf32> to vector<4x1xf32>
    %319 = vector.broadcast %318 : vector<4x1xf32> to vector<4x4xf32>
    %320 = arith.subf %316, %319 : vector<4x4xf32>
    %321 = math.exp %320 : vector<4x4xf32>
    %cst_173 = arith.constant dense<0.000000e+00> : vector<4xf32>
    %322 = vector.multi_reduction <add>, %321, %cst_173 [1] : vector<4x4xf32> to vector<4xf32>
    %323 = vector.shape_cast %322 : vector<4xf32> to vector<4x1xf32>
    %324 = vector.broadcast %323 : vector<4x1xf32> to vector<4x4xf32>
    %325 = arith.divf %321, %324 : vector<4x4xf32>
    %326 = vector.broadcast %59 : vector<1x32xf32> to vector<4x32xf32>
    %327 = arith.mulf %292, %326 : vector<4x32xf32>
    %cst_174 = arith.constant dense<0.000000e+00> : vector<4x32xf32>
    %328 = tpu.matmul %325, %327, %cst_174 {dimension_numbers = #tpu.dot_dimension_numbers<[1], [0], [0], [1], [0, 0, 1, 1], [], []>} : vector<4x4xf32>, vector<4x32xf32>, vector<4x32xf32> -> vector<4x32xf32>
    %329 = arith.addf %311, %328 : vector<4x32xf32>
    %330 = vector.broadcast %66 : vector<1x32xf32> to vector<4x32xf32>
    %331 = arith.mulf %289, %330 : vector<4x32xf32>
    %cst_175 = arith.constant dense<0.000000e+00> : vector<4x4xf32>
    %332 = tpu.matmul %286, %331, %cst_175 {dimension_numbers = #tpu.dot_dimension_numbers<[1], [1], [0], [0], [0, 0, 1, 0], [], []>} : vector<4x32xf32>, vector<4x32xf32>, vector<4x4xf32> -> vector<4x4xf32>
    %cst_176 = arith.constant 0.353553385 : f32
    %333 = vector.broadcast %cst_176 : f32 to vector<4x4xf32>
    %334 = arith.mulf %332, %333 : vector<4x4xf32>
    %cst_177 = arith.constant dense<0xFF800000> : vector<4xf32>
    %335 = vector.multi_reduction <maximumf>, %334, %cst_177 [1] : vector<4x4xf32> to vector<4xf32>
    %336 = vector.shape_cast %335 : vector<4xf32> to vector<4x1xf32>
    %337 = vector.broadcast %336 : vector<4x1xf32> to vector<4x4xf32>
    %338 = arith.subf %334, %337 : vector<4x4xf32>
    %339 = math.exp %338 : vector<4x4xf32>
    %cst_178 = arith.constant dense<0.000000e+00> : vector<4xf32>
    %340 = vector.multi_reduction <add>, %339, %cst_178 [1] : vector<4x4xf32> to vector<4xf32>
    %341 = vector.shape_cast %340 : vector<4xf32> to vector<4x1xf32>
    %342 = vector.broadcast %341 : vector<4x1xf32> to vector<4x4xf32>
    %343 = arith.divf %339, %342 : vector<4x4xf32>
    %344 = vector.broadcast %66 : vector<1x32xf32> to vector<4x32xf32>
    %345 = arith.mulf %292, %344 : vector<4x32xf32>
    %cst_179 = arith.constant dense<0.000000e+00> : vector<4x32xf32>
    %346 = tpu.matmul %343, %345, %cst_179 {dimension_numbers = #tpu.dot_dimension_numbers<[1], [0], [0], [1], [0, 0, 1, 1], [], []>} : vector<4x4xf32>, vector<4x32xf32>, vector<4x32xf32> -> vector<4x32xf32>
    %347 = arith.addf %329, %346 : vector<4x32xf32>
    %348 = vector.broadcast %73 : vector<1x32xf32> to vector<4x32xf32>
    %349 = arith.mulf %289, %348 : vector<4x32xf32>
    %cst_180 = arith.constant dense<0.000000e+00> : vector<4x4xf32>
    %350 = tpu.matmul %286, %349, %cst_180 {dimension_numbers = #tpu.dot_dimension_numbers<[1], [1], [0], [0], [0, 0, 1, 0], [], []>} : vector<4x32xf32>, vector<4x32xf32>, vector<4x4xf32> -> vector<4x4xf32>
    %cst_181 = arith.constant 0.353553385 : f32
    %351 = vector.broadcast %cst_181 : f32 to vector<4x4xf32>
    %352 = arith.mulf %350, %351 : vector<4x4xf32>
    %cst_182 = arith.constant dense<0xFF800000> : vector<4xf32>
    %353 = vector.multi_reduction <maximumf>, %352, %cst_182 [1] : vector<4x4xf32> to vector<4xf32>
    %354 = vector.shape_cast %353 : vector<4xf32> to vector<4x1xf32>
    %355 = vector.broadcast %354 : vector<4x1xf32> to vector<4x4xf32>
    %356 = arith.subf %352, %355 : vector<4x4xf32>
    %357 = math.exp %356 : vector<4x4xf32>
    %cst_183 = arith.constant dense<0.000000e+00> : vector<4xf32>
    %358 = vector.multi_reduction <add>, %357, %cst_183 [1] : vector<4x4xf32> to vector<4xf32>
    %359 = vector.shape_cast %358 : vector<4xf32> to vector<4x1xf32>
    %360 = vector.broadcast %359 : vector<4x1xf32> to vector<4x4xf32>
    %361 = arith.divf %357, %360 : vector<4x4xf32>
    %362 = vector.broadcast %73 : vector<1x32xf32> to vector<4x32xf32>
    %363 = arith.mulf %292, %362 : vector<4x32xf32>
    %cst_184 = arith.constant dense<0.000000e+00> : vector<4x32xf32>
    %364 = tpu.matmul %361, %363, %cst_184 {dimension_numbers = #tpu.dot_dimension_numbers<[1], [0], [0], [1], [0, 0, 1, 1], [], []>} : vector<4x4xf32>, vector<4x32xf32>, vector<4x32xf32> -> vector<4x32xf32>
    %365 = arith.addf %347, %364 : vector<4x32xf32>
    %cst_185 = arith.constant dense<0.000000e+00> : vector<4x32xf32>
    %366 = tpu.matmul %365, %281, %cst_185 {dimension_numbers = #tpu.dot_dimension_numbers<[1], [0], [0], [1], [0, 0, 1, 1], [], []>} : vector<4x32xf32>, vector<32x32xf32>, vector<4x32xf32> -> vector<4x32xf32>
    %367 = vector.broadcast %283 : vector<1x32xf32> to vector<4x32xf32>
    %368 = arith.addf %366, %367 : vector<4x32xf32>
    %369 = vector.extract_strided_slice %21 {offsets = [0, 0, 0], sizes = [1, 1, 32], strides = [1, 1, 1]} : vector<5x1x32xf32> to vector<1x1x32xf32>
    %370 = vector.shape_cast %369 : vector<1x1x32xf32> to vector<1x32xf32>
    %371 = vector.extract_strided_slice %22 {offsets = [0, 0, 0], sizes = [1, 1, 32], strides = [1, 1, 1]} : vector<5x1x32xf32> to vector<1x1x32xf32>
    %372 = vector.shape_cast %371 : vector<1x1x32xf32> to vector<1x32xf32>
    %cst_186 = arith.constant dense<0.000000e+00> : vector<4xf32>
    %373 = vector.multi_reduction <add>, %368, %cst_186 [1] : vector<4x32xf32> to vector<4xf32>
    %374 = vector.shape_cast %373 : vector<4xf32> to vector<4x1xf32>
    %cst_187 = arith.constant 3.200000e+01 : f32
    %375 = vector.broadcast %cst_187 : f32 to vector<4x1xf32>
    %376 = arith.divf %374, %375 : vector<4x1xf32>
    %377 = vector.broadcast %376 : vector<4x1xf32> to vector<4x32xf32>
    %378 = arith.subf %368, %377 : vector<4x32xf32>
    %379 = arith.mulf %378, %378 : vector<4x32xf32>
    %cst_188 = arith.constant dense<0.000000e+00> : vector<4xf32>
    %380 = vector.multi_reduction <add>, %379, %cst_188 [1] : vector<4x32xf32> to vector<4xf32>
    %381 = vector.shape_cast %380 : vector<4xf32> to vector<4x1xf32>
    %cst_189 = arith.constant 3.200000e+01 : f32
    %382 = vector.broadcast %cst_189 : f32 to vector<4x1xf32>
    %383 = arith.divf %381, %382 : vector<4x1xf32>
    %384 = vector.broadcast %376 : vector<4x1xf32> to vector<4x32xf32>
    %385 = arith.subf %368, %384 : vector<4x32xf32>
    %cst_190 = arith.constant 9.99999974E-6 : f32
    %386 = vector.broadcast %cst_190 : f32 to vector<4x1xf32>
    %387 = arith.addf %383, %386 : vector<4x1xf32>
    %388 = math.rsqrt %387 : vector<4x1xf32>
    %389 = vector.broadcast %388 : vector<4x1xf32> to vector<4x32xf32>
    %390 = arith.mulf %385, %389 : vector<4x32xf32>
    %391 = vector.broadcast %370 : vector<1x32xf32> to vector<4x32xf32>
    %392 = arith.mulf %390, %391 : vector<4x32xf32>
    %393 = vector.broadcast %372 : vector<1x32xf32> to vector<4x32xf32>
    %394 = arith.addf %392, %393 : vector<4x32xf32>
    %395 = arith.addf %394, %267 : vector<4x32xf32>
    %396 = arith.addf %265, %16 : vector<16x32xf32>
    %397 = vector.extract_strided_slice %17 {offsets = [1, 0, 0, 0], sizes = [1, 1, 32, 32], strides = [1, 1, 1, 1]} : vector<4x3x32x32xf32> to vector<1x1x32x32xf32>
    %398 = vector.shape_cast %397 : vector<1x1x32x32xf32> to vector<32x32xf32>
    %399 = vector.extract_strided_slice %17 {offsets = [1, 1, 0, 0], sizes = [1, 1, 32, 32], strides = [1, 1, 1, 1]} : vector<4x3x32x32xf32> to vector<1x1x32x32xf32>
    %400 = vector.shape_cast %399 : vector<1x1x32x32xf32> to vector<32x32xf32>
    %401 = vector.extract_strided_slice %17 {offsets = [1, 2, 0, 0], sizes = [1, 1, 32, 32], strides = [1, 1, 1, 1]} : vector<4x3x32x32xf32> to vector<1x1x32x32xf32>
    %402 = vector.shape_cast %401 : vector<1x1x32x32xf32> to vector<32x32xf32>
    %403 = vector.extract_strided_slice %18 {offsets = [1, 0, 0, 0], sizes = [1, 1, 1, 32], strides = [1, 1, 1, 1]} : vector<4x3x1x32xf32> to vector<1x1x1x32xf32>
    %404 = vector.shape_cast %403 : vector<1x1x1x32xf32> to vector<1x32xf32>
    %405 = vector.extract_strided_slice %18 {offsets = [1, 1, 0, 0], sizes = [1, 1, 1, 32], strides = [1, 1, 1, 1]} : vector<4x3x1x32xf32> to vector<1x1x1x32xf32>
    %406 = vector.shape_cast %405 : vector<1x1x1x32xf32> to vector<1x32xf32>
    %407 = vector.extract_strided_slice %18 {offsets = [1, 2, 0, 0], sizes = [1, 1, 1, 32], strides = [1, 1, 1, 1]} : vector<4x3x1x32xf32> to vector<1x1x1x32xf32>
    %408 = vector.shape_cast %407 : vector<1x1x1x32xf32> to vector<1x32xf32>
    %409 = vector.extract_strided_slice %19 {offsets = [1, 0, 0], sizes = [1, 32, 32], strides = [1, 1, 1]} : vector<4x32x32xf32> to vector<1x32x32xf32>
    %410 = vector.shape_cast %409 : vector<1x32x32xf32> to vector<32x32xf32>
    %411 = vector.extract_strided_slice %20 {offsets = [1, 0, 0], sizes = [1, 1, 32], strides = [1, 1, 1]} : vector<4x1x32xf32> to vector<1x1x32xf32>
    %412 = vector.shape_cast %411 : vector<1x1x32xf32> to vector<1x32xf32>
    %cst_191 = arith.constant dense<0.000000e+00> : vector<4x32xf32>
    %413 = tpu.matmul %395, %398, %cst_191 {dimension_numbers = #tpu.dot_dimension_numbers<[1], [0], [0], [1], [0, 0, 1, 1], [], []>} : vector<4x32xf32>, vector<32x32xf32>, vector<4x32xf32> -> vector<4x32xf32>
    %414 = vector.broadcast %404 : vector<1x32xf32> to vector<4x32xf32>
    %415 = arith.addf %413, %414 : vector<4x32xf32>
    %cst_192 = arith.constant dense<0.000000e+00> : vector<16x32xf32>
    %416 = tpu.matmul %396, %400, %cst_192 {dimension_numbers = #tpu.dot_dimension_numbers<[1], [0], [0], [1], [0, 0, 1, 1], [], []>} : vector<16x32xf32>, vector<32x32xf32>, vector<16x32xf32> -> vector<16x32xf32>
    %417 = vector.broadcast %406 : vector<1x32xf32> to vector<16x32xf32>
    %418 = arith.addf %416, %417 : vector<16x32xf32>
    %cst_193 = arith.constant dense<0.000000e+00> : vector<16x32xf32>
    %419 = tpu.matmul %265, %402, %cst_193 {dimension_numbers = #tpu.dot_dimension_numbers<[1], [0], [0], [1], [0, 0, 1, 1], [], []>} : vector<16x32xf32>, vector<32x32xf32>, vector<16x32xf32> -> vector<16x32xf32>
    %420 = vector.broadcast %408 : vector<1x32xf32> to vector<16x32xf32>
    %421 = arith.addf %419, %420 : vector<16x32xf32>
    %cst_194 = arith.constant 0.000000e+00 : f32
    %422 = vector.broadcast %cst_194 : f32 to vector<4x32xf32>
    %423 = vector.broadcast %52 : vector<1x32xf32> to vector<16x32xf32>
    %424 = arith.mulf %418, %423 : vector<16x32xf32>
    %cst_195 = arith.constant dense<0.000000e+00> : vector<4x16xf32>
    %425 = tpu.matmul %415, %424, %cst_195 {dimension_numbers = #tpu.dot_dimension_numbers<[1], [1], [0], [0], [0, 0, 1, 0], [], []>} : vector<4x32xf32>, vector<16x32xf32>, vector<4x16xf32> -> vector<4x16xf32>
    %cst_196 = arith.constant 0.353553385 : f32
    %426 = vector.broadcast %cst_196 : f32 to vector<4x16xf32>
    %427 = arith.mulf %425, %426 : vector<4x16xf32>
    %cst_197 = arith.constant dense<0xFF800000> : vector<4xf32>
    %428 = vector.multi_reduction <maximumf>, %427, %cst_197 [1] : vector<4x16xf32> to vector<4xf32>
    %429 = vector.shape_cast %428 : vector<4xf32> to vector<4x1xf32>
    %430 = vector.broadcast %429 : vector<4x1xf32> to vector<4x16xf32>
    %431 = arith.subf %427, %430 : vector<4x16xf32>
    %432 = math.exp %431 : vector<4x16xf32>
    %cst_198 = arith.constant dense<0.000000e+00> : vector<4xf32>
    %433 = vector.multi_reduction <add>, %432, %cst_198 [1] : vector<4x16xf32> to vector<4xf32>
    %434 = vector.shape_cast %433 : vector<4xf32> to vector<4x1xf32>
    %435 = vector.broadcast %434 : vector<4x1xf32> to vector<4x16xf32>
    %436 = arith.divf %432, %435 : vector<4x16xf32>
    %437 = vector.broadcast %52 : vector<1x32xf32> to vector<16x32xf32>
    %438 = arith.mulf %421, %437 : vector<16x32xf32>
    %cst_199 = arith.constant dense<0.000000e+00> : vector<4x32xf32>
    %439 = tpu.matmul %436, %438, %cst_199 {dimension_numbers = #tpu.dot_dimension_numbers<[1], [0], [0], [1], [0, 0, 1, 1], [], []>} : vector<4x16xf32>, vector<16x32xf32>, vector<4x32xf32> -> vector<4x32xf32>
    %440 = arith.addf %422, %439 : vector<4x32xf32>
    %441 = vector.broadcast %59 : vector<1x32xf32> to vector<16x32xf32>
    %442 = arith.mulf %418, %441 : vector<16x32xf32>
    %cst_200 = arith.constant dense<0.000000e+00> : vector<4x16xf32>
    %443 = tpu.matmul %415, %442, %cst_200 {dimension_numbers = #tpu.dot_dimension_numbers<[1], [1], [0], [0], [0, 0, 1, 0], [], []>} : vector<4x32xf32>, vector<16x32xf32>, vector<4x16xf32> -> vector<4x16xf32>
    %cst_201 = arith.constant 0.353553385 : f32
    %444 = vector.broadcast %cst_201 : f32 to vector<4x16xf32>
    %445 = arith.mulf %443, %444 : vector<4x16xf32>
    %cst_202 = arith.constant dense<0xFF800000> : vector<4xf32>
    %446 = vector.multi_reduction <maximumf>, %445, %cst_202 [1] : vector<4x16xf32> to vector<4xf32>
    %447 = vector.shape_cast %446 : vector<4xf32> to vector<4x1xf32>
    %448 = vector.broadcast %447 : vector<4x1xf32> to vector<4x16xf32>
    %449 = arith.subf %445, %448 : vector<4x16xf32>
    %450 = math.exp %449 : vector<4x16xf32>
    %cst_203 = arith.constant dense<0.000000e+00> : vector<4xf32>
    %451 = vector.multi_reduction <add>, %450, %cst_203 [1] : vector<4x16xf32> to vector<4xf32>
    %452 = vector.shape_cast %451 : vector<4xf32> to vector<4x1xf32>
    %453 = vector.broadcast %452 : vector<4x1xf32> to vector<4x16xf32>
    %454 = arith.divf %450, %453 : vector<4x16xf32>
    %455 = vector.broadcast %59 : vector<1x32xf32> to vector<16x32xf32>
    %456 = arith.mulf %421, %455 : vector<16x32xf32>
    %cst_204 = arith.constant dense<0.000000e+00> : vector<4x32xf32>
    %457 = tpu.matmul %454, %456, %cst_204 {dimension_numbers = #tpu.dot_dimension_numbers<[1], [0], [0], [1], [0, 0, 1, 1], [], []>} : vector<4x16xf32>, vector<16x32xf32>, vector<4x32xf32> -> vector<4x32xf32>
    %458 = arith.addf %440, %457 : vector<4x32xf32>
    %459 = vector.broadcast %66 : vector<1x32xf32> to vector<16x32xf32>
    %460 = arith.mulf %418, %459 : vector<16x32xf32>
    %cst_205 = arith.constant dense<0.000000e+00> : vector<4x16xf32>
    %461 = tpu.matmul %415, %460, %cst_205 {dimension_numbers = #tpu.dot_dimension_numbers<[1], [1], [0], [0], [0, 0, 1, 0], [], []>} : vector<4x32xf32>, vector<16x32xf32>, vector<4x16xf32> -> vector<4x16xf32>
    %cst_206 = arith.constant 0.353553385 : f32
    %462 = vector.broadcast %cst_206 : f32 to vector<4x16xf32>
    %463 = arith.mulf %461, %462 : vector<4x16xf32>
    %cst_207 = arith.constant dense<0xFF800000> : vector<4xf32>
    %464 = vector.multi_reduction <maximumf>, %463, %cst_207 [1] : vector<4x16xf32> to vector<4xf32>
    %465 = vector.shape_cast %464 : vector<4xf32> to vector<4x1xf32>
    %466 = vector.broadcast %465 : vector<4x1xf32> to vector<4x16xf32>
    %467 = arith.subf %463, %466 : vector<4x16xf32>
    %468 = math.exp %467 : vector<4x16xf32>
    %cst_208 = arith.constant dense<0.000000e+00> : vector<4xf32>
    %469 = vector.multi_reduction <add>, %468, %cst_208 [1] : vector<4x16xf32> to vector<4xf32>
    %470 = vector.shape_cast %469 : vector<4xf32> to vector<4x1xf32>
    %471 = vector.broadcast %470 : vector<4x1xf32> to vector<4x16xf32>
    %472 = arith.divf %468, %471 : vector<4x16xf32>
    %473 = vector.broadcast %66 : vector<1x32xf32> to vector<16x32xf32>
    %474 = arith.mulf %421, %473 : vector<16x32xf32>
    %cst_209 = arith.constant dense<0.000000e+00> : vector<4x32xf32>
    %475 = tpu.matmul %472, %474, %cst_209 {dimension_numbers = #tpu.dot_dimension_numbers<[1], [0], [0], [1], [0, 0, 1, 1], [], []>} : vector<4x16xf32>, vector<16x32xf32>, vector<4x32xf32> -> vector<4x32xf32>
    %476 = arith.addf %458, %475 : vector<4x32xf32>
    %477 = vector.broadcast %73 : vector<1x32xf32> to vector<16x32xf32>
    %478 = arith.mulf %418, %477 : vector<16x32xf32>
    %cst_210 = arith.constant dense<0.000000e+00> : vector<4x16xf32>
    %479 = tpu.matmul %415, %478, %cst_210 {dimension_numbers = #tpu.dot_dimension_numbers<[1], [1], [0], [0], [0, 0, 1, 0], [], []>} : vector<4x32xf32>, vector<16x32xf32>, vector<4x16xf32> -> vector<4x16xf32>
    %cst_211 = arith.constant 0.353553385 : f32
    %480 = vector.broadcast %cst_211 : f32 to vector<4x16xf32>
    %481 = arith.mulf %479, %480 : vector<4x16xf32>
    %cst_212 = arith.constant dense<0xFF800000> : vector<4xf32>
    %482 = vector.multi_reduction <maximumf>, %481, %cst_212 [1] : vector<4x16xf32> to vector<4xf32>
    %483 = vector.shape_cast %482 : vector<4xf32> to vector<4x1xf32>
    %484 = vector.broadcast %483 : vector<4x1xf32> to vector<4x16xf32>
    %485 = arith.subf %481, %484 : vector<4x16xf32>
    %486 = math.exp %485 : vector<4x16xf32>
    %cst_213 = arith.constant dense<0.000000e+00> : vector<4xf32>
    %487 = vector.multi_reduction <add>, %486, %cst_213 [1] : vector<4x16xf32> to vector<4xf32>
    %488 = vector.shape_cast %487 : vector<4xf32> to vector<4x1xf32>
    %489 = vector.broadcast %488 : vector<4x1xf32> to vector<4x16xf32>
    %490 = arith.divf %486, %489 : vector<4x16xf32>
    %491 = vector.broadcast %73 : vector<1x32xf32> to vector<16x32xf32>
    %492 = arith.mulf %421, %491 : vector<16x32xf32>
    %cst_214 = arith.constant dense<0.000000e+00> : vector<4x32xf32>
    %493 = tpu.matmul %490, %492, %cst_214 {dimension_numbers = #tpu.dot_dimension_numbers<[1], [0], [0], [1], [0, 0, 1, 1], [], []>} : vector<4x16xf32>, vector<16x32xf32>, vector<4x32xf32> -> vector<4x32xf32>
    %494 = arith.addf %476, %493 : vector<4x32xf32>
    %cst_215 = arith.constant dense<0.000000e+00> : vector<4x32xf32>
    %495 = tpu.matmul %494, %410, %cst_215 {dimension_numbers = #tpu.dot_dimension_numbers<[1], [0], [0], [1], [0, 0, 1, 1], [], []>} : vector<4x32xf32>, vector<32x32xf32>, vector<4x32xf32> -> vector<4x32xf32>
    %496 = vector.broadcast %412 : vector<1x32xf32> to vector<4x32xf32>
    %497 = arith.addf %495, %496 : vector<4x32xf32>
    %498 = arith.addf %394, %497 : vector<4x32xf32>
    %499 = vector.extract_strided_slice %21 {offsets = [1, 0, 0], sizes = [1, 1, 32], strides = [1, 1, 1]} : vector<5x1x32xf32> to vector<1x1x32xf32>
    %500 = vector.shape_cast %499 : vector<1x1x32xf32> to vector<1x32xf32>
    %501 = vector.extract_strided_slice %22 {offsets = [1, 0, 0], sizes = [1, 1, 32], strides = [1, 1, 1]} : vector<5x1x32xf32> to vector<1x1x32xf32>
    %502 = vector.shape_cast %501 : vector<1x1x32xf32> to vector<1x32xf32>
    %cst_216 = arith.constant dense<0.000000e+00> : vector<4xf32>
    %503 = vector.multi_reduction <add>, %498, %cst_216 [1] : vector<4x32xf32> to vector<4xf32>
    %504 = vector.shape_cast %503 : vector<4xf32> to vector<4x1xf32>
    %cst_217 = arith.constant 3.200000e+01 : f32
    %505 = vector.broadcast %cst_217 : f32 to vector<4x1xf32>
    %506 = arith.divf %504, %505 : vector<4x1xf32>
    %507 = vector.broadcast %506 : vector<4x1xf32> to vector<4x32xf32>
    %508 = arith.subf %498, %507 : vector<4x32xf32>
    %509 = arith.mulf %508, %508 : vector<4x32xf32>
    %cst_218 = arith.constant dense<0.000000e+00> : vector<4xf32>
    %510 = vector.multi_reduction <add>, %509, %cst_218 [1] : vector<4x32xf32> to vector<4xf32>
    %511 = vector.shape_cast %510 : vector<4xf32> to vector<4x1xf32>
    %cst_219 = arith.constant 3.200000e+01 : f32
    %512 = vector.broadcast %cst_219 : f32 to vector<4x1xf32>
    %513 = arith.divf %511, %512 : vector<4x1xf32>
    %514 = vector.broadcast %506 : vector<4x1xf32> to vector<4x32xf32>
    %515 = arith.subf %498, %514 : vector<4x32xf32>
    %cst_220 = arith.constant 9.99999974E-6 : f32
    %516 = vector.broadcast %cst_220 : f32 to vector<4x1xf32>
    %517 = arith.addf %513, %516 : vector<4x1xf32>
    %518 = math.rsqrt %517 : vector<4x1xf32>
    %519 = vector.broadcast %518 : vector<4x1xf32> to vector<4x32xf32>
    %520 = arith.mulf %515, %519 : vector<4x32xf32>
    %521 = vector.broadcast %500 : vector<1x32xf32> to vector<4x32xf32>
    %522 = arith.mulf %520, %521 : vector<4x32xf32>
    %523 = vector.broadcast %502 : vector<1x32xf32> to vector<4x32xf32>
    %524 = arith.addf %522, %523 : vector<4x32xf32>
    %cst_221 = arith.constant dense<0.000000e+00> : vector<4x64xf32>
    %525 = tpu.matmul %524, %23, %cst_221 {dimension_numbers = #tpu.dot_dimension_numbers<[1], [0], [0], [1], [0, 0, 1, 1], [], []>} : vector<4x32xf32>, vector<32x64xf32>, vector<4x64xf32> -> vector<4x64xf32>
    %526 = vector.broadcast %24 : vector<1x64xf32> to vector<4x64xf32>
    %527 = arith.addf %525, %526 : vector<4x64xf32>
    %cst_222 = arith.constant 0.000000e+00 : f32
    %528 = vector.broadcast %cst_222 : f32 to vector<4x64xf32>
    %529 = arith.maximumf %527, %528 : vector<4x64xf32>
    %cst_223 = arith.constant dense<0.000000e+00> : vector<4x32xf32>
    %530 = tpu.matmul %529, %25, %cst_223 {dimension_numbers = #tpu.dot_dimension_numbers<[1], [0], [0], [1], [0, 0, 1, 1], [], []>} : vector<4x64xf32>, vector<64x32xf32>, vector<4x32xf32> -> vector<4x32xf32>
    %531 = vector.broadcast %26 : vector<1x32xf32> to vector<4x32xf32>
    %532 = arith.addf %530, %531 : vector<4x32xf32>
    %533 = arith.addf %524, %532 : vector<4x32xf32>
    %534 = vector.extract_strided_slice %21 {offsets = [2, 0, 0], sizes = [1, 1, 32], strides = [1, 1, 1]} : vector<5x1x32xf32> to vector<1x1x32xf32>
    %535 = vector.shape_cast %534 : vector<1x1x32xf32> to vector<1x32xf32>
    %536 = vector.extract_strided_slice %22 {offsets = [2, 0, 0], sizes = [1, 1, 32], strides = [1, 1, 1]} : vector<5x1x32xf32> to vector<1x1x32xf32>
    %537 = vector.shape_cast %536 : vector<1x1x32xf32> to vector<1x32xf32>
    %cst_224 = arith.constant dense<0.000000e+00> : vector<4xf32>
    %538 = vector.multi_reduction <add>, %533, %cst_224 [1] : vector<4x32xf32> to vector<4xf32>
    %539 = vector.shape_cast %538 : vector<4xf32> to vector<4x1xf32>
    %cst_225 = arith.constant 3.200000e+01 : f32
    %540 = vector.broadcast %cst_225 : f32 to vector<4x1xf32>
    %541 = arith.divf %539, %540 : vector<4x1xf32>
    %542 = vector.broadcast %541 : vector<4x1xf32> to vector<4x32xf32>
    %543 = arith.subf %533, %542 : vector<4x32xf32>
    %544 = arith.mulf %543, %543 : vector<4x32xf32>
    %cst_226 = arith.constant dense<0.000000e+00> : vector<4xf32>
    %545 = vector.multi_reduction <add>, %544, %cst_226 [1] : vector<4x32xf32> to vector<4xf32>
    %546 = vector.shape_cast %545 : vector<4xf32> to vector<4x1xf32>
    %cst_227 = arith.constant 3.200000e+01 : f32
    %547 = vector.broadcast %cst_227 : f32 to vector<4x1xf32>
    %548 = arith.divf %546, %547 : vector<4x1xf32>
    %549 = vector.broadcast %541 : vector<4x1xf32> to vector<4x32xf32>
    %550 = arith.subf %533, %549 : vector<4x32xf32>
    %cst_228 = arith.constant 9.99999974E-6 : f32
    %551 = vector.broadcast %cst_228 : f32 to vector<4x1xf32>
    %552 = arith.addf %548, %551 : vector<4x1xf32>
    %553 = math.rsqrt %552 : vector<4x1xf32>
    %554 = vector.broadcast %553 : vector<4x1xf32> to vector<4x32xf32>
    %555 = arith.mulf %550, %554 : vector<4x32xf32>
    %556 = vector.broadcast %535 : vector<1x32xf32> to vector<4x32xf32>
    %557 = arith.mulf %555, %556 : vector<4x32xf32>
    %558 = vector.broadcast %537 : vector<1x32xf32> to vector<4x32xf32>
    %559 = arith.addf %557, %558 : vector<4x32xf32>
    %560 = arith.addf %559, %267 : vector<4x32xf32>
    %561 = arith.addf %265, %16 : vector<16x32xf32>
    %562 = vector.extract_strided_slice %17 {offsets = [2, 0, 0, 0], sizes = [1, 1, 32, 32], strides = [1, 1, 1, 1]} : vector<4x3x32x32xf32> to vector<1x1x32x32xf32>
    %563 = vector.shape_cast %562 : vector<1x1x32x32xf32> to vector<32x32xf32>
    %564 = vector.extract_strided_slice %17 {offsets = [2, 1, 0, 0], sizes = [1, 1, 32, 32], strides = [1, 1, 1, 1]} : vector<4x3x32x32xf32> to vector<1x1x32x32xf32>
    %565 = vector.shape_cast %564 : vector<1x1x32x32xf32> to vector<32x32xf32>
    %566 = vector.extract_strided_slice %17 {offsets = [2, 2, 0, 0], sizes = [1, 1, 32, 32], strides = [1, 1, 1, 1]} : vector<4x3x32x32xf32> to vector<1x1x32x32xf32>
    %567 = vector.shape_cast %566 : vector<1x1x32x32xf32> to vector<32x32xf32>
    %568 = vector.extract_strided_slice %18 {offsets = [2, 0, 0, 0], sizes = [1, 1, 1, 32], strides = [1, 1, 1, 1]} : vector<4x3x1x32xf32> to vector<1x1x1x32xf32>
    %569 = vector.shape_cast %568 : vector<1x1x1x32xf32> to vector<1x32xf32>
    %570 = vector.extract_strided_slice %18 {offsets = [2, 1, 0, 0], sizes = [1, 1, 1, 32], strides = [1, 1, 1, 1]} : vector<4x3x1x32xf32> to vector<1x1x1x32xf32>
    %571 = vector.shape_cast %570 : vector<1x1x1x32xf32> to vector<1x32xf32>
    %572 = vector.extract_strided_slice %18 {offsets = [2, 2, 0, 0], sizes = [1, 1, 1, 32], strides = [1, 1, 1, 1]} : vector<4x3x1x32xf32> to vector<1x1x1x32xf32>
    %573 = vector.shape_cast %572 : vector<1x1x1x32xf32> to vector<1x32xf32>
    %574 = vector.extract_strided_slice %19 {offsets = [2, 0, 0], sizes = [1, 32, 32], strides = [1, 1, 1]} : vector<4x32x32xf32> to vector<1x32x32xf32>
    %575 = vector.shape_cast %574 : vector<1x32x32xf32> to vector<32x32xf32>
    %576 = vector.extract_strided_slice %20 {offsets = [2, 0, 0], sizes = [1, 1, 32], strides = [1, 1, 1]} : vector<4x1x32xf32> to vector<1x1x32xf32>
    %577 = vector.shape_cast %576 : vector<1x1x32xf32> to vector<1x32xf32>
    %cst_229 = arith.constant dense<0.000000e+00> : vector<16x32xf32>
    %578 = tpu.matmul %561, %563, %cst_229 {dimension_numbers = #tpu.dot_dimension_numbers<[1], [0], [0], [1], [0, 0, 1, 1], [], []>} : vector<16x32xf32>, vector<32x32xf32>, vector<16x32xf32> -> vector<16x32xf32>
    %579 = vector.broadcast %569 : vector<1x32xf32> to vector<16x32xf32>
    %580 = arith.addf %578, %579 : vector<16x32xf32>
    %cst_230 = arith.constant dense<0.000000e+00> : vector<4x32xf32>
    %581 = tpu.matmul %560, %565, %cst_230 {dimension_numbers = #tpu.dot_dimension_numbers<[1], [0], [0], [1], [0, 0, 1, 1], [], []>} : vector<4x32xf32>, vector<32x32xf32>, vector<4x32xf32> -> vector<4x32xf32>
    %582 = vector.broadcast %571 : vector<1x32xf32> to vector<4x32xf32>
    %583 = arith.addf %581, %582 : vector<4x32xf32>
    %cst_231 = arith.constant dense<0.000000e+00> : vector<4x32xf32>
    %584 = tpu.matmul %559, %567, %cst_231 {dimension_numbers = #tpu.dot_dimension_numbers<[1], [0], [0], [1], [0, 0, 1, 1], [], []>} : vector<4x32xf32>, vector<32x32xf32>, vector<4x32xf32> -> vector<4x32xf32>
    %585 = vector.broadcast %573 : vector<1x32xf32> to vector<4x32xf32>
    %586 = arith.addf %584, %585 : vector<4x32xf32>
    %cst_232 = arith.constant 0.000000e+00 : f32
    %587 = vector.broadcast %cst_232 : f32 to vector<16x32xf32>
    %588 = vector.broadcast %52 : vector<1x32xf32> to vector<4x32xf32>
    %589 = arith.mulf %583, %588 : vector<4x32xf32>
    %cst_233 = arith.constant dense<0.000000e+00> : vector<16x4xf32>
    %590 = tpu.matmul %580, %589, %cst_233 {dimension_numbers = #tpu.dot_dimension_numbers<[1], [1], [0], [0], [0, 0, 1, 0], [], []>} : vector<16x32xf32>, vector<4x32xf32>, vector<16x4xf32> -> vector<16x4xf32>
    %cst_234 = arith.constant 0.353553385 : f32
    %591 = vector.broadcast %cst_234 : f32 to vector<16x4xf32>
    %592 = arith.mulf %590, %591 : vector<16x4xf32>
    %cst_235 = arith.constant dense<0xFF800000> : vector<16xf32>
    %593 = vector.multi_reduction <maximumf>, %592, %cst_235 [1] : vector<16x4xf32> to vector<16xf32>
    %594 = vector.shape_cast %593 : vector<16xf32> to vector<16x1xf32>
    %595 = vector.broadcast %594 : vector<16x1xf32> to vector<16x4xf32>
    %596 = arith.subf %592, %595 : vector<16x4xf32>
    %597 = math.exp %596 : vector<16x4xf32>
    %cst_236 = arith.constant dense<0.000000e+00> : vector<16xf32>
    %598 = vector.multi_reduction <add>, %597, %cst_236 [1] : vector<16x4xf32> to vector<16xf32>
    %599 = vector.shape_cast %598 : vector<16xf32> to vector<16x1xf32>
    %600 = vector.broadcast %599 : vector<16x1xf32> to vector<16x4xf32>
    %601 = arith.divf %597, %600 : vector<16x4xf32>
    %602 = vector.broadcast %52 : vector<1x32xf32> to vector<4x32xf32>
    %603 = arith.mulf %586, %602 : vector<4x32xf32>
    %cst_237 = arith.constant dense<0.000000e+00> : vector<16x32xf32>
    %604 = tpu.matmul %601, %603, %cst_237 {dimension_numbers = #tpu.dot_dimension_numbers<[1], [0], [0], [1], [0, 0, 1, 1], [], []>} : vector<16x4xf32>, vector<4x32xf32>, vector<16x32xf32> -> vector<16x32xf32>
    %605 = arith.addf %587, %604 : vector<16x32xf32>
    %606 = vector.broadcast %59 : vector<1x32xf32> to vector<4x32xf32>
    %607 = arith.mulf %583, %606 : vector<4x32xf32>
    %cst_238 = arith.constant dense<0.000000e+00> : vector<16x4xf32>
    %608 = tpu.matmul %580, %607, %cst_238 {dimension_numbers = #tpu.dot_dimension_numbers<[1], [1], [0], [0], [0, 0, 1, 0], [], []>} : vector<16x32xf32>, vector<4x32xf32>, vector<16x4xf32> -> vector<16x4xf32>
    %cst_239 = arith.constant 0.353553385 : f32
    %609 = vector.broadcast %cst_239 : f32 to vector<16x4xf32>
    %610 = arith.mulf %608, %609 : vector<16x4xf32>
    %cst_240 = arith.constant dense<0xFF800000> : vector<16xf32>
    %611 = vector.multi_reduction <maximumf>, %610, %cst_240 [1] : vector<16x4xf32> to vector<16xf32>
    %612 = vector.shape_cast %611 : vector<16xf32> to vector<16x1xf32>
    %613 = vector.broadcast %612 : vector<16x1xf32> to vector<16x4xf32>
    %614 = arith.subf %610, %613 : vector<16x4xf32>
    %615 = math.exp %614 : vector<16x4xf32>
    %cst_241 = arith.constant dense<0.000000e+00> : vector<16xf32>
    %616 = vector.multi_reduction <add>, %615, %cst_241 [1] : vector<16x4xf32> to vector<16xf32>
    %617 = vector.shape_cast %616 : vector<16xf32> to vector<16x1xf32>
    %618 = vector.broadcast %617 : vector<16x1xf32> to vector<16x4xf32>
    %619 = arith.divf %615, %618 : vector<16x4xf32>
    %620 = vector.broadcast %59 : vector<1x32xf32> to vector<4x32xf32>
    %621 = arith.mulf %586, %620 : vector<4x32xf32>
    %cst_242 = arith.constant dense<0.000000e+00> : vector<16x32xf32>
    %622 = tpu.matmul %619, %621, %cst_242 {dimension_numbers = #tpu.dot_dimension_numbers<[1], [0], [0], [1], [0, 0, 1, 1], [], []>} : vector<16x4xf32>, vector<4x32xf32>, vector<16x32xf32> -> vector<16x32xf32>
    %623 = arith.addf %605, %622 : vector<16x32xf32>
    %624 = vector.broadcast %66 : vector<1x32xf32> to vector<4x32xf32>
    %625 = arith.mulf %583, %624 : vector<4x32xf32>
    %cst_243 = arith.constant dense<0.000000e+00> : vector<16x4xf32>
    %626 = tpu.matmul %580, %625, %cst_243 {dimension_numbers = #tpu.dot_dimension_numbers<[1], [1], [0], [0], [0, 0, 1, 0], [], []>} : vector<16x32xf32>, vector<4x32xf32>, vector<16x4xf32> -> vector<16x4xf32>
    %cst_244 = arith.constant 0.353553385 : f32
    %627 = vector.broadcast %cst_244 : f32 to vector<16x4xf32>
    %628 = arith.mulf %626, %627 : vector<16x4xf32>
    %cst_245 = arith.constant dense<0xFF800000> : vector<16xf32>
    %629 = vector.multi_reduction <maximumf>, %628, %cst_245 [1] : vector<16x4xf32> to vector<16xf32>
    %630 = vector.shape_cast %629 : vector<16xf32> to vector<16x1xf32>
    %631 = vector.broadcast %630 : vector<16x1xf32> to vector<16x4xf32>
    %632 = arith.subf %628, %631 : vector<16x4xf32>
    %633 = math.exp %632 : vector<16x4xf32>
    %cst_246 = arith.constant dense<0.000000e+00> : vector<16xf32>
    %634 = vector.multi_reduction <add>, %633, %cst_246 [1] : vector<16x4xf32> to vector<16xf32>
    %635 = vector.shape_cast %634 : vector<16xf32> to vector<16x1xf32>
    %636 = vector.broadcast %635 : vector<16x1xf32> to vector<16x4xf32>
    %637 = arith.divf %633, %636 : vector<16x4xf32>
    %638 = vector.broadcast %66 : vector<1x32xf32> to vector<4x32xf32>
    %639 = arith.mulf %586, %638 : vector<4x32xf32>
    %cst_247 = arith.constant dense<0.000000e+00> : vector<16x32xf32>
    %640 = tpu.matmul %637, %639, %cst_247 {dimension_numbers = #tpu.dot_dimension_numbers<[1], [0], [0], [1], [0, 0, 1, 1], [], []>} : vector<16x4xf32>, vector<4x32xf32>, vector<16x32xf32> -> vector<16x32xf32>
    %641 = arith.addf %623, %640 : vector<16x32xf32>
    %642 = vector.broadcast %73 : vector<1x32xf32> to vector<4x32xf32>
    %643 = arith.mulf %583, %642 : vector<4x32xf32>
    %cst_248 = arith.constant dense<0.000000e+00> : vector<16x4xf32>
    %644 = tpu.matmul %580, %643, %cst_248 {dimension_numbers = #tpu.dot_dimension_numbers<[1], [1], [0], [0], [0, 0, 1, 0], [], []>} : vector<16x32xf32>, vector<4x32xf32>, vector<16x4xf32> -> vector<16x4xf32>
    %cst_249 = arith.constant 0.353553385 : f32
    %645 = vector.broadcast %cst_249 : f32 to vector<16x4xf32>
    %646 = arith.mulf %644, %645 : vector<16x4xf32>
    %cst_250 = arith.constant dense<0xFF800000> : vector<16xf32>
    %647 = vector.multi_reduction <maximumf>, %646, %cst_250 [1] : vector<16x4xf32> to vector<16xf32>
    %648 = vector.shape_cast %647 : vector<16xf32> to vector<16x1xf32>
    %649 = vector.broadcast %648 : vector<16x1xf32> to vector<16x4xf32>
    %650 = arith.subf %646, %649 : vector<16x4xf32>
    %651 = math.exp %650 : vector<16x4xf32>
    %cst_251 = arith.constant dense<0.000000e+00> : vector<16xf32>
    %652 = vector.multi_reduction <add>, %651, %cst_251 [1] : vector<16x4xf32> to vector<16xf32>
    %653 = vector.shape_cast %652 : vector<16xf32> to vector<16x1xf32>
    %654 = vector.broadcast %653 : vector<16x1xf32> to vector<16x4xf32>
    %655 = arith.divf %651, %654 : vector<16x4xf32>
    %656 = vector.broadcast %73 : vector<1x32xf32> to vector<4x32xf32>
    %657 = arith.mulf %586, %656 : vector<4x32xf32>
    %cst_252 = arith.constant dense<0.000000e+00> : vector<16x32xf32>
    %658 = tpu.matmul %655, %657, %cst_252 {dimension_numbers = #tpu.dot_dimension_numbers<[1], [0], [0], [1], [0, 0, 1, 1], [], []>} : vector<16x4xf32>, vector<4x32xf32>, vector<16x32xf32> -> vector<16x32xf32>
    %659 = arith.addf %641, %658 : vector<16x32xf32>
    %cst_253 = arith.constant dense<0.000000e+00> : vector<16x32xf32>
    %660 = tpu.matmul %659, %575, %cst_253 {dimension_numbers = #tpu.dot_dimension_numbers<[1], [0], [0], [1], [0, 0, 1, 1], [], []>} : vector<16x32xf32>, vector<32x32xf32>, vector<16x32xf32> -> vector<16x32xf32>
    %661 = vector.broadcast %577 : vector<1x32xf32> to vector<16x32xf32>
    %662 = arith.addf %660, %661 : vector<16x32xf32>
    %663 = arith.addf %265, %662 : vector<16x32xf32>
    %664 = vector.extract_strided_slice %21 {offsets = [3, 0, 0], sizes = [1, 1, 32], strides = [1, 1, 1]} : vector<5x1x32xf32> to vector<1x1x32xf32>
    %665 = vector.shape_cast %664 : vector<1x1x32xf32> to vector<1x32xf32>
    %666 = vector.extract_strided_slice %22 {offsets = [3, 0, 0], sizes = [1, 1, 32], strides = [1, 1, 1]} : vector<5x1x32xf32> to vector<1x1x32xf32>
    %667 = vector.shape_cast %666 : vector<1x1x32xf32> to vector<1x32xf32>
    %cst_254 = arith.constant dense<0.000000e+00> : vector<16xf32>
    %668 = vector.multi_reduction <add>, %663, %cst_254 [1] : vector<16x32xf32> to vector<16xf32>
    %669 = vector.shape_cast %668 : vector<16xf32> to vector<16x1xf32>
    %cst_255 = arith.constant 3.200000e+01 : f32
    %670 = vector.broadcast %cst_255 : f32 to vector<16x1xf32>
    %671 = arith.divf %669, %670 : vector<16x1xf32>
    %672 = vector.broadcast %671 : vector<16x1xf32> to vector<16x32xf32>
    %673 = arith.subf %663, %672 : vector<16x32xf32>
    %674 = arith.mulf %673, %673 : vector<16x32xf32>
    %cst_256 = arith.constant dense<0.000000e+00> : vector<16xf32>
    %675 = vector.multi_reduction <add>, %674, %cst_256 [1] : vector<16x32xf32> to vector<16xf32>
    %676 = vector.shape_cast %675 : vector<16xf32> to vector<16x1xf32>
    %cst_257 = arith.constant 3.200000e+01 : f32
    %677 = vector.broadcast %cst_257 : f32 to vector<16x1xf32>
    %678 = arith.divf %676, %677 : vector<16x1xf32>
    %679 = vector.broadcast %671 : vector<16x1xf32> to vector<16x32xf32>
    %680 = arith.subf %663, %679 : vector<16x32xf32>
    %cst_258 = arith.constant 9.99999974E-6 : f32
    %681 = vector.broadcast %cst_258 : f32 to vector<16x1xf32>
    %682 = arith.addf %678, %681 : vector<16x1xf32>
    %683 = math.rsqrt %682 : vector<16x1xf32>
    %684 = vector.broadcast %683 : vector<16x1xf32> to vector<16x32xf32>
    %685 = arith.mulf %680, %684 : vector<16x32xf32>
    %686 = vector.broadcast %665 : vector<1x32xf32> to vector<16x32xf32>
    %687 = arith.mulf %685, %686 : vector<16x32xf32>
    %688 = vector.broadcast %667 : vector<1x32xf32> to vector<16x32xf32>
    %689 = arith.addf %687, %688 : vector<16x32xf32>
    %690 = arith.addf %559, %267 : vector<4x32xf32>
    %691 = arith.addf %689, %16 : vector<16x32xf32>
    %692 = vector.extract_strided_slice %17 {offsets = [3, 0, 0, 0], sizes = [1, 1, 32, 32], strides = [1, 1, 1, 1]} : vector<4x3x32x32xf32> to vector<1x1x32x32xf32>
    %693 = vector.shape_cast %692 : vector<1x1x32x32xf32> to vector<32x32xf32>
    %694 = vector.extract_strided_slice %17 {offsets = [3, 1, 0, 0], sizes = [1, 1, 32, 32], strides = [1, 1, 1, 1]} : vector<4x3x32x32xf32> to vector<1x1x32x32xf32>
    %695 = vector.shape_cast %694 : vector<1x1x32x32xf32> to vector<32x32xf32>
    %696 = vector.extract_strided_slice %17 {offsets = [3, 2, 0, 0], sizes = [1, 1, 32, 32], strides = [1, 1, 1, 1]} : vector<4x3x32x32xf32> to vector<1x1x32x32xf32>
    %697 = vector.shape_cast %696 : vector<1x1x32x32xf32> to vector<32x32xf32>
    %698 = vector.extract_strided_slice %18 {offsets = [3, 0, 0, 0], sizes = [1, 1, 1, 32], strides = [1, 1, 1, 1]} : vector<4x3x1x32xf32> to vector<1x1x1x32xf32>
    %699 = vector.shape_cast %698 : vector<1x1x1x32xf32> to vector<1x32xf32>
    %700 = vector.extract_strided_slice %18 {offsets = [3, 1, 0, 0], sizes = [1, 1, 1, 32], strides = [1, 1, 1, 1]} : vector<4x3x1x32xf32> to vector<1x1x1x32xf32>
    %701 = vector.shape_cast %700 : vector<1x1x1x32xf32> to vector<1x32xf32>
    %702 = vector.extract_strided_slice %18 {offsets = [3, 2, 0, 0], sizes = [1, 1, 1, 32], strides = [1, 1, 1, 1]} : vector<4x3x1x32xf32> to vector<1x1x1x32xf32>
    %703 = vector.shape_cast %702 : vector<1x1x1x32xf32> to vector<1x32xf32>
    %704 = vector.extract_strided_slice %19 {offsets = [3, 0, 0], sizes = [1, 32, 32], strides = [1, 1, 1]} : vector<4x32x32xf32> to vector<1x32x32xf32>
    %705 = vector.shape_cast %704 : vector<1x32x32xf32> to vector<32x32xf32>
    %706 = vector.extract_strided_slice %20 {offsets = [3, 0, 0], sizes = [1, 1, 32], strides = [1, 1, 1]} : vector<4x1x32xf32> to vector<1x1x32xf32>
    %707 = vector.shape_cast %706 : vector<1x1x32xf32> to vector<1x32xf32>
    %cst_259 = arith.constant dense<0.000000e+00> : vector<4x32xf32>
    %708 = tpu.matmul %690, %693, %cst_259 {dimension_numbers = #tpu.dot_dimension_numbers<[1], [0], [0], [1], [0, 0, 1, 1], [], []>} : vector<4x32xf32>, vector<32x32xf32>, vector<4x32xf32> -> vector<4x32xf32>
    %709 = vector.broadcast %699 : vector<1x32xf32> to vector<4x32xf32>
    %710 = arith.addf %708, %709 : vector<4x32xf32>
    %cst_260 = arith.constant dense<0.000000e+00> : vector<16x32xf32>
    %711 = tpu.matmul %691, %695, %cst_260 {dimension_numbers = #tpu.dot_dimension_numbers<[1], [0], [0], [1], [0, 0, 1, 1], [], []>} : vector<16x32xf32>, vector<32x32xf32>, vector<16x32xf32> -> vector<16x32xf32>
    %712 = vector.broadcast %701 : vector<1x32xf32> to vector<16x32xf32>
    %713 = arith.addf %711, %712 : vector<16x32xf32>
    %cst_261 = arith.constant dense<0.000000e+00> : vector<16x32xf32>
    %714 = tpu.matmul %689, %697, %cst_261 {dimension_numbers = #tpu.dot_dimension_numbers<[1], [0], [0], [1], [0, 0, 1, 1], [], []>} : vector<16x32xf32>, vector<32x32xf32>, vector<16x32xf32> -> vector<16x32xf32>
    %715 = vector.broadcast %703 : vector<1x32xf32> to vector<16x32xf32>
    %716 = arith.addf %714, %715 : vector<16x32xf32>
    %cst_262 = arith.constant 0.000000e+00 : f32
    %717 = vector.broadcast %cst_262 : f32 to vector<4x32xf32>
    %718 = vector.broadcast %52 : vector<1x32xf32> to vector<16x32xf32>
    %719 = arith.mulf %713, %718 : vector<16x32xf32>
    %cst_263 = arith.constant dense<0.000000e+00> : vector<4x16xf32>
    %720 = tpu.matmul %710, %719, %cst_263 {dimension_numbers = #tpu.dot_dimension_numbers<[1], [1], [0], [0], [0, 0, 1, 0], [], []>} : vector<4x32xf32>, vector<16x32xf32>, vector<4x16xf32> -> vector<4x16xf32>
    %cst_264 = arith.constant 0.353553385 : f32
    %721 = vector.broadcast %cst_264 : f32 to vector<4x16xf32>
    %722 = arith.mulf %720, %721 : vector<4x16xf32>
    %cst_265 = arith.constant dense<0xFF800000> : vector<4xf32>
    %723 = vector.multi_reduction <maximumf>, %722, %cst_265 [1] : vector<4x16xf32> to vector<4xf32>
    %724 = vector.shape_cast %723 : vector<4xf32> to vector<4x1xf32>
    %725 = vector.broadcast %724 : vector<4x1xf32> to vector<4x16xf32>
    %726 = arith.subf %722, %725 : vector<4x16xf32>
    %727 = math.exp %726 : vector<4x16xf32>
    %cst_266 = arith.constant dense<0.000000e+00> : vector<4xf32>
    %728 = vector.multi_reduction <add>, %727, %cst_266 [1] : vector<4x16xf32> to vector<4xf32>
    %729 = vector.shape_cast %728 : vector<4xf32> to vector<4x1xf32>
    %730 = vector.broadcast %729 : vector<4x1xf32> to vector<4x16xf32>
    %731 = arith.divf %727, %730 : vector<4x16xf32>
    %732 = vector.broadcast %52 : vector<1x32xf32> to vector<16x32xf32>
    %733 = arith.mulf %716, %732 : vector<16x32xf32>
    %cst_267 = arith.constant dense<0.000000e+00> : vector<4x32xf32>
    %734 = tpu.matmul %731, %733, %cst_267 {dimension_numbers = #tpu.dot_dimension_numbers<[1], [0], [0], [1], [0, 0, 1, 1], [], []>} : vector<4x16xf32>, vector<16x32xf32>, vector<4x32xf32> -> vector<4x32xf32>
    %735 = arith.addf %717, %734 : vector<4x32xf32>
    %736 = vector.broadcast %59 : vector<1x32xf32> to vector<16x32xf32>
    %737 = arith.mulf %713, %736 : vector<16x32xf32>
    %cst_268 = arith.constant dense<0.000000e+00> : vector<4x16xf32>
    %738 = tpu.matmul %710, %737, %cst_268 {dimension_numbers = #tpu.dot_dimension_numbers<[1], [1], [0], [0], [0, 0, 1, 0], [], []>} : vector<4x32xf32>, vector<16x32xf32>, vector<4x16xf32> -> vector<4x16xf32>
    %cst_269 = arith.constant 0.353553385 : f32
    %739 = vector.broadcast %cst_269 : f32 to vector<4x16xf32>
    %740 = arith.mulf %738, %739 : vector<4x16xf32>
    %cst_270 = arith.constant dense<0xFF800000> : vector<4xf32>
    %741 = vector.multi_reduction <maximumf>, %740, %cst_270 [1] : vector<4x16xf32> to vector<4xf32>
    %742 = vector.shape_cast %741 : vector<4xf32> to vector<4x1xf32>
    %743 = vector.broadcast %742 : vector<4x1xf32> to vector<4x16xf32>
    %744 = arith.subf %740, %743 : vector<4x16xf32>
    %745 = math.exp %744 : vector<4x16xf32>
    %cst_271 = arith.constant dense<0.000000e+00> : vector<4xf32>
    %746 = vector.multi_reduction <add>, %745, %cst_271 [1] : vector<4x16xf32> to vector<4xf32>
    %747 = vector.shape_cast %746 : vector<4xf32> to vector<4x1xf32>
    %748 = vector.broadcast %747 : vector<4x1xf32> to vector<4x16xf32>
    %749 = arith.divf %745, %748 : vector<4x16xf32>
    %750 = vector.broadcast %59 : vector<1x32xf32> to vector<16x32xf32>
    %751 = arith.mulf %716, %750 : vector<16x32xf32>
    %cst_272 = arith.constant dense<0.000000e+00> : vector<4x32xf32>
    %752 = tpu.matmul %749, %751, %cst_272 {dimension_numbers = #tpu.dot_dimension_numbers<[1], [0], [0], [1], [0, 0, 1, 1], [], []>} : vector<4x16xf32>, vector<16x32xf32>, vector<4x32xf32> -> vector<4x32xf32>
    %753 = arith.addf %735, %752 : vector<4x32xf32>
    %754 = vector.broadcast %66 : vector<1x32xf32> to vector<16x32xf32>
    %755 = arith.mulf %713, %754 : vector<16x32xf32>
    %cst_273 = arith.constant dense<0.000000e+00> : vector<4x16xf32>
    %756 = tpu.matmul %710, %755, %cst_273 {dimension_numbers = #tpu.dot_dimension_numbers<[1], [1], [0], [0], [0, 0, 1, 0], [], []>} : vector<4x32xf32>, vector<16x32xf32>, vector<4x16xf32> -> vector<4x16xf32>
    %cst_274 = arith.constant 0.353553385 : f32
    %757 = vector.broadcast %cst_274 : f32 to vector<4x16xf32>
    %758 = arith.mulf %756, %757 : vector<4x16xf32>
    %cst_275 = arith.constant dense<0xFF800000> : vector<4xf32>
    %759 = vector.multi_reduction <maximumf>, %758, %cst_275 [1] : vector<4x16xf32> to vector<4xf32>
    %760 = vector.shape_cast %759 : vector<4xf32> to vector<4x1xf32>
    %761 = vector.broadcast %760 : vector<4x1xf32> to vector<4x16xf32>
    %762 = arith.subf %758, %761 : vector<4x16xf32>
    %763 = math.exp %762 : vector<4x16xf32>
    %cst_276 = arith.constant dense<0.000000e+00> : vector<4xf32>
    %764 = vector.multi_reduction <add>, %763, %cst_276 [1] : vector<4x16xf32> to vector<4xf32>
    %765 = vector.shape_cast %764 : vector<4xf32> to vector<4x1xf32>
    %766 = vector.broadcast %765 : vector<4x1xf32> to vector<4x16xf32>
    %767 = arith.divf %763, %766 : vector<4x16xf32>
    %768 = vector.broadcast %66 : vector<1x32xf32> to vector<16x32xf32>
    %769 = arith.mulf %716, %768 : vector<16x32xf32>
    %cst_277 = arith.constant dense<0.000000e+00> : vector<4x32xf32>
    %770 = tpu.matmul %767, %769, %cst_277 {dimension_numbers = #tpu.dot_dimension_numbers<[1], [0], [0], [1], [0, 0, 1, 1], [], []>} : vector<4x16xf32>, vector<16x32xf32>, vector<4x32xf32> -> vector<4x32xf32>
    %771 = arith.addf %753, %770 : vector<4x32xf32>
    %772 = vector.broadcast %73 : vector<1x32xf32> to vector<16x32xf32>
    %773 = arith.mulf %713, %772 : vector<16x32xf32>
    %cst_278 = arith.constant dense<0.000000e+00> : vector<4x16xf32>
    %774 = tpu.matmul %710, %773, %cst_278 {dimension_numbers = #tpu.dot_dimension_numbers<[1], [1], [0], [0], [0, 0, 1, 0], [], []>} : vector<4x32xf32>, vector<16x32xf32>, vector<4x16xf32> -> vector<4x16xf32>
    %cst_279 = arith.constant 0.353553385 : f32
    %775 = vector.broadcast %cst_279 : f32 to vector<4x16xf32>
    %776 = arith.mulf %774, %775 : vector<4x16xf32>
    %cst_280 = arith.constant dense<0xFF800000> : vector<4xf32>
    %777 = vector.multi_reduction <maximumf>, %776, %cst_280 [1] : vector<4x16xf32> to vector<4xf32>
    %778 = vector.shape_cast %777 : vector<4xf32> to vector<4x1xf32>
    %779 = vector.broadcast %778 : vector<4x1xf32> to vector<4x16xf32>
    %780 = arith.subf %776, %779 : vector<4x16xf32>
    %781 = math.exp %780 : vector<4x16xf32>
    %cst_281 = arith.constant dense<0.000000e+00> : vector<4xf32>
    %782 = vector.multi_reduction <add>, %781, %cst_281 [1] : vector<4x16xf32> to vector<4xf32>
    %783 = vector.shape_cast %782 : vector<4xf32> to vector<4x1xf32>
    %784 = vector.broadcast %783 : vector<4x1xf32> to vector<4x16xf32>
    %785 = arith.divf %781, %784 : vector<4x16xf32>
    %786 = vector.broadcast %73 : vector<1x32xf32> to vector<16x32xf32>
    %787 = arith.mulf %716, %786 : vector<16x32xf32>
    %cst_282 = arith.constant dense<0.000000e+00> : vector<4x32xf32>
    %788 = tpu.matmul %785, %787, %cst_282 {dimension_numbers = #tpu.dot_dimension_numbers<[1], [0], [0], [1], [0, 0, 1, 1], [], []>} : vector<4x16xf32>, vector<16x32xf32>, vector<4x32xf32> -> vector<4x32xf32>
    %789 = arith.addf %771, %788 : vector<4x32xf32>
    %cst_283 = arith.constant dense<0.000000e+00> : vector<4x32xf32>
    %790 = tpu.matmul %789, %705, %cst_283 {dimension_numbers = #tpu.dot_dimension_numbers<[1], [0], [0], [1], [0, 0, 1, 1], [], []>} : vector<4x32xf32>, vector<32x32xf32>, vector<4x32xf32> -> vector<4x32xf32>
    %791 = vector.broadcast %707 : vector<1x32xf32> to vector<4x32xf32>
    %792 = arith.addf %790, %791 : vector<4x32xf32>
    %793 = arith.addf %559, %792 : vector<4x32xf32>
    %794 = vector.extract_strided_slice %21 {offsets = [4, 0, 0], sizes = [1, 1, 32], strides = [1, 1, 1]} : vector<5x1x32xf32> to vector<1x1x32xf32>
    %795 = vector.shape_cast %794 : vector<1x1x32xf32> to vector<1x32xf32>
    %796 = vector.extract_strided_slice %22 {offsets = [4, 0, 0], sizes = [1, 1, 32], strides = [1, 1, 1]} : vector<5x1x32xf32> to vector<1x1x32xf32>
    %797 = vector.shape_cast %796 : vector<1x1x32xf32> to vector<1x32xf32>
    %cst_284 = arith.constant dense<0.000000e+00> : vector<4xf32>
    %798 = vector.multi_reduction <add>, %793, %cst_284 [1] : vector<4x32xf32> to vector<4xf32>
    %799 = vector.shape_cast %798 : vector<4xf32> to vector<4x1xf32>
    %cst_285 = arith.constant 3.200000e+01 : f32
    %800 = vector.broadcast %cst_285 : f32 to vector<4x1xf32>
    %801 = arith.divf %799, %800 : vector<4x1xf32>
    %802 = vector.broadcast %801 : vector<4x1xf32> to vector<4x32xf32>
    %803 = arith.subf %793, %802 : vector<4x32xf32>
    %804 = arith.mulf %803, %803 : vector<4x32xf32>
    %cst_286 = arith.constant dense<0.000000e+00> : vector<4xf32>
    %805 = vector.multi_reduction <add>, %804, %cst_286 [1] : vector<4x32xf32> to vector<4xf32>
    %806 = vector.shape_cast %805 : vector<4xf32> to vector<4x1xf32>
    %cst_287 = arith.constant 3.200000e+01 : f32
    %807 = vector.broadcast %cst_287 : f32 to vector<4x1xf32>
    %808 = arith.divf %806, %807 : vector<4x1xf32>
    %809 = vector.broadcast %801 : vector<4x1xf32> to vector<4x32xf32>
    %810 = arith.subf %793, %809 : vector<4x32xf32>
    %cst_288 = arith.constant 9.99999974E-6 : f32
    %811 = vector.broadcast %cst_288 : f32 to vector<4x1xf32>
    %812 = arith.addf %808, %811 : vector<4x1xf32>
    %813 = math.rsqrt %812 : vector<4x1xf32>
    %814 = vector.broadcast %813 : vector<4x1xf32> to vector<4x32xf32>
    %815 = arith.mulf %810, %814 : vector<4x32xf32>
    %816 = vector.broadcast %795 : vector<1x32xf32> to vector<4x32xf32>
    %817 = arith.mulf %815, %816 : vector<4x32xf32>
    %818 = vector.broadcast %797 : vector<1x32xf32> to vector<4x32xf32>
    %819 = arith.addf %817, %818 : vector<4x32xf32>
    %820 = vector.extract_strided_slice %819 {offsets = [1, 0], sizes = [1, 32], strides = [1, 1]} : vector<4x32xf32> to vector<1x32xf32>
    %cst_289 = arith.constant dense<0.000000e+00> : vector<1x32xf32>
    %821 = tpu.matmul %820, %27, %cst_289 {dimension_numbers = #tpu.dot_dimension_numbers<[1], [0], [0], [1], [0, 0, 1, 1], [], []>} : vector<1x32xf32>, vector<32x32xf32>, vector<1x32xf32> -> vector<1x32xf32>
    %822 = arith.addf %821, %28 : vector<1x32xf32>
    %cst_290 = arith.constant 0.000000e+00 : f32
    %823 = vector.broadcast %cst_290 : f32 to vector<1x32xf32>
    %824 = arith.maximumf %822, %823 : vector<1x32xf32>
    %cst_291 = arith.constant dense<0.000000e+00> : vector<1x32xf32>
    %825 = tpu.matmul %824, %29, %cst_291 {dimension_numbers = #tpu.dot_dimension_numbers<[1], [0], [0], [1], [0, 0, 1, 1], [], []>} : vector<1x32xf32>, vector<32x32xf32>, vector<1x32xf32> -> vector<1x32xf32>
    %826 = arith.addf %825, %30 : vector<1x32xf32>
    %cst_292 = arith.constant 0.000000e+00 : f32
    %827 = vector.broadcast %cst_292 : f32 to vector<1x32xf32>
    %828 = arith.maximumf %826, %827 : vector<1x32xf32>
    %cst_293 = arith.constant dense<0.000000e+00> : vector<1x128xf32>
    %829 = tpu.matmul %828, %31, %cst_293 {dimension_numbers = #tpu.dot_dimension_numbers<[1], [0], [0], [1], [0, 0, 1, 1], [], []>} : vector<1x32xf32>, vector<32x128xf32>, vector<1x128xf32> -> vector<1x128xf32>
    %830 = arith.addf %829, %32 : vector<1x128xf32>
    %cst_294 = arith.constant dense<0.000000e+00> : vector<16x32xf32>
    %831 = tpu.matmul %689, %33, %cst_294 {dimension_numbers = #tpu.dot_dimension_numbers<[1], [0], [0], [1], [0, 0, 1, 1], [], []>} : vector<16x32xf32>, vector<32x32xf32>, vector<16x32xf32> -> vector<16x32xf32>
    %832 = vector.broadcast %34 : vector<1x32xf32> to vector<16x32xf32>
    %833 = arith.addf %831, %832 : vector<16x32xf32>
    %834 = arith.mulf %833, %833 : vector<16x32xf32>
    %835 = arith.mulf %833, %834 : vector<16x32xf32>
    %cst_295 = arith.constant 4.471500e-02 : f32
    %836 = vector.broadcast %cst_295 : f32 to vector<16x32xf32>
    %837 = arith.mulf %836, %835 : vector<16x32xf32>
    %838 = arith.addf %833, %837 : vector<16x32xf32>
    %cst_296 = arith.constant 0.797884583 : f32
    %839 = vector.broadcast %cst_296 : f32 to vector<16x32xf32>
    %840 = arith.mulf %839, %838 : vector<16x32xf32>
    %841 = math.tanh %840 : vector<16x32xf32>
    %cst_297 = arith.constant 1.000000e+00 : f32
    %842 = vector.broadcast %cst_297 : f32 to vector<16x32xf32>
    %843 = arith.addf %842, %841 : vector<16x32xf32>
    %cst_298 = arith.constant 5.000000e-01 : f32
    %844 = vector.broadcast %cst_298 : f32 to vector<16x32xf32>
    %845 = arith.mulf %844, %843 : vector<16x32xf32>
    %846 = arith.mulf %833, %845 : vector<16x32xf32>
    %cst_299 = arith.constant 0.000000e+00 : f32
    %847 = vector.broadcast %cst_299 : f32 to vector<4x128xf32>
    %848 = vector.extract_strided_slice %35 {offsets = [0, 0, 0], sizes = [1, 4, 16], strides = [1, 1, 1]} : vector<4x4x16xf32> to vector<1x4x16xf32>
    %849 = vector.shape_cast %848 : vector<1x4x16xf32> to vector<4x16xf32>
    %cst_300 = arith.constant dense<0.000000e+00> : vector<4x32xf32>
    %850 = tpu.matmul %849, %846, %cst_300 {dimension_numbers = #tpu.dot_dimension_numbers<[1], [0], [0], [1], [0, 0, 1, 1], [], []>} : vector<4x16xf32>, vector<16x32xf32>, vector<4x32xf32> -> vector<4x32xf32>
    %851 = vector.extract_strided_slice %36 {offsets = [0, 0, 0], sizes = [1, 32, 128], strides = [1, 1, 1]} : vector<4x32x128xf32> to vector<1x32x128xf32>
    %852 = vector.shape_cast %851 : vector<1x32x128xf32> to vector<32x128xf32>
    %cst_301 = arith.constant dense<0.000000e+00> : vector<4x128xf32>
    %853 = tpu.matmul %850, %852, %cst_301 {dimension_numbers = #tpu.dot_dimension_numbers<[1], [0], [0], [1], [0, 0, 1, 1], [], []>} : vector<4x32xf32>, vector<32x128xf32>, vector<4x128xf32> -> vector<4x128xf32>
    %854 = arith.addf %847, %853 : vector<4x128xf32>
    %855 = vector.extract_strided_slice %35 {offsets = [1, 0, 0], sizes = [1, 4, 16], strides = [1, 1, 1]} : vector<4x4x16xf32> to vector<1x4x16xf32>
    %856 = vector.shape_cast %855 : vector<1x4x16xf32> to vector<4x16xf32>
    %cst_302 = arith.constant dense<0.000000e+00> : vector<4x32xf32>
    %857 = tpu.matmul %856, %846, %cst_302 {dimension_numbers = #tpu.dot_dimension_numbers<[1], [0], [0], [1], [0, 0, 1, 1], [], []>} : vector<4x16xf32>, vector<16x32xf32>, vector<4x32xf32> -> vector<4x32xf32>
    %858 = vector.extract_strided_slice %36 {offsets = [1, 0, 0], sizes = [1, 32, 128], strides = [1, 1, 1]} : vector<4x32x128xf32> to vector<1x32x128xf32>
    %859 = vector.shape_cast %858 : vector<1x32x128xf32> to vector<32x128xf32>
    %cst_303 = arith.constant dense<0.000000e+00> : vector<4x128xf32>
    %860 = tpu.matmul %857, %859, %cst_303 {dimension_numbers = #tpu.dot_dimension_numbers<[1], [0], [0], [1], [0, 0, 1, 1], [], []>} : vector<4x32xf32>, vector<32x128xf32>, vector<4x128xf32> -> vector<4x128xf32>
    %861 = arith.addf %854, %860 : vector<4x128xf32>
    %862 = vector.extract_strided_slice %35 {offsets = [2, 0, 0], sizes = [1, 4, 16], strides = [1, 1, 1]} : vector<4x4x16xf32> to vector<1x4x16xf32>
    %863 = vector.shape_cast %862 : vector<1x4x16xf32> to vector<4x16xf32>
    %cst_304 = arith.constant dense<0.000000e+00> : vector<4x32xf32>
    %864 = tpu.matmul %863, %846, %cst_304 {dimension_numbers = #tpu.dot_dimension_numbers<[1], [0], [0], [1], [0, 0, 1, 1], [], []>} : vector<4x16xf32>, vector<16x32xf32>, vector<4x32xf32> -> vector<4x32xf32>
    %865 = vector.extract_strided_slice %36 {offsets = [2, 0, 0], sizes = [1, 32, 128], strides = [1, 1, 1]} : vector<4x32x128xf32> to vector<1x32x128xf32>
    %866 = vector.shape_cast %865 : vector<1x32x128xf32> to vector<32x128xf32>
    %cst_305 = arith.constant dense<0.000000e+00> : vector<4x128xf32>
    %867 = tpu.matmul %864, %866, %cst_305 {dimension_numbers = #tpu.dot_dimension_numbers<[1], [0], [0], [1], [0, 0, 1, 1], [], []>} : vector<4x32xf32>, vector<32x128xf32>, vector<4x128xf32> -> vector<4x128xf32>
    %868 = arith.addf %861, %867 : vector<4x128xf32>
    %869 = vector.extract_strided_slice %35 {offsets = [3, 0, 0], sizes = [1, 4, 16], strides = [1, 1, 1]} : vector<4x4x16xf32> to vector<1x4x16xf32>
    %870 = vector.shape_cast %869 : vector<1x4x16xf32> to vector<4x16xf32>
    %cst_306 = arith.constant dense<0.000000e+00> : vector<4x32xf32>
    %871 = tpu.matmul %870, %846, %cst_306 {dimension_numbers = #tpu.dot_dimension_numbers<[1], [0], [0], [1], [0, 0, 1, 1], [], []>} : vector<4x16xf32>, vector<16x32xf32>, vector<4x32xf32> -> vector<4x32xf32>
    %872 = vector.extract_strided_slice %36 {offsets = [3, 0, 0], sizes = [1, 32, 128], strides = [1, 1, 1]} : vector<4x32x128xf32> to vector<1x32x128xf32>
    %873 = vector.shape_cast %872 : vector<1x32x128xf32> to vector<32x128xf32>
    %cst_307 = arith.constant dense<0.000000e+00> : vector<4x128xf32>
    %874 = tpu.matmul %871, %873, %cst_307 {dimension_numbers = #tpu.dot_dimension_numbers<[1], [0], [0], [1], [0, 0, 1, 1], [], []>} : vector<4x32xf32>, vector<32x128xf32>, vector<4x128xf32> -> vector<4x128xf32>
    %875 = arith.addf %868, %874 : vector<4x128xf32>
    %876 = vector.extract_strided_slice %37 {offsets = [0, 0, 0], sizes = [1, 128, 128], strides = [1, 1, 1]} : vector<2x128x128xf32> to vector<1x128x128xf32>
    %877 = vector.shape_cast %876 : vector<1x128x128xf32> to vector<128x128xf32>
    %cst_308 = arith.constant dense<0.000000e+00> : vector<4x128xf32>
    %878 = tpu.matmul %875, %877, %cst_308 {dimension_numbers = #tpu.dot_dimension_numbers<[1], [0], [0], [1], [0, 0, 1, 1], [], []>} : vector<4x128xf32>, vector<128x128xf32>, vector<4x128xf32> -> vector<4x128xf32>
    %879 = vector.extract_strided_slice %37 {offsets = [1, 0, 0], sizes = [1, 128, 128], strides = [1, 1, 1]} : vector<2x128x128xf32> to vector<1x128x128xf32>
    %880 = vector.shape_cast %879 : vector<1x128x128xf32> to vector<128x128xf32>
    %cst_309 = arith.constant dense<0.000000e+00> : vector<4x128xf32>
    %881 = tpu.matmul %875, %880, %cst_309 {dimension_numbers = #tpu.dot_dimension_numbers<[1], [0], [0], [1], [0, 0, 1, 1], [], []>} : vector<4x128xf32>, vector<128x128xf32>, vector<4x128xf32> -> vector<4x128xf32>
    %882 = vector.extract_strided_slice %38 {offsets = [0, 0, 0], sizes = [1, 8, 4], strides = [1, 1, 1]} : vector<2x8x4xf32> to vector<1x8x4xf32>
    %883 = vector.shape_cast %882 : vector<1x8x4xf32> to vector<8x4xf32>
    %cst_310 = arith.constant dense<0.000000e+00> : vector<8x128xf32>
    %884 = tpu.matmul %883, %878, %cst_310 {dimension_numbers = #tpu.dot_dimension_numbers<[1], [0], [0], [1], [0, 0, 1, 1], [], []>} : vector<8x4xf32>, vector<4x128xf32>, vector<8x128xf32> -> vector<8x128xf32>
    %885 = vector.extract_strided_slice %38 {offsets = [1, 0, 0], sizes = [1, 8, 4], strides = [1, 1, 1]} : vector<2x8x4xf32> to vector<1x8x4xf32>
    %886 = vector.shape_cast %885 : vector<1x8x4xf32> to vector<8x4xf32>
    %cst_311 = arith.constant dense<0.000000e+00> : vector<8x128xf32>
    %887 = tpu.matmul %886, %881, %cst_311 {dimension_numbers = #tpu.dot_dimension_numbers<[1], [0], [0], [1], [0, 0, 1, 1], [], []>} : vector<8x4xf32>, vector<4x128xf32>, vector<8x128xf32> -> vector<8x128xf32>
    %888 = arith.addf %884, %887 : vector<8x128xf32>
    %889 = vector.broadcast %39 : vector<1x128xf32> to vector<8x128xf32>
    %890 = arith.addf %888, %889 : vector<8x128xf32>
    %891 = arith.mulf %890, %890 : vector<8x128xf32>
    %892 = arith.mulf %890, %891 : vector<8x128xf32>
    %cst_312 = arith.constant 4.471500e-02 : f32
    %893 = vector.broadcast %cst_312 : f32 to vector<8x128xf32>
    %894 = arith.mulf %893, %892 : vector<8x128xf32>
    %895 = arith.addf %890, %894 : vector<8x128xf32>
    %cst_313 = arith.constant 0.797884583 : f32
    %896 = vector.broadcast %cst_313 : f32 to vector<8x128xf32>
    %897 = arith.mulf %896, %895 : vector<8x128xf32>
    %898 = math.tanh %897 : vector<8x128xf32>
    %cst_314 = arith.constant 1.000000e+00 : f32
    %899 = vector.broadcast %cst_314 : f32 to vector<8x128xf32>
    %900 = arith.addf %899, %898 : vector<8x128xf32>
    %cst_315 = arith.constant 5.000000e-01 : f32
    %901 = vector.broadcast %cst_315 : f32 to vector<8x128xf32>
    %902 = arith.mulf %901, %900 : vector<8x128xf32>
    %903 = arith.mulf %890, %902 : vector<8x128xf32>
    %904 = vector.broadcast %830 : vector<1x128xf32> to vector<8x128xf32>
    %905 = arith.mulf %903, %904 : vector<8x128xf32>
    %906 = vector.extract_strided_slice %40 {offsets = [0, 0, 0], sizes = [1, 128, 16], strides = [1, 1, 1]} : vector<2x128x16xf32> to vector<1x128x16xf32>
    %907 = vector.shape_cast %906 : vector<1x128x16xf32> to vector<128x16xf32>
    %cst_316 = arith.constant dense<0.000000e+00> : vector<8x16xf32>
    %908 = tpu.matmul %905, %907, %cst_316 {dimension_numbers = #tpu.dot_dimension_numbers<[1], [0], [0], [1], [0, 0, 1, 1], [], []>} : vector<8x128xf32>, vector<128x16xf32>, vector<8x16xf32> -> vector<8x16xf32>
    %909 = vector.extract_strided_slice %40 {offsets = [1, 0, 0], sizes = [1, 128, 16], strides = [1, 1, 1]} : vector<2x128x16xf32> to vector<1x128x16xf32>
    %910 = vector.shape_cast %909 : vector<1x128x16xf32> to vector<128x16xf32>
    %cst_317 = arith.constant dense<0.000000e+00> : vector<8x16xf32>
    %911 = tpu.matmul %905, %910, %cst_317 {dimension_numbers = #tpu.dot_dimension_numbers<[1], [0], [0], [1], [0, 0, 1, 1], [], []>} : vector<8x128xf32>, vector<128x16xf32>, vector<8x16xf32> -> vector<8x16xf32>
    %912 = vector.extract_strided_slice %41 {offsets = [0, 0, 0], sizes = [1, 16, 8], strides = [1, 1, 1]} : vector<2x16x8xf32> to vector<1x16x8xf32>
    %913 = vector.shape_cast %912 : vector<1x16x8xf32> to vector<16x8xf32>
    %cst_318 = arith.constant dense<0.000000e+00> : vector<16x16xf32>
    %914 = tpu.matmul %913, %908, %cst_318 {dimension_numbers = #tpu.dot_dimension_numbers<[1], [0], [0], [1], [0, 0, 1, 1], [], []>} : vector<16x8xf32>, vector<8x16xf32>, vector<16x16xf32> -> vector<16x16xf32>
    %915 = vector.extract_strided_slice %41 {offsets = [1, 0, 0], sizes = [1, 16, 8], strides = [1, 1, 1]} : vector<2x16x8xf32> to vector<1x16x8xf32>
    %916 = vector.shape_cast %915 : vector<1x16x8xf32> to vector<16x8xf32>
    %cst_319 = arith.constant dense<0.000000e+00> : vector<16x16xf32>
    %917 = tpu.matmul %916, %911, %cst_319 {dimension_numbers = #tpu.dot_dimension_numbers<[1], [0], [0], [1], [0, 0, 1, 1], [], []>} : vector<16x8xf32>, vector<8x16xf32>, vector<16x16xf32> -> vector<16x16xf32>
    %918 = arith.addf %914, %917 : vector<16x16xf32>
    %cst_320 = arith.constant dense<0.000000e+00> : vector<16x64xf32>
    %919 = tpu.matmul %918, %42, %cst_320 {dimension_numbers = #tpu.dot_dimension_numbers<[1], [0], [0], [1], [0, 0, 1, 1], [], []>} : vector<16x16xf32>, vector<16x64xf32>, vector<16x64xf32> -> vector<16x64xf32>
    %920 = vector.extract_strided_slice %43 {offsets = [0, 0, 0], sizes = [1, 32, 16], strides = [1, 1, 1]} : vector<2x32x16xf32> to vector<1x32x16xf32>
    %921 = vector.shape_cast %920 : vector<1x32x16xf32> to vector<32x16xf32>
    %cst_321 = arith.constant dense<0.000000e+00> : vector<32x64xf32>
    %922 = tpu.matmul %921, %919, %cst_321 {dimension_numbers = #tpu.dot_dimension_numbers<[1], [0], [0], [1], [0, 0, 1, 1], [], []>} : vector<32x16xf32>, vector<16x64xf32>, vector<32x64xf32> -> vector<32x64xf32>
    %923 = vector.extract_strided_slice %43 {offsets = [1, 0, 0], sizes = [1, 32, 16], strides = [1, 1, 1]} : vector<2x32x16xf32> to vector<1x32x16xf32>
    %924 = vector.shape_cast %923 : vector<1x32x16xf32> to vector<32x16xf32>
    %cst_322 = arith.constant dense<0.000000e+00> : vector<32x64xf32>
    %925 = tpu.matmul %924, %919, %cst_322 {dimension_numbers = #tpu.dot_dimension_numbers<[1], [0], [0], [1], [0, 0, 1, 1], [], []>} : vector<32x16xf32>, vector<16x64xf32>, vector<32x64xf32> -> vector<32x64xf32>
    %926 = vector.extract_strided_slice %44 {offsets = [0, 0, 0], sizes = [1, 64, 128], strides = [1, 1, 1]} : vector<2x64x128xf32> to vector<1x64x128xf32>
    %927 = vector.shape_cast %926 : vector<1x64x128xf32> to vector<64x128xf32>
    %cst_323 = arith.constant dense<0.000000e+00> : vector<32x128xf32>
    %928 = tpu.matmul %922, %927, %cst_323 {dimension_numbers = #tpu.dot_dimension_numbers<[1], [0], [0], [1], [0, 0, 1, 1], [], []>} : vector<32x64xf32>, vector<64x128xf32>, vector<32x128xf32> -> vector<32x128xf32>
    %929 = vector.extract_strided_slice %44 {offsets = [1, 0, 0], sizes = [1, 64, 128], strides = [1, 1, 1]} : vector<2x64x128xf32> to vector<1x64x128xf32>
    %930 = vector.shape_cast %929 : vector<1x64x128xf32> to vector<64x128xf32>
    %cst_324 = arith.constant dense<0.000000e+00> : vector<32x128xf32>
    %931 = tpu.matmul %925, %930, %cst_324 {dimension_numbers = #tpu.dot_dimension_numbers<[1], [0], [0], [1], [0, 0, 1, 1], [], []>} : vector<32x64xf32>, vector<64x128xf32>, vector<32x128xf32> -> vector<32x128xf32>
    %932 = arith.addf %928, %931 : vector<32x128xf32>
    %c0_325 = arith.constant 0 : index
    %c0_326 = arith.constant 0 : index
    %c0_327 = arith.constant 0 : index
    %933 = vector.load %arg48[%c0_325, %c0_326, %c0_327] : memref<1x32x128xf32, #tpu.memory_space<vmem>>, vector<1x32x128xf32>
    %934 = vector.shape_cast %933 : vector<1x32x128xf32> to vector<32x128xf32>
    %935 = vector.shape_cast %932 : vector<32x128xf32> to vector<1x32x128xf32>
    tpu.vector_store %arg48[%c0_325, %c0_326, %c0_327], %935 {strides = array<i32>} : memref<1x32x128xf32, #tpu.memory_space<vmem>>, vector<1x32x128xf32>,
    return
  }
  func.func @transform_0(%arg0: i32) -> (i32, i32, i32) {
    %c0_i32 = arith.constant 0 : i32
    %c0_i32_0 = arith.constant 0 : i32
    %c0_i32_1 = arith.constant 0 : i32
    return %arg0, %c0_i32, %c0_i32_0 : i32, i32, i32
  }
  func.func @transform_1(%arg0: i32) -> (i32, i32, i32) {
    %c0_i32 = arith.constant 0 : i32
    %c0_i32_0 = arith.constant 0 : i32
    %c0_i32_1 = arith.constant 0 : i32
    return %arg0, %c0_i32, %c0_i32_0 : i32, i32, i32
  }
  func.func @transform_2(%arg0: i32) -> (i32, i32) {
    %c0_i32 = arith.constant 0 : i32
    %c0_i32_0 = arith.constant 0 : i32
    %c0_i32_1 = arith.constant 0 : i32
    return %c0_i32, %c0_i32_0 : i32, i32
  }
  func.func @transform_3(%arg0: i32) -> (i32, i32) {
    %c0_i32 = arith.constant 0 : i32
    %c0_i32_0 = arith.constant 0 : i32
    %c0_i32_1 = arith.constant 0 : i32
    return %c0_i32, %c0_i32_0 : i32, i32
  }
  func.func @transform_4(%arg0: i32) -> (i32, i32) {
    %c0_i32 = arith.constant 0 : i32
    %c0_i32_0 = arith.constant 0 : i32
    %c0_i32_1 = arith.constant 0 : i32
    return %c0_i32, %c0_i32_0 : i32, i32
  }
  func.func @transform_5(%arg0: i32) -> (i32, i32) {
    %c0_i32 = arith.constant 0 : i32
    %c0_i32_0 = arith.constant 0 : i32
    %c0_i32_1 = arith.constant 0 : i32
    return %c0_i32, %c0_i32_0 : i32, i32
  }
  func.func @transform_6(%arg0: i32) -> (i32, i32) {
    %c0_i32 = arith.constant 0 : i32
    %c0_i32_0 = arith.constant 0 : i32
    %c0_i32_1 = arith.constant 0 : i32
    return %c0_i32, %c0_i32_0 : i32, i32
  }
  func.func @transform_7(%arg0: i32) -> (i32, i32) {
    %c0_i32 = arith.constant 0 : i32
    %c0_i32_0 = arith.constant 0 : i32
    %c0_i32_1 = arith.constant 0 : i32
    return %c0_i32, %c0_i32_0 : i32, i32
  }
  func.func @transform_8(%arg0: i32) -> (i32, i32) {
    %c0_i32 = arith.constant 0 : i32
    %c0_i32_0 = arith.constant 0 : i32
    %c0_i32_1 = arith.constant 0 : i32
    return %c0_i32, %c0_i32_0 : i32, i32
  }
  func.func @transform_9(%arg0: i32) -> (i32, i32, i32) {
    %c0_i32 = arith.constant 0 : i32
    %c0_i32_0 = arith.constant 0 : i32
    %c0_i32_1 = arith.constant 0 : i32
    %c0_i32_2 = arith.constant 0 : i32
    return %c0_i32, %c0_i32_0, %c0_i32_1 : i32, i32, i32
  }
  func.func @transform_10(%arg0: i32) -> (i32, i32, i32) {
    %c0_i32 = arith.constant 0 : i32
    %c0_i32_0 = arith.constant 0 : i32
    %c0_i32_1 = arith.constant 0 : i32
    %c0_i32_2 = arith.constant 0 : i32
    return %c0_i32, %c0_i32_0, %c0_i32_1 : i32, i32, i32
  }
  func.func @transform_11(%arg0: i32) -> (i32, i32) {
    %c0_i32 = arith.constant 0 : i32
    %c0_i32_0 = arith.constant 0 : i32
    %c0_i32_1 = arith.constant 0 : i32
    return %c0_i32, %c0_i32_0 : i32, i32
  }
  func.func @transform_12(%arg0: i32) -> (i32, i32) {
    %c0_i32 = arith.constant 0 : i32
    %c0_i32_0 = arith.constant 0 : i32
    %c0_i32_1 = arith.constant 0 : i32
    return %c0_i32, %c0_i32_0 : i32, i32
  }
  func.func @transform_13(%arg0: i32) -> (i32, i32) {
    %c0_i32 = arith.constant 0 : i32
    %c0_i32_0 = arith.constant 0 : i32
    %c0_i32_1 = arith.constant 0 : i32
    return %c0_i32, %c0_i32_0 : i32, i32
  }
  func.func @transform_14(%arg0: i32) -> (i32, i32) {
    %c0_i32 = arith.constant 0 : i32
    %c0_i32_0 = arith.constant 0 : i32
    %c0_i32_1 = arith.constant 0 : i32
    return %c0_i32, %c0_i32_0 : i32, i32
  }
  func.func @transform_15(%arg0: i32) -> (i32, i32) {
    %c0_i32 = arith.constant 0 : i32
    %c0_i32_0 = arith.constant 0 : i32
    %c0_i32_1 = arith.constant 0 : i32
    return %c0_i32, %c0_i32_0 : i32, i32
  }
  func.func @transform_16(%arg0: i32) -> (i32, i32) {
    %c0_i32 = arith.constant 0 : i32
    %c0_i32_0 = arith.constant 0 : i32
    %c0_i32_1 = arith.constant 0 : i32
    return %c0_i32, %c0_i32_0 : i32, i32
  }
  func.func @transform_17(%arg0: i32) -> (i32, i32) {
    %c0_i32 = arith.constant 0 : i32
    %c0_i32_0 = arith.constant 0 : i32
    %c0_i32_1 = arith.constant 0 : i32
    return %c0_i32, %c0_i32_0 : i32, i32
  }
  func.func @transform_18(%arg0: i32) -> (i32, i32) {
    %c0_i32 = arith.constant 0 : i32
    %c0_i32_0 = arith.constant 0 : i32
    %c0_i32_1 = arith.constant 0 : i32
    return %c0_i32, %c0_i32_0 : i32, i32
  }
  func.func @transform_19(%arg0: i32) -> (i32, i32, i32, i32) {
    %c0_i32 = arith.constant 0 : i32
    %c0_i32_0 = arith.constant 0 : i32
    %c0_i32_1 = arith.constant 0 : i32
    %c0_i32_2 = arith.constant 0 : i32
    %c0_i32_3 = arith.constant 0 : i32
    return %c0_i32, %c0_i32_0, %c0_i32_1, %c0_i32_2 : i32, i32, i32, i32
  }
  func.func @transform_20(%arg0: i32) -> (i32, i32, i32, i32) {
    %c0_i32 = arith.constant 0 : i32
    %c0_i32_0 = arith.constant 0 : i32
    %c0_i32_1 = arith.constant 0 : i32
    %c0_i32_2 = arith.constant 0 : i32
    %c0_i32_3 = arith.constant 0 : i32
    return %c0_i32, %c0_i32_0, %c0_i32_1, %c0_i32_2 : i32, i32, i32, i32
  }
  func.func @transform_21(%arg0: i32) -> (i32, i32, i32) {
    %c0_i32 = arith.constant 0 : i32
    %c0_i32_0 = arith.constant 0 : i32
    %c0_i32_1 = arith.constant 0 : i32
    %c0_i32_2 = arith.constant 0 : i32
    return %c0_i32, %c0_i32_0, %c0_i32_1 : i32, i32, i32
  }
  func.func @transform_22(%arg0: i32) -> (i32, i32, i32) {
    %c0_i32 = arith.constant 0 : i32
    %c0_i32_0 = arith.constant 0 : i32
    %c0_i32_1 = arith.constant 0 : i32
    %c0_i32_2 = arith.constant 0 : i32
    return %c0_i32, %c0_i32_0, %c0_i32_1 : i32, i32, i32
  }
  func.func @transform_23(%arg0: i32) -> (i32, i32, i32) {
    %c0_i32 = arith.constant 0 : i32
    %c0_i32_0 = arith.constant 0 : i32
    %c0_i32_1 = arith.constant 0 : i32
    %c0_i32_2 = arith.constant 0 : i32
    return %c0_i32, %c0_i32_0, %c0_i32_1 : i32, i32, i32
  }
  func.func @transform_24(%arg0: i32) -> (i32, i32, i32) {
    %c0_i32 = arith.constant 0 : i32
    %c0_i32_0 = arith.constant 0 : i32
    %c0_i32_1 = arith.constant 0 : i32
    %c0_i32_2 = arith.constant 0 : i32
    return %c0_i32, %c0_i32_0, %c0_i32_1 : i32, i32, i32
  }
  func.func @transform_25(%arg0: i32) -> (i32, i32) {
    %c0_i32 = arith.constant 0 : i32
    %c0_i32_0 = arith.constant 0 : i32
    %c0_i32_1 = arith.constant 0 : i32
    return %c0_i32, %c0_i32_0 : i32, i32
  }
  func.func @transform_26(%arg0: i32) -> (i32, i32) {
    %c0_i32 = arith.constant 0 : i32
    %c0_i32_0 = arith.constant 0 : i32
    %c0_i32_1 = arith.constant 0 : i32
    return %c0_i32, %c0_i32_0 : i32, i32
  }
  func.func @transform_27(%arg0: i32) -> (i32, i32) {
    %c0_i32 = arith.constant 0 : i32
    %c0_i32_0 = arith.constant 0 : i32
    %c0_i32_1 = arith.constant 0 : i32
    return %c0_i32, %c0_i32_0 : i32, i32
  }
  func.func @transform_28(%arg0: i32) -> (i32, i32) {
    %c0_i32 = arith.constant 0 : i32
    %c0_i32_0 = arith.constant 0 : i32
    %c0_i32_1 = arith.constant 0 : i32
    return %c0_i32, %c0_i32_0 : i32, i32
  }
  func.func @transform_29(%arg0: i32) -> (i32, i32) {
    %c0_i32 = arith.constant 0 : i32
    %c0_i32_0 = arith.constant 0 : i32
    %c0_i32_1 = arith.constant 0 : i32
    return %c0_i32, %c0_i32_0 : i32, i32
  }
  func.func @transform_30(%arg0: i32) -> (i32, i32) {
    %c0_i32 = arith.constant 0 : i32
    %c0_i32_0 = arith.constant 0 : i32
    %c0_i32_1 = arith.constant 0 : i32
    return %c0_i32, %c0_i32_0 : i32, i32
  }
  func.func @transform_31(%arg0: i32) -> (i32, i32) {
    %c0_i32 = arith.constant 0 : i32
    %c0_i32_0 = arith.constant 0 : i32
    %c0_i32_1 = arith.constant 0 : i32
    return %c0_i32, %c0_i32_0 : i32, i32
  }
  func.func @transform_32(%arg0: i32) -> (i32, i32) {
    %c0_i32 = arith.constant 0 : i32
    %c0_i32_0 = arith.constant 0 : i32
    %c0_i32_1 = arith.constant 0 : i32
    return %c0_i32, %c0_i32_0 : i32, i32
  }
  func.func @transform_33(%arg0: i32) -> (i32, i32) {
    %c0_i32 = arith.constant 0 : i32
    %c0_i32_0 = arith.constant 0 : i32
    %c0_i32_1 = arith.constant 0 : i32
    return %c0_i32, %c0_i32_0 : i32, i32
  }
  func.func @transform_34(%arg0: i32) -> (i32, i32) {
    %c0_i32 = arith.constant 0 : i32
    %c0_i32_0 = arith.constant 0 : i32
    %c0_i32_1 = arith.constant 0 : i32
    return %c0_i32, %c0_i32_0 : i32, i32
  }
  func.func @transform_35(%arg0: i32) -> (i32, i32) {
    %c0_i32 = arith.constant 0 : i32
    %c0_i32_0 = arith.constant 0 : i32
    %c0_i32_1 = arith.constant 0 : i32
    return %c0_i32, %c0_i32_0 : i32, i32
  }
  func.func @transform_36(%arg0: i32) -> (i32, i32) {
    %c0_i32 = arith.constant 0 : i32
    %c0_i32_0 = arith.constant 0 : i32
    %c0_i32_1 = arith.constant 0 : i32
    return %c0_i32, %c0_i32_0 : i32, i32
  }
  func.func @transform_37(%arg0: i32) -> (i32, i32, i32) {
    %c0_i32 = arith.constant 0 : i32
    %c0_i32_0 = arith.constant 0 : i32
    %c0_i32_1 = arith.constant 0 : i32
    %c0_i32_2 = arith.constant 0 : i32
    return %c0_i32, %c0_i32_0, %c0_i32_1 : i32, i32, i32
  }
  func.func @transform_38(%arg0: i32) -> (i32, i32, i32) {
    %c0_i32 = arith.constant 0 : i32
    %c0_i32_0 = arith.constant 0 : i32
    %c0_i32_1 = arith.constant 0 : i32
    %c0_i32_2 = arith.constant 0 : i32
    return %c0_i32, %c0_i32_0, %c0_i32_1 : i32, i32, i32
  }
  func.func @transform_39(%arg0: i32) -> (i32, i32, i32) {
    %c0_i32 = arith.constant 0 : i32
    %c0_i32_0 = arith.constant 0 : i32
    %c0_i32_1 = arith.constant 0 : i32
    %c0_i32_2 = arith.constant 0 : i32
    return %c0_i32, %c0_i32_0, %c0_i32_1 : i32, i32, i32
  }
  func.func @transform_40(%arg0: i32) -> (i32, i32, i32) {
    %c0_i32 = arith.constant 0 : i32
    %c0_i32_0 = arith.constant 0 : i32
    %c0_i32_1 = arith.constant 0 : i32
    %c0_i32_2 = arith.constant 0 : i32
    return %c0_i32, %c0_i32_0, %c0_i32_1 : i32, i32, i32
  }
  func.func @transform_41(%arg0: i32) -> (i32, i32) {
    %c0_i32 = arith.constant 0 : i32
    %c0_i32_0 = arith.constant 0 : i32
    %c0_i32_1 = arith.constant 0 : i32
    return %c0_i32, %c0_i32_0 : i32, i32
  }
  func.func @transform_42(%arg0: i32) -> (i32, i32, i32) {
    %c0_i32 = arith.constant 0 : i32
    %c0_i32_0 = arith.constant 0 : i32
    %c0_i32_1 = arith.constant 0 : i32
    %c0_i32_2 = arith.constant 0 : i32
    return %c0_i32, %c0_i32_0, %c0_i32_1 : i32, i32, i32
  }
  func.func @transform_43(%arg0: i32) -> (i32, i32, i32) {
    %c0_i32 = arith.constant 0 : i32
    %c0_i32_0 = arith.constant 0 : i32
    %c0_i32_1 = arith.constant 0 : i32
    %c0_i32_2 = arith.constant 0 : i32
    return %c0_i32, %c0_i32_0, %c0_i32_1 : i32, i32, i32
  }
  func.func @transform_44(%arg0: i32) -> (i32, i32) {
    %c0_i32 = arith.constant 0 : i32
    %c0_i32_0 = arith.constant 0 : i32
    %c0_i32_1 = arith.constant 0 : i32
    return %c0_i32, %c0_i32_0 : i32, i32
  }
  func.func @transform_45(%arg0: i32) -> (i32, i32, i32) {
    %c0_i32 = arith.constant 0 : i32
    %c0_i32_0 = arith.constant 0 : i32
    %c0_i32_1 = arith.constant 0 : i32
    %c0_i32_2 = arith.constant 0 : i32
    return %c0_i32, %c0_i32_0, %c0_i32_1 : i32, i32, i32
  }
  func.func @transform_46(%arg0: i32) -> (i32, i32, i32) {
    %c0_i32 = arith.constant 0 : i32
    %c0_i32_0 = arith.constant 0 : i32
    %c0_i32_1 = arith.constant 0 : i32
    %c0_i32_2 = arith.constant 0 : i32
    return %c0_i32, %c0_i32_0, %c0_i32_1 : i32, i32, i32
  }
  func.func @transform_47(%arg0: i32) -> (i32, i32, i32) {
    %c0_i32 = arith.constant 0 : i32
    %c0_i32_0 = arith.constant 0 : i32
    %c0_i32_1 = arith.constant 0 : i32
    return %arg0, %c0_i32, %c0_i32_0 : i32, i32, i32
  }
}

</mosaic_0001>

<bundles_post_ra>
// kernel: medsam_forward.1
= control target key start
LH: loop header
LB: loop body
LE: loop exit
PB: predicated region body
PF: predicated region fallthrough
CT: control target
= control target key end

     0   :  { %s12679_s6 = smov 1   ;;  %s12680_s10 = smov 2   ;;  %s14344_s0 = inlined_call_operand.smem [shape: u32[48], index: -1, kind: input, shape index: {}] }
   0x1   :  { %s12748_s5 = sld [smem:[%s14344_s0]]   ;;  %s12681_s14 = smov 3  }
   0x2   :  { %s12753_s9 = sld [smem:[%s14344_s0 + %s12679_s6]]   ;;  %s12682_s18 = smov 4  }
   0x3   :  { %s12758_s13 = sld [smem:[%s14344_s0 + %s12680_s10]]   ;;  %s12683_s22 = smov 5  }
   0x4   :  { %s12763_s17 = sld [smem:[%s14344_s0 + %s12681_s14]]   ;;  %s12684_s26 = smov 6  }
   0x5   :  { %s12768_s21 = sld [smem:[%s14344_s0 + %s12682_s18]]   ;;  %s12685_s30 = smov 7  }
   0x6   :  { %s12773_s25 = sld [smem:[%s14344_s0 + %s12683_s22]]   ;;  %s12686_s4 = smov 8  }
   0x7   :  { %14385 = sst [smem:[#allocation21_spill]] %s12748_s5  ;;  %s12687_s10 = smov 9  }
   0x8   :  { %14386 = sst [smem:[#allocation22_spill]] %s12753_s9  ;;  %s12688_s15 = smov 10  }
   0x9   :  { %s12778_s29 = sld [smem:[%s14344_s0 + %s12684_s26]]   ;;  %s12689_s20 = smov 11  }
   0xa   :  { %s12783_s3 = sld [smem:[%s14344_s0 + %s12685_s30]]   ;;  %s12690_s26 = smov 12  }
   0xb   :  { %s12788_s8 = sld [smem:[%s14344_s0 + %s12686_s4]]   ;;  %s12691_s1 = smov 13  }
   0xc   :  { %s12793_s14 = sld [smem:[%s14344_s0 + %s12687_s10]]   ;;  %s12692_s7 = smov 14  }
   0xd   :  { %s12798_s19 = sld [smem:[%s14344_s0 + %s12688_s15]]   ;;  %s12693_s15 = smov 15  }
   0xe   :  { %s12803_s24 = sld [smem:[%s14344_s0 + %s12689_s20]]   ;;  %s12694_s22 = smov 16  }
   0xf   :  { %14387 = sst [smem:[#allocation23_spill]] %s12778_s29  ;;  %s12695_s28 = smov 17  }
  0x10   :  { %14388 = sst [smem:[#allocation24_spill]] %s12783_s3 }
  0x11   :  { %14389 = sst [smem:[#allocation25_spill]] %s12788_s8 }
  0x12   :  { %14390 = sst [smem:[#allocation26_spill]] %s12793_s14 }
  0x13   :  { %14391 = sst [smem:[#allocation27_spill]] %s12798_s19 }
  0x14   :  { %14392 = sst [smem:[#allocation28_spill]] %s12803_s24 }
  0x15   :  { %s12808_s30 = sld [smem:[%s14344_s0 + %s12690_s26]]  }
  0x16   :  { %s12813_s6 = sld [smem:[%s14344_s0 + %s12691_s1]]  }
  0x17   :  { %s12818_s12 = sld [smem:[%s14344_s0 + %s12692_s7]]   ;;  %s12696_s7 = smov 18  }
  0x18   :  { %s12823_s20 = sld [smem:[%s14344_s0 + %s12693_s15]]   ;;  %s12697_s15 = smov 19  }
  0x19   :  { %s12828_s27 = sld [smem:[%s14344_s0 + %s12694_s22]]   ;;  %s12698_s22 = smov 20  }
  0x1a   :  { %s12833_s4 = sld [smem:[%s14344_s0 + %s12695_s28]]   ;;  %s12699_s28 = smov 21  }
  0x1b   :  { %14393 = sst [smem:[#allocation29_spill]] %s12808_s30 }
  0x1c   :  { %14394 = sst [smem:[#allocation30_spill]] %s12813_s6 }
  0x1d   :  { %14395 = sst [smem:[#allocation31_spill]] %s12818_s12 }
  0x1e   :  { %14396 = sst [smem:[#allocation32_spill]] %s12823_s20 }
  0x1f   :  { %s12838_s12 = sld [smem:[%s14344_s0 + %s12696_s7]]   ;;  %s12700_s7 = smov 22  }
  0x20   :  { %14397 = sst [smem:[#allocation33_spill]] %s12833_s4 }
  0x21   :  { %s12843_s9 = sld [smem:[%s14344_s0 + %s12697_s15]]   ;;  %s12701_s15 = smov 23  }
  0x22   :  { %s12848_s30 = sld [smem:[%s14344_s0 + %s12698_s22]]   ;;  %s12702_s22 = smov 24  }
  0x23   :  { %s12853_s20 = sld [smem:[%s14344_s0 + %s12699_s28]]   ;;  %s12703_s28 = smov 25  }
  0x25   :  { %14398 = sst [smem:[#allocation34_spill]] %s12838_s12 }
  0x26   :  { %s12858_s12 = sld [smem:[%s14344_s0 + %s12700_s7]]   ;;  %s12704_s7 = smov 26  }
  0x27   :  { %14399 = sst [smem:[#allocation35_spill]] %s12843_s9 }
  0x28   :  { %14400 = sst [smem:[#allocation36_spill]] %s12848_s30 }
  0x29   :  { %14401 = sst [smem:[#allocation37_spill]] %s12853_s20 }
  0x2a   :  { %s12863_s9 = sld [smem:[%s14344_s0 + %s12701_s15]]   ;;  %s12705_s15 = smov 27  }
  0x2b   :  { %s12868_s30 = sld [smem:[%s14344_s0 + %s12702_s22]]   ;;  %s12706_s22 = smov 28  }
  0x2c   :  { %14402 = sst [smem:[#allocation38_spill]] %s12858_s12 }
  0x2d   :  { %s12873_s20 = sld [smem:[%s14344_s0 + %s12703_s28]]   ;;  %s12707_s28 = smov 29  }
  0x2e   :  { %s12878_s12 = sld [smem:[%s14344_s0 + %s12704_s7]]   ;;  %s12708_s7 = smov 30  }
  0x2f   :  { %s12898_s6 = sld [smem:[%s14344_s0 + %s12708_s7]]   ;;  %s12712_s7 = smov 34  }
  0x30   :  { %14403 = sst [smem:[#allocation39_spill]] %s12863_s9 }
  0x31   :  { %14404 = sst [smem:[#allocation40_spill]] %s12868_s30 }
  0x32   :  { %s12883_s9 = sld [smem:[%s14344_s0 + %s12705_s15]]   ;;  %s12709_s15 = smov 31  }
  0x33   :  { %14405 = sst [smem:[#allocation41_spill]] %s12873_s20 }
  0x34   :  { %s12888_s30 = sld [smem:[%s14344_s0 + %s12706_s22]]   ;;  %s12710_s22 = smov 32  }
  0x35   :  { %s12893_s20 = sld [smem:[%s14344_s0 + %s12707_s28]]   ;;  %s12711_s28 = smov 33  }
  0x36   :  { %s12908_s24 = sld [smem:[%s14344_s0 + %s12710_s22]]   ;;  %s12714_s22 = smov 36  }
  0x37   :  { %s12918_s8 = sld [smem:[%s14344_s0 + %s12712_s7]]   ;;  %s12716_s7 = smov 38  }
  0x38   :  { %14406 = sst [smem:[#allocation42_spill]] %s12883_s9 }
  0x39   :  { %s12903_s9 = sld [smem:[%s14344_s0 + %s12709_s15]]   ;;  %s12713_s15 = smov 35  }
  0x3a   :  { %s12928_s3 = sld [smem:[%s14344_s0 + %s12714_s22]]   ;;  %s12718_s22 = smov 40  }
  0x3b   :  { %14407 = sst [smem:[#allocation43_spill]] %s12893_s20 }
  0x3c   :  { %s12913_s20 = sld [smem:[%s14344_s0 + %s12711_s28]]   ;;  %s12715_s28 = smov 37  }
  0x3d   :  { %s12938_s29 = sld [smem:[%s14344_s0 + %s12716_s7]]   ;;  %s12720_s7 = smov 42  }
  0x3e   :  { %s12948_s19 = sld [smem:[%s14344_s0 + %s12718_s22]]   ;;  %s12722_s22 = smov 44  }
  0x3f   :  { %14408 = sst [smem:[#allocation44_spill]] %s12903_s9 }
  0x40   :  { %s12923_s9 = sld [smem:[%s14344_s0 + %s12713_s15]]   ;;  %s12717_s15 = smov 39  }
  0x41   :  { %14411 = sst [smem:[#allocation47_spill]] %s12928_s3 }
  0x42   :  { %14409 = sst [smem:[#allocation45_spill]] %s12913_s20 }
  0x43   :  { %s12933_s20 = sld [smem:[%s14344_s0 + %s12715_s28]]   ;;  %s12719_s28 = smov 41  }
  0x44   :  { %14413 = sst [smem:[#allocation49_spill]] %s12938_s29 }
  0x45   :  { %14415 = sst [smem:[#allocation51_spill]] %s12948_s19 }
  0x46   :  { %14410 = sst [smem:[#allocation46_spill]] %s12923_s9 }
  0x47   :  { %s12943_s9 = sld [smem:[%s14344_s0 + %s12717_s15]]   ;;  %s12721_s15 = smov 43  }
  0x48   :  { %s12958_s29 = sld [smem:[%s14344_s0 + %s12720_s7]]   ;;  %s12724_s7 = smov 46  }
  0x49   :  { %14412 = sst [smem:[#allocation48_spill]] %s12933_s20 }
  0x4a   :  { %s12953_s20 = sld [smem:[%s14344_s0 + %s12719_s28]]   ;;  %s12723_s28 = smov 45  }
  0x4b   :  { %s12968_s19 = sld [smem:[%s14344_s0 + %s12722_s22]]  }
  0x4c   :  { %s12973_s14 = sld [smem:[%s14344_s0 + %s12723_s28]]  }
  0x4d   :  { %14414 = sst [smem:[#allocation50_spill]] %s12943_s9 }
  0x4e   :  { %14416 = sst [smem:[#allocation52_spill]] %s12958_s29 }
  0x4f   :  { %s12963_s9 = sld [smem:[%s14344_s0 + %s12721_s15]]   ;;  %s12725_s15 = smov 47  }
  0x50   :  { %s12978_s29 = sld [smem:[%s14344_s0 + %s12724_s7]]  }
  0x55   :  { %14417 = sst [smem:[#allocation53_spill]] %s12963_s9 }
  0x56   :  { %s12983_s9 = sld [smem:[%s14344_s0 + %s12725_s15]]  }
  0x57   :  { %100 = vsyncpa [#allocation3], 0 }
  0x58   :  { %101 = vsyncpa [#allocation5], 0 }
  0x59   :  { %102 = vsyncpa [#allocation8], 0 }
  0x5a   :  { %103 = vsyncpa [#allocation11], 0 }
  0x5b   :  { %104 = vsyncpa [#allocation14], 0  ;;  %s12985_s22 = smov 0  }
  0x5c LB: > { %s12726_s23 = smov [#allocation4]   ;;  %s12991_s28 = sadd.s32 4294967295, %s12677_s22   ;;  %s12677_s22 = sphi %s12985_s22, %s110_s22  }
  0x5d   : > { %s1204_s26 = sshll.u32 %s12726_s23, 4  ;;  %p10406_p0 = scmp.ge.s32.totalorder %s12677_s22, 1  ;;  %s1205_s26 = int_to_ptr.vmem [resolvable:$true] %s1204_s26 }
  0x5e   : > { %p1138_p1 = scmp.lt.s32.totalorder %s12677_s22, 3  ;;  %p14370_p2 = scmp.eq.s32.totalorder %s12991_s28, 0 }
  0x5f   : > { %s12727_s1 = smov [#allocation7]   ;;  %s12728_s7 = smov [#allocation10]  }
  0x60   : > { %p12996_p3 = pnand %p10406_p0, %p1138_p1  ;;  %s1253_s2 = sshll.u32 %s12727_s1, 4  ;;  %s13002_s2 = int_to_ptr.vmem [resolvable:$true] %s1253_s2 }
  0x61   : > { %s1281_s10 = sshll.u32 %s12728_s7, 4  ;;  %s12729_s15 = smov [#allocation13]   ;;  %s13010_s10 = int_to_ptr.vmem [resolvable:$true] %s1281_s10 }
  0x62   : > { %s14418_s0 = scalar_select %p12996_p3, 1, 0 }
  0x63   : > { %p12096_p4 = pneg %p12996_p3  ;;  %s1309_s16 = sshll.u32 %s12729_s15, 4  ;;  %s13012_s16 = int_to_ptr.vmem [resolvable:$true] %s1309_s16 }
  0x64   : > { %s12428_s23 = scalar_lea.vmem %s1205_s26, 16  ;;  %s12435_s1 = scalar_lea.vmem %s1205_s26, 32 }
  0x65   : > { %p13006_p5 = pnand %p14370_p2, %p12096_p4  ;;  %p12429_p7 = scmp.ne.s32.totalorder %s1205_s26, %s12428_s23 }
  0x66   : > { %p12436_p10 = scmp.lt.s32.totalorder %s1205_s26, %s1205_s26  ;;  %p12437_p11 = scmp.lt.s32.totalorder %s12435_s1, %s12428_s23 }
  0x67   : > { %p13016_p6 = pneg %p13006_p5 }
  0x68   : > { %p12438_p12 = por %p12437_p11, %p12436_p10 }
  0x69   : > { %p12431_p8 = pnand %p12429_p7, %p13016_p6 }
  0x6b   : > { %p12432_p9 = pneg %p12431_p8 }
  0x6d   : > { %p12439_p13 = pnand %p12438_p12, %p12432_p9 }
  0x6f   : > { %12442 = shalt.err (!%p12439_p13)
}
  0x70   : > { %s14421_s4 = sld [smem:[#allocation33_spill]]  ;;  %s12454_s7 = scalar_lea.vmem %s13002_s2, 16 }
  0x71   : > { %p12455_p0 = scmp.ne.s32.totalorder %s13002_s2, %s12454_s7  ;;  %s12461_s15 = scalar_lea.vmem %s13002_s2, 32 }
  0x72   : > { %p12462_p7 = scmp.lt.s32.totalorder %s13002_s2, %s13002_s2  ;;  %p12463_p8 = scmp.lt.s32.totalorder %s12461_s15, %s12454_s7 }
  0x73   : > { %p12457_p1 = pnand %p12455_p0, %p13016_p6 }
  0x74   : > { %p12464_p9 = por %p12463_p8, %p12462_p7 }
  0x75   : > { %p12458_p4 = pneg %p12457_p1 }
  0x76   : > { %12102 = dma.hbm_to_vmem [thread:$0]  (!%p13006_p5), %s14421_s4, 16, %s1205_s26, [#allocation5]  }
  0x77   : > { %p12465_p10 = pnand %p12464_p9, %p12458_p4 }
  0x79   : > { %12468 = shalt.err (!%p12465_p10)
}
  0x7a   : > { %12108 = dma.hbm_to_vmem [thread:$0]  (!%p13006_p5), %s12888_s30, 16, %s13002_s2, [#allocation8]  }
  0x7b   : > { %s12480_s26 = scalar_lea.vmem %s13010_s10, 16  ;;  %s12487_s23 = scalar_lea.vmem %s13010_s10, 32 }
  0x7c   : > { %p12481_p11 = scmp.ne.s32.totalorder %s13010_s10, %s12480_s26  ;;  %p12488_p0 = scmp.lt.s32.totalorder %s13010_s10, %s13010_s10 }
  0x7d   : > { %p12489_p1 = scmp.lt.s32.totalorder %s12487_s23, %s12480_s26 }
  0x7e   : > { %p12483_p12 = pnand %p12481_p11, %p13016_p6 }
  0x7f   : > { %p12490_p4 = por %p12489_p1, %p12488_p0 }
  0x80   : > { %p12484_p13 = pneg %p12483_p12 }
  0x82   : > { %p12491_p7 = pnand %p12490_p4, %p12484_p13 }
  0x84   : > { %12494 = shalt.err (!%p12491_p7)
}
  0x85   : > { %12114 = dma.hbm_to_vmem [thread:$0]  (!%p13006_p5), %s12908_s24, 16, %s13010_s10, [#allocation11]  }
  0x86   : > { %s12506_s2 = scalar_lea.vmem %s13012_s16, 16  ;;  %s12513_s1 = scalar_lea.vmem %s13012_s16, 32 }
  0x87   : > { %p12507_p8 = scmp.ne.s32.totalorder %s13012_s16, %s12506_s2  ;;  %p12514_p11 = scmp.lt.s32.totalorder %s13012_s16, %s13012_s16 }
  0x88   : > { %p12515_p12 = scmp.lt.s32.totalorder %s12513_s1, %s12506_s2 }
  0x89   : > { %p12509_p9 = pnand %p12507_p8, %p13016_p6 }
  0x8a   : > { %p12516_p13 = por %p12515_p12, %p12514_p11 }
  0x8b   : > { %p12510_p10 = pneg %p12509_p9 }
  0x8d   : > { %p12517_p0 = pnand %p12516_p13, %p12510_p10 }
  0x8f   : > { %12520 = shalt.err (!%p12517_p0)
}
  0x90   : > { %s14422_s3 = sld [smem:[#allocation47_spill]]  ;;  %s12730_s7 = smov [#allocation2]  }
  0x91   : > { %s1193_s10 = sshll.u32 %s12730_s7, 4  ;;  %s12731_s15 = smov [#allocation6]   ;;  %s1194_s10 = int_to_ptr.vmem [resolvable:$true] %s1193_s10 }
  0x92   : > { %s1239_s26 = sshll.u32 %s12731_s15, 4  ;;  %s12532_s23 = scalar_lea.vmem %s1194_s10, 16  ;;  %s1240_s26 = int_to_ptr.vmem [resolvable:$true] %s1239_s26 }
  0x93   : > { %p12533_p1 = scmp.ne.s32.totalorder %s1194_s10, %s12532_s23  ;;  %s12539_s2 = scalar_lea.vmem %s1194_s10, 32 }
  0x94   : > { %p12540_p8 = scmp.lt.s32.totalorder %s1194_s10, %s1194_s10  ;;  %p12541_p9 = scmp.lt.s32.totalorder %s12539_s2, %s12532_s23 }
  0x95   : > { %p12535_p4 = pnand %p12533_p1, %p13016_p6 }
  0x96   : > { %12120 = dma.hbm_to_vmem [thread:$0]  (!%p13006_p5), %s14422_s3, 16, %s13012_s16, [#allocation14]  }
  0x97   : > { %p12536_p7 = pneg %p12535_p4  ;;  %p12542_p10 = por %p12541_p9, %p12540_p8 }
  0x99   : > { %p12543_p11 = pnand %p12542_p10, %p12536_p7 }
  0x9b   : > { %12546 = shalt.err (!%p12543_p11)
}
  0x9c   : > { %12099 = dma.hbm_to_vmem [thread:$0]  (!%p13006_p5), %s12828_s27, 16, %s1194_s10, [#allocation3]  }
  0x9d   : > { %s12558_s16 = scalar_lea.vmem %s1240_s26, 16  ;;  %s12565_s1 = scalar_lea.vmem %s1240_s26, 32 }
  0x9e   : > { %p12559_p12 = scmp.ne.s32.totalorder %s1240_s26, %s12558_s16  ;;  %p12566_p1 = scmp.lt.s32.totalorder %s1240_s26, %s1240_s26 }
  0x9f   : > { %p12567_p4 = scmp.lt.s32.totalorder %s12565_s1, %s12558_s16 }
  0xa0   : > { %p12561_p13 = pnand %p12559_p12, %p13016_p6 }
  0xa1   : > { %p12568_p2 = por %p12567_p4, %p12566_p1 }
  0xa2   : > { %p12562_p0 = pneg %p12561_p13 }
  0xa4   : > { %p12569_p3 = pnand %p12568_p2, %p12562_p0 }
  0xa6   : > { %12572 = shalt.err (!%p12569_p3)
}
  0xa7   : > { %12105 = dma.hbm_to_vmem [thread:$0]  (!%p13006_p5), %s12878_s12, 16, %s1240_s26, [#allocation5]  }
  0xa8   : > { %s12732_s7 = smov [#allocation9]   ;;  %s12733_s10 = smov [#allocation12]  }
  0xa9   : > { %s1267_s15 = sshll.u32 %s12732_s7, 4  ;;  %s1295_s23 = sshll.u32 %s12733_s10, 4  ;;  %s1268_s15 = int_to_ptr.vmem [resolvable:$true] %s1267_s15  ;;  %s1296_s23 = int_to_ptr.vmem [resolvable:$true] %s1295_s23 }
  0xaa   : > { %s12584_s2 = scalar_lea.vmem %s1268_s15, 16  ;;  %s12591_s3 = scalar_lea.vmem %s1268_s15, 32 }
  0xab   : > { %p12585_p7 = scmp.ne.s32.totalorder %s1268_s15, %s12584_s2  ;;  %p12592_p10 = scmp.lt.s32.totalorder %s1268_s15, %s1268_s15 }
  0xac   : > { %p12593_p11 = scmp.lt.s32.totalorder %s12591_s3, %s12584_s2 }
  0xad   : > { %p12587_p8 = pnand %p12585_p7, %p13016_p6 }
  0xae   : > { %p12594_p2 = por %p12593_p11, %p12592_p10 }
  0xaf   : > { %p12588_p9 = pneg %p12587_p8 }
  0xb1   : > { %p12595_p3 = pnand %p12594_p2, %p12588_p9 }
  0xb3   : > { %12598 = shalt.err (!%p12595_p3)
}
  0xb4   : > { %12111 = dma.hbm_to_vmem [thread:$0]  (!%p13006_p5), %s12898_s6, 16, %s1268_s15, [#allocation8]  }
  0xb5   : > { %s12610_s26 = scalar_lea.vmem %s1296_s23, 16  ;;  %s12617_s16 = scalar_lea.vmem %s1296_s23, 32 }
  0xb6   : > { %p12611_p12 = scmp.ne.s32.totalorder %s1296_s23, %s12610_s26  ;;  %p12618_p1 = scmp.lt.s32.totalorder %s1296_s23, %s1296_s23 }
  0xb7   : > { %p12619_p4 = scmp.lt.s32.totalorder %s12617_s16, %s12610_s26 }
  0xb8   : > { %p12613_p13 = pnand %p12611_p12, %p13016_p6 }
  0xb9   : > { %p12620_p7 = por %p12619_p4, %p12618_p1 }
  0xba   : > { %p12614_p0 = pneg %p12613_p13 }
  0xbc   : > { %p12621_p8 = pnand %p12620_p7, %p12614_p0 }
  0xbe   : > { %12624 = shalt.err (!%p12621_p8)
}
  0xbf   : > { %12117 = dma.hbm_to_vmem [thread:$0]  (!%p13006_p5), %s12918_s8, 16, %s1296_s23, [#allocation11]  }
  0xc0   : > { %s12734_s3 = smov [#allocation15]  }
  0xc1   : > { %s1332_s1 = sshll.u32 %s12734_s3, 4  ;;  %s1333_s1 = int_to_ptr.vmem [resolvable:$true] %s1332_s1 }
  0xc2   : > { %s12636_s7 = scalar_lea.vmem %s1333_s1, 16  ;;  %s12643_s15 = scalar_lea.vmem %s1333_s1, 32 }
  0xc3   : > { %p12637_p9 = scmp.ne.s32.totalorder %s1333_s1, %s12636_s7  ;;  %p12644_p2 = scmp.lt.s32.totalorder %s1333_s1, %s1333_s1 }
  0xc4   : > { %p12645_p3 = scmp.lt.s32.totalorder %s12643_s15, %s12636_s7 }
  0xc5   : > { %p12639_p10 = pnand %p12637_p9, %p13016_p6 }
  0xc6   : > { %p12646_p12 = por %p12645_p3, %p12644_p2 }
  0xc7   : > { %p12640_p11 = pneg %p12639_p10 }
  0xc9   : > { %p12647_p13 = pnand %p12646_p12, %p12640_p11 }
  0xcb   : > { %12650 = shalt.err (!%p12647_p13)
}
  0xcc   : > { %12123 = dma.hbm_to_vmem [thread:$0]  (!%p13006_p5), %s12953_s20, 16, %s1333_s1, [#allocation14]  }
  0xcd   : > { %p14423_p0 = scmp.ne.s32.totalorder %s14418_s0, 0 }
  0xce   : > { %p14424_p1 = scmp.eq.s32.totalorder (!%p14423_p0), %s12991_s28, 0 }
  0xcf   : > { %1375 = sbr.rel (%p14423_p0) target bundleno = 15278 (0x3bae), region = 208 }
  0xd4   : > { %12656 = dma.done.wait (%p14424_p1), [#allocation3], 16   ;;  %p14425_p4 = pmov %p14424_p1 }
  0xd5   : > { %p14426_p6 = pmov %p14424_p1 }
  0xd6   : > { %12658 = vsyncadd (%p14425_p4), [#allocation3], 4294967280 }
  0xd7   : > { %12660 = dma.done.wait (%p14426_p6), [#allocation5], 32   ;;  %p14427_p7 = pmov %p14424_p1 }
  0xd8   : > { %p14428_p8 = pmov %p14424_p1 }
  0xd9   : > { %12662 = vsyncadd (%p14427_p7), [#allocation5], 4294967264 }
  0xda   : > { %12664 = dma.done.wait (%p14428_p8), [#allocation8], 32   ;;  %p14429_p5 = pmov %p14424_p1 }
  0xdb   : > { %p14430_p9 = pmov %p14424_p1 }
  0xdc   : > { %12666 = vsyncadd (%p14429_p5), [#allocation8], 4294967264 }
  0xdd   : > { %12668 = dma.done.wait (%p14430_p9), [#allocation11], 32   ;;  %p14431_p10 = pmov %p14424_p1 }
  0xde   : > { %p14432_p11 = pmov %p14424_p1 }
  0xdf   : > { %12670 = vsyncadd (%p14431_p10), [#allocation11], 4294967264 }
  0xe0   : > { %12672 = dma.done.wait (%p14432_p11), [#allocation14], 32   ;;  %p14433_p2 = pmov %p14424_p1 }
  0xe1   : > { %v12211_v0 = vld [vmem:[%s12758_s13 + $0x78] sm:$0xff]   ;;  %v12215_v4 = vld [vmem:[%s12758_s13 + $0x70] sm:$0xff]   ;;  %v12219_v8 = vld [vmem:[%s12758_s13 + $0x68] sm:$0xff]   ;;  %p1523_p3 = scmp.lt.s32.totalorder %s12991_s28, 1  ;;  %s14434_s5 = sld [smem:[#allocation21_spill]]  ;;  %vm2393_vm0 = vcmask 261120  }
  0xe2   : > { %12674 = vsyncadd (%p14433_p2), [#allocation14], 4294967264  ;;  %v12212_v1 = vld [vmem:[%s12758_s13 + $0x38] sm:$0xff]   ;;  %10704 = vmatprep.subr.bf16.mxu0 %v12211_v0  ;;  %v12216_v5 = vld [vmem:[%s12758_s13 + $0x30] sm:$0xff]   ;;  %s14435_s18 = sld [smem:[#allocation26_spill]]  ;;  %s12736_s10 = smov 32  }
  0xe3   : > { %v12213_v2 = vld [vmem:[%s12758_s13 + $0xf8] sm:$0xff]   ;;  %10705 = vmatpush3.bf16.msra.mxu0 %v12212_v1  ;;  %v12217_v6 = vld [vmem:[%s12758_s13 + $0xf0] sm:$0xff]   ;;  %v12220_v9 = vld [vmem:[%s12758_s13 + $0x28] sm:$0xff]   ;;  %s14466_s28 = smov (!%p1523_p3, %s12991_s28), 1  ;;  %s14436_s23 = sld [smem:[#allocation27_spill]]  ;;  %vm2623_vm8 = vcmask 130048  }
  0xe4   : > { %v12214_v3 = vld [vmem:[%s12758_s13 + $0xb8] sm:$0xff]   ;;  %10726 = vmatprep.subr.bf16.mxu1 %v12213_v2  ;;  %10706 = vmatprep.subr.bf16.mxu0 %v12215_v4  ;;  %v12218_v7 = vld [vmem:[%s12758_s13 + $0xb0] sm:$0xff]   ;;  %v12221_v10 = vld [vmem:[%s12758_s13 + $0xe8] sm:$0xff]   ;;  %s12059_s0 = smul.u32 48, %s14466_s28  ;;  %s14437_s2 = sld [smem:[#allocation23_spill]]  ;;  %vm3613_vm12 = vcmask 523264  }
  0xe5   : > { %10727 = vmatpush3.bf16.msra.mxu1 %v12214_v3  ;;  %v12222_v11 = vld [vmem:[%s12758_s13 + $0xa8] sm:$0xff]   ;;  %v12223_v12 = vld [vmem:[%s12758_s13 + $0x60] sm:$0xff]   ;;  %v12227_v16 = vld [vmem:[%s12758_s13 + $0x58] sm:$0xff]   ;;  %s12737_s26 = smov 96   ;;  %s12738_s16 = smov 64   ;;  %vm12739_vm13 = vmmov 0  }
  0xe6   : > { %10728 = vmatprep.subr.bf16.mxu1 %v12217_v6  ;;  %v12224_v13 = vld [vmem:[%s12758_s13 + $0x20] sm:$0xff]   ;;  %v12228_v17 = vld [vmem:[%s12758_s13 + $0x18] sm:$0xff]   ;;  %v12231_v20 = vld [vmem:[%s12758_s13 + $0x50] sm:$0xff]   ;;  %s14438_s3 = sld [smem:[#allocation24_spill]]  ;;  %vm4248_vm14 = vcmask 1043456   ;;  %vm4144_vm15 = vcmask 27648  }
  0xe7   : > { %10707 = vmatpush3.bf16.msra.mxu0 %v12216_v5  ;;  %v12225_v14 = vld [vmem:[%s12758_s13 + $0xe0] sm:$0xff]   ;;  %v12229_v18 = vld [vmem:[%s12758_s13 + $0xd8] sm:$0xff]   ;;  %v12232_v21 = vld [vmem:[%s12758_s13 + $0x10] sm:$0xff]   ;;  %s13140_s11 = scalar_lea.vmem %s14434_s5, %s12059_s0  ;;  %s14439_s1 = sld [smem:[#allocation25_spill]] }
  0xe8   : > { %10708 = vmatprep.subr.bf16.mxu0 %v12219_v8  ;;  %v12226_v15 = vld [vmem:[%s12758_s13 + $0xa0] sm:$0xff]   ;;  %v12230_v19 = vld [vmem:[%s12758_s13 + $0x98] sm:$0xff]   ;;  %v12233_v22 = vld [vmem:[%s12758_s13 + $0xd0] sm:$0xff]   ;;  %s14440_s7 = sld [smem:[#allocation28_spill]] }
  0xe9   : > { %10729 = vmatpush3.bf16.msra.mxu1 %v12218_v7  ;;  %v12234_v23 = vld [vmem:[%s12758_s13 + $0x90] sm:$0xff]   ;;  %v12235_v24 = vld [vmem:[%s12758_s13 + $0x48] sm:$0xff]   ;;  %v12239_v28 = vld [vmem:[%s12758_s13 + $0x40] sm:$0xff]   ;;  %s14441_s15 = sld [smem:[#allocation30_spill]] }
  0xea   : > { %10730 = vmatprep.subr.bf16.mxu1 %v12221_v10  ;;  %v12236_v25 = vld [vmem:[%s12758_s13 + $0x8] sm:$0xff]   ;;  %v12240_v29 = vld [vmem:[%s12758_s13] sm:$0xff]   ;;  %v12246_v34 = vld [vmem:[%s12758_s13 + $0x178] sm:$0xff]   ;;  %s14442_s0 = sld [smem:[#allocation32_spill]] }
  0xeb   : > { %10709 = vmatpush3.bf16.msra.mxu0 %v12220_v9  ;;  %v12237_v26 = vld [vmem:[%s12758_s13 + $0xc8] sm:$0xff]   ;;  %v12241_v30 = vld [vmem:[%s12758_s13 + $0xc0] sm:$0xff]   ;;  %v12250_v37 = vld [vmem:[%s12758_s13 + $0x138] sm:$0xff]   ;;  %s14453_s4 = sld [smem:[#allocation41_spill]] }
  0xec   : > { %10710 = vmatprep.subr.bf16.mxu0 %v12223_v12  ;;  %v12238_v27 = vld [vmem:[%s12758_s13 + $0x88] sm:$0xff]   ;;  %v12242_v31 = vld [vmem:[%s13140_s11] ss:$24 sps:$4 sm:$0xff]   ;;  %v12244_v32 = vld [vmem:[%s13140_s11 + $0x4] ss:$24 sps:$4 sm:$0xff]   ;;  %s14454_s5 = sld [smem:[#allocation42_spill]] }
  0xed   : > { %10731 = vmatpush3.bf16.msra.mxu1 %v12222_v11  ;;  %v12245_v33 = vld [vmem:[%s12758_s13 + $0x80] sm:$0xff]   ;;  %2300 = vmatprep.mubr.bf16.mxu0 %v12244_v32  ;;  %v12251_v38 = vld [vmem:[%s12758_s13 + $0x170] sm:$0xff]   ;;  %v12253_v40 = vld [vmem:[%s12758_s13 + $0x168] sm:$0xff]  }
  0xee   : > { %10732 = vmatprep.subr.bf16.mxu1 %v12225_v14  ;;  %v12247_v35 = vld [vmem:[%s13140_s11 + $0x8] ss:$24 sps:$4 sm:$0xff]   ;;  %v12249_v36 = vld [vmem:[%s13140_s11 + $0xc] ss:$24 sps:$4 sm:$0xff]   ;;  %v12252_v39 = vld [vmem:[%s12758_s13 + $0x130] sm:$0xff]  }
  0xef   : > { %10711 = vmatpush3.bf16.msra.mxu0 %v12224_v13  ;;  %2341 = vmatprep.mubr.bf16.mxu1 %v12249_v36  ;;  %v12254_v41 = vld [vmem:[%s12758_s13 + $0x128] sm:$0xff]   ;;  %v12255_v42 = vld [vmem:[%s12758_s13 + $0x160] sm:$0xff]   ;;  %v12257_v44 = vld [vmem:[%s12758_s13 + $0x158] sm:$0xff]  }
  0xf0   : > { %10712 = vmatprep.subr.bf16.mxu0 %v12227_v16  ;;  %v12256_v43 = vld [vmem:[%s12758_s13 + $0x120] sm:$0xff]   ;;  %v12258_v45 = vld [vmem:[%s12758_s13 + $0x118] sm:$0xff]   ;;  %v12259_v46 = vld [vmem:[%s12758_s13 + $0x150] sm:$0xff]  }
  0xf1   : > { %10733 = vmatpush3.bf16.msra.mxu1 %v12226_v15  ;;  %v12267_v47 = vld [vmem:[%s13140_s11 + $0x14] ss:$24 sps:$4 sm:$0xff]   ;;  %v12263_v51 = vld [vmem:[%s12758_s13 + $0x140] sm:$0xff]   ;;  %v12265_v53 = vld [vmem:[%s13140_s11 + $0x10] ss:$24 sps:$4 sm:$0xff]   ;;  %s14443_s11 = sld [smem:[#allocation29_spill]] }
  0xf2   : > { %10734 = vmatprep.subr.bf16.mxu1 %v12229_v18  ;;  %v12260_v48 = vld [vmem:[%s12758_s13 + $0x110] sm:$0xff]   ;;  %v12261_v49 = vld [vmem:[%s12758_s13 + $0x148] sm:$0xff]   ;;  %v12264_v52 = vld [vmem:[%s12758_s13 + $0x100] sm:$0xff]  }
  0xf3   : > { %10713 = vmatpush3.bf16.msra.mxu0 %v12228_v17  ;;  %v12262_v50 = vld [vmem:[%s12758_s13 + $0x108] sm:$0xff]   ;;  %v10435_v60 = vld [vmem:[%s12763_s17] ss:$0 sm:$0xff]  ;;  %v1639_v32 = vld [vmem:[%s12773_s25 + $0x10] sm:$0xff] }
  0xf4   : > { %10714 = vmatprep.subr.bf16.mxu0 %v12231_v20  ;;  %v1635_v10 = vld [vmem:[%s12768_s21] sm:$0xff]  ;;  %v1636_v16 = vld [vmem:[%s12768_s21 + $0x8] sm:$0xff] }
  0xf5   : > { %10735 = vmatpush3.bf16.msra.mxu1 %v12230_v19 }
  0xf6   : > { %10736 = vmatprep.subr.bf16.mxu1 %v12233_v22 }
  0xf7   : > { %10715 = vmatpush3.bf16.msra.mxu0 %v12232_v21 }
  0xf8   : > { %10716 = vmatprep.subr.bf16.mxu0 %v12235_v24 }
  0xf9   : > { %10737 = vmatpush3.bf16.msra.mxu1 %v12234_v23 }
  0xfa   : > { %10738 = vmatprep.subr.bf16.mxu1 %v12237_v26 }
  0xfb   : > { %10717 = vmatpush3.bf16.msra.mxu0 %v12236_v25 }
  0xfc   : > { %10718 = vmatprep.subr.bf16.mxu0 %v12239_v28 }
  0xfd   : > { %10739 = vmatpush3.bf16.msra.mxu1 %v12238_v27 }
  0xfe   : > { %10740 = vmatprep.subr.bf16.mxu1 %v12241_v30 }
  0xff   : > { %10719 = vmatpush3.bf16.msra.mxu0 %v12240_v29 }
 0x100   : > { %10748 = vmatprep.subr.bf16.mxu0 %v12246_v34  ;;  %v1637_v34 = vld [vmem:[%s12773_s25] sm:$0xff] }
 0x101   : > { %10741 = vmatpush3.bf16.msra.mxu1 %v12245_v33  ;;  %v1638_v33 = vld [vmem:[%s12773_s25 + $0x8] sm:$0xff] }
 0x102   : > { %2301 = vmatmul.mubr.bf16.vlgmr.msra.gmra.mxu0 %v12242_v31  ;;  %v1640_v31 = vld [vmem:[%s12773_s25 + $0x18] sm:$0xff] }
 0x103   : > { %10749 = vmatpush3.bf16.msra.mxu0 %v12250_v37  ;;  %2382 = vmatprep.mubr.bf16.mxu0 %v12267_v47  ;;  %v12735_v37 = vmov 0.0  }
 0x104   : > { %2342 = vmatmul.mubr.bf16.vlgmr.msra.gmra.mxu1 %v12247_v35  ;;  %10750 = vmatprep.subr.bf16.mxu0 %v12251_v38  ;;  %v1916_v35 = vlaneseq }
 0x105   : > { %11195 = vmatprep.subr.mxu1 %v1640_v31 }
 0x106   : > { %11196 = vmatpush3.msra.mxu1 %v1640_v31  ;;  %v13187_v36 = vand.u32 127, %v1916_v35 }
 0x107   : > { %10751 = vmatpush3.bf16.msra.mxu0 %v12252_v39  ;;  %11197 = vmatprep.subr.mxu1 %v1639_v32 }
 0x108   : > { %10752 = vmatprep.subr.bf16.mxu0 %v12253_v40  ;;  %11198 = vmatpush3.msra.mxu1 %v1639_v32  ;;  %vm1923_vm1 = vcmp.ge.s32.totalorder %v13187_v36, 8  ;;  %vm1924_vm2 = vcmp.lt.s32.totalorder %v13187_v36, 16  ;;  %vm1919_vm3 = vcmp.lt.s32.totalorder %v13187_v36, 8  ;;  %vm1928_vm4 = vcmp.ge.s32.totalorder %v13187_v36, 16 }
 0x109   : > { %11199 = vmatprep.subr.mxu1 %v1638_v33  ;;  %vm1925_vm5 = vmand %vm1923_vm1, %vm1924_vm2  ;;  %v13194_v38 = vsel %vm1919_vm3, 1.0, %v12735_v37  ;;  %vm1929_vm6 = vcmp.lt.s32.totalorder %v13187_v36, 24  ;;  %vm1933_vm9 = vcmp.ge.s32.totalorder %v13187_v36, 24  ;;  %vm1934_vm10 = vcmp.lt.s32.totalorder %v13187_v36, 32 }
 0x10a   : > { %11200 = vmatpush3.msra.mxu1 %v1638_v33  ;;  %v13198_v39 = vsel %vm1925_vm5, 1.0, %v12735_v37  ;;  %vm1930_vm7 = vmand %vm1928_vm4, %vm1929_vm6  ;;  %vm4244_vm1 = vcmask 31744   ;;  %vm4805_vm2 = vcmask 257024   ;;  %vm5171_vm3 = vcmask 125952  }
 0x10b   : > { %10753 = vmatpush3.bf16.msra.mxu0 %v12254_v41  ;;  %11201 = vmatprep.subr.mxu1 %v1637_v34  ;;  %v13205_v40 = vsel %vm1930_vm7, 1.0, %v12735_v37  ;;  %vm1935_vm11 = vmand %vm1933_vm9, %vm1934_vm10 }
 0x10c   : > { %10754 = vmatprep.subr.bf16.mxu0 %v12255_v42  ;;  %11202 = vmatpush3.msra.mxu1 %v1637_v34 }
 0x10f   : > { %10755 = vmatpush3.bf16.msra.mxu0 %v12256_v43 }
 0x110   : > { %10756 = vmatprep.subr.bf16.mxu0 %v12257_v44 }
 0x113   : > { %10757 = vmatpush3.bf16.msra.mxu0 %v12258_v45 }
 0x114   : > { %10758 = vmatprep.subr.bf16.mxu0 %v12259_v46 }
 0x117   : > { %10759 = vmatpush3.bf16.msra.mxu0 %v12260_v48  ;;  %v10490_v48 = vld [vmem:[%s14435_s18] ss:$0 sm:$0xff] }
 0x118   : > { %10760 = vmatprep.subr.bf16.mxu0 %v12261_v49 }
 0x11b   : > { %10761 = vmatpush3.bf16.msra.mxu0 %v12262_v50  ;;  %v10491_v50 = vld [vmem:[%s14436_s23] ss:$0 sm:$0xff] }
 0x11c   : > { %10762 = vmatprep.subr.bf16.mxu0 %v12263_v51 }
 0x11f   : > { %10763 = vmatpush3.bf16.msra.mxu0 %v12264_v52 }
 0x122   : > { %2383 = vmatmul.mubr.bf16.vlgmr.msra.gmra.mxu0 %v12265_v53 }
 0x1c2   : > { %v10720_v54 = vpop.f32.mrf.mxu0 }
 0x1c4   : > { %v10721_v55 = vpop.f32.mrf.mxu0  ;;  %v10742_v56 = vpop.f32.mrf.mxu1 }
 0x1c5   : > { %v10722_v59 = vadd.f32 %v10721_v55, %v10720_v54 }
 0x1c6   : > { %v10723_v57 = vpop.f32.mrf.mxu0  ;;  %v10743_v58 = vpop.f32.mrf.mxu1 }
 0x1c7   : > { %v2303_v63 = vadd.f32 %v10722_v59, %v10435_v60  ;;  %v10744_v0 = vadd.f32 %v10743_v58, %v10742_v56 }
 0x1c8   : > { %v10724_v61 = vpop.f32.mrf.mxu0  ;;  %v10745_v62 = vpop.f32.mrf.mxu1 }
 0x1c9   : > { %v10725_v1 = vadd.f32 %v10724_v61, %v10723_v57  ;;  %v2344_v5 = vadd.f32 %v10744_v0, %v2303_v63  ;;  %v10492_v57 = vld [vmem:[%s14437_s2] ss:$0 sm:$0xff]  ;;  %s14445_s2 = sld [smem:[#allocation22_spill]] }
 0x1ca   : > { %v10746_v2 = vpop.f32.mrf.mxu1 }
 0x1cb   : > { %v2306_v6 = vadd.f32 %v10725_v1, %v10435_v60  ;;  %v10747_v7 = vadd.f32 %v10746_v2, %v10745_v62 }
 0x1cd   : > { %v2347_v13 = vadd.f32 %v10747_v7, %v2306_v6 }
 0x1e2   : > { %v10764_v3 = vpop.f32.mrf.mxu0 }
 0x1e4   : > { %v10765_v4 = vpop.f32.mrf.mxu0 }
 0x1e5   : > { %v10766_v8 = vadd.f32 %v10765_v4, %v10764_v3 }
 0x1e6   : > { %v10767_v9 = vpop.f32.mrf.mxu0 }
 0x1e7   : > { %v2385_v11 = vadd.f32 %v10766_v8, %v2344_v5 }
 0x1e8   : > { %v10768_v12 = vpop.f32.mrf.mxu0 }
 0x1e9   : > { %v10769_v14 = vadd.f32 %v10768_v12, %v10767_v9  ;;  %v13169_v15 = vadd.f32 %v2385_v11, %v1635_v10 }
 0x1eb   : > { %v2388_v17 = vadd.f32 %v10769_v14, %v2347_v13  ;;  %v2394_v18 = vsel %vm2393_vm0, %v13169_v15, 0.0 }
 0x1ec   : > { %2395 = vadd.xlane.f32.xlu0 %v2394_v18 }
 0x1ed   : > { %v13174_v19 = vadd.f32 %v2388_v17, %v1636_v16 }
 0x1ef   : > { %v2397_v20 = vsel %vm2393_vm0, %v13174_v19, 0.0 }
 0x1f0   : > { %2398 = vadd.xlane.f32.xlu0 %v2397_v20 }
 0x206   : > { %2525 = vrot.lane.b32.xlu0 %v13194_v38, %s12736_s10 }
 0x275   : > { %v2396_v21 = vpop.xlane.xlu0 %2395 }
 0x276   : > { %v2401_v22 = vmul.f32 0.03125, %v2396_v21 }
 0x278   : > { %v2403_v23 = vsub.f32 %v13169_v15, %v2401_v22 }
 0x279   : > { %v2399_v24 = vpop.xlane.xlu0 %2398 }
 0x27a   : > { %v2402_v25 = vmul.f32 0.03125, %v2399_v24  ;;  %v2405_v26 = vmul.f32 %v2403_v23, %v2403_v23 }
 0x27c   : > { %v2404_v27 = vsub.f32 %v13174_v19, %v2402_v25  ;;  %v2407_v28 = vsel %vm2393_vm0, %v2405_v26, 0.0 }
 0x27d   : > { %2408 = vadd.xlane.f32.xlu1 %v2407_v28  ;;  %v2526_v59 = vpop.permute.xlu0 %2525 }
 0x27e   : > { %v2406_v29 = vmul.f32 %v2404_v27, %v2404_v27 }
 0x280   : > { %v2410_v30 = vsel %vm2393_vm0, %v2406_v29, 0.0 }
 0x281   : > { %2411 = vadd.xlane.f32.xlu1 %v2410_v30  ;;  %v13266_v30 = vsel %vm1935_vm11, 1.0, %v12735_v37 }
 0x292   : > { %2652 = vrot.lane.b32.xlu1 %v13198_v39, %s12736_s10 }
 0x296   : > { %2950 = vrot.lane.b32.xlu1 %v13205_v40, %s12736_s10 }
 0x306   : > { %v2409_v41 = vpop.xlane.xlu1 %2408 }
 0x307   : > { %v2413_v42 = vmul.f32 0.03125, %v2409_v41 }
 0x309   : > { %v2415_v43 = vadd.f32 1e-05, %v2413_v42 }
 0x30a   : > { %v2412_v44 = vpop.xlane.xlu1 %2411 }
 0x30b   : > { %12268 = vrsqrt.f32 %v2415_v43  ;;  %v2414_v45 = vmul.f32 0.03125, %v2412_v44 }
 0x30d   : > { %v2416_v46 = vadd.f32 1e-05, %v2414_v45 }
 0x30e   : > { %v2653_v62 = vpop.permute.xlu1 %2652 }
 0x30f   : > { %12270 = vrsqrt.f32 %v2416_v46 }
 0x312   : > { %v2951_v3 = vpop.permute.xlu1 %2950 }
 0x318   : > { %v12269_v47 = vpop.eup %12268 }
 0x319   : > { %v2419_v49 = vmul.f32 %v12269_v47, %v2403_v23 }
 0x31b   : > { %v2427_v51 = vmul.f32 %v10490_v48, %v2419_v49 }
 0x31c   : > { %v12271_v52 = vpop.eup %12270 }
 0x31d   : > { %v2420_v53 = vmul.f32 %v12271_v52, %v2404_v27  ;;  %v2435_v54 = vadd.f32 %v10491_v50, %v2427_v51 }
 0x31f   : > { %v2428_v55 = vmul.f32 %v10490_v48, %v2420_v53  ;;  %11203 = vmatprep.mubr.msk.f32.mxu1 %vm2393_vm0, %v2435_v54 }
 0x321   : > { %v2436_v56 = vadd.f32 %v10491_v50, %v2428_v55 }
 0x323   : > { %11204 = vmatmul.mubr.msk.f32.vlgmr.msra.gmra.mxu1 %vm2393_vm0, %v2436_v56 }
 0x3e3   : > { %v11205_v58 = vpop.f32.mrf.mxu1 }
 0x3e4   : > { %v13214_v60 = vadd.f32 %v11205_v58, %v10492_v57 }
 0x3e5   : > { %v2515_v61 = vpop.f32.mrf.mxu1 }
 0x3e6   : > { %v13216_v63 = vadd.f32 %v10492_v57, %v2515_v61  ;;  %v2529_v0 = vmul.f32 %v2526_v59, %v13214_v60  ;;  %v2656_v2 = vmul.f32 %v2653_v62, %v13214_v60  ;;  %v2954_v5 = vmul.f32 %v2951_v3, %v13214_v60 }
 0x3e8   : > { %v2528_v1 = vmul.f32 %v2526_v59, %v13216_v63  ;;  %11210 = vmatprep.mubr.msk.f32.mxu1 %vm2393_vm0, %v13216_v63  ;;  %11238 = vmatprep.mubr.msk.f32.mxu0 %vm2393_vm0, %v13216_v63  ;;  %v2655_v4 = vmul.f32 %v2653_v62, %v13216_v63  ;;  %v2953_v6 = vmul.f32 %v2951_v3, %v13216_v63 }
 0x3e9   : > { %2534 = vrot.lane.b32.xlu1 %v2529_v0, %s12737_s26 }
 0x3ea   : > { %2532 = vrot.lane.b32.xlu0 %v2528_v1, %s12737_s26 }
 0x3ed   : > { %2661 = vrot.lane.b32.xlu1 %v2656_v2, %s12737_s26 }
 0x3ee   : > { %2659 = vrot.lane.b32.xlu0 %v2655_v4, %s12737_s26 }
 0x3f1   : > { %2959 = vrot.lane.b32.xlu1 %v2954_v5, %s12737_s26 }
 0x3f2   : > { %2957 = vrot.lane.b32.xlu0 %v2953_v6, %s12737_s26 }
 0x45b   : > { %v2535_v7 = vpop.permute.xlu1 %2534 }
 0x45c   : > { %11206 = vmatprep.subr.msk.mxu1 %vm2393_vm0, %v2535_v7  ;;  %v2533_v8 = vpop.permute.xlu0 %2532 }
 0x45d   : > { %11207 = vmatpush3.xpose.msk.msra.mxu1 %vm2393_vm0, %v2535_v7 }
 0x45e   : > { %11208 = vmatprep.subr.msk.mxu1 %vm2393_vm0, %v2533_v8 }
 0x45f   : > { %v2662_v9 = vpop.permute.xlu1 %2661 }
 0x460   : > { %v2660_v10 = vpop.permute.xlu0 %2659 }
 0x461   : > { %11209 = vmatpush3.xpose.msk.msra.mxu1 %vm2393_vm0, %v2533_v8 }
 0x462   : > { %11213 = vmatprep.subr.msk.mxu1 %vm2393_vm0, %v2662_v9 }
 0x463   : > { %v2960_v11 = vpop.permute.xlu1 %2959 }
 0x464   : > { %11211 = vmatmul.mubr.msk.f32.vlgmr.msra.gmra.mxu1 %vm2393_vm0, %v13214_v60  ;;  %11234 = vmatprep.subr.msk.mxu0 %vm2393_vm0, %v2960_v11  ;;  %v2958_v12 = vpop.permute.xlu0 %2957 }
 0x465   : > { %11214 = vmatpush3.xpose.msk.msra.mxu1 %vm2393_vm0, %v2662_v9  ;;  %11217 = vmatprep.mubr.msk.f32.mxu1 %vm2393_vm0, %v13216_v63 }
 0x466   : > { %11235 = vmatpush3.xpose.msk.msra.mxu0 %vm2393_vm0, %v2960_v11  ;;  %11215 = vmatprep.subr.msk.mxu1 %vm2393_vm0, %v2660_v10 }
 0x467   : > { %11236 = vmatprep.subr.msk.mxu0 %vm2393_vm0, %v2958_v12 }
 0x469   : > { %11216 = vmatpush3.xpose.msk.msra.mxu1 %vm2393_vm0, %v2660_v10 }
 0x46a   : > { %11237 = vmatpush3.xpose.msk.msra.mxu0 %vm2393_vm0, %v2958_v12 }
 0x46c   : > { %11218 = vmatmul.mubr.msk.f32.vlgmr.msra.gmra.mxu1 %vm2393_vm0, %v13214_v60 }
 0x46d   : > { %11239 = vmatmul.mubr.msk.f32.vlgmr.msra.gmra.mxu0 %vm2393_vm0, %v13214_v60 }
 0x524   : > { %v11212_v13 = vpop.f32.mrf.mxu1 }
 0x525   : > { %v2622_v22 = vmul.f32 0.35355338, %v11212_v13 }
 0x526   : > { %v2612_v14 = vpop.f32.mrf.mxu1 }
 0x527   : > { %v2621_v16 = vmul.f32 0.35355338, %v2612_v14  ;;  %v2627_v28 = vsel %vm2623_vm8, %v2622_v22, -inf }
 0x529   : > { %v2624_v17 = vsel %vm2623_vm8, %v2621_v16, -inf }
 0x52a   : > { %2625 = vmax.xlane.f32.xlu0 %v2624_v17 }
 0x52c   : > { %v11219_v18 = vpop.f32.mrf.mxu1 }
 0x52d   : > { %v2743_v20 = vmul.f32 0.35355338, %v11219_v18  ;;  %v11240_v21 = vpop.f32.mrf.mxu0 }
 0x52e   : > { %v3041_v27 = vmul.f32 0.35355338, %v11240_v21  ;;  %v2733_v31 = vpop.f32.mrf.mxu1 }
 0x52f   : > { %v3031_v23 = vpop.f32.mrf.mxu0  ;;  %v2747_v24 = vsel %vm2623_vm8, %v2743_v20, -inf  ;;  %v2742_v32 = vmul.f32 0.35355338, %v2733_v31 }
 0x530   : > { %v3040_v25 = vmul.f32 0.35355338, %v3031_v23  ;;  %2748 = vmax.xlane.f32.xlu0 %v2747_v24  ;;  %v3045_v29 = vsel %vm2623_vm8, %v3041_v27, -inf }
 0x531   : > { %v2744_v33 = vsel %vm2623_vm8, %v2742_v32, -inf }
 0x532   : > { %v3042_v26 = vsel %vm2623_vm8, %v3040_v25, -inf }
 0x533   : > { %3043 = vmax.xlane.f32.xlu1 %v3042_v26 }
 0x534   : > { %2628 = vmax.xlane.f32.xlu0 %v2627_v28 }
 0x538   : > { %3046 = vmax.xlane.f32.xlu0 %v3045_v29 }
 0x544   : > { %2766 = vrot.lane.b32.xlu1 %v13198_v39, %s12738_s16 }
 0x548   : > { %3064 = vrot.lane.b32.xlu1 %v13205_v40, %s12738_s16 }
 0x54c   : > { %3161 = vrot.lane.b32.xlu1 %v13266_v30, %s12736_s10  ;;  %s14444_s10 = sld [smem:[#allocation35_spill]] }
 0x54e   : > { %2646 = vrot.lane.b32.xlu0 %v13194_v38, %s12738_s16 }
 0x570   : > { %2745 = vmax.xlane.f32.xlu1 %v2744_v33 }
 0x5b3   : > { %v2626_v34 = vpop.xlane.xlu0 %2625 }
 0x5b4   : > { %v2630_v44 = vsub.f32 %v2621_v16, %v2626_v34 }
 0x5b6   : > { %v2632_v50 = vmul.f32 1.442695, %v2630_v44 }
 0x5b9   : > { %v2749_v36 = vpop.xlane.xlu0 %2748 }
 0x5ba   : > { %v2751_v51 = vsub.f32 %v2743_v20, %v2749_v36 }
 0x5bc   : > { %v3044_v41 = vpop.xlane.xlu1 %3043  ;;  %v2754_v53 = vmul.f32 1.442695, %v2751_v51 }
 0x5bd   : > { %v2629_v42 = vpop.xlane.xlu0 %2628  ;;  %v3048_v54 = vsub.f32 %v3040_v25, %v3044_v41 }
 0x5be   : > { %v2631_v43 = vsub.f32 %v2622_v22, %v2629_v42 }
 0x5bf   : > { %v3050_v57 = vmul.f32 1.442695, %v3048_v54 }
 0x5c0   : > { %v2634_v45 = vmul.f32 1.442695, %v2631_v43  ;;  %v2767_v46 = vpop.permute.xlu1 %2766 }
 0x5c1   : > { %v2770_v47 = vmul.f32 %v2767_v46, %v13214_v60  ;;  %v3047_v48 = vpop.xlane.xlu0 %3046  ;;  %v2769_v5 = vmul.f32 %v2767_v46, %v13216_v63 }
 0x5c2   : > { %12272 = vpow2.f32 %v2634_v45  ;;  %v3049_v49 = vsub.f32 %v3041_v27, %v3047_v48 }
 0x5c3   : > { %2775 = vrot.lane.b32.xlu1 %v2770_v47, %s12738_s16 }
 0x5c4   : > { %v3052_v52 = vmul.f32 1.442695, %v3049_v49  ;;  %v3065_v4 = vpop.permute.xlu1 %3064 }
 0x5c5   : > { %v2647_v6 = vpop.permute.xlu0 %2646  ;;  %v3067_v7 = vmul.f32 %v3065_v4, %v13216_v63  ;;  %v3068_v12 = vmul.f32 %v3065_v4, %v13214_v60 }
 0x5c6   : > { %12274 = vpow2.f32 %v3052_v52  ;;  %v2650_v8 = vmul.f32 %v2647_v6, %v13214_v60  ;;  %v2649_v11 = vmul.f32 %v2647_v6, %v13216_v63 }
 0x5c7   : > { %12276 = vpow2.f32 %v2632_v50 }
 0x5c8   : > { %12278 = vpow2.f32 %v2754_v53  ;;  %v3162_v9 = vpop.permute.xlu1 %3161 }
 0x5c9   : > { %12280 = vpow2.f32 %v3050_v57  ;;  %v3164_v10 = vmul.f32 %v3162_v9, %v13216_v63  ;;  %v3165_v20 = vmul.f32 %v3162_v9, %v13214_v60 }
 0x5cf   : > { %v13275_v55 = vpop.eup %12272 }
 0x5d0   : > { %v2639_v56 = vsel %vm2623_vm8, %v13275_v55, 0.0 }
 0x5d1   : > { %2640 = vadd.xlane.f32.xlu0 %v2639_v56 }
 0x5d3   : > { %v13279_v58 = vpop.eup %12274 }
 0x5d4   : > { %v3057_v59 = vsel %vm2623_vm8, %v13279_v58, 0.0  ;;  %v13283_v61 = vpop.eup %12276 }
 0x5d5   : > { %3058 = vadd.xlane.f32.xlu0 %v3057_v59  ;;  %v2636_v62 = vsel %vm2623_vm8, %v13283_v61, 0.0  ;;  %v12279_v0 = vpop.eup %12278 }
 0x5d6   : > { %v2759_v1 = vsel %vm2623_vm8, %v12279_v0, 0.0  ;;  %v13288_v2 = vpop.eup %12280 }
 0x5d7   : > { %v3054_v3 = vsel %vm2623_vm8, %v13288_v2, 0.0 }
 0x5d9   : > { %2637 = vadd.xlane.f32.xlu0 %v2636_v62 }
 0x5dd   : > { %2760 = vadd.xlane.f32.xlu0 %v2759_v1 }
 0x5e7   : > { %3055 = vadd.xlane.f32.xlu1 %v3054_v3 }
 0x5f3   : > { %2773 = vrot.lane.b32.xlu0 %v2769_v5, %s12738_s16 }
 0x5f7   : > { %3071 = vrot.lane.b32.xlu0 %v3067_v7, %s12738_s16 }
 0x5f8   : > { %2864 = vrot.lane.b32.xlu1 %v2650_v8, %s12738_s16 }
 0x5f9   : > { %v2746_v13 = vpop.xlane.xlu1 %2745 }
 0x5fa   : > { %v2750_v14 = vsub.f32 %v2742_v32, %v2746_v13 }
 0x5fb   : > { %3168 = vrot.lane.b32.xlu0 %v3164_v10, %s12737_s26 }
 0x5fc   : > { %2862 = vrot.lane.b32.xlu1 %v2649_v11, %s12738_s16  ;;  %v2752_v16 = vmul.f32 1.442695, %v2750_v14 }
 0x5fe   : > { %12282 = vpow2.f32 %v2752_v16 }
 0x600   : > { %3073 = vrot.lane.b32.xlu1 %v3068_v12, %s12738_s16 }
 0x60b   : > { %v12283_v17 = vpop.eup %12282 }
 0x60c   : > { %v2756_v18 = vsel %vm2623_vm8, %v12283_v17, 0.0 }
 0x624   : > { %2757 = vadd.xlane.f32.xlu1 %v2756_v18 }
 0x635   : > { %v2776_v21 = vpop.permute.xlu1 %2775  ;;  %3170 = vrot.lane.b32.xlu1 %v3165_v20, %s12737_s26  ;;  %s14446_s26 = sld [smem:[#allocation31_spill]] }
 0x636   : > { %11220 = vmatprep.subr.mxu1 %v2776_v21 }
 0x637   : > { %11221 = vmatpush3.msra.mxu1 %v2776_v21 }
 0x65a   : > { %v2641_v22 = vpop.xlane.xlu0 %2640 }
 0x65e   : > { %v3059_v23 = vpop.xlane.xlu0 %3058 }
 0x662   : > { %v2638_v24 = vpop.xlane.xlu0 %2637 }
 0x663   : > { %12284 = vrcp.f32 %v2638_v24 }
 0x666   : > { %v2761_v25 = vpop.xlane.xlu0 %2760 }
 0x667   : > { %12286 = vrcp.f32 %v2761_v25  ;;  %v1645_v25 = vld [vmem:[%s14438_s3 + $0x18] sm:$0xff] }
 0x66a   : > { %v2774_v26 = vpop.permute.xlu0 %2773 }
 0x66b   : > { %11222 = vmatprep.subr.mxu1 %v2774_v26 }
 0x66c   : > { %11223 = vmatpush3.msra.mxu1 %v2774_v26 }
 0x66e   : > { %v3072_v48 = vpop.permute.xlu0 %3071 }
 0x670   : > { %v3056_v27 = vpop.xlane.xlu1 %3055  ;;  %v12285_v33 = vpop.eup %12284 }
 0x671   : > { %v2643_v44 = vmul.f32 %v12285_v33, %v13283_v61 }
 0x672   : > { %v3169_v52 = vpop.permute.xlu0 %3168 }
 0x674   : > { %v2865_v28 = vpop.permute.xlu1 %2864  ;;  %v12287_v34 = vpop.eup %12286 }
 0x675   : > { %11227 = vmatprep.subr.mxu1 %v2865_v28  ;;  %v2765_v42 = vmul.f32 %v12287_v34, %v12279_v0 }
 0x678   : > { %v2863_v29 = vpop.permute.xlu1 %2862 }
 0x67c   : > { %v3074_v31 = vpop.permute.xlu1 %3073 }
 0x6ad   : > { %v2758_v32 = vpop.xlane.xlu1 %2757 }
 0x6ae   : > { %12288 = vrcp.f32 %v2758_v32  ;;  %v1642_v32 = vld [vmem:[%s14438_s3] sm:$0xff] }
 0x6af   : > { %12290 = vrcp.f32 %v2641_v22 }
 0x6b0   : > { %12292 = vrcp.f32 %v3056_v27 }
 0x6b1   : > { %12294 = vrcp.f32 %v3059_v23  ;;  %v3171_v51 = vpop.permute.xlu1 %3170 }
 0x6bb   : > { %v12289_v36 = vpop.eup %12288 }
 0x6bc   : > { %v2763_v41 = vmul.f32 %v12289_v36, %v12283_v17  ;;  %v12291_v43 = vpop.eup %12290 }
 0x6bd   : > { %v12293_v45 = vpop.eup %12292  ;;  %v2645_v46 = vmul.f32 %v12291_v43, %v13275_v55 }
 0x6be   : > { %11224 = vmatprep.mubr.msk.f32.mxu1 %vm2623_vm8, %v2763_v41  ;;  %v12295_v47 = vpop.eup %12294  ;;  %v3061_v49 = vmul.f32 %v12293_v45, %v13288_v2 }
 0x6bf   : > { %11225 = vmatmul.mubr.msk.f32.vlgmr.msra.gmra.mxu1 %vm2623_vm8, %v2765_v42  ;;  %v3063_v50 = vmul.f32 %v12295_v47, %v13279_v58  ;;  %v10519_v42 = vld [vmem:[%s14439_s1] ss:$0 sm:$0xff] }
 0x6c0   : > { %11228 = vmatpush3.msra.mxu1 %v2865_v28  ;;  %11231 = vmatprep.mubr.msk.f32.mxu1 %vm2623_vm8, %v2643_v44 }
 0x6c1   : > { %11229 = vmatprep.subr.mxu1 %v2863_v29 }
 0x6c2   : > { %11230 = vmatpush3.msra.mxu1 %v2863_v29  ;;  %v1644_v29 = vld [vmem:[%s14438_s3 + $0x10] sm:$0xff] }
 0x6c3   : > { %11241 = vmatprep.subr.mxu1 %v3074_v31  ;;  %11232 = vmatmul.mubr.msk.f32.vlgmr.msra.gmra.mxu1 %vm2623_vm8, %v2645_v46 }
 0x6c4   : > { %11242 = vmatpush3.msra.mxu1 %v3074_v31  ;;  %11245 = vmatprep.mubr.msk.f32.mxu1 %vm2623_vm8, %v3061_v49  ;;  %v1643_v31 = vld [vmem:[%s14438_s3 + $0x8] sm:$0xff]  ;;  %s14452_s3 = sld [smem:[#allocation40_spill]] }
 0x6c5   : > { %11243 = vmatprep.subr.mxu1 %v3072_v48 }
 0x6c6   : > { %11244 = vmatpush3.msra.mxu1 %v3072_v48 }
 0x6c7   : > { %11248 = vmatprep.subr.msk.mxu1 %vm2393_vm0, %v3171_v51  ;;  %11246 = vmatmul.mubr.msk.f32.vlgmr.msra.gmra.mxu1 %vm2623_vm8, %v3063_v50 }
 0x6c8   : > { %11249 = vmatpush3.xpose.msk.msra.mxu1 %vm2393_vm0, %v3171_v51  ;;  %11252 = vmatprep.mubr.msk.f32.mxu1 %vm2393_vm0, %v13216_v63 }
 0x6c9   : > { %11250 = vmatprep.subr.msk.mxu1 %vm2393_vm0, %v3169_v52 }
 0x6cc   : > { %11251 = vmatpush3.xpose.msk.msra.mxu1 %vm2393_vm0, %v3169_v52 }
 0x6cf   : > { %11253 = vmatmul.mubr.msk.f32.vlgmr.msra.gmra.mxu1 %vm2393_vm0, %v13214_v60 }
 0x77f   : > { %v11226_v53 = vpop.f32.mrf.mxu1 }
 0x781   : > { %v2851_v54 = vpop.f32.mrf.mxu1 }
 0x783   : > { %v11233_v55 = vpop.f32.mrf.mxu1 }
 0x784   : > { %v2946_v56 = vadd.f32 %v11233_v55, %v11226_v53 }
 0x785   : > { %v2940_v57 = vpop.f32.mrf.mxu1 }
 0x786   : > { %v2941_v58 = vadd.f32 %v2940_v57, %v2851_v54 }
 0x787   : > { %v11247_v59 = vpop.f32.mrf.mxu1 }
 0x788   : > { %v3159_v61 = vadd.f32 %v11247_v59, %v2946_v56  ;;  %v1656_v59 = vld [vmem:[%s14440_s7 + $0x18] sm:$0xff] }
 0x789   : > { %v3149_v62 = vpop.f32.mrf.mxu1  ;;  %11273 = vmatprep.subr.mxu1 %v1656_v59 }
 0x78a   : > { %v3158_v0 = vadd.f32 %v3149_v62, %v2941_v58  ;;  %11274 = vmatpush3.msra.mxu1 %v1656_v59  ;;  %v1654_v62 = vld [vmem:[%s14440_s7 + $0x8] sm:$0xff]  ;;  %v1667_v59 = vld [vmem:[%s14442_s0] sm:$0xff] }
 0x78f   : > { %v11254_v1 = vpop.f32.mrf.mxu1 }
 0x790   : > { %v3252_v2 = vmul.f32 0.35355338, %v11254_v1 }
 0x791   : > { %v3242_v3 = vpop.f32.mrf.mxu1 }
 0x792   : > { %v3251_v4 = vmul.f32 0.35355338, %v3242_v3  ;;  %v3256_v5 = vsel %vm2623_vm8, %v3252_v2, -inf }
 0x793   : > { %3257 = vmax.xlane.f32.xlu0 %v3256_v5 }
 0x794   : > { %v3253_v6 = vsel %vm2623_vm8, %v3251_v4, -inf }
 0x795   : > { %3254 = vmax.xlane.f32.xlu1 %v3253_v6 }
 0x7a9   : > { %3275 = vrot.lane.b32.xlu0 %v13266_v30, %s12738_s16 }
 0x81c   : > { %v3258_v7 = vpop.xlane.xlu0 %3257 }
 0x81d   : > { %v3260_v8 = vsub.f32 %v3252_v2, %v3258_v7 }
 0x81e   : > { %v3255_v9 = vpop.xlane.xlu1 %3254 }
 0x81f   : > { %v3263_v10 = vmul.f32 1.442695, %v3260_v8  ;;  %v3259_v11 = vsub.f32 %v3251_v4, %v3255_v9  ;;  %v10522_v8 = vld [vmem:[%s14435_s18 + $0x1] ss:$0 sm:$0xff] }
 0x820   : > { %v3276_v12 = vpop.permute.xlu0 %3275 }
 0x821   : > { %12296 = vpow2.f32 %v3263_v10  ;;  %v3261_v13 = vmul.f32 1.442695, %v3259_v11  ;;  %v3278_v14 = vmul.f32 %v3276_v12, %v13216_v63  ;;  %v3279_v21 = vmul.f32 %v3276_v12, %v13214_v60  ;;  %v10523_v10 = vld [vmem:[%s14436_s23 + $0x1] ss:$0 sm:$0xff] }
 0x823   : > { %12298 = vpow2.f32 %v3261_v13  ;;  %3282 = vrot.lane.b32.xlu0 %v3278_v14, %s12738_s16 }
 0x82e   : > { %v12297_v16 = vpop.eup %12296 }
 0x82f   : > { %v3268_v17 = vsel %vm2623_vm8, %v12297_v16, 0.0 }
 0x830   : > { %v12299_v18 = vpop.eup %12298  ;;  %3269 = vadd.xlane.f32.xlu1 %v3268_v17 }
 0x831   : > { %v3265_v20 = vsel %vm2623_vm8, %v12299_v18, 0.0 }
 0x834   : > { %3266 = vadd.xlane.f32.xlu1 %v3265_v20  ;;  %v1664_v20 = vld [vmem:[%s14441_s15 + $0x30] sm:$0xff] }
 0x845   : > { %3284 = vrot.lane.b32.xlu1 %v3279_v21, %s12738_s16  ;;  %v1663_v21 = vld [vmem:[%s14441_s15 + $0x28] sm:$0xff]  ;;  %s10428_s16 = sshll.u32 %s14466_s28, 2 }
 0x846   : > { %s13392_s1 = scalar_lea.vmem %s14445_s2, %s10428_s16  ;;  %s14448_s2 = sld [smem:[#allocation37_spill]] }
 0x847   : > { %s14450_s16 = sld [smem:[#allocation38_spill]] }
 0x895   : > { %v3283_v24 = vpop.permute.xlu0 %3282 }
 0x8b9   : > { %v3270_v22 = vpop.xlane.xlu1 %3269 }
 0x8ba   : > { %12300 = vrcp.f32 %v3270_v22  ;;  %v1662_v22 = vld [vmem:[%s14441_s15 + $0x20] sm:$0xff] }
 0x8bd   : > { %v3267_v23 = vpop.xlane.xlu1 %3266 }
 0x8be   : > { %12302 = vrcp.f32 %v3267_v23  ;;  %v1661_v23 = vld [vmem:[%s14441_s15 + $0x18] sm:$0xff] }
 0x8c1   : > { %v3285_v63 = vpop.permute.xlu1 %3284 }
 0x8c2   : > { %11255 = vmatprep.subr.mxu0 %v3285_v63 }
 0x8c3   : > { %11256 = vmatpush3.msra.mxu0 %v3285_v63  ;;  %v1660_v63 = vld [vmem:[%s14441_s15 + $0x10] sm:$0xff] }
 0x8c4   : > { %11257 = vmatprep.subr.mxu0 %v3283_v24 }
 0x8c5   : > { %11258 = vmatpush3.msra.mxu0 %v3283_v24  ;;  %v1659_v24 = vld [vmem:[%s14441_s15 + $0x8] sm:$0xff] }
 0x8c6   : > { %11262 = vmatprep.subr.mxu0 %v1645_v25 }
 0x8c7   : > { %v12301_v26 = vpop.eup %12300 }
 0x8c8   : > { %v3274_v28 = vmul.f32 %v12301_v26, %v12297_v16  ;;  %v1670_v26 = vld [vmem:[%s14442_s0 + $0x18] sm:$0xff] }
 0x8cb   : > { %v12303_v27 = vpop.eup %12302 }
 0x8cc   : > { %v3272_v60 = vmul.f32 %v12303_v27, %v12299_v18  ;;  %v1665_v18 = vld [vmem:[%s14441_s15 + $0x38] sm:$0xff]  ;;  %v10524_v27 = vld [vmem:[%s14443_s11] ss:$0 sm:$0xff]  ;;  %s14447_s11 = sld [smem:[#allocation36_spill]] }
 0x8ce   : > { %11259 = vmatprep.mubr.msk.f32.mxu0 %vm2623_vm8, %v3272_v60 }
 0x8cf   : > { %11260 = vmatmul.mubr.msk.f32.vlgmr.msra.gmra.mxu0 %vm2623_vm8, %v3274_v28 }
 0x8d0   : > { %11263 = vmatpush3.msra.mxu0 %v1645_v25  ;;  %v1658_v25 = vld [vmem:[%s14441_s15] sm:$0xff] }
 0x8d1   : > { %11264 = vmatprep.subr.mxu0 %v1644_v29 }
 0x8d2   : > { %11265 = vmatpush3.msra.mxu0 %v1644_v29 }
 0x8d3   : > { %11266 = vmatprep.subr.mxu0 %v1643_v31 }
 0x8d4   : > { %11267 = vmatpush3.msra.mxu0 %v1643_v31 }
 0x8d5   : > { %11268 = vmatprep.subr.mxu0 %v1642_v32 }
 0x8d6   : > { %11269 = vmatpush3.msra.mxu0 %v1642_v32 }
 0x8d7   : > { %11284 = vmatprep.subr.mxu0 %v1665_v18 }
 0x98f   : > { %v11261_v33 = vpop.f32.mrf.mxu0 }
 0x990   : > { %v3370_v41 = vadd.f32 %v11261_v33, %v3159_v61  ;;  %v1655_v61 = vld [vmem:[%s14440_s7 + $0x10] sm:$0xff] }
 0x991   : > { %v3360_v34 = vpop.f32.mrf.mxu0  ;;  %11275 = vmatprep.subr.mxu1 %v1655_v61 }
 0x992   : > { %v3369_v36 = vadd.f32 %v3360_v34, %v3158_v0  ;;  %11276 = vmatpush3.msra.mxu1 %v1655_v61  ;;  %v1653_v0 = vld [vmem:[%s14440_s7] sm:$0xff]  ;;  %v1680_v61 = vld [vmem:[%s14444_s10 + $0x28] sm:$0xff] }
 0x993   : > { %11277 = vmatprep.subr.mxu1 %v1654_v62 }
 0x994   : > { %11270 = vmatprep.mubr.msk.f32.mxu0 %vm2393_vm0, %v3369_v36  ;;  %11278 = vmatpush3.msra.mxu1 %v1654_v62  ;;  %v1679_v62 = vld [vmem:[%s14444_s10 + $0x20] sm:$0xff] }
 0x995   : > { %11271 = vmatmul.mubr.msk.f32.vlgmr.msra.gmra.mxu0 %vm2393_vm0, %v3370_v41  ;;  %11279 = vmatprep.subr.mxu1 %v1653_v0 }
 0x996   : > { %11280 = vmatpush3.msra.mxu1 %v1653_v0  ;;  %11285 = vmatpush3.msra.mxu0 %v1665_v18  ;;  %v13397_v0 = vld [vmem:[%s13392_s1] sm:$0xf] }
 0x997   : > { %11286 = vmatprep.subr.mxu0 %v1664_v20  ;;  %11303 = vmatprep.subr.mxu1 %v1670_v26  ;;  %v1683_v18 = vld [vmem:[%s14444_s10 + $0x40] sm:$0xff] }
 0x998   : > { %11287 = vmatpush3.msra.mxu0 %v1664_v20 }
 0x999   : > { %11288 = vmatprep.subr.mxu0 %v1663_v21 }
 0x99a   : > { %11289 = vmatpush3.msra.mxu0 %v1663_v21 }
 0x99b   : > { %11290 = vmatprep.subr.mxu0 %v1662_v22 }
 0x99c   : > { %11291 = vmatpush3.msra.mxu0 %v1662_v22 }
 0x99d   : > { %11292 = vmatprep.subr.mxu0 %v1661_v23 }
 0x99e   : > { %11293 = vmatpush3.msra.mxu0 %v1661_v23 }
 0x99f   : > { %11294 = vmatprep.subr.mxu0 %v1660_v63 }
 0x9a0   : > { %11295 = vmatpush3.msra.mxu0 %v1660_v63  ;;  %v10536_v63 = vld [vmem:[%s14447_s11] ss:$0 sm:$0xff] }
 0x9a1   : > { %11296 = vmatprep.subr.mxu0 %v1659_v24 }
 0x9a2   : > { %11297 = vmatpush3.msra.mxu0 %v1659_v24 }
 0x9a3   : > { %11298 = vmatprep.subr.mxu0 %v1658_v25 }
 0x9a4   : > { %11299 = vmatpush3.msra.mxu0 %v1658_v25 }
 0x9a5   : > { %11325 = vmatprep.subr.mxu0 %v12735_v37 }
 0xa55   : > { %v11272_v43 = vpop.f32.mrf.mxu0 }
 0xa56   : > { %v3455_v44 = vadd.f32 %v11272_v43, %v10519_v42 }
 0xa57   : > { %v3449_v45 = vpop.f32.mrf.mxu0 }
 0xa58   : > { %v13345_v46 = vadd.f32 %v3455_v44, %v13174_v19  ;;  %v3450_v47 = vadd.f32 %v10519_v42, %v3449_v45 }
 0xa5a   : > { %v13348_v48 = vadd.f32 %v3450_v47, %v13169_v15  ;;  %v3463_v49 = vsel %vm2393_vm0, %v13345_v46, 0.0 }
 0xa5b   : > { %3464 = vadd.xlane.f32.xlu1 %v3463_v49 }
 0xa5c   : > { %v3460_v50 = vsel %vm2393_vm0, %v13348_v48, 0.0 }
 0xa5d   : > { %3461 = vadd.xlane.f32.xlu0 %v3460_v50 }
 0xae4   : > { %v3465_v51 = vpop.xlane.xlu1 %3464 }
 0xae5   : > { %v3467_v52 = vmul.f32 0.03125, %v3465_v51 }
 0xae6   : > { %v3462_v53 = vpop.xlane.xlu0 %3461 }
 0xae7   : > { %v3466_v19 = vmul.f32 0.03125, %v3462_v53  ;;  %v3469_v54 = vsub.f32 %v13345_v46, %v3467_v52 }
 0xae9   : > { %v3468_v15 = vsub.f32 %v13348_v48, %v3466_v19  ;;  %v3471_v57 = vmul.f32 %v3469_v54, %v3469_v54 }
 0xaeb   : > { %v3470_v55 = vmul.f32 %v3468_v15, %v3468_v15  ;;  %v3475_v58 = vsel %vm2393_vm0, %v3471_v57, 0.0  ;;  %v1668_v57 = vld [vmem:[%s14442_s0 + $0x8] sm:$0xff] }
 0xaed   : > { %v3472_v56 = vsel %vm2393_vm0, %v3470_v55, 0.0  ;;  %v1669_v55 = vld [vmem:[%s14442_s0 + $0x10] sm:$0xff]  ;;  %s14451_s0 = sld [smem:[#allocation39_spill]] }
 0xaee   : > { %3473 = vadd.xlane.f32.xlu0 %v3472_v56  ;;  %v1682_v56 = vld [vmem:[%s14444_s10 + $0x38] sm:$0xff] }
 0xaf2   : > { %3476 = vadd.xlane.f32.xlu0 %v3475_v58  ;;  %v1681_v58 = vld [vmem:[%s14444_s10 + $0x30] sm:$0xff] }
 0xb77   : > { %v3474_v1 = vpop.xlane.xlu0 %3473 }
 0xb78   : > { %v3478_v2 = vmul.f32 0.03125, %v3474_v1  ;;  %v10527_v1 = vld [vmem:[%s14446_s26] ss:$0 sm:$0xff]  ;;  %s14449_s26 = sld [smem:[#allocation34_spill]] }
 0xb7a   : > { %v3480_v3 = vadd.f32 1e-05, %v3478_v2 }
 0xb7b   : > { %v3477_v4 = vpop.xlane.xlu0 %3476 }
 0xb7c   : > { %12304 = vrsqrt.f32 %v3480_v3  ;;  %v3479_v5 = vmul.f32 0.03125, %v3477_v4 }
 0xb7e   : > { %v3481_v6 = vadd.f32 1e-05, %v3479_v5 }
 0xb80   : > { %12306 = vrsqrt.f32 %v3481_v6 }
 0xb89   : > { %v12305_v7 = vpop.eup %12304 }
 0xb8a   : > { %v3484_v9 = vmul.f32 %v12305_v7, %v3468_v15 }
 0xb8c   : > { %v3492_v11 = vmul.f32 %v10522_v8, %v3484_v9  ;;  %v1677_v9 = vld [vmem:[%s14444_s10 + $0x10] sm:$0xff] }
 0xb8d   : > { %v12307_v12 = vpop.eup %12306 }
 0xb8e   : > { %v3485_v13 = vmul.f32 %v12307_v12, %v3469_v54  ;;  %v3500_v14 = vadd.f32 %v10523_v10, %v3492_v11  ;;  %v1685_v11 = vld [vmem:[%s14444_s10 + $0x50] sm:$0xff]  ;;  %v10538_v12 = vld [vmem:[%s14447_s11 + $0x1] ss:$0 sm:$0xff] }
 0xb90   : > { %v3493_v16 = vmul.f32 %v10522_v8, %v3485_v13  ;;  %11281 = vmatprep.mubr.msk.f32.mxu1 %vm2393_vm0, %v3500_v14  ;;  %v1678_v8 = vld [vmem:[%s14444_s10 + $0x18] sm:$0xff]  ;;  %v1684_v14 = vld [vmem:[%s14444_s10 + $0x48] sm:$0xff] }
 0xb92   : > { %v3501_v17 = vadd.f32 %v10523_v10, %v3493_v16  ;;  %v1676_v10 = vld [vmem:[%s14444_s10 + $0x8] sm:$0xff] }
 0xb94   : > { %11282 = vmatmul.mubr.msk.f32.vlgmr.msra.gmra.mxu1 %vm2393_vm0, %v3501_v17 }
 0xb95   : > { %11304 = vmatpush3.msra.mxu1 %v1670_v26 }
 0xb96   : > { %11305 = vmatprep.subr.mxu1 %v1669_v55 }
 0xb97   : > { %11306 = vmatpush3.msra.mxu1 %v1669_v55 }
 0xb98   : > { %11307 = vmatprep.subr.mxu1 %v1668_v57 }
 0xb99   : > { %11308 = vmatpush3.msra.mxu1 %v1668_v57 }
 0xb9a   : > { %11309 = vmatprep.subr.mxu1 %v1667_v59 }
 0xb9b   : > { %11310 = vmatpush3.msra.mxu1 %v1667_v59 }
 0xb9c   : > { %11314 = vmatprep.subr.mxu1 %v12735_v37 }
 0xc54   : > { %v11283_v60 = vpop.f32.mrf.mxu1 }
 0xc55   : > { %v3586_v28 = vadd.f32 %v11283_v60, %v10524_v27 }
 0xc56   : > { %v3580_v29 = vpop.f32.mrf.mxu1 }
 0xc57   : > { %v3590_v31 = vmul.f32 %v3586_v28, %v3586_v28  ;;  %v3581_v32 = vadd.f32 %v10524_v27, %v3580_v29  ;;  %v10540_v27 = vld [vmem:[%s14447_s11 + $0x2] ss:$0 sm:$0xff] }
 0xc59   : > { %v3592_v33 = vmul.f32 %v3590_v31, %v3586_v28  ;;  %v3589_v34 = vmul.f32 %v3581_v32, %v3581_v32 }
 0xc5b   : > { %v3594_v36 = vmul.f32 0.044715, %v3592_v33  ;;  %v3591_v41 = vmul.f32 %v3589_v34, %v3581_v32 }
 0xc5d   : > { %v3596_v42 = vadd.f32 %v3594_v36, %v3586_v28  ;;  %v3593_v43 = vmul.f32 0.044715, %v3591_v41 }
 0xc5f   : > { %v3598_v44 = vmul.f32 0.7978846, %v3596_v42  ;;  %v3595_v45 = vadd.f32 %v3593_v43, %v3581_v32 }
 0xc61   : > { %12308 = vtanh.f32 %v3598_v44  ;;  %v3597_v47 = vmul.f32 0.7978846, %v3595_v45 }
 0xc63   : > { %12310 = vtanh.f32 %v3597_v47 }
 0xc6e   : > { %v12309_v49 = vpop.eup %12308 }
 0xc6f   : > { %v3602_v50 = vadd.f32 1.0, %v12309_v49 }
 0xc70   : > { %v12311_v51 = vpop.eup %12310 }
 0xc71   : > { %v3601_v52 = vadd.f32 1.0, %v12311_v51  ;;  %v3604_v53 = vmul.f32 0.5, %v3602_v50 }
 0xc73   : > { %v3603_v19 = vmul.f32 0.5, %v3601_v52  ;;  %v3606_v15 = vmul.f32 %v3604_v53, %v3586_v28 }
 0xc75   : > { %v3605_v54 = vmul.f32 %v3603_v19, %v3581_v32 }
 0xc77   : > { %11300 = vmatprep.mubr.msk.f32.mxu0 %vm3613_vm12, %v3605_v54 }
 0xc78   : > { %11301 = vmatmul.mubr.msk.f32.vlgmr.msra.gmra.mxu0 %vm3613_vm12, %v3606_v15 }
 0xc79   : > { %11326 = vmatpush3.msra.mxu0 %v1682_v56  ;;  %11333 = vmatprep.mubr.msk.f32.mxu0 %vm12739_vm13, %v12735_v37 }
 0xc7a   : > { %11327 = vmatprep.subr.mxu0 %v12735_v37 }
 0xc7b   : > { %11328 = vmatpush3.msra.mxu0 %v1681_v58 }
 0xc7c   : > { %11329 = vmatprep.subr.mxu0 %v12735_v37 }
 0xc7d   : > { %11330 = vmatpush3.msra.mxu0 %v1680_v61 }
 0xc7e   : > { %11331 = vmatprep.subr.mxu0 %v12735_v37 }
 0xc7f   : > { %11332 = vmatpush3.msra.mxu0 %v1679_v62 }
 0xc80   : > { %11347 = vmatprep.subr.mxu0 %v12735_v37  ;;  %11334 = vmatmul.mubr.msk.f32.vlgmr.msra.gmra.mxu0 %vm2393_vm0, %v13397_v0 }
 0xc81   : > { %11349 = vmatprep.mubr.msk.f32.mxu0 %vm12739_vm13, %v12735_v37 }
 0xd38   : > { %v11302_v2 = vpop.f32.mrf.mxu0 }
 0xd39   : > { %v3692_v3 = vadd.f32 %v11302_v2, %v10527_v1 }
 0xd3a   : > { %v3686_v4 = vpop.f32.mrf.mxu0 }
 0xd3b   : > { %v3687_v5 = vadd.f32 %v10527_v1, %v3686_v4  ;;  %v3696_v7 = vadd.f32 %v3692_v3, %v13345_v46  ;;  %v1675_v46 = vld [vmem:[%s14444_s10] sm:$0xff] }
 0xd3d   : > { %v3695_v6 = vadd.f32 %v3687_v5, %v13348_v48  ;;  %v1686_v48 = vld [vmem:[%s14444_s10 + $0x58] sm:$0xff] }
 0xd3f   : > { %11311 = vmatprep.mubr.msk.f32.mxu1 %vm2393_vm0, %v3695_v6 }
 0xd40   : > { %11312 = vmatmul.mubr.msk.f32.vlgmr.msra.gmra.mxu1 %vm2393_vm0, %v3696_v7  ;;  %v3986_v13 = vpop.f32.mrf.mxu0 }
 0xd41   : > { %11315 = vmatpush3.msra.mxu1 %v1678_v8  ;;  %11322 = vmatprep.mubr.msk.f32.mxu1 %vm12739_vm13, %v12735_v37  ;;  %v13429_v16 = vadd.f32 %v10538_v12, %v3986_v13 }
 0xd42   : > { %11316 = vmatprep.subr.mxu1 %v12735_v37  ;;  %v11335_v17 = vpop.f32.mrf.mxu0 }
 0xd43   : > { %11317 = vmatpush3.msra.mxu1 %v1677_v9  ;;  %v4066_v20 = vmul.f32 %v13194_v38, %v13429_v16  ;;  %v4157_v21 = vmul.f32 %v13198_v39, %v13429_v16  ;;  %v4398_v15 = vmul.f32 %v13205_v40, %v13429_v16  ;;  %v4562_v55 = vmul.f32 %v13266_v30, %v13429_v16  ;;  %v10530_v17 = vld [vmem:[#allocation2] ss:$0 sm:$0xff] }
 0xd44   : > { %11318 = vmatprep.subr.mxu1 %v12735_v37 }
 0xd45   : > { %11319 = vmatpush3.msra.mxu1 %v1676_v10  ;;  %11348 = vmatpush3.xpose.msk.msra.mxu0 %vm2393_vm0, %v4066_v20 }
 0xd46   : > { %11320 = vmatprep.subr.mxu1 %v12735_v37  ;;  %11357 = vmatprep.subr.mxu0 %v12735_v37 }
 0xd47   : > { %11321 = vmatpush3.msra.mxu1 %v1675_v46 }
 0xd48   : > { %11323 = vmatmul.mubr.msk.f32.vlgmr.msra.gmra.mxu1 %vm2393_vm0, %v13397_v0  ;;  %11336 = vmatprep.subr.mxu1 %v12735_v37 }
 0xd49   : > { %11337 = vmatpush3.msra.mxu1 %v1686_v48  ;;  %11344 = vmatprep.mubr.msk.f32.mxu1 %vm12739_vm13, %v12735_v37 }
 0xd4a   : > { %11338 = vmatprep.subr.mxu1 %v12735_v37 }
 0xd4b   : > { %11339 = vmatpush3.msra.mxu1 %v1685_v11 }
 0xd4c   : > { %11340 = vmatprep.subr.mxu1 %v12735_v37 }
 0xd4d   : > { %11341 = vmatpush3.msra.mxu1 %v1684_v14 }
 0xd4e   : > { %11342 = vmatprep.subr.mxu1 %v12735_v37 }
 0xd4f   : > { %11343 = vmatpush3.msra.mxu1 %v1683_v18 }
 0xd50   : > { %11345 = vmatmul.mubr.msk.f32.vlgmr.msra.gmra.mxu1 %vm2393_vm0, %v13397_v0  ;;  %11352 = vmatprep.subr.mxu1 %v12735_v37 }
 0xd51   : > { %11353 = vmatpush3.xpose.msk.msra.mxu1 %vm2393_vm0, %v4157_v21  ;;  %11354 = vmatprep.mubr.msk.f32.mxu1 %vm12739_vm13, %v12735_v37 }
 0xd52   : > { %11362 = vmatprep.subr.mxu1 %v12735_v37 }
 0xe00   : > { %v13446_v22 = vpop.f32.mrf.mxu1 }
 0xe02   : > { %v13448_v23 = vpop.f32.mrf.mxu1 }
 0xe03   : > { %v3776_v20 = vadd.f32 %v10530_v17, %v13448_v23 }
 0xe08   : > { %v3910_v24 = vpop.f32.mrf.mxu1 }
 0xe09   : > { %v3911_v25 = vadd.f32 %v10536_v63, %v3910_v24 }
 0xe0a   : > { %v11324_v26 = vpop.f32.mrf.mxu1 }
 0xe0b   : > { %11350 = vmatmul.mubr.msk.f32.vlgmr.msra.gmra.mxu0 %vm2393_vm0, %v3911_v25  ;;  %11355 = vmatmul.mubr.msk.f32.vlgmr.msra.gmra.mxu1 %vm2393_vm0, %v3911_v25  ;;  %v13499_v26 = vadd.f32 %v13446_v22, %v10530_v17 }
 0xe0c   : > { %11359 = vmatprep.mubr.msk.f32.mxu0 %vm12739_vm13, %v12735_v37  ;;  %11364 = vmatprep.mubr.msk.f32.mxu1 %vm12739_vm13, %v12735_v37 }
 0xe0d   : > { %v3787_v23 = vsel %vm2393_vm0, %v13499_v26, 0.0 }
 0xe10   : > { %v4062_v60 = vpop.f32.mrf.mxu1 }
 0xe11   : > { %v13458_v28 = vadd.f32 %v10540_v27, %v4062_v60  ;;  %v3784_v60 = vsel %vm2393_vm0, %v3776_v20, 0.0 }
 0xe12   : > { %v11346_v29 = vpop.f32.mrf.mxu1 }
 0xe13   : > { %v4156_v31 = vmul.f32 %v13194_v38, %v13458_v28  ;;  %v4243_v32 = vmul.f32 %v13198_v39, %v13458_v28  ;;  %v4484_v24 = vmul.f32 %v13205_v40, %v13458_v28 }
 0xe15   : > { %11358 = vmatpush3.msk.msra.mxu0 %vm4248_vm14, %v4243_v32  ;;  %11363 = vmatpush3.msk.msra.mxu1 %vm4248_vm14, %v4156_v31 }
 0xe16   : > { %11367 = vmatprep.subr.mxu0 %v12735_v37  ;;  %11372 = vmatprep.subr.mxu1 %v12735_v37 }
 0xecb   : > { %v4139_v33 = vpop.f32.mrf.mxu0  ;;  %v4227_v34 = vpop.f32.mrf.mxu1 }
 0xecc   : > { %v4231_v36 = vmul.f32 0.35355338, %v4227_v34  ;;  %v4143_v43 = vmul.f32 0.35355338, %v4139_v33 }
 0xecd   : > { %v11351_v41 = vpop.f32.mrf.mxu0  ;;  %v11356_v42 = vpop.f32.mrf.mxu1 }
 0xece   : > { %v4232_v44 = vsel %vm4144_vm15, %v4231_v36, -inf  ;;  %v4145_v45 = vsel %vm4144_vm15, %v4143_v43, -inf }
 0xecf   : > { %4233 = vmax.xlane.f32.xlu0 %v4232_v44 }
 0xed3   : > { %4146 = vmax.xlane.f32.xlu0 %v4145_v45 }
 0xf58   : > { %v4234_v47 = vpop.xlane.xlu0 %4233 }
 0xf59   : > { %v4235_v49 = vsub.f32 %v4231_v36, %v4234_v47 }
 0xf5b   : > { %v4236_v50 = vmul.f32 1.442695, %v4235_v49  ;;  %v1738_v49 = vld [vmem:[%s14448_s2 + $0x18] sm:$0xff] }
 0xf5c   : > { %v4147_v56 = vpop.xlane.xlu0 %4146 }
 0xf5d   : > { %12312 = vpow2.f32 %v4236_v50  ;;  %v4148_v57 = vsub.f32 %v4143_v43, %v4147_v56  ;;  %v4648_v43 = vmul.f32 %v13266_v30, %v13458_v28  ;;  %v1737_v50 = vld [vmem:[%s14448_s2 + $0x10] sm:$0xff] }
 0xf5f   : > { %v4149_v58 = vmul.f32 1.442695, %v4148_v57  ;;  %v10533_v57 = vld [vmem:[%s14435_s18 + $0x2] ss:$0 sm:$0xff] }
 0xf6a   : > { %v12313_v51 = vpop.eup %12312 }
 0xf6b   : > { %v4238_v52 = vsel %vm4144_vm15, %v12313_v51, 0.0 }
 0xf6c   : > { %4239 = vadd.xlane.f32.xlu1 %v4238_v52  ;;  %v1735_v52 = vld [vmem:[%s14448_s2] sm:$0xff] }
 0xff5   : > { %v4240_v53 = vpop.xlane.xlu1 %4239 }
 0xff6   : > { %12314 = vrcp.f32 %v4240_v53 }
 0xff7   : > { %12316 = vpow2.f32 %v4149_v58 }
0x1003   : > { %v12315_v19 = vpop.eup %12314 }
0x1004   : > { %v4242_v54 = vmul.f32 %v12315_v19, %v12313_v51  ;;  %v12317_v4 = vpop.eup %12316  ;;  %v1736_v51 = vld [vmem:[%s14448_s2 + $0x8] sm:$0xff] }
0x1005   : > { %v4151_v9 = vsel %vm4144_vm15, %v12317_v4, 0.0 }
0x1006   : > { %11360 = vmatmul.mubr.msk.f32.vlgmr.msra.gmra.mxu0 %vm4244_vm1, %v4242_v54 }
0x1007   : > { %11368 = vmatpush3.xpose.msk.msra.mxu0 %vm2393_vm0, %v4398_v15  ;;  %11369 = vmatprep.mubr.msk.f32.mxu0 %vm12739_vm13, %v12735_v37 }
0x1008   : > { %11377 = vmatprep.subr.mxu0 %v12735_v37 }
0x100a   : > { %11370 = vmatmul.mubr.msk.f32.vlgmr.msra.gmra.mxu0 %vm2393_vm0, %v3911_v25 }
0x100b   : > { %11378 = vmatpush3.xpose.msk.msra.mxu0 %vm2393_vm0, %v4562_v55  ;;  %11379 = vmatprep.mubr.msk.f32.mxu0 %vm12739_vm13, %v12735_v37 }
0x100c   : > { %11387 = vmatprep.subr.mxu0 %v12735_v37 }
0x100e   : > { %11380 = vmatmul.mubr.msk.f32.vlgmr.msra.gmra.mxu0 %vm2393_vm0, %v3911_v25 }
0x100f   : > { %11395 = vmatprep.mubr.msk.f32.mxu0 %vm12739_vm13, %v12735_v37  ;;  %11388 = vmatpush3.msra.mxu0 %v1738_v49  ;;  %v1698_v49 = vld [vmem:[%s14444_s10 + $0xb8] sm:$0xff] }
0x1010   : > { %11389 = vmatprep.subr.mxu0 %v12735_v37 }
0x1011   : > { %11390 = vmatpush3.msra.mxu0 %v1737_v50 }
0x1012   : > { %11391 = vmatprep.subr.mxu0 %v12735_v37 }
0x1013   : > { %11392 = vmatpush3.msra.mxu0 %v1736_v51 }
0x1014   : > { %11393 = vmatprep.subr.mxu0 %v12735_v37 }
0x1015   : > { %11394 = vmatpush3.msra.mxu0 %v1735_v52 }
0x10c6   : > { %v13488_v59 = vpop.f32.mrf.mxu0 }
0x10c8   : > { %v11361_v61 = vpop.f32.mrf.mxu0 }
0x10c9   : > { %v10534_v61 = vld [vmem:[%s14436_s23 + $0x2] ss:$0 sm:$0xff] }
0x10ca   : > { %v4468_v62 = vpop.f32.mrf.mxu0 }
0x10cb   : > { %v4472_v1 = vmul.f32 0.35355338, %v4468_v62 }
0x10cc   : > { %v11371_v2 = vpop.f32.mrf.mxu0 }
0x10cd   : > { %v4473_v3 = vsel %vm4144_vm15, %v4472_v1, -inf }
0x10ce   : > { %4474 = vmax.xlane.f32.xlu1 %v4473_v3  ;;  %v4632_v5 = vpop.f32.mrf.mxu0 }
0x10cf   : > { %v4636_v6 = vmul.f32 0.35355338, %v4632_v5 }
0x10d0   : > { %v11381_v7 = vpop.f32.mrf.mxu0 }
0x10d1   : > { %v4637_v8 = vsel %vm4144_vm15, %v4636_v6, -inf  ;;  %v1673_v7 = vld [vmem:[%s14449_s26] sm:$0xff] }
0x10d2   : > { %4638 = vmax.xlane.f32.xlu0 %v4637_v8  ;;  %4152 = vadd.xlane.f32.xlu1 %v4151_v9 }
0x1157   : > { %v4475_v10 = vpop.xlane.xlu1 %4474 }
0x1158   : > { %v4476_v46 = vsub.f32 %v4472_v1, %v4475_v10  ;;  %v10535_v1 = vld [vmem:[#allocation4] ss:$0 sm:$0xff] }
0x115a   : > { %v4477_v48 = vmul.f32 1.442695, %v4476_v46 }
0x115b   : > { %v4153_v11 = vpop.xlane.xlu1 %4152  ;;  %v4639_v12 = vpop.xlane.xlu0 %4638 }
0x115c   : > { %12318 = vpow2.f32 %v4477_v48  ;;  %v4640_v13 = vsub.f32 %v4636_v6, %v4639_v12 }
0x115d   : > { %12320 = vrcp.f32 %v4153_v11 }
0x115e   : > { %v4641_v14 = vmul.f32 1.442695, %v4640_v13 }
0x1160   : > { %12322 = vpow2.f32 %v4641_v14 }
0x1169   : > { %v12319_v16 = vpop.eup %12318 }
0x116a   : > { %v12321_v18 = vpop.eup %12320  ;;  %v4479_v21 = vsel %vm4144_vm15, %v12319_v16, 0.0 }
0x116b   : > { %4480 = vadd.xlane.f32.xlu0 %v4479_v21  ;;  %v4155_v63 = vmul.f32 %v12321_v18, %v12317_v4  ;;  %v1693_v21 = vld [vmem:[%s14444_s10 + $0x90] sm:$0xff] }
0x116d   : > { %v12323_v25 = vpop.eup %12322  ;;  %11365 = vmatmul.mubr.msk.f32.vlgmr.msra.gmra.mxu1 %vm4244_vm1, %v4155_v63  ;;  %v1692_v63 = vld [vmem:[%s14444_s10 + $0x88] sm:$0xff] }
0x116e   : > { %11373 = vmatpush3.msk.msra.mxu1 %vm4248_vm14, %v4484_v24  ;;  %v4643_v27 = vsel %vm4144_vm15, %v12323_v25, 0.0  ;;  %11374 = vmatprep.mubr.msk.f32.mxu1 %vm12739_vm13, %v12735_v37  ;;  %v1691_v24 = vld [vmem:[%s14444_s10 + $0x80] sm:$0xff] }
0x116f   : > { %4644 = vadd.xlane.f32.xlu1 %v4643_v27  ;;  %3785 = vadd.xlane.f32.xlu0 %v3784_v60 }
0x1170   : > { %11382 = vmatprep.subr.mxu1 %v12735_v37 }
0x1173   : > { %3788 = vadd.xlane.f32.xlu1 %v3787_v23 }
0x11f4   : > { %v4481_v29 = vpop.xlane.xlu0 %4480 }
0x11f5   : > { %12324 = vrcp.f32 %v4481_v29 }
0x11f8   : > { %v4645_v22 = vpop.xlane.xlu1 %4644  ;;  %v3786_v31 = vpop.xlane.xlu0 %3785 }
0x11f9   : > { %12326 = vrcp.f32 %v4645_v22  ;;  %v3790_v32 = vmul.f32 0.03125, %v3786_v31 }
0x11fb   : > { %v3792_v33 = vsub.f32 %v3776_v20, %v3790_v32  ;;  %v1694_v20 = vld [vmem:[%s14444_s10 + $0x98] sm:$0xff] }
0x11fc   : > { %v3789_v53 = vpop.xlane.xlu1 %3788  ;;  %11409 = vmatprep.subr.mxu0 %v1694_v20 }
0x11fd   : > { %v3794_v34 = vmul.f32 %v3792_v33, %v3792_v33  ;;  %v3791_v48 = vmul.f32 0.03125, %v3789_v53 }
0x11ff   : > { %v3796_v36 = vsel %vm2393_vm0, %v3794_v34, 0.0  ;;  %v3793_v11 = vsub.f32 %v13499_v26, %v3791_v48 }
0x1200   : > { %3797 = vadd.xlane.f32.xlu1 %v3796_v36 }
0x1201   : > { %v3795_v17 = vmul.f32 %v3793_v11, %v3793_v11 }
0x1202   : > { %v12325_v41 = vpop.eup %12324 }
0x1203   : > { %v4483_v42 = vmul.f32 %v12325_v41, %v12319_v16  ;;  %v3799_v18 = vsel %vm2393_vm0, %v3795_v17, 0.0  ;;  %v1674_v41 = vld [vmem:[%s14449_s26 + $0x8] sm:$0xff] }
0x1205   : > { %11375 = vmatmul.mubr.msk.f32.vlgmr.msra.gmra.mxu1 %vm4244_vm1, %v4483_v42 }
0x1206   : > { %v12327_v44 = vpop.eup %12326  ;;  %11383 = vmatpush3.msk.msra.mxu1 %vm4248_vm14, %v4648_v43  ;;  %11384 = vmatprep.mubr.msk.f32.mxu1 %vm12739_vm13, %v12735_v37 }
0x1207   : > { %v4647_v45 = vmul.f32 %v12327_v44, %v12323_v25  ;;  %11398 = vmatprep.subr.mxu1 %v12735_v37  ;;  %v1690_v44 = vld [vmem:[%s14444_s10 + $0x78] sm:$0xff] }
0x1209   : > { %11385 = vmatmul.mubr.msk.f32.vlgmr.msra.gmra.mxu1 %vm4244_vm1, %v4647_v45  ;;  %v1689_v45 = vld [vmem:[%s14444_s10 + $0x70] sm:$0xff] }
0x120a   : > { %11406 = vmatprep.mubr.msk.f32.mxu1 %vm12739_vm13, %v12735_v37  ;;  %11399 = vmatpush3.msra.mxu1 %v1690_v44 }
0x120b   : > { %11400 = vmatprep.subr.mxu1 %v12735_v37 }
0x120c   : > { %11401 = vmatpush3.msra.mxu1 %v1689_v45 }
0x120d   : > { %11402 = vmatprep.subr.mxu1 %v12735_v37 }
0x122d   : > { %v4394_v47 = vpop.f32.mrf.mxu1 }
0x122e   : > { %v4395_v3 = vadd.f32 %v4394_v47, %v13488_v59  ;;  %v10558_v59 = vld [vmem:[%s14450_s16] ss:$0 sm:$0xff]  ;;  %v1688_v47 = vld [vmem:[%s14444_s10 + $0x68] sm:$0xff] }
0x122f   : > { %v11366_v28 = vpop.f32.mrf.mxu1  ;;  %11403 = vmatpush3.msra.mxu1 %v1688_v47 }
0x1230   : > { %v1687_v28 = vld [vmem:[%s14444_s10 + $0x60] sm:$0xff]  ;;  %11404 = vmatprep.subr.mxu1 %v12735_v37 }
0x1231   : > { %11405 = vmatpush3.msra.mxu1 %v1687_v28 }
0x1232   : > { %11420 = vmatprep.subr.mxu1 %v1698_v49 }
0x1289   : > { %v3798_v19 = vpop.xlane.xlu1 %3797 }
0x128a   : > { %v3802_v54 = vmul.f32 0.03125, %v3798_v19  ;;  %v10560_v19 = vld [vmem:[%s14451_s0] ss:$0 sm:$0xff] }
0x128c   : > { %v3804_v15 = vadd.f32 1e-05, %v3802_v54 }
0x128e   : > { %12328 = vrsqrt.f32 %v3804_v15  ;;  %v10561_v15 = vld [vmem:[%s14452_s3] ss:$0 sm:$0xff] }
0x129b   : > { %v12329_v55 = vpop.eup %12328 }
0x129c   : > { %v3808_v56 = vmul.f32 %v12329_v55, %v3792_v33 }
0x129e   : > { %v3816_v58 = vmul.f32 %v10533_v57, %v3808_v56 }
0x12a0   : > { %v3824_v62 = vadd.f32 %v10534_v61, %v3816_v58  ;;  %v1697_v58 = vld [vmem:[%s14444_s10 + $0xb0] sm:$0xff] }
0x12a2   : > { %v13530_v5 = vadd.f32 %v10535_v1, %v3824_v62  ;;  %v1695_v62 = vld [vmem:[%s14444_s10 + $0xa0] sm:$0xff] }
0x12a4   : > { %v13534_v46 = vadd.f32 %v13530_v5, %v1673_v7 }
0x12c5   : > { %v4557_v2 = vpop.f32.mrf.mxu1 }
0x12c6   : > { %v4561_v6 = vadd.f32 %v4557_v2, %v4395_v3 }
0x12c7   : > { %v11376_v4 = vpop.f32.mrf.mxu1 }
0x12c9   : > { %v4721_v8 = vpop.f32.mrf.mxu1 }
0x12ca   : > { %v4725_v9 = vadd.f32 %v4721_v8, %v4561_v6 }
0x12cb   : > { %v11386_v10 = vpop.f32.mrf.mxu1 }
0x12cc   : > { %11396 = vmatmul.mubr.msk.f32.vlgmr.msra.gmra.mxu0 %vm2393_vm0, %v4725_v9  ;;  %v10562_v10 = vld [vmem:[%s14447_s11 + $0x3] ss:$0 sm:$0xff] }
0x12cd   : > { %11417 = vmatprep.mubr.msk.f32.mxu0 %vm2393_vm0, %v13534_v46  ;;  %11410 = vmatpush3.msra.mxu0 %v1694_v20 }
0x12ce   : > { %11411 = vmatprep.subr.mxu0 %v1693_v21 }
0x12cf   : > { %11412 = vmatpush3.msra.mxu0 %v1693_v21 }
0x12d0   : > { %11413 = vmatprep.subr.mxu0 %v1692_v63 }
0x12d1   : > { %11414 = vmatpush3.msra.mxu0 %v1692_v63 }
0x12d2   : > { %11415 = vmatprep.subr.mxu0 %v1691_v24 }
0x12d3   : > { %11416 = vmatpush3.msra.mxu0 %v1691_v24 }
0x12d4   : > { %11431 = vmatprep.subr.mxu0 %v12735_v37 }
0x138c   : > { %v4801_v12 = vpop.f32.mrf.mxu0 }
0x138d   : > { %v4802_v13 = vadd.f32 %v10558_v59, %v4801_v12  ;;  %v10567_v12 = vld [vmem:[%s14447_s11 + $0x5] ss:$0 sm:$0xff] }
0x138e   : > { %v11397_v14 = vpop.f32.mrf.mxu0 }
0x138f   : > { %v4806_v16 = vsel %vm4805_vm2, %v4802_v13, 0.0 }
0x1390   : > { %4807 = vadd.xlane.f32.xlu0 %v4806_v16 }
0x1394   : > { %3800 = vadd.xlane.f32.xlu0 %v3799_v18 }
0x1419   : > { %v4808_v25 = vpop.xlane.xlu0 %4807 }
0x141a   : > { %v4809_v26 = vmul.f32 0.03125, %v4808_v25 }
0x141c   : > { %v4810_v27 = vsub.f32 %v4802_v13, %v4809_v26 }
0x141d   : > { %v3801_v60 = vpop.xlane.xlu0 %3800 }
0x141e   : > { %v3803_v23 = vmul.f32 0.03125, %v3801_v60  ;;  %v4811_v29 = vmul.f32 %v4810_v27, %v4810_v27 }
0x1420   : > { %v3805_v22 = vadd.f32 1e-05, %v3803_v23  ;;  %v4812_v31 = vsel %vm4805_vm2, %v4811_v29, 0.0 }
0x1421   : > { %4813 = vadd.xlane.f32.xlu1 %v4812_v31 }
0x1422   : > { %12330 = vrsqrt.f32 %v3805_v22 }
0x142f   : > { %v12331_v32 = vpop.eup %12330 }
0x1430   : > { %v3809_v33 = vmul.f32 %v12331_v32, %v3793_v11 }
0x1432   : > { %v3817_v34 = vmul.f32 %v10533_v57, %v3809_v33 }
0x1434   : > { %v3825_v36 = vadd.f32 %v10534_v61, %v3817_v34  ;;  %v1696_v61 = vld [vmem:[%s14444_s10 + $0xa8] sm:$0xff] }
0x1436   : > { %v13550_v42 = vadd.f32 %v10535_v1, %v3825_v36 }
0x1438   : > { %v13553_v43 = vadd.f32 %v13550_v42, %v1674_v41 }
0x143a   : > { %11418 = vmatmul.mubr.msk.f32.vlgmr.msra.gmra.mxu0 %vm2393_vm0, %v13553_v43 }
0x143b   : > { %11435 = vmatprep.mubr.msk.f32.mxu0 %vm12739_vm13, %v12735_v37 }
0x14aa   : > { %v4814_v50 = vpop.xlane.xlu1 %4813 }
0x14ab   : > { %v4815_v51 = vmul.f32 0.03125, %v4814_v50 }
0x14ad   : > { %v4816_v52 = vadd.f32 1e-05, %v4815_v51 }
0x14af   : > { %12332 = vrsqrt.f32 %v4816_v52 }
0x14bc   : > { %v12333_v53 = vpop.eup %12332 }
0x14bd   : > { %v4818_v54 = vmul.f32 %v12333_v53, %v4810_v27 }
0x14bf   : > { %v4825_v55 = vmul.f32 %v10560_v19, %v4818_v54 }
0x14c1   : > { %v13569_v56 = vadd.f32 %v10561_v15, %v4825_v55 }
0x14c3   : > { %v4833_v57 = vadd.f32 %v13569_v56, %v13397_v0  ;;  %v10564_v0 = vld [vmem:[%s14447_s11 + $0x4] ss:$0 sm:$0xff] }
0x14c5   : > { %11407 = vmatmul.mubr.msk.f32.vlgmr.msra.gmra.mxu1 %vm2393_vm0, %v4833_v57 }
0x14c6   : > { %11421 = vmatpush3.msra.mxu1 %v1698_v49  ;;  %11428 = vmatprep.mubr.msk.f32.mxu1 %vm2393_vm0, %v13530_v5 }
0x14c7   : > { %11422 = vmatprep.subr.mxu1 %v1697_v58 }
0x14c8   : > { %11423 = vmatpush3.msra.mxu1 %v1697_v58 }
0x14c9   : > { %11424 = vmatprep.subr.mxu1 %v1696_v61 }
0x14ca   : > { %11425 = vmatpush3.msra.mxu1 %v1696_v61 }
0x14cb   : > { %11426 = vmatprep.subr.mxu1 %v1695_v62 }
0x14cc   : > { %11427 = vmatpush3.msra.mxu1 %v1695_v62 }
0x14cd   : > { %11429 = vmatmul.mubr.msk.f32.vlgmr.msra.gmra.mxu1 %vm2393_vm0, %v13550_v42  ;;  %11438 = vmatprep.subr.mxu1 %v12735_v37 }
0x14ce   : > { %11442 = vmatprep.mubr.msk.f32.mxu1 %vm12739_vm13, %v12735_v37 }
0x14fa   : > { %v11419_v1 = vpop.f32.mrf.mxu0 }
0x14fb   : > { %v13585_v2 = vadd.f32 %v11419_v1, %v10564_v0 }
0x14fc   : > { %v4993_v3 = vpop.f32.mrf.mxu0 }
0x14fd   : > { %v5090_v4 = vmul.f32 %v13194_v38, %v13585_v2  ;;  %v5186_v6 = vmul.f32 %v13198_v39, %v13585_v2  ;;  %v13591_v7 = vadd.f32 %v10564_v0, %v4993_v3  ;;  %v5424_v53 = vmul.f32 %v13205_v40, %v13585_v2 }
0x14ff   : > { %11432 = vmatpush3.xpose.msk.msra.mxu0 %vm2393_vm0, %v5090_v4  ;;  %11439 = vmatpush3.xpose.msk.msra.mxu1 %vm2393_vm0, %v5186_v6  ;;  %v5089_v8 = vmul.f32 %v13194_v38, %v13591_v7  ;;  %v5185_v9 = vmul.f32 %v13198_v39, %v13591_v7  ;;  %v5423_v15 = vmul.f32 %v13205_v40, %v13591_v7 }
0x1500   : > { %11433 = vmatprep.subr.mxu0 %v12735_v37  ;;  %11440 = vmatprep.subr.mxu1 %v12735_v37 }
0x1503   : > { %11434 = vmatpush3.xpose.msk.msra.mxu0 %vm2393_vm0, %v5089_v8  ;;  %11441 = vmatpush3.xpose.msk.msra.mxu1 %vm2393_vm0, %v5185_v9 }
0x1504   : > { %11445 = vmatprep.subr.mxu0 %v12735_v37  ;;  %11452 = vmatprep.subr.mxu1 %v12735_v37 }
0x1585   : > { %v4911_v48 = vpop.f32.mrf.mxu1 }
0x1586   : > { %v13606_v59 = vadd.f32 %v10562_v10, %v4911_v48 }
0x1587   : > { %v11408_v11 = vpop.f32.mrf.mxu1 }
0x1588   : > { %11436 = vmatmul.mubr.msk.f32.vlgmr.msra.gmra.mxu0 %vm2393_vm0, %v13606_v59  ;;  %11443 = vmatmul.mubr.msk.f32.vlgmr.msra.gmra.mxu1 %vm2393_vm0, %v13606_v59 }
0x1589   : > { %11449 = vmatprep.mubr.msk.f32.mxu0 %vm12739_vm13, %v12735_v37  ;;  %11456 = vmatprep.mubr.msk.f32.mxu1 %vm12739_vm13, %v12735_v37 }
0x158d   : > { %v11430_v13 = vpop.f32.mrf.mxu1 }
0x158e   : > { %v5086_v14 = vadd.f32 %v11430_v13, %v10567_v12 }
0x158f   : > { %v5080_v16 = vpop.f32.mrf.mxu1 }
0x1590   : > { %v13617_v17 = vadd.f32 %v10567_v12, %v5080_v16  ;;  %v5276_v18 = vmul.f32 %v13198_v39, %v5086_v14  ;;  %v5184_v20 = vmul.f32 %v13194_v38, %v5086_v14  ;;  %v5514_v55 = vmul.f32 %v13205_v40, %v5086_v14 }
0x1591   : > { %v5680_v58 = vmul.f32 %v13266_v30, %v5086_v14 }
0x1592   : > { %11446 = vmatpush3.msra.mxu0 %v5276_v18  ;;  %11453 = vmatpush3.msra.mxu1 %v5184_v20  ;;  %v5275_v21 = vmul.f32 %v13198_v39, %v13617_v17  ;;  %v5183_v63 = vmul.f32 %v13194_v38, %v13617_v17  ;;  %v5513_v57 = vmul.f32 %v13205_v40, %v13617_v17 }
0x1593   : > { %11447 = vmatprep.subr.mxu0 %v12735_v37  ;;  %11454 = vmatprep.subr.mxu1 %v12735_v37  ;;  %v5679_v61 = vmul.f32 %v13266_v30, %v13617_v17  ;;  %v5590_v20 = vmul.f32 %v13266_v30, %v13585_v2 }
0x1594   : > { %11448 = vmatpush3.msra.mxu0 %v5275_v21  ;;  %11455 = vmatpush3.msra.mxu1 %v5183_v63  ;;  %v5589_v21 = vmul.f32 %v13266_v30, %v13591_v7 }
0x1595   : > { %11459 = vmatprep.subr.mxu0 %v12735_v37  ;;  %11466 = vmatprep.subr.mxu1 %v12735_v37 }
0x1648   : > { %v5166_v24 = vpop.f32.mrf.mxu0  ;;  %v5259_v25 = vpop.f32.mrf.mxu1 }
0x1649   : > { %v5263_v26 = vmul.f32 0.35355338, %v5259_v25  ;;  %v5170_v23 = vmul.f32 0.35355338, %v5166_v24 }
0x164a   : > { %v11437_v27 = vpop.f32.mrf.mxu0  ;;  %v11444_v60 = vpop.f32.mrf.mxu1 }
0x164b   : > { %v5264_v29 = vsel %vm5171_vm3, %v5263_v26, -inf  ;;  %v5172_v22 = vsel %vm5171_vm3, %v5170_v23, -inf }
0x164c   : > { %5265 = vmax.xlane.f32.xlu0 %v5264_v29 }
0x1650   : > { %5173 = vmax.xlane.f32.xlu0 %v5172_v22 }
0x16d5   : > { %v5266_v31 = vpop.xlane.xlu0 %5265 }
0x16d6   : > { %v5267_v32 = vsub.f32 %v5263_v26, %v5266_v31 }
0x16d8   : > { %v5268_v33 = vmul.f32 1.442695, %v5267_v32 }
0x16d9   : > { %v5174_v34 = vpop.xlane.xlu0 %5173 }
0x16da   : > { %12334 = vpow2.f32 %v5268_v33  ;;  %v5175_v36 = vsub.f32 %v5170_v23, %v5174_v34  ;;  %v1742_v34 = vld [vmem:[%s14448_s2 + $0x38] sm:$0xff] }
0x16dc   : > { %v5176_v41 = vmul.f32 1.442695, %v5175_v36  ;;  %v1741_v36 = vld [vmem:[%s14448_s2 + $0x30] sm:$0xff] }
0x16de   : > { %12336 = vpow2.f32 %v5176_v41  ;;  %v1740_v41 = vld [vmem:[%s14448_s2 + $0x28] sm:$0xff] }
0x16e7   : > { %v12335_v44 = vpop.eup %12334 }
0x16e8   : > { %v5270_v45 = vsel %vm5171_vm3, %v12335_v44, 0.0 }
0x16e9   : > { %5271 = vadd.xlane.f32.xlu1 %v5270_v45 }
0x16eb   : > { %v12337_v47 = vpop.eup %12336 }
0x16ec   : > { %v5178_v28 = vsel %vm5171_vm3, %v12337_v47, 0.0 }
0x16ed   : > { %5179 = vadd.xlane.f32.xlu0 %v5178_v28 }
0x1772   : > { %v5272_v49 = vpop.xlane.xlu1 %5271 }
0x1773   : > { %12338 = vrcp.f32 %v5272_v49  ;;  %v10586_v49 = vld [vmem:[%s14450_s16 + $0x1] ss:$0 sm:$0xff] }
0x1776   : > { %v5180_v50 = vpop.xlane.xlu0 %5179 }
0x1777   : > { %12340 = vrcp.f32 %v5180_v50 }
0x1780   : > { %v12339_v51 = vpop.eup %12338 }
0x1781   : > { %v5274_v52 = vmul.f32 %v12339_v51, %v12335_v44  ;;  %v1739_v44 = vld [vmem:[%s14448_s2 + $0x20] sm:$0xff] }
0x1783   : > { %11450 = vmatmul.mubr.msk.f32.vlgmr.msra.gmra.mxu0 %vm2623_vm8, %v5274_v52 }
0x1784   : > { %v12341_v19 = vpop.eup %12340  ;;  %11460 = vmatpush3.xpose.msk.msra.mxu0 %vm2393_vm0, %v5424_v53  ;;  %11463 = vmatprep.mubr.msk.f32.mxu0 %vm12739_vm13, %v12735_v37 }
0x1785   : > { %11461 = vmatprep.subr.mxu0 %v12735_v37  ;;  %v5182_v54 = vmul.f32 %v12341_v19, %v12337_v47 }
0x1787   : > { %11457 = vmatmul.mubr.msk.f32.vlgmr.msra.gmra.mxu1 %vm2623_vm8, %v5182_v54 }
0x1788   : > { %11462 = vmatpush3.xpose.msk.msra.mxu0 %vm2393_vm0, %v5423_v15  ;;  %11467 = vmatpush3.msra.mxu1 %v5514_v55 }
0x1789   : > { %11468 = vmatprep.subr.mxu1 %v12735_v37  ;;  %11480 = vmatprep.subr.mxu0 %v12735_v37 }
0x178a   : > { %11469 = vmatpush3.msra.mxu1 %v5513_v57  ;;  %11470 = vmatprep.mubr.msk.f32.mxu1 %vm12739_vm13, %v12735_v37 }
0x178b   : > { %11464 = vmatmul.mubr.msk.f32.vlgmr.msra.gmra.mxu0 %vm2393_vm0, %v13606_v59  ;;  %11473 = vmatprep.subr.mxu1 %v12735_v37 }
0x178c   : > { %11481 = vmatpush3.msra.mxu0 %v5680_v58  ;;  %11484 = vmatprep.mubr.msk.f32.mxu0 %vm12739_vm13, %v12735_v37 }
0x178d   : > { %11482 = vmatprep.subr.mxu0 %v12735_v37 }
0x178e   : > { %11483 = vmatpush3.msra.mxu0 %v5679_v61  ;;  %v1768_v61 = vld [vmem:[%s14453_s4 + $0x18] sm:$0xff] }
0x178f   : > { %11487 = vmatprep.subr.mxu0 %v12735_v37 }
0x1843   : > { %v5346_v62 = vpop.f32.mrf.mxu0 }
0x1845   : > { %v11451_v0 = vpop.f32.mrf.mxu0 }
0x1846   : > { %v1765_v0 = vld [vmem:[%s14453_s4] sm:$0xff] }
0x1847   : > { %v5419_v1 = vpop.f32.mrf.mxu1 }
0x1848   : > { %v5420_v3 = vadd.f32 %v5419_v1, %v5346_v62  ;;  %v1766_v62 = vld [vmem:[%s14453_s4 + $0x8] sm:$0xff]  ;;  %v1702_v1 = vld [vmem:[%s14444_s10 + $0xd8] sm:$0xff] }
0x1849   : > { %v11458_v4 = vpop.f32.mrf.mxu1 }
0x184a   : > { %v1776_v4 = vld [vmem:[%s14454_s5 + $0x30] sm:$0xff] }
0x184b   : > { %v5497_v6 = vpop.f32.mrf.mxu0 }
0x184c   : > { %v5501_v8 = vmul.f32 0.35355338, %v5497_v6  ;;  %v1775_v6 = vld [vmem:[%s14454_s5 + $0x28] sm:$0xff] }
0x184d   : > { %v11465_v9 = vpop.f32.mrf.mxu0 }
0x184e   : > { %v5502_v10 = vsel %vm5171_vm3, %v5501_v8, -inf  ;;  %v1773_v9 = vld [vmem:[%s14454_s5 + $0x18] sm:$0xff] }
0x184f   : > { %5503 = vmax.xlane.f32.xlu1 %v5502_v10 }
0x18d8   : > { %v5504_v48 = vpop.xlane.xlu1 %5503 }
0x18d9   : > { %v5505_v11 = vsub.f32 %v5501_v8, %v5504_v48  ;;  %v1774_v8 = vld [vmem:[%s14454_s5 + $0x20] sm:$0xff] }
0x18db   : > { %v5506_v12 = vmul.f32 1.442695, %v5505_v11 }
0x18dd   : > { %12342 = vpow2.f32 %v5506_v12 }
0x18ea   : > { %v12343_v13 = vpop.eup %12342 }
0x18eb   : > { %v5508_v14 = vsel %vm5171_vm3, %v12343_v13, 0.0 }
0x18ec   : > { %5509 = vadd.xlane.f32.xlu1 %v5508_v14 }
0x1975   : > { %v5510_v16 = vpop.xlane.xlu1 %5509 }
0x1976   : > { %12344 = vrcp.f32 %v5510_v16  ;;  %v10589_v16 = vld [vmem:[%s14452_s3 + $0x1] ss:$0 sm:$0xff] }
0x1983   : > { %v12345_v17 = vpop.eup %12344 }
0x1984   : > { %v5512_v18 = vmul.f32 %v12345_v17, %v12343_v13  ;;  %v10588_v13 = vld [vmem:[%s14451_s0 + $0x1] ss:$0 sm:$0xff] }
0x1986   : > { %11471 = vmatmul.mubr.msk.f32.vlgmr.msra.gmra.mxu1 %vm2623_vm8, %v5512_v18 }
0x1987   : > { %11474 = vmatpush3.xpose.msk.msra.mxu1 %vm2393_vm0, %v5590_v20  ;;  %11477 = vmatprep.mubr.msk.f32.mxu1 %vm12739_vm13, %v12735_v37  ;;  %v1701_v20 = vld [vmem:[%s14444_s10 + $0xd0] sm:$0xff] }
0x1988   : > { %11475 = vmatprep.subr.mxu1 %v12735_v37 }
0x198b   : > { %11476 = vmatpush3.xpose.msk.msra.mxu1 %vm2393_vm0, %v5589_v21  ;;  %v1700_v21 = vld [vmem:[%s14444_s10 + $0xc8] sm:$0xff] }
0x198c   : > { %11498 = vmatprep.subr.mxu1 %v12735_v37 }
0x198e   : > { %11478 = vmatmul.mubr.msk.f32.vlgmr.msra.gmra.mxu1 %vm2393_vm0, %v13606_v59 }
0x198f   : > { %11506 = vmatprep.mubr.msk.f32.mxu1 %vm12739_vm13, %v12735_v37  ;;  %11499 = vmatpush3.msra.mxu1 %v1768_v61  ;;  %v10594_v61 = vld [vmem:[%s14451_s0 + $0x2] ss:$0 sm:$0xff] }
0x1990   : > { %11500 = vmatprep.subr.mxu1 %v12735_v37 }
0x1a46   : > { %v5584_v2 = vpop.f32.mrf.mxu1 }
0x1a47   : > { %v5588_v63 = vadd.f32 %v5584_v2, %v5420_v3  ;;  %v1777_v3 = vld [vmem:[%s14454_s5 + $0x38] sm:$0xff]  ;;  %v1699_v2 = vld [vmem:[%s14444_s10 + $0xc0] sm:$0xff] }
0x1a48   : > { %v11472_v24 = vpop.f32.mrf.mxu1 }
0x1a49   : > { %v1770_v24 = vld [vmem:[%s14454_s5] sm:$0xff] }
0x1a4e   : > { %v5663_v25 = vpop.f32.mrf.mxu1 }
0x1a4f   : > { %v5667_v26 = vmul.f32 0.35355338, %v5663_v25  ;;  %v10590_v25 = vld [vmem:[#allocation6] ss:$0 sm:$0xff] }
0x1a50   : > { %v11479_v27 = vpop.f32.mrf.mxu1 }
0x1a51   : > { %v5668_v7 = vsel %vm5171_vm3, %v5667_v26, -inf }
0x1a52   : > { %5669 = vmax.xlane.f32.xlu0 %v5668_v7 }
0x1adb   : > { %v5670_v60 = vpop.xlane.xlu0 %5669 }
0x1adc   : > { %v5671_v23 = vsub.f32 %v5667_v26, %v5670_v60  ;;  %v10596_v60 = vld [vmem:[%s14447_s11 + $0x6] ss:$0 sm:$0xff] }
0x1ade   : > { %v5672_v29 = vmul.f32 1.442695, %v5671_v23 }
0x1ae0   : > { %12346 = vpow2.f32 %v5672_v29 }
0x1aed   : > { %v12347_v59 = vpop.eup %12346 }
0x1aee   : > { %v5674_v22 = vsel %vm5171_vm3, %v12347_v59, 0.0 }
0x1aef   : > { %5675 = vadd.xlane.f32.xlu1 %v5674_v22 }
0x1b78   : > { %v5676_v31 = vpop.xlane.xlu1 %5675 }
0x1b79   : > { %12348 = vrcp.f32 %v5676_v31 }
0x1b86   : > { %v12349_v32 = vpop.eup %12348 }
0x1b87   : > { %v5678_v33 = vmul.f32 %v12349_v32, %v12347_v59  ;;  %v10592_v59 = vld [vmem:[#allocation7] ss:$0 sm:$0xff] }
0x1b89   : > { %11485 = vmatmul.mubr.msk.f32.vlgmr.msra.gmra.mxu0 %vm2623_vm8, %v5678_v33 }
0x1b8a   : > { %11488 = vmatpush3.msra.mxu0 %v1742_v34  ;;  %11495 = vmatprep.mubr.msk.f32.mxu0 %vm12739_vm13, %v12735_v37 }
0x1b8b   : > { %11489 = vmatprep.subr.mxu0 %v12735_v37 }
0x1b8c   : > { %11490 = vmatpush3.msra.mxu0 %v1741_v36 }
0x1b8d   : > { %11491 = vmatprep.subr.mxu0 %v12735_v37 }
0x1b8e   : > { %11492 = vmatpush3.msra.mxu0 %v1740_v41 }
0x1b8f   : > { %11493 = vmatprep.subr.mxu0 %v12735_v37 }
0x1b90   : > { %11494 = vmatpush3.msra.mxu0 %v1739_v44 }
0x1b91   : > { %11509 = vmatprep.subr.mxu0 %v12735_v37 }
0x1c49   : > { %v5750_v45 = vpop.f32.mrf.mxu0 }
0x1c4a   : > { %v5754_v47 = vadd.f32 %v5750_v45, %v5588_v63  ;;  %v1772_v63 = vld [vmem:[%s14454_s5 + $0x10] sm:$0xff] }
0x1c4b   : > { %v11486_v28 = vpop.f32.mrf.mxu0 }
0x1c4c   : > { %11496 = vmatmul.mubr.msk.f32.vlgmr.msra.gmra.mxu0 %vm2393_vm0, %v5754_v47  ;;  %v1710_v28 = vld [vmem:[%s14444_s10 + $0x118] sm:$0xff] }
0x1c4d   : > { %11525 = vmatprep.mubr.msk.f32.mxu0 %vm12739_vm13, %v12735_v37  ;;  %11510 = vmatpush3.msra.mxu0 %v1777_v3 }
0x1c4e   : > { %11511 = vmatprep.subr.mxu0 %v12735_v37 }
0x1c4f   : > { %11512 = vmatpush3.msra.mxu0 %v1776_v4  ;;  %v12414_v4 = vld [vmem:[%s13392_s1] sm:$0xf]  ;;  %s14455_s1 = sld [smem:[#allocation43_spill]] }
0x1c50   : > { %11513 = vmatprep.subr.mxu0 %v12735_v37 }
0x1c51   : > { %11514 = vmatpush3.msra.mxu0 %v1775_v6 }
0x1c52   : > { %11515 = vmatprep.subr.mxu0 %v12735_v37 }
0x1c53   : > { %11516 = vmatpush3.msra.mxu0 %v1774_v8 }
0x1c54   : > { %11517 = vmatprep.subr.mxu0 %v12735_v37 }
0x1c55   : > { %11518 = vmatpush3.msra.mxu0 %v1773_v9  ;;  %v10601_v9 = vld [vmem:[%s14447_s11 + $0x8] ss:$0 sm:$0xff] }
0x1c56   : > { %11519 = vmatprep.subr.mxu0 %v12735_v37 }
0x1c57   : > { %11520 = vmatpush3.msra.mxu0 %v1772_v63 }
0x1c58   : > { %11521 = vmatprep.subr.mxu0 %v12735_v37 }
0x1d0c   : > { %v5830_v50 = vpop.f32.mrf.mxu0 }
0x1d0d   : > { %v5831_v51 = vadd.f32 %v10586_v49, %v5830_v50  ;;  %v1706_v49 = vld [vmem:[%s14444_s10 + $0xf8] sm:$0xff]  ;;  %v1709_v50 = vld [vmem:[%s14444_s10 + $0x110] sm:$0xff] }
0x1d0e   : > { %v11497_v52 = vpop.f32.mrf.mxu0 }
0x1d0f   : > { %v5834_v53 = vadd.f32 %v5831_v51, %v13569_v56  ;;  %v1767_v56 = vld [vmem:[%s14453_s4 + $0x10] sm:$0xff]  ;;  %v1708_v52 = vld [vmem:[%s14444_s10 + $0x108] sm:$0xff]  ;;  %s14458_s4 = sld [smem:[#allocation45_spill]] }
0x1d10   : > { %11501 = vmatpush3.msra.mxu1 %v1767_v56  ;;  %v1705_v51 = vld [vmem:[%s14444_s10 + $0xf0] sm:$0xff] }
0x1d11   : > { %v5835_v19 = vsel %vm4805_vm2, %v5834_v53, 0.0  ;;  %11502 = vmatprep.subr.mxu1 %v12735_v37 }
0x1d12   : > { %5836 = vadd.xlane.f32.xlu0 %v5835_v19  ;;  %11503 = vmatpush3.msra.mxu1 %v1766_v62  ;;  %v1707_v19 = vld [vmem:[%s14444_s10 + $0x100] sm:$0xff] }
0x1d13   : > { %11504 = vmatprep.subr.mxu1 %v12735_v37  ;;  %v10595_v62 = vld [vmem:[%s14452_s3 + $0x2] ss:$0 sm:$0xff] }
0x1d14   : > { %11505 = vmatpush3.msra.mxu1 %v1765_v0 }
0x1d15   : > { %11528 = vmatprep.subr.mxu1 %v1702_v1 }
0x1d9b   : > { %v5837_v54 = vpop.xlane.xlu0 %5836 }
0x1d9c   : > { %v5838_v15 = vmul.f32 0.03125, %v5837_v54  ;;  %v1703_v54 = vld [vmem:[%s14444_s10 + $0xe0] sm:$0xff] }
0x1d9e   : > { %v5839_v55 = vsub.f32 %v5834_v53, %v5838_v15  ;;  %v1704_v53 = vld [vmem:[%s14444_s10 + $0xe8] sm:$0xff] }
0x1da0   : > { %v5840_v57 = vmul.f32 %v5839_v55, %v5839_v55 }
0x1da2   : > { %v5841_v58 = vsel %vm4805_vm2, %v5840_v57, 0.0 }
0x1da3   : > { %5842 = vadd.xlane.f32.xlu1 %v5841_v58 }
0x1e2c   : > { %v5843_v10 = vpop.xlane.xlu1 %5842 }
0x1e2d   : > { %v5844_v48 = vmul.f32 0.03125, %v5843_v10 }
0x1e2f   : > { %v5845_v11 = vadd.f32 1e-05, %v5844_v48  ;;  %v10599_v48 = vld [vmem:[%s14447_s11 + $0x7] ss:$0 sm:$0xff] }
0x1e31   : > { %12350 = vrsqrt.f32 %v5845_v11 }
0x1e3e   : > { %v12351_v12 = vpop.eup %12350 }
0x1e3f   : > { %v5847_v14 = vmul.f32 %v12351_v12, %v5839_v55 }
0x1e41   : > { %v5854_v17 = vmul.f32 %v10588_v13, %v5847_v14 }
0x1e43   : > { %v5861_v18 = vadd.f32 %v10589_v16, %v5854_v17 }
0x1e45   : > { %11507 = vmatmul.mubr.msk.f32.vlgmr.msra.gmra.mxu1 %vm2393_vm0, %v5861_v18 }
0x1e46   : > { %11529 = vmatpush3.msra.mxu1 %v1702_v1  ;;  %11536 = vmatprep.mubr.msk.f32.mxu1 %vm2393_vm0, %v13534_v46  ;;  %v1771_v46 = vld [vmem:[%s14454_s5 + $0x8] sm:$0xff] }
0x1e47   : > { %11530 = vmatprep.subr.mxu1 %v1701_v20  ;;  %11522 = vmatpush3.msra.mxu0 %v1771_v46 }
0x1e48   : > { %11531 = vmatpush3.msra.mxu1 %v1701_v20  ;;  %11523 = vmatprep.subr.mxu0 %v12735_v37 }
0x1e49   : > { %11532 = vmatprep.subr.mxu1 %v1700_v21  ;;  %11524 = vmatpush3.msra.mxu0 %v1770_v24 }
0x1e4a   : > { %11533 = vmatpush3.msra.mxu1 %v1700_v21  ;;  %11550 = vmatprep.subr.mxu0 %v12735_v37 }
0x1e4b   : > { %11534 = vmatprep.subr.mxu1 %v1699_v2 }
0x1e4c   : > { %11535 = vmatpush3.msra.mxu1 %v1699_v2 }
0x1e4d   : > { %11537 = vmatmul.mubr.msk.f32.vlgmr.msra.gmra.mxu1 %vm2393_vm0, %v13553_v43  ;;  %11539 = vmatprep.subr.mxu1 %v12735_v37 }
0x1e4e   : > { %11547 = vmatprep.mubr.msk.f32.mxu1 %vm12739_vm13, %v12735_v37  ;;  %11540 = vmatpush3.msra.mxu1 %v1706_v49 }
0x1e4f   : > { %11541 = vmatprep.subr.mxu1 %v12735_v37 }
0x1e50   : > { %11542 = vmatpush3.msra.mxu1 %v1705_v51 }
0x1e51   : > { %11543 = vmatprep.subr.mxu1 %v12735_v37 }
0x1e52   : > { %11544 = vmatpush3.msra.mxu1 %v1704_v53 }
0x1e53   : > { %11545 = vmatprep.subr.mxu1 %v12735_v37 }
0x1e54   : > { %11546 = vmatpush3.msra.mxu1 %v1703_v54 }
0x1f05   : > { %v5937_v43 = vpop.f32.mrf.mxu1 }
0x1f06   : > { %v5938_v26 = vadd.f32 %v10590_v25, %v5937_v43 }
0x1f07   : > { %v11508_v27 = vpop.f32.mrf.mxu1 }
0x1f08   : > { %v5941_v7 = vmax.f32 %v5938_v26, 0.0 }
0x1f0a   : > { %11526 = vmatmul.mubr.msk.f32.vlgmr.msra.gmra.mxu0 %vm3613_vm12, %v5941_v7 }
0x1f0b   : > { %11558 = vmatprep.mubr.msk.f32.mxu0 %vm12739_vm13, %v12735_v37  ;;  %11551 = vmatpush3.msra.mxu0 %v1710_v28 }
0x1f0c   : > { %11552 = vmatprep.subr.mxu0 %v12735_v37 }
0x1f0d   : > { %v11538_v23 = vpop.f32.mrf.mxu1  ;;  %11553 = vmatpush3.msra.mxu0 %v1709_v50 }
0x1f0e   : > { %v13739_v29 = vadd.f32 %v11538_v23, %v10596_v60  ;;  %11554 = vmatprep.subr.mxu0 %v12735_v37 }
0x1f0f   : > { %11555 = vmatpush3.msra.mxu0 %v1708_v52  ;;  %v6122_v1 = vpop.f32.mrf.mxu1 }
0x1f10   : > { %11556 = vmatprep.subr.mxu0 %v12735_v37  ;;  %v13767_v8 = vadd.f32 %v10596_v60, %v6122_v1 }
0x1f11   : > { %11557 = vmatpush3.msra.mxu0 %v1707_v19 }
0x1fca   : > { %v6017_v22 = vpop.f32.mrf.mxu0 }
0x1fcb   : > { %v6018_v31 = vadd.f32 %v10592_v59, %v6017_v22 }
0x1fcc   : > { %v11527_v32 = vpop.f32.mrf.mxu0 }
0x1fcd   : > { %v6021_v33 = vadd.f32 %v6018_v31, %v5861_v18 }
0x1fcf   : > { %v6022_v34 = vsel %vm4805_vm2, %v6021_v33, 0.0 }
0x1fd0   : > { %6023 = vadd.xlane.f32.xlu0 %v6022_v34 }
0x2059   : > { %v6024_v36 = vpop.xlane.xlu0 %6023 }
0x205a   : > { %v6025_v41 = vmul.f32 0.03125, %v6024_v36 }
0x205c   : > { %v6026_v44 = vsub.f32 %v6021_v33, %v6025_v41 }
0x205e   : > { %v6027_v45 = vmul.f32 %v6026_v44, %v6026_v44 }
0x2060   : > { %v6028_v47 = vsel %vm4805_vm2, %v6027_v45, 0.0 }
0x2061   : > { %6029 = vadd.xlane.f32.xlu1 %v6028_v47 }
0x20ea   : > { %v6030_v15 = vpop.xlane.xlu1 %6029 }
0x20eb   : > { %v6031_v55 = vmul.f32 0.03125, %v6030_v15 }
0x20ed   : > { %v6032_v57 = vadd.f32 1e-05, %v6031_v55 }
0x20ef   : > { %12352 = vrsqrt.f32 %v6032_v57 }
0x20fc   : > { %v12353_v58 = vpop.eup %12352 }
0x20fd   : > { %v6034_v56 = vmul.f32 %v12353_v58, %v6026_v44 }
0x20ff   : > { %v6041_v0 = vmul.f32 %v10594_v61, %v6034_v56 }
0x2101   : > { %v13759_v3 = vadd.f32 %v10595_v62, %v6041_v0 }
0x2103   : > { %11559 = vmatmul.mubr.msk.f32.vlgmr.msra.gmra.mxu0 %vm2393_vm0, %v13759_v3  ;;  %v13765_v6 = vadd.f32 %v12414_v4, %v13759_v3 }
0x2105   : > { %11548 = vmatmul.mubr.msk.f32.vlgmr.msra.gmra.mxu1 %vm2393_vm0, %v13765_v6 }
0x2106   : > { %11563 = vmatprep.mubr.msk.f32.mxu1 %vm2393_vm0, %v13767_v8 }
0x21c3   : > { %v6285_v10 = vpop.f32.mrf.mxu0 }
0x21c4   : > { %v13775_v11 = vadd.f32 %v10601_v9, %v6285_v10 }
0x21c5   : > { %v6206_v12 = vpop.f32.mrf.mxu1  ;;  %v11560_v13 = vpop.f32.mrf.mxu0 }
0x21c6   : > { %v6207_v14 = vadd.f32 %v10599_v48, %v6206_v12  ;;  %v6502_v16 = vmul.f32 %v13198_v39, %v13775_v11  ;;  %v6398_v2 = vmul.f32 %v13194_v38, %v13775_v11  ;;  %v13800_v63 = vmul.f32 %v13205_v40, %v13775_v11 }
0x21c7   : > { %v11549_v17 = vpop.f32.mrf.mxu1 }
0x21c8   : > { %11571 = vmatprep.subr.msk.mxu0 %vm4248_vm14, %v6502_v16  ;;  %v6289_v18 = vmul.f32 %v13194_v38, %v6207_v14  ;;  %v6671_v20 = vmul.f32 %v13205_v40, %v6207_v14  ;;  %v6399_v21 = vmul.f32 %v13198_v39, %v6207_v14  ;;  %v6861_v15 = vmul.f32 %v13266_v30, %v6207_v14 }
0x21c9   : > { %11572 = vmatpush3.msk.msra.mxu0 %vm4248_vm14, %v6502_v16 }
0x21ca   : > { %11561 = vmatprep.subr.msk.mxu1 %vm2393_vm0, %v6289_v18  ;;  %11581 = vmatprep.subr.msk.mxu0 %vm2393_vm0, %v6671_v20 }
0x21cb   : > { %11562 = vmatpush3.xpose.msk.msra.mxu1 %vm2393_vm0, %v6289_v18 }
0x21cc   : > { %11566 = vmatprep.subr.msk.mxu1 %vm2393_vm0, %v6399_v21 }
0x21ce   : > { %11564 = vmatmul.mubr.msk.f32.vlgmr.msra.gmra.mxu1 %vm2393_vm0, %v13739_v29 }
0x21cf   : > { %11567 = vmatpush3.xpose.msk.msra.mxu1 %vm2393_vm0, %v6399_v21  ;;  %11568 = vmatprep.mubr.msk.f32.mxu1 %vm2393_vm0, %v13767_v8 }
0x21d0   : > { %11576 = vmatprep.subr.msk.mxu1 %vm4248_vm14, %v6398_v2 }
0x21d2   : > { %11569 = vmatmul.mubr.msk.f32.vlgmr.msra.gmra.mxu1 %vm2393_vm0, %v13739_v29 }
0x21d3   : > { %11577 = vmatpush3.msk.msra.mxu1 %vm4248_vm14, %v6398_v2 }
0x21d4   : > { %11586 = vmatprep.subr.msk.mxu1 %vm4248_vm14, %v13800_v63 }
0x228e   : > { %v11565_v46 = vpop.f32.mrf.mxu1 }
0x228f   : > { %v6375_v36 = vmul.f32 0.35355338, %v11565_v46 }
0x2290   : > { %v6365_v24 = vpop.f32.mrf.mxu1 }
0x2291   : > { %v6374_v45 = vmul.f32 0.35355338, %v6365_v24  ;;  %v6379_v28 = vsel %vm4244_vm1, %v6375_v36, -inf }
0x2292   : > { %v11570_v25 = vpop.f32.mrf.mxu1 }
0x2293   : > { %v6479_v43 = vmul.f32 0.35355338, %v11570_v25  ;;  %v6376_v49 = vsel %vm4244_vm1, %v6374_v45, -inf }
0x2294   : > { %v6469_v26 = vpop.f32.mrf.mxu1 }
0x2295   : > { %v6478_v27 = vmul.f32 0.35355338, %v6469_v26  ;;  %v6483_v7 = vsel %vm4244_vm1, %v6479_v43, -inf }
0x2296   : > { %6484 = vmax.xlane.f32.xlu1 %v6483_v7 }
0x2297   : > { %v6480_v60 = vsel %vm4244_vm1, %v6478_v27, -inf }
0x2298   : > { %6481 = vmax.xlane.f32.xlu0 %v6480_v60 }
0x231f   : > { %v6485_v23 = vpop.xlane.xlu1 %6484 }
0x2320   : > { %v6487_v59 = vsub.f32 %v6479_v43, %v6485_v23 }
0x2321   : > { %v6482_v22 = vpop.xlane.xlu0 %6481 }
0x2322   : > { %v6490_v31 = vmul.f32 1.442695, %v6487_v59  ;;  %v6486_v32 = vsub.f32 %v6478_v27, %v6482_v22 }
0x2324   : > { %12354 = vpow2.f32 %v6490_v31  ;;  %v6488_v33 = vmul.f32 1.442695, %v6486_v32 }
0x2326   : > { %12356 = vpow2.f32 %v6488_v33 }
0x2331   : > { %v12355_v34 = vpop.eup %12354 }
0x2332   : > { %v6495_v41 = vsel %vm4244_vm1, %v12355_v34, 0.0 }
0x2333   : > { %v12357_v44 = vpop.eup %12356  ;;  %6496 = vadd.xlane.f32.xlu1 %v6495_v41 }
0x2334   : > { %v6492_v47 = vsel %vm4244_vm1, %v12357_v44, 0.0 }
0x2335   : > { %6493 = vadd.xlane.f32.xlu0 %v6492_v47 }
0x2337   : > { %6380 = vmax.xlane.f32.xlu1 %v6379_v28 }
0x2339   : > { %6377 = vmax.xlane.f32.xlu0 %v6376_v49 }
0x23bc   : > { %v6497_v50 = vpop.xlane.xlu1 %6496 }
0x23bd   : > { %12358 = vrcp.f32 %v6497_v50 }
0x23be   : > { %v6494_v51 = vpop.xlane.xlu0 %6493 }
0x23bf   : > { %12360 = vrcp.f32 %v6494_v51 }
0x23c0   : > { %v6381_v55 = vpop.xlane.xlu1 %6380 }
0x23c1   : > { %v6383_v58 = vsub.f32 %v6375_v36, %v6381_v55 }
0x23c2   : > { %v6378_v57 = vpop.xlane.xlu0 %6377 }
0x23c3   : > { %v6382_v61 = vsub.f32 %v6374_v45, %v6378_v57  ;;  %v6386_v56 = vmul.f32 1.442695, %v6383_v58 }
0x23c5   : > { %v6384_v62 = vmul.f32 1.442695, %v6382_v61  ;;  %12362 = vpow2.f32 %v6386_v56 }
0x23c7   : > { %12364 = vpow2.f32 %v6384_v62 }
0x23ca   : > { %v12359_v52 = vpop.eup %12358 }
0x23cb   : > { %v6501_v54 = vmul.f32 %v12359_v52, %v12355_v34 }
0x23cc   : > { %v12361_v53 = vpop.eup %12360 }
0x23cd   : > { %v6499_v19 = vmul.f32 %v12361_v53, %v12357_v44 }
0x23cf   : > { %11573 = vmatprep.mubr.msk.f32.mxu0 %vm4244_vm1, %v6499_v19 }
0x23d0   : > { %11574 = vmatmul.mubr.msk.f32.vlgmr.msra.gmra.mxu0 %vm4244_vm1, %v6501_v54  ;;  %v6964_v54 = vmul.f32 %v13266_v30, %v13775_v11 }
0x23d1   : > { %11582 = vmatpush3.xpose.msk.msra.mxu0 %vm2393_vm0, %v6671_v20  ;;  %11583 = vmatprep.mubr.msk.f32.mxu0 %vm2393_vm0, %v13767_v8 }
0x23d2   : > { %11591 = vmatprep.subr.msk.mxu0 %vm2393_vm0, %v6861_v15  ;;  %v12363_v18 = vpop.eup %12362 }
0x23d3   : > { %v6391_v2 = vsel %vm4244_vm1, %v12363_v18, 0.0 }
0x23d4   : > { %11584 = vmatmul.mubr.msk.f32.vlgmr.msra.gmra.mxu0 %vm2393_vm0, %v13739_v29  ;;  %v12365_v21 = vpop.eup %12364 }
0x23d5   : > { %11592 = vmatpush3.xpose.msk.msra.mxu0 %vm2393_vm0, %v6861_v15  ;;  %11593 = vmatprep.mubr.msk.f32.mxu0 %vm2393_vm0, %v13767_v8  ;;  %v6388_v46 = vsel %vm4244_vm1, %v12365_v21, 0.0 }
0x23d8   : > { %11594 = vmatmul.mubr.msk.f32.vlgmr.msra.gmra.mxu0 %vm2393_vm0, %v13739_v29 }
0x2490   : > { %v13825_v0 = vpop.f32.mrf.mxu0 }
0x2492   : > { %v13827_v1 = vpop.f32.mrf.mxu0 }
0x2494   : > { %v11585_v4 = vpop.f32.mrf.mxu0 }
0x2495   : > { %v6751_v9 = vmul.f32 0.35355338, %v11585_v4 }
0x2496   : > { %v6741_v10 = vpop.f32.mrf.mxu0 }
0x2497   : > { %v6750_v48 = vmul.f32 0.35355338, %v6741_v10  ;;  %v6755_v8 = vsel %vm4244_vm1, %v6751_v9, -inf }
0x2498   : > { %6756 = vmax.xlane.f32.xlu1 %v6755_v8  ;;  %v11595_v29 = vpop.f32.mrf.mxu0  ;;  %v1713_v8 = vld [vmem:[%s14444_s10 + $0x130] sm:$0xff] }
0x2499   : > { %v6941_v12 = vmul.f32 0.35355338, %v11595_v29  ;;  %v6752_v13 = vsel %vm4244_vm1, %v6750_v48, -inf  ;;  %v1712_v29 = vld [vmem:[%s14444_s10 + $0x128] sm:$0xff] }
0x249a   : > { %v6931_v14 = vpop.f32.mrf.mxu0  ;;  %6753 = vmax.xlane.f32.xlu0 %v6752_v13  ;;  %v1746_v13 = vld [vmem:[%s14448_s2 + $0x58] sm:$0xff] }
0x249b   : > { %v6940_v16 = vmul.f32 0.35355338, %v6931_v14  ;;  %v6945_v17 = vsel %vm4244_vm1, %v6941_v12, -inf  ;;  %11601 = vmatprep.subr.mxu0 %v1746_v13  ;;  %v1745_v14 = vld [vmem:[%s14448_s2 + $0x50] sm:$0xff] }
0x249c   : > { %6946 = vmax.xlane.f32.xlu1 %v6945_v17  ;;  %11602 = vmatpush3.msra.mxu0 %v1746_v13  ;;  %v1743_v17 = vld [vmem:[%s14448_s2 + $0x40] sm:$0xff] }
0x249d   : > { %v6942_v20 = vsel %vm4244_vm1, %v6940_v16, -inf  ;;  %11603 = vmatprep.subr.mxu0 %v1745_v14 }
0x249e   : > { %6943 = vmax.xlane.f32.xlu0 %v6942_v20  ;;  %11604 = vmatpush3.msra.mxu0 %v1745_v14 }
0x24a0   : > { %6392 = vadd.xlane.f32.xlu1 %v6391_v2 }
0x24a2   : > { %6389 = vadd.xlane.f32.xlu0 %v6388_v46 }
0x2521   : > { %v6757_v24 = vpop.xlane.xlu1 %6756 }
0x2522   : > { %v6759_v25 = vsub.f32 %v6751_v9, %v6757_v24 }
0x2523   : > { %v6754_v43 = vpop.xlane.xlu0 %6753 }
0x2524   : > { %v6762_v26 = vmul.f32 1.442695, %v6759_v25  ;;  %v6758_v27 = vsub.f32 %v6750_v48, %v6754_v43  ;;  %v1714_v48 = vld [vmem:[%s14444_s10 + $0x138] sm:$0xff] }
0x2525   : > { %v6947_v7 = vpop.xlane.xlu1 %6946 }
0x2526   : > { %12366 = vpow2.f32 %v6762_v26  ;;  %v6760_v60 = vmul.f32 1.442695, %v6758_v27  ;;  %v6949_v23 = vsub.f32 %v6941_v12, %v6947_v7  ;;  %v1711_v12 = vld [vmem:[%s14444_s10 + $0x120] sm:$0xff] }
0x2527   : > { %v6944_v59 = vpop.xlane.xlu0 %6943 }
0x2528   : > { %12368 = vpow2.f32 %v6760_v60  ;;  %v6952_v22 = vmul.f32 1.442695, %v6949_v23  ;;  %v6948_v31 = vsub.f32 %v6940_v16, %v6944_v59  ;;  %v1744_v16 = vld [vmem:[%s14448_s2 + $0x48] sm:$0xff]  ;;  %v10627_v59 = vld [vmem:[%s14450_s16 + $0x2] ss:$0 sm:$0xff] }
0x2529   : > { %v6393_v32 = vpop.xlane.xlu1 %6392  ;;  %11605 = vmatprep.subr.mxu0 %v1744_v16 }
0x252a   : > { %12370 = vpow2.f32 %v6952_v22  ;;  %v6950_v33 = vmul.f32 1.442695, %v6948_v31  ;;  %11606 = vmatpush3.msra.mxu0 %v1744_v16 }
0x252b   : > { %12372 = vrcp.f32 %v6393_v32  ;;  %v6390_v34 = vpop.xlane.xlu0 %6389  ;;  %11607 = vmatprep.subr.mxu0 %v1743_v17 }
0x252c   : > { %12374 = vpow2.f32 %v6950_v33  ;;  %11608 = vmatpush3.msra.mxu0 %v1743_v17 }
0x252d   : > { %12376 = vrcp.f32 %v6390_v34 }
0x2533   : > { %v12367_v36 = vpop.eup %12366 }
0x2534   : > { %v6767_v41 = vsel %vm4244_vm1, %v12367_v36, 0.0 }
0x2535   : > { %v12369_v44 = vpop.eup %12368  ;;  %6768 = vadd.xlane.f32.xlu1 %v6767_v41 }
0x2536   : > { %v6764_v45 = vsel %vm4244_vm1, %v12369_v44, 0.0 }
0x2537   : > { %v12371_v47 = vpop.eup %12370  ;;  %6765 = vadd.xlane.f32.xlu0 %v6764_v45 }
0x2538   : > { %v12373_v28 = vpop.eup %12372  ;;  %v6957_v49 = vsel %vm4244_vm1, %v12371_v47, 0.0 }
0x2539   : > { %v12375_v50 = vpop.eup %12374  ;;  %6958 = vadd.xlane.f32.xlu1 %v6957_v49  ;;  %v6397_v19 = vmul.f32 %v12373_v28, %v12363_v18 }
0x253a   : > { %v12377_v51 = vpop.eup %12376  ;;  %v6954_v52 = vsel %vm4244_vm1, %v12375_v50, 0.0 }
0x253b   : > { %6955 = vadd.xlane.f32.xlu0 %v6954_v52  ;;  %v6395_v53 = vmul.f32 %v12377_v51, %v12365_v21  ;;  %v1722_v52 = vld [vmem:[%s14444_s10 + $0x178] sm:$0xff] }
0x253d   : > { %11578 = vmatprep.mubr.msk.f32.mxu1 %vm4244_vm1, %v6395_v53  ;;  %v1718_v53 = vld [vmem:[%s14444_s10 + $0x158] sm:$0xff] }
0x253e   : > { %11579 = vmatmul.mubr.msk.f32.vlgmr.msra.gmra.mxu1 %vm4244_vm1, %v6397_v19  ;;  %v1721_v19 = vld [vmem:[%s14444_s10 + $0x170] sm:$0xff]  ;;  %11623 = vmatprep.subr.mxu0 %v1718_v53 }
0x253f   : > { %11587 = vmatpush3.msk.msra.mxu1 %vm4248_vm14, %v13800_v63 }
0x2540   : > { %11596 = vmatprep.subr.msk.mxu1 %vm4248_vm14, %v6964_v54 }
0x25be   : > { %v6769_v15 = vpop.xlane.xlu1 %6768 }
0x25bf   : > { %12378 = vrcp.f32 %v6769_v15  ;;  %v1720_v15 = vld [vmem:[%s14444_s10 + $0x168] sm:$0xff] }
0x25c0   : > { %v6766_v55 = vpop.xlane.xlu0 %6765 }
0x25c1   : > { %12380 = vrcp.f32 %v6766_v55  ;;  %v1716_v55 = vld [vmem:[%s14444_s10 + $0x148] sm:$0xff] }
0x25c2   : > { %v6959_v57 = vpop.xlane.xlu1 %6958 }
0x25c3   : > { %12382 = vrcp.f32 %v6959_v57  ;;  %v1719_v57 = vld [vmem:[%s14444_s10 + $0x160] sm:$0xff] }
0x25c4   : > { %v6956_v58 = vpop.xlane.xlu0 %6955 }
0x25c5   : > { %12384 = vrcp.f32 %v6956_v58  ;;  %v1715_v58 = vld [vmem:[%s14444_s10 + $0x140] sm:$0xff] }
0x25cc   : > { %v12379_v61 = vpop.eup %12378 }
0x25cd   : > { %v6773_v4 = vmul.f32 %v12379_v61, %v12367_v36 }
0x25ce   : > { %v12381_v56 = vpop.eup %12380 }
0x25cf   : > { %v6771_v62 = vmul.f32 %v12381_v56, %v12369_v44 }
0x25d0   : > { %v12383_v11 = vpop.eup %12382 }
0x25d1   : > { %11588 = vmatprep.mubr.msk.f32.mxu1 %vm4244_vm1, %v6771_v62  ;;  %v6963_v10 = vmul.f32 %v12383_v11, %v12371_v47 }
0x25d2   : > { %v12385_v63 = vpop.eup %12384  ;;  %11589 = vmatmul.mubr.msk.f32.vlgmr.msra.gmra.mxu1 %vm4244_vm1, %v6773_v4 }
0x25d3   : > { %11597 = vmatpush3.msk.msra.mxu1 %vm4248_vm14, %v6964_v54  ;;  %v6961_v9 = vmul.f32 %v12385_v63, %v12375_v50  ;;  %v1717_v54 = vld [vmem:[%s14444_s10 + $0x150] sm:$0xff] }
0x25d4   : > { %11612 = vmatprep.subr.mxu1 %v12735_v37 }
0x25d5   : > { %11598 = vmatprep.mubr.msk.f32.mxu1 %vm4244_vm1, %v6961_v9 }
0x25d6   : > { %11599 = vmatmul.mubr.msk.f32.vlgmr.msra.gmra.mxu1 %vm4244_vm1, %v6963_v10  ;;  %v10630_v10 = vld [vmem:[%s14451_s0 + $0x3] ss:$0 sm:$0xff] }
0x25d7   : > { %11613 = vmatpush3.msra.mxu1 %v1714_v48  ;;  %11620 = vmatprep.mubr.msk.f32.mxu1 %vm12739_vm13, %v12735_v37 }
0x25d8   : > { %11614 = vmatprep.subr.mxu1 %v12735_v37 }
0x25d9   : > { %11615 = vmatpush3.msra.mxu1 %v1713_v8 }
0x25da   : > { %11616 = vmatprep.subr.mxu1 %v12735_v37 }
0x25db   : > { %11617 = vmatpush3.msra.mxu1 %v1712_v29  ;;  %v10631_v29 = vld [vmem:[%s14452_s3 + $0x3] ss:$0 sm:$0xff] }
0x25dc   : > { %11618 = vmatprep.subr.mxu1 %v12735_v37 }
0x25dd   : > { %11619 = vmatpush3.msra.mxu1 %v1711_v12 }
0x25de   : > { %11621 = vmatmul.mubr.msk.f32.vlgmr.msra.gmra.mxu1 %vm2393_vm0, %v13765_v6  ;;  %11634 = vmatprep.subr.mxu1 %v1722_v52 }
0x25df   : > { %11635 = vmatpush3.msra.mxu1 %v1722_v52 }
0x25e0   : > { %11636 = vmatprep.subr.mxu1 %v1721_v19 }
0x25e1   : > { %11637 = vmatpush3.msra.mxu1 %v1721_v19 }
0x25e2   : > { %11638 = vmatprep.subr.mxu1 %v1720_v15 }
0x25e3   : > { %11639 = vmatpush3.msra.mxu1 %v1720_v15 }
0x25e4   : > { %11640 = vmatprep.subr.mxu1 %v1719_v57 }
0x25e5   : > { %11641 = vmatpush3.msra.mxu1 %v1719_v57 }
0x25e6   : > { %11652 = vmatprep.subr.mxu1 %v12735_v37 }
0x25fe   : > { %v11580_v18 = vpop.f32.mrf.mxu1 }
0x25ff   : > { %v6668_v6 = vadd.f32 %v11580_v18, %v13825_v0  ;;  %v12415_v18 = vld [vmem:[%s14449_s26] sm:$0xff] }
0x2600   : > { %v6662_v20 = vpop.f32.mrf.mxu1 }
0x2601   : > { %v6663_v46 = vadd.f32 %v6662_v20, %v13827_v1 }
0x2692   : > { %v11590_v21 = vpop.f32.mrf.mxu1 }
0x2693   : > { %v6860_v43 = vadd.f32 %v11590_v21, %v6668_v6  ;;  %v12416_v21 = vld [vmem:[%s14449_s26 + $0x8] sm:$0xff] }
0x2694   : > { %v6850_v2 = vpop.f32.mrf.mxu1 }
0x2695   : > { %v6859_v25 = vadd.f32 %v6850_v2, %v6663_v46  ;;  %v10634_v46 = vld [vmem:[%s14447_s11 + $0xa] ss:$0 sm:$0xff] }
0x2696   : > { %v11600_v24 = vpop.f32.mrf.mxu1 }
0x2697   : > { %v7050_v7 = vadd.f32 %v11600_v24, %v6860_v43 }
0x2698   : > { %v7040_v26 = vpop.f32.mrf.mxu1 }
0x2699   : > { %v7049_v27 = vadd.f32 %v7040_v26, %v6859_v25 }
0x269b   : > { %11609 = vmatprep.mubr.msk.f32.mxu0 %vm2393_vm0, %v7049_v27 }
0x269c   : > { %11610 = vmatmul.mubr.msk.f32.vlgmr.msra.gmra.mxu0 %vm2393_vm0, %v7050_v7  ;;  %v10637_v7 = vld [vmem:[%s14447_s11 + $0xb] ss:$0 sm:$0xff] }
0x269d   : > { %11624 = vmatpush3.msra.mxu0 %v1718_v53 }
0x269e   : > { %v13871_v60 = vpop.f32.mrf.mxu1  ;;  %11625 = vmatprep.subr.mxu0 %v1717_v54 }
0x269f   : > { %11626 = vmatpush3.msra.mxu0 %v1717_v54 }
0x26a0   : > { %v11622_v23 = vpop.f32.mrf.mxu1  ;;  %11627 = vmatprep.subr.mxu0 %v1716_v55 }
0x26a1   : > { %11628 = vmatpush3.msra.mxu0 %v1716_v55 }
0x26a2   : > { %11629 = vmatprep.subr.mxu0 %v1715_v58 }
0x26a3   : > { %11630 = vmatpush3.msra.mxu0 %v1715_v58 }
0x26a4   : > { %11645 = vmatprep.subr.mxu0 %v12735_v37 }
0x275c   : > { %v11611_v22 = vpop.f32.mrf.mxu0 }
0x275d   : > { %v7135_v31 = vadd.f32 %v11611_v22, %v10627_v59  ;;  %v10632_v22 = vld [vmem:[%s14447_s11 + $0x9] ss:$0 sm:$0xff] }
0x275e   : > { %v7129_v32 = vpop.f32.mrf.mxu0 }
0x275f   : > { %v7130_v1 = vadd.f32 %v10627_v59, %v7129_v32  ;;  %v7139_v0 = vadd.f32 %v7135_v31, %v13550_v42 }
0x2761   : > { %v7143_v33 = vsel %vm2393_vm0, %v7139_v0, 0.0  ;;  %v7138_v34 = vadd.f32 %v7130_v1, %v13530_v5 }
0x2762   : > { %7144 = vadd.xlane.f32.xlu1 %v7143_v33  ;;  %v13936_v33 = vadd.f32 %v10632_v22, %v13871_v60 }
0x2763   : > { %v7140_v36 = vsel %vm2393_vm0, %v7138_v34, 0.0 }
0x2764   : > { %7141 = vadd.xlane.f32.xlu0 %v7140_v36 }
0x27eb   : > { %v7145_v41 = vpop.xlane.xlu1 %7144 }
0x27ec   : > { %v7147_v44 = vmul.f32 0.03125, %v7145_v41 }
0x27ed   : > { %v7142_v45 = vpop.xlane.xlu0 %7141 }
0x27ee   : > { %v7149_v47 = vsub.f32 %v7139_v0, %v7147_v44  ;;  %v7146_v28 = vmul.f32 0.03125, %v7142_v45 }
0x27f0   : > { %v7148_v49 = vsub.f32 %v7138_v34, %v7146_v28  ;;  %v7151_v42 = vmul.f32 %v7149_v47, %v7149_v47 }
0x27f2   : > { %v7155_v50 = vsel %vm2393_vm0, %v7151_v42, 0.0  ;;  %v7150_v5 = vmul.f32 %v7148_v49, %v7148_v49 }
0x27f3   : > { %7156 = vadd.xlane.f32.xlu1 %v7155_v50 }
0x27f4   : > { %v7152_v51 = vsel %vm2393_vm0, %v7150_v5, 0.0 }
0x27f5   : > { %7153 = vadd.xlane.f32.xlu0 %v7152_v51 }
0x287c   : > { %v7157_v61 = vpop.xlane.xlu1 %7156 }
0x287d   : > { %v7159_v56 = vmul.f32 0.03125, %v7157_v61 }
0x287e   : > { %v7154_v62 = vpop.xlane.xlu0 %7153 }
0x287f   : > { %v7161_v4 = vadd.f32 1e-05, %v7159_v56  ;;  %v7158_v11 = vmul.f32 0.03125, %v7154_v62 }
0x2881   : > { %12386 = vrsqrt.f32 %v7161_v4  ;;  %v7160_v63 = vadd.f32 1e-05, %v7158_v11 }
0x2883   : > { %12388 = vrsqrt.f32 %v7160_v63 }
0x288e   : > { %v12387_v9 = vpop.eup %12386 }
0x288f   : > { %v7165_v48 = vmul.f32 %v12387_v9, %v7149_v47 }
0x2890   : > { %v12389_v8 = vpop.eup %12388 }
0x2891   : > { %v7164_v12 = vmul.f32 %v12389_v8, %v7148_v49  ;;  %v7173_v13 = vmul.f32 %v10630_v10, %v7165_v48 }
0x2893   : > { %v7172_v14 = vmul.f32 %v10630_v10, %v7164_v12  ;;  %v13892_v16 = vadd.f32 %v10631_v29, %v7173_v13 }
0x2895   : > { %v13894_v17 = vadd.f32 %v10631_v29, %v7172_v14  ;;  %v7183_v2 = vadd.f32 %v12416_v21, %v13892_v16 }
0x2897   : > { %11642 = vmatprep.mubr.msk.f32.mxu1 %vm2393_vm0, %v13894_v17  ;;  %v7182_v20 = vadd.f32 %v12415_v18, %v13894_v17 }
0x2898   : > { %11643 = vmatmul.mubr.msk.f32.vlgmr.msra.gmra.mxu1 %vm2393_vm0, %v13892_v16 }
0x2899   : > { %11631 = vmatprep.mubr.msk.f32.mxu0 %vm2393_vm0, %v7182_v20  ;;  %11656 = vmatprep.mubr.msk.f32.mxu1 %vm12739_vm13, %v12735_v37 }
0x289a   : > { %11632 = vmatmul.mubr.msk.f32.vlgmr.msra.gmra.mxu0 %vm2393_vm0, %v7183_v2 }
0x289b   : > { %11649 = vmatprep.mubr.msk.f32.mxu0 %vm12739_vm13, %v12735_v37 }
0x2958   : > { %v11644_v25 = vpop.f32.mrf.mxu1 }
0x2959   : > { %v13924_v31 = vadd.f32 %v11644_v25, %v10637_v7 }
0x295a   : > { %v11633_v6 = vpop.f32.mrf.mxu0  ;;  %v7425_v59 = vpop.f32.mrf.mxu1 }
0x295b   : > { %v13911_v24 = vadd.f32 %v11633_v6, %v10634_v46  ;;  %v13931_v0 = vadd.f32 %v10637_v7, %v7425_v59  ;;  %v7620_v34 = vmul.f32 %v13198_v39, %v13924_v31  ;;  %v7528_v36 = vmul.f32 %v13194_v38, %v13924_v31 }
0x295c   : > { %v7338_v43 = vpop.f32.mrf.mxu0  ;;  %v7858_v10 = vmul.f32 %v13205_v40, %v13924_v31  ;;  %v8024_v8 = vmul.f32 %v13266_v30, %v13924_v31 }
0x295d   : > { %v7435_v26 = vmul.f32 %v13194_v38, %v13911_v24  ;;  %v7530_v27 = vmul.f32 %v13198_v39, %v13911_v24  ;;  %v13918_v23 = vadd.f32 %v10634_v46, %v7338_v43  ;;  %v7619_v60 = vmul.f32 %v13198_v39, %v13931_v0 }
0x295e   : > { %v7527_v41 = vmul.f32 %v13194_v38, %v13931_v0  ;;  %v7768_v4 = vmul.f32 %v13205_v40, %v13911_v24  ;;  %v7857_v48 = vmul.f32 %v13205_v40, %v13931_v0  ;;  %v7934_v31 = vmul.f32 %v13266_v30, %v13911_v24 }
0x295f   : > { %11646 = vmatpush3.xpose.msk.msra.mxu0 %vm2393_vm0, %v7435_v26  ;;  %11653 = vmatpush3.xpose.msk.msra.mxu1 %vm2393_vm0, %v7530_v27  ;;  %v7434_v32 = vmul.f32 %v13194_v38, %v13918_v23  ;;  %v7529_v1 = vmul.f32 %v13198_v39, %v13918_v23  ;;  %v7767_v9 = vmul.f32 %v13205_v40, %v13918_v23 }
0x2960   : > { %11647 = vmatprep.subr.mxu0 %v12735_v37  ;;  %11654 = vmatprep.subr.mxu1 %v12735_v37  ;;  %v8023_v40 = vmul.f32 %v13266_v30, %v13931_v0 }
0x2963   : > { %11648 = vmatpush3.xpose.msk.msra.mxu0 %vm2393_vm0, %v7434_v32  ;;  %11655 = vmatpush3.xpose.msk.msra.mxu1 %vm2393_vm0, %v7529_v1  ;;  %v7933_v32 = vmul.f32 %v13266_v30, %v13918_v23 }
0x2964   : > { %11659 = vmatprep.subr.mxu0 %v12735_v37  ;;  %11666 = vmatprep.subr.mxu1 %v12735_v37 }
0x2966   : > { %11650 = vmatmul.mubr.msk.f32.vlgmr.msra.gmra.mxu0 %vm2393_vm0, %v13936_v33  ;;  %11657 = vmatmul.mubr.msk.f32.vlgmr.msra.gmra.mxu1 %vm2393_vm0, %v13936_v33 }
0x2967   : > { %11660 = vmatpush3.msra.mxu0 %v7620_v34  ;;  %11667 = vmatpush3.msra.mxu1 %v7528_v36 }
0x2968   : > { %11661 = vmatprep.subr.mxu0 %v12735_v37  ;;  %11668 = vmatprep.subr.mxu1 %v12735_v37 }
0x2969   : > { %11662 = vmatpush3.msra.mxu0 %v7619_v60  ;;  %11669 = vmatpush3.msra.mxu1 %v7527_v41 }
0x296a   : > { %11663 = vmatprep.mubr.msk.f32.mxu0 %vm12739_vm13, %v12735_v37  ;;  %11673 = vmatprep.subr.mxu0 %v12735_v37 }
0x296b   : > { %11670 = vmatprep.mubr.msk.f32.mxu1 %vm12739_vm13, %v12735_v37  ;;  %11680 = vmatprep.subr.mxu1 %v12735_v37 }
0x2a26   : > { %v7511_v39 = vpop.f32.mrf.mxu0  ;;  %v7603_v44 = vpop.f32.mrf.mxu1 }
0x2a27   : > { %v7607_v45 = vmul.f32 0.35355338, %v7603_v44  ;;  %v7515_v28 = vmul.f32 0.35355338, %v7511_v39 }
0x2a28   : > { %v11651_v38 = vpop.f32.mrf.mxu0  ;;  %v11658_v47 = vpop.f32.mrf.mxu1 }
0x2a29   : > { %v7608_v49 = vsel %vm5171_vm3, %v7607_v45, -inf  ;;  %v7516_v42 = vsel %vm5171_vm3, %v7515_v28, -inf }
0x2a2a   : > { %7609 = vmax.xlane.f32.xlu0 %v7608_v49  ;;  %v1749_v49 = vld [vmem:[%s14448_s2 + $0x70] sm:$0xff] }
0x2a2e   : > { %7517 = vmax.xlane.f32.xlu0 %v7516_v42  ;;  %v1748_v42 = vld [vmem:[%s14448_s2 + $0x68] sm:$0xff] }
0x2ab3   : > { %v7610_v50 = vpop.xlane.xlu0 %7609 }
0x2ab4   : > { %v7611_v5 = vsub.f32 %v7607_v45, %v7610_v50  ;;  %v1747_v50 = vld [vmem:[%s14448_s2 + $0x60] sm:$0xff] }
0x2ab6   : > { %v7612_v51 = vmul.f32 1.442695, %v7611_v5 }
0x2ab7   : > { %v7518_v52 = vpop.xlane.xlu0 %7517 }
0x2ab8   : > { %12390 = vpow2.f32 %v7612_v51  ;;  %v7519_v53 = vsub.f32 %v7515_v28, %v7518_v52  ;;  %v1750_v28 = vld [vmem:[%s14448_s2 + $0x78] sm:$0xff]  ;;  %s14456_s2 = sld [smem:[#allocation44_spill]] }
0x2aba   : > { %v7520_v19 = vmul.f32 1.442695, %v7519_v53  ;;  %v10656_v53 = vld [vmem:[%s14450_s16 + $0x3] ss:$0 sm:$0xff] }
0x2abc   : > { %12392 = vpow2.f32 %v7520_v19 }
0x2ac5   : > { %v12391_v54 = vpop.eup %12390 }
0x2ac6   : > { %v7614_v15 = vsel %vm5171_vm3, %v12391_v54, 0.0 }
0x2ac7   : > { %7615 = vadd.xlane.f32.xlu1 %v7614_v15 }
0x2ac9   : > { %v12393_v55 = vpop.eup %12392 }
0x2aca   : > { %v7522_v57 = vsel %vm5171_vm3, %v12393_v55, 0.0 }
0x2acb   : > { %7523 = vadd.xlane.f32.xlu0 %v7522_v57 }
0x2b50   : > { %v7616_v58 = vpop.xlane.xlu1 %7615 }
0x2b51   : > { %12394 = vrcp.f32 %v7616_v58 }
0x2b54   : > { %v7524_v61 = vpop.xlane.xlu0 %7523 }
0x2b55   : > { %12396 = vrcp.f32 %v7524_v61 }
0x2b5e   : > { %v12395_v56 = vpop.eup %12394 }
0x2b5f   : > { %v7618_v62 = vmul.f32 %v12395_v56, %v12391_v54 }
0x2b61   : > { %11664 = vmatmul.mubr.msk.f32.vlgmr.msra.gmra.mxu0 %vm2623_vm8, %v7618_v62 }
0x2b62   : > { %v12397_v11 = vpop.eup %12396  ;;  %11674 = vmatpush3.xpose.msk.msra.mxu0 %vm2393_vm0, %v7768_v4  ;;  %11677 = vmatprep.mubr.msk.f32.mxu0 %vm12739_vm13, %v12735_v37 }
0x2b63   : > { %11675 = vmatprep.subr.mxu0 %v12735_v37  ;;  %v7526_v63 = vmul.f32 %v12397_v11, %v12393_v55  ;;  %v1782_v11 = vld [vmem:[%s14455_s1 + $0x18] sm:$0xff] }
0x2b65   : > { %11671 = vmatmul.mubr.msk.f32.vlgmr.msra.gmra.mxu1 %vm2623_vm8, %v7526_v63  ;;  %v1781_v63 = vld [vmem:[%s14455_s1 + $0x10] sm:$0xff] }
0x2b66   : > { %11676 = vmatpush3.xpose.msk.msra.mxu0 %vm2393_vm0, %v7767_v9  ;;  %11681 = vmatpush3.msra.mxu1 %v7858_v10  ;;  %v1780_v9 = vld [vmem:[%s14455_s1 + $0x8] sm:$0xff]  ;;  %v1787_v10 = vld [vmem:[%s14456_s2 + $0x18] sm:$0xff] }
0x2b67   : > { %11682 = vmatprep.subr.mxu1 %v12735_v37  ;;  %11694 = vmatprep.subr.mxu0 %v12735_v37 }
0x2b68   : > { %11683 = vmatpush3.msra.mxu1 %v7857_v48  ;;  %11684 = vmatprep.mubr.msk.f32.mxu1 %vm12739_vm13, %v12735_v37  ;;  %v1786_v48 = vld [vmem:[%s14456_s2 + $0x10] sm:$0xff] }
0x2b69   : > { %11678 = vmatmul.mubr.msk.f32.vlgmr.msra.gmra.mxu0 %vm2393_vm0, %v13936_v33  ;;  %11687 = vmatprep.subr.mxu1 %v12735_v37 }
0x2b6a   : > { %11695 = vmatpush3.msra.mxu0 %v8024_v8  ;;  %11698 = vmatprep.mubr.msk.f32.mxu0 %vm12739_vm13, %v12735_v37 }
0x2b6b   : > { %11696 = vmatprep.subr.mxu0 %v12735_v37 }
0x2b6c   : > { %11697 = vmatpush3.msra.mxu0 %v8023_v40 }
0x2b6d   : > { %11701 = vmatprep.subr.mxu0 %v12735_v37 }
0x2c21   : > { %v7690_v29 = vpop.f32.mrf.mxu0 }
0x2c23   : > { %v11665_v12 = vpop.f32.mrf.mxu0 }
0x2c25   : > { %v7763_v13 = vpop.f32.mrf.mxu1 }
0x2c26   : > { %v7764_v14 = vadd.f32 %v7763_v13, %v7690_v29  ;;  %v10658_v13 = vld [vmem:[%s14451_s0 + $0x4] ss:$0 sm:$0xff]  ;;  %s14459_s0 = sld [smem:[#allocation48_spill]] }
0x2c27   : > { %v11672_v18 = vpop.f32.mrf.mxu1 }
0x2c28   : > { %v10659_v18 = vld [vmem:[%s14452_s3 + $0x4] ss:$0 sm:$0xff] }
0x2c29   : > { %v7841_v20 = vpop.f32.mrf.mxu0 }
0x2c2a   : > { %v7845_v21 = vmul.f32 0.35355338, %v7841_v20 }
0x2c2b   : > { %v11679_v2 = vpop.f32.mrf.mxu0 }
0x2c2c   : > { %v7846_v46 = vsel %vm5171_vm3, %v7845_v21, -inf }
0x2c2d   : > { %7847 = vmax.xlane.f32.xlu1 %v7846_v46  ;;  %v1785_v46 = vld [vmem:[%s14456_s2 + $0x8] sm:$0xff] }
0x2cb6   : > { %v7848_v6 = vpop.xlane.xlu1 %7847 }
0x2cb7   : > { %v7849_v25 = vsub.f32 %v7845_v21, %v7848_v6  ;;  %v1784_v6 = vld [vmem:[%s14456_s2] sm:$0xff] }
0x2cb9   : > { %v7850_v43 = vmul.f32 1.442695, %v7849_v25 }
0x2cbb   : > { %12398 = vpow2.f32 %v7850_v43  ;;  %v1792_v43 = vld [vmem:[%s14458_s4 + $0x18] sm:$0xff] }
0x2cc8   : > { %v12399_v26 = vpop.eup %12398 }
0x2cc9   : > { %v7852_v27 = vsel %vm5171_vm3, %v12399_v26, 0.0 }
0x2cca   : > { %7853 = vadd.xlane.f32.xlu1 %v7852_v27 }
0x2d53   : > { %v7854_v7 = vpop.xlane.xlu1 %7853 }
0x2d54   : > { %12400 = vrcp.f32 %v7854_v7 }
0x2d61   : > { %v12401_v59 = vpop.eup %12400 }
0x2d62   : > { %v7856_v22 = vmul.f32 %v12401_v59, %v12399_v26  ;;  %v1783_v26 = vld [vmem:[#allocation9] sm:$0x1] }
0x2d64   : > { %11685 = vmatmul.mubr.msk.f32.vlgmr.msra.gmra.mxu1 %vm2623_vm8, %v7856_v22 }
0x2d65   : > { %11688 = vmatpush3.xpose.msk.msra.mxu1 %vm2393_vm0, %v7934_v31  ;;  %11691 = vmatprep.mubr.msk.f32.mxu1 %vm12739_vm13, %v12735_v37 }
0x2d66   : > { %11689 = vmatprep.subr.mxu1 %v12735_v37 }
0x2d69   : > { %11690 = vmatpush3.xpose.msk.msra.mxu1 %vm2393_vm0, %v7933_v32 }
0x2d6a   : > { %11712 = vmatprep.subr.mxu1 %v12735_v37 }
0x2d6c   : > { %11692 = vmatmul.mubr.msk.f32.vlgmr.msra.gmra.mxu1 %vm2393_vm0, %v13936_v33 }
0x2d6d   : > { %11720 = vmatprep.mubr.msk.f32.mxu1 %vm12739_vm13, %v12735_v37  ;;  %11713 = vmatpush3.msra.mxu1 %v1782_v11 }
0x2d6e   : > { %11714 = vmatprep.subr.mxu1 %v12735_v37 }
0x2d6f   : > { %11715 = vmatpush3.msra.mxu1 %v1781_v63 }
0x2d70   : > { %11716 = vmatprep.subr.mxu1 %v12735_v37 }
0x2d71   : > { %11717 = vmatpush3.msra.mxu1 %v1780_v9 }
0x2d72   : > { %11718 = vmatprep.subr.mxu1 %v12735_v37 }
0x2e24   : > { %v7928_v24 = vpop.f32.mrf.mxu1 }
0x2e25   : > { %v7932_v1 = vadd.f32 %v7928_v24, %v7764_v14 }
0x2e26   : > { %v11686_v0 = vpop.f32.mrf.mxu1 }
0x2e27   : > { %v1789_v0 = vld [vmem:[%s14458_s4] sm:$0xff] }
0x2e2c   : > { %v8007_v34 = vpop.f32.mrf.mxu1 }
0x2e2d   : > { %v8011_v36 = vmul.f32 0.35355338, %v8007_v34  ;;  %v1788_v34 = vld [vmem:[#allocation10] sm:$0x1] }
0x2e2e   : > { %v11693_v60 = vpop.f32.mrf.mxu1 }
0x2e2f   : > { %v8012_v30 = vsel %vm5171_vm3, %v8011_v36, -inf }
0x2e30   : > { %8013 = vmax.xlane.f32.xlu0 %v8012_v30 }
0x2eb9   : > { %v8014_v23 = vpop.xlane.xlu0 %8013 }
0x2eba   : > { %v8015_v41 = vsub.f32 %v8011_v36, %v8014_v23  ;;  %v10663_v23 = vld [vmem:[#allocation13] ss:$0 sm:$0xff] }
0x2ebc   : > { %v8016_v39 = vmul.f32 1.442695, %v8015_v41 }
0x2ebe   : > { %12402 = vpow2.f32 %v8016_v39 }
0x2ecb   : > { %v12403_v33 = vpop.eup %12402 }
0x2ecc   : > { %v8018_v44 = vsel %vm5171_vm3, %v12403_v33, 0.0 }
0x2ecd   : > { %8019 = vadd.xlane.f32.xlu1 %v8018_v44 }
0x2f56   : > { %v8020_v45 = vpop.xlane.xlu1 %8019 }
0x2f57   : > { %12404 = vrcp.f32 %v8020_v45 }
0x2f64   : > { %v12405_v38 = vpop.eup %12404 }
0x2f65   : > { %v8022_v47 = vmul.f32 %v12405_v38, %v12403_v33 }
0x2f67   : > { %11699 = vmatmul.mubr.msk.f32.vlgmr.msra.gmra.mxu0 %vm2623_vm8, %v8022_v47 }
0x2f68   : > { %11702 = vmatpush3.msra.mxu0 %v1750_v28  ;;  %11709 = vmatprep.mubr.msk.f32.mxu0 %vm12739_vm13, %v12735_v37 }
0x2f69   : > { %11703 = vmatprep.subr.mxu0 %v12735_v37 }
0x2f6a   : > { %11704 = vmatpush3.msra.mxu0 %v1749_v49 }
0x2f6b   : > { %11705 = vmatprep.subr.mxu0 %v12735_v37 }
0x2f6c   : > { %11706 = vmatpush3.msra.mxu0 %v1748_v42 }
0x2f6d   : > { %11707 = vmatprep.subr.mxu0 %v12735_v37 }
0x2f6e   : > { %11708 = vmatpush3.msra.mxu0 %v1747_v50 }
0x2f6f   : > { %11723 = vmatprep.subr.mxu0 %v12735_v37 }
0x3027   : > { %v8094_v5 = vpop.f32.mrf.mxu0 }
0x3028   : > { %v8098_v51 = vadd.f32 %v8094_v5, %v7932_v1  ;;  %v1791_v1 = vld [vmem:[%s14458_s4 + $0x10] sm:$0xff] }
0x3029   : > { %v11700_v52 = vpop.f32.mrf.mxu0 }
0x302a   : > { %11710 = vmatmul.mubr.msk.f32.vlgmr.msra.gmra.mxu0 %vm2393_vm0, %v8098_v51 }
0x302b   : > { %11731 = vmatprep.mubr.msk.f32.mxu0 %vm12739_vm13, %v12735_v37  ;;  %11724 = vmatpush3.msra.mxu0 %v1787_v10 }
0x302c   : > { %11725 = vmatprep.subr.mxu0 %v12735_v37 }
0x302d   : > { %11726 = vmatpush3.msra.mxu0 %v1786_v48 }
0x302e   : > { %11727 = vmatprep.subr.mxu0 %v12735_v37 }
0x302f   : > { %11728 = vmatpush3.msra.mxu0 %v1785_v46 }
0x3030   : > { %11729 = vmatprep.subr.mxu0 %v12735_v37 }
0x3031   : > { %11730 = vmatpush3.msra.mxu0 %v1784_v6 }
0x30ea   : > { %v8174_v19 = vpop.f32.mrf.mxu0 }
0x30eb   : > { %v8175_v54 = vadd.f32 %v10656_v53, %v8174_v19 }
0x30ec   : > { %v11711_v15 = vpop.f32.mrf.mxu0 }
0x30ed   : > { %v8178_v55 = vadd.f32 %v8175_v54, %v13759_v3  ;;  %v1779_v3 = vld [vmem:[%s14455_s1] sm:$0xff]  ;;  %s14457_s1 = sld [smem:[#allocation46_spill]] }
0x30ee   : > { %11719 = vmatpush3.msra.mxu1 %v1779_v3 }
0x30ef   : > { %v8179_v57 = vsel %vm4805_vm2, %v8178_v55, 0.0  ;;  %11734 = vmatprep.subr.mxu1 %v12735_v37 }
0x30f0   : > { %8180 = vadd.xlane.f32.xlu0 %v8179_v57 }
0x30f3   : > { %v1797_v25 = vld [vmem:[%s14457_s1 + $0x18] sm:$0xff]  ;;  %v1796_v31 = vld [vmem:[%s14457_s1 + $0x10] sm:$0xff]  ;;  %v1795_v32 = vld [vmem:[%s14457_s1 + $0x8] sm:$0xff] }
0x30f4   : > { %11745 = vmatprep.subr.mxu0 %v1797_v25  ;;  %v1794_v24 = vld [vmem:[%s14457_s1] sm:$0xff]  ;;  %s14460_s1 = sld [smem:[#allocation49_spill]] }
0x30fa   : > { %v1805_v11 = vld [vmem:[%s14460_s1 + $0x10] sm:$0xff]  ;;  %v1810_v63 = vld [vmem:[%s14460_s1 + $0x38] sm:$0xff]  ;;  %v1804_v3 = vld [vmem:[%s14460_s1 + $0x8] sm:$0xff] }
0x30fb   : > { %v1809_v9 = vld [vmem:[%s14460_s1 + $0x30] sm:$0xff]  ;;  %v1803_v10 = vld [vmem:[%s14460_s1] sm:$0xff]  ;;  %v1808_v48 = vld [vmem:[%s14460_s1 + $0x28] sm:$0xff] }
0x30fc   : > { %v1813_v46 = vld [vmem:[%s14460_s1 + $0x50] sm:$0xff]  ;;  %v1812_v6 = vld [vmem:[%s14460_s1 + $0x48] sm:$0xff] }
0x3179   : > { %v8181_v58 = vpop.xlane.xlu0 %8180 }
0x317a   : > { %v8182_v61 = vmul.f32 0.03125, %v8181_v58 }
0x317c   : > { %v8183_v56 = vsub.f32 %v8178_v55, %v8182_v61 }
0x317e   : > { %v8184_v62 = vmul.f32 %v8183_v56, %v8183_v56 }
0x3180   : > { %v8185_v4 = vsel %vm4805_vm2, %v8184_v62, 0.0  ;;  %v1800_v62 = vld [vmem:[%s14459_s0 + $0x4] sm:$0xf] }
0x3181   : > { %8186 = vadd.xlane.f32.xlu1 %v8185_v4  ;;  %v1806_v4 = vld [vmem:[%s14460_s1 + $0x18] sm:$0xff] }
0x320a   : > { %v8187_v8 = vpop.xlane.xlu1 %8186 }
0x320b   : > { %v8188_v40 = vmul.f32 0.03125, %v8187_v8  ;;  %v1807_v8 = vld [vmem:[%s14460_s1 + $0x20] sm:$0xff] }
0x320d   : > { %v8189_v29 = vadd.f32 1e-05, %v8188_v40 }
0x320f   : > { %12406 = vrsqrt.f32 %v8189_v29 }
0x321c   : > { %v12407_v12 = vpop.eup %12406 }
0x321d   : > { %v8191_v14 = vmul.f32 %v12407_v12, %v8183_v56  ;;  %v1799_v56 = vld [vmem:[%s14459_s0] sm:$0xf] }
0x321f   : > { %v8198_v20 = vmul.f32 %v10658_v13, %v8191_v14 }
0x3221   : > { %v8205_v21 = vadd.f32 %v10659_v18, %v8198_v20  ;;  %v1801_v20 = vld [vmem:[%s14459_s0 + $0x8] sm:$0xf] }
0x3223   : > { %v8207_v2 = vrot.slane %v8205_v21, 1  ;;  %v1802_v21 = vld [vmem:[%s14459_s0 + $0xc] sm:$0xf]  ;;  %s14461_s0 = sld [smem:[#allocation50_spill]] }
0x3225   : > { %11721 = vmatmul.mubr.msk.f32.vlgmr.msra.gmra.mxu1 %vm2393_vm0, %v8207_v2  ;;  %v1814_v2 = vld [vmem:[%s14460_s1 + $0x58] sm:$0xff] }
0x3226   : > { %11742 = vmatprep.mubr.msk.f32.mxu1 %vm12739_vm13, %v12735_v37  ;;  %11735 = vmatpush3.msra.mxu1 %v1792_v43  ;;  %v1811_v43 = vld [vmem:[%s14460_s1 + $0x40] sm:$0xff] }
0x3227   : > { %11736 = vmatprep.subr.mxu1 %v12735_v37 }
0x3228   : > { %11737 = vmatpush3.msra.mxu1 %v1791_v1 }
0x3229   : > { %11738 = vmatprep.subr.mxu1 %v12735_v37  ;;  %v1834_v1 = vld [vmem:[%s14461_s0 + $0x78] sm:$0xff] }
0x32e5   : > { %v8276_v27 = vpop.f32.mrf.mxu1 }
0x32e6   : > { %v8277_v7 = vadd.f32 %v8276_v27, %v1783_v26  ;;  %v1817_v26 = vld [vmem:[%s14460_s1 + $0x70] sm:$0xff]  ;;  %v1816_v27 = vld [vmem:[%s14460_s1 + $0x68] sm:$0xff] }
0x32e7   : > { %v11722_v59 = vpop.f32.mrf.mxu1 }
0x32e8   : > { %v8280_v22 = vmax.f32 %v8277_v7, 0.0  ;;  %v1815_v7 = vld [vmem:[%s14460_s1 + $0x60] sm:$0xff] }
0x32ea   : > { %11732 = vmatmul.mubr.msk.f32.vlgmr.msra.gmra.mxu0 %vm2393_vm0, %v8280_v22 }
0x32eb   : > { %11746 = vmatpush3.msra.mxu0 %v1797_v25  ;;  %11753 = vmatprep.mubr.msk.f32.mxu0 %vm2393_vm0, %v13894_v17  ;;  %v1790_v17 = vld [vmem:[%s14458_s4 + $0x8] sm:$0xff]  ;;  %v1818_v25 = vld [vmem:[%s14460_s1 + $0x78] sm:$0xff]  ;;  %s14462_s1 = sld [smem:[#allocation51_spill]] }
0x32ec   : > { %11747 = vmatprep.subr.mxu0 %v1796_v31  ;;  %11739 = vmatpush3.msra.mxu1 %v1790_v17 }
0x32ed   : > { %11748 = vmatpush3.msra.mxu0 %v1796_v31  ;;  %11740 = vmatprep.subr.mxu1 %v12735_v37 }
0x32ee   : > { %11749 = vmatprep.subr.mxu0 %v1795_v32  ;;  %11741 = vmatpush3.msra.mxu1 %v1789_v0  ;;  %v1833_v0 = vld [vmem:[%s14461_s0 + $0x70] sm:$0xff] }
0x32ef   : > { %11750 = vmatpush3.msra.mxu0 %v1795_v32  ;;  %11756 = vmatprep.subr.mxu1 %v12735_v37 }
0x32f0   : > { %11751 = vmatprep.subr.mxu0 %v1794_v24 }
0x32f1   : > { %11752 = vmatpush3.msra.mxu0 %v1794_v24 }
0x32f2   : > { %11754 = vmatmul.mubr.msk.f32.vlgmr.msra.gmra.mxu0 %vm2393_vm0, %v13892_v16  ;;  %11770 = vmatprep.subr.mxu0 %v12735_v37 }
0x32f3   : > { %11778 = vmatprep.mubr.msk.f32.mxu0 %vm12739_vm13, %v12735_v37  ;;  %11771 = vmatpush3.msra.mxu0 %v1810_v63  ;;  %v1835_v63 = vld [vmem:[%s14461_s0 + $0x80] sm:$0xff] }
0x32f4   : > { %11772 = vmatprep.subr.mxu0 %v12735_v37 }
0x32f5   : > { %11773 = vmatpush3.msra.mxu0 %v1809_v9 }
0x32f6   : > { %11774 = vmatprep.subr.mxu0 %v12735_v37 }
0x32f7   : > { %11775 = vmatpush3.msra.mxu0 %v1808_v48 }
0x32f8   : > { %11776 = vmatprep.subr.mxu0 %v12735_v37 }
0x32f9   : > { %11777 = vmatpush3.msra.mxu0 %v1807_v8 }
0x32fa   : > { %11792 = vmatprep.subr.mxu0 %v12735_v37 }
0x33aa   : > { %v8350_v36 = vpop.f32.mrf.mxu0 }
0x33ab   : > { %v8351_v16 = vadd.f32 %v8350_v36, %v1788_v34  ;;  %v1850_v36 = vld [vmem:[%s14461_s0 + $0xf8] sm:$0xff] }
0x33ac   : > { %v11733_v60 = vpop.f32.mrf.mxu0 }
0x33ad   : > { %v8354_v30 = vmax.f32 %v8351_v16, 0.0  ;;  %v1832_v16 = vld [vmem:[%s14461_s0 + $0x68] sm:$0xff] }
0x33af   : > { %11743 = vmatmul.mubr.msk.f32.vlgmr.msra.gmra.mxu1 %vm2393_vm0, %v8354_v30  ;;  %v1849_v30 = vld [vmem:[%s14461_s0 + $0xf0] sm:$0xff] }
0x33b0   : > { %11760 = vmatprep.mubr.msk.f32.mxu1 %vm12739_vm13, %v12735_v37 }
0x33b2   : > { %v11755_v41 = vpop.f32.mrf.mxu0 }
0x33b3   : > { %v8506_v39 = vadd.f32 %v11755_v41, %v10663_v23 }
0x33b4   : > { %v8500_v33 = vpop.f32.mrf.mxu0 }
0x33b5   : > { %v8510_v44 = vmul.f32 %v8506_v39, %v8506_v39  ;;  %v8501_v45 = vadd.f32 %v10663_v23, %v8500_v33  ;;  %v1831_v23 = vld [vmem:[%s14461_s0 + $0x60] sm:$0xff]  ;;  %v1830_v33 = vld [vmem:[%s14461_s0 + $0x58] sm:$0xff] }
0x33b7   : > { %v8512_v38 = vmul.f32 %v8510_v44, %v8506_v39  ;;  %v8509_v47 = vmul.f32 %v8501_v45, %v8501_v45  ;;  %v1847_v44 = vld [vmem:[%s14461_s0 + $0xe0] sm:$0xff] }
0x33b9   : > { %v8514_v28 = vmul.f32 0.044715, %v8512_v38  ;;  %v8511_v49 = vmul.f32 %v8509_v47, %v8501_v45  ;;  %v1846_v38 = vld [vmem:[%s14461_s0 + $0xd8] sm:$0xff]  ;;  %v1828_v47 = vld [vmem:[%s14461_s0 + $0x48] sm:$0xff] }
0x33bb   : > { %v8516_v42 = vadd.f32 %v8514_v28, %v8506_v39  ;;  %v8513_v50 = vmul.f32 0.044715, %v8511_v49  ;;  %v1845_v28 = vld [vmem:[%s14461_s0 + $0xd0] sm:$0xff]  ;;  %v1827_v49 = vld [vmem:[%s14461_s0 + $0x40] sm:$0xff] }
0x33bd   : > { %v8518_v5 = vmul.f32 0.7978846, %v8516_v42  ;;  %v8515_v51 = vadd.f32 %v8513_v50, %v8501_v45  ;;  %v1844_v42 = vld [vmem:[%s14461_s0 + $0xc8] sm:$0xff]  ;;  %v1826_v50 = vld [vmem:[%s14461_s0 + $0x38] sm:$0xff] }
0x33bf   : > { %12408 = vtanh.f32 %v8518_v5  ;;  %v8517_v52 = vmul.f32 0.7978846, %v8515_v51  ;;  %v1843_v5 = vld [vmem:[%s14461_s0 + $0xc0] sm:$0xff]  ;;  %v1825_v51 = vld [vmem:[%s14461_s0 + $0x30] sm:$0xff] }
0x33c1   : > { %12410 = vtanh.f32 %v8517_v52  ;;  %v1842_v52 = vld [vmem:[%s14461_s0 + $0xb8] sm:$0xff] }
0x33cc   : > { %v12409_v53 = vpop.eup %12408 }
0x33cd   : > { %v8522_v19 = vadd.f32 1.0, %v12409_v53  ;;  %v1824_v53 = vld [vmem:[%s14461_s0 + $0x28] sm:$0xff] }
0x33ce   : > { %v12411_v54 = vpop.eup %12410 }
0x33cf   : > { %v8524_v15 = vmul.f32 0.5, %v8522_v19  ;;  %v8521_v55 = vadd.f32 1.0, %v12411_v54  ;;  %v1841_v19 = vld [vmem:[%s14461_s0 + $0xb0] sm:$0xff]  ;;  %v1823_v54 = vld [vmem:[%s14461_s0 + $0x20] sm:$0xff] }
0x33d1   : > { %v8526_v57 = vmul.f32 %v8524_v15, %v8506_v39  ;;  %v8523_v58 = vmul.f32 0.5, %v8521_v55  ;;  %v1848_v39 = vld [vmem:[%s14461_s0 + $0xe8] sm:$0xff]  ;;  %v1839_v55 = vld [vmem:[%s14461_s0 + $0xa0] sm:$0xff] }
0x33d2   : > { %v1840_v15 = vld [vmem:[%s14461_s0 + $0xa8] sm:$0xff] }
0x33d3   : > { %11757 = vmatpush3.msra.mxu1 %v8526_v57  ;;  %v8525_v61 = vmul.f32 %v8523_v58, %v8501_v45  ;;  %v1829_v45 = vld [vmem:[%s14461_s0 + $0x50] sm:$0xff]  ;;  %v1838_v58 = vld [vmem:[%s14461_s0 + $0x98] sm:$0xff] }
0x33d4   : > { %11758 = vmatprep.subr.mxu1 %v12735_v37 }
0x33d5   : > { %11759 = vmatpush3.msra.mxu1 %v8525_v61 }
0x33d6   : > { %11761 = vmatmul.mubr.msk.f32.vlgmr.msra.gmra.mxu1 %vm2623_vm8, %v1799_v56  ;;  %11763 = vmatprep.subr.mxu1 %v12735_v37  ;;  %v1837_v56 = vld [vmem:[%s14461_s0 + $0x90] sm:$0xff] }
0x33d7   : > { %11764 = vmatpush3.msra.mxu1 %v8526_v57  ;;  %11767 = vmatprep.mubr.msk.f32.mxu1 %vm12739_vm13, %v12735_v37 }
0x33d8   : > { %11765 = vmatprep.subr.mxu1 %v12735_v37 }
0x33d9   : > { %11766 = vmatpush3.msra.mxu1 %v8525_v61 }
0x33da   : > { %11768 = vmatmul.mubr.msk.f32.vlgmr.msra.gmra.mxu1 %vm2623_vm8, %v1800_v62  ;;  %11781 = vmatprep.subr.mxu1 %v12735_v37  ;;  %v1820_v62 = vld [vmem:[%s14461_s0 + $0x8] sm:$0xff] }
0x33db   : > { %11789 = vmatprep.mubr.msk.f32.mxu1 %vm12739_vm13, %v12735_v37  ;;  %11782 = vmatpush3.msra.mxu1 %v1806_v4  ;;  %v1836_v4 = vld [vmem:[%s14461_s0 + $0x88] sm:$0xff] }
0x33dc   : > { %11783 = vmatprep.subr.mxu1 %v12735_v37 }
0x33dd   : > { %11784 = vmatpush3.msra.mxu1 %v1805_v11  ;;  %v1819_v11 = vld [vmem:[%s14461_s0] sm:$0xff] }
0x33de   : > { %11785 = vmatprep.subr.mxu1 %v12735_v37 }
0x33df   : > { %11786 = vmatpush3.msra.mxu1 %v1804_v3 }
0x33e0   : > { %11787 = vmatprep.subr.mxu1 %v12735_v37 }
0x33e1   : > { %11788 = vmatpush3.msra.mxu1 %v1803_v10 }
0x33e2   : > { %11799 = vmatprep.subr.mxu1 %v12735_v37 }
0x346f   : > { %v14102_v40 = vpop.f32.mrf.mxu1 }
0x3471   : > { %v11744_v29 = vpop.f32.mrf.mxu1 }
0x3496   : > { %v8596_v12 = vpop.f32.mrf.mxu1 }
0x3497   : > { %11790 = vmatmul.mubr.msk.f32.vlgmr.msra.gmra.mxu1 %vm2393_vm0, %v8596_v12  ;;  %v1852_v12 = vld [vmem:[%s14462_s1 + $0x8] sm:$0xff] }
0x3498   : > { %v11762_v13 = vpop.f32.mrf.mxu1  ;;  %11807 = vmatprep.mubr.msk.f32.mxu1 %vm12739_vm13, %v12735_v37  ;;  %11800 = vmatpush3.msra.mxu1 %v1814_v2 }
0x3499   : > { %11801 = vmatprep.subr.mxu1 %v12735_v37 }
0x349a   : > { %v8669_v14 = vpop.f32.mrf.mxu1  ;;  %11802 = vmatpush3.msra.mxu1 %v1813_v46 }
0x349b   : > { %11779 = vmatmul.mubr.msk.f32.vlgmr.msra.gmra.mxu0 %vm2393_vm0, %v8669_v14  ;;  %11803 = vmatprep.subr.mxu1 %v12735_v37 }
0x349c   : > { %11793 = vmatpush3.msra.mxu0 %v8526_v57  ;;  %v11769_v18 = vpop.f32.mrf.mxu1  ;;  %11796 = vmatprep.mubr.msk.f32.mxu0 %vm12739_vm13, %v12735_v37 }
0x349d   : > { %11794 = vmatprep.subr.mxu0 %v12735_v37  ;;  %11804 = vmatpush3.msra.mxu1 %v1812_v6 }
0x349e   : > { %11795 = vmatpush3.msra.mxu0 %v8525_v61  ;;  %11805 = vmatprep.subr.mxu1 %v12735_v37 }
0x349f   : > { %11810 = vmatprep.subr.mxu0 %v12735_v37  ;;  %11797 = vmatmul.mubr.msk.f32.vlgmr.msra.gmra.mxu0 %vm2623_vm8, %v1801_v20 }
0x34a0   : > { %11811 = vmatpush3.msra.mxu0 %v8526_v57  ;;  %11814 = vmatprep.mubr.msk.f32.mxu0 %vm12739_vm13, %v12735_v37  ;;  %v1822_v57 = vld [vmem:[%s14461_s0 + $0x18] sm:$0xff] }
0x34a1   : > { %11812 = vmatprep.subr.mxu0 %v12735_v37  ;;  %11806 = vmatpush3.msra.mxu1 %v1811_v43 }
0x34a2   : > { %11813 = vmatpush3.msra.mxu0 %v8525_v61  ;;  %11828 = vmatprep.subr.mxu1 %v12735_v37  ;;  %v1821_v61 = vld [vmem:[%s14461_s0 + $0x10] sm:$0xff]  ;;  %s14463_s0 = sld [smem:[#allocation52_spill]] }
0x34a3   : > { %11815 = vmatmul.mubr.msk.f32.vlgmr.msra.gmra.mxu0 %vm2623_vm8, %v1802_v21  ;;  %11817 = vmatprep.subr.mxu0 %v12735_v37  ;;  %v1851_v21 = vld [vmem:[%s14462_s1] sm:$0xff]  ;;  %s14464_s1 = sld [smem:[#allocation53_spill]] }
0x34a4   : > { %11825 = vmatprep.mubr.msk.f32.mxu0 %vm12739_vm13, %v12735_v37  ;;  %11818 = vmatpush3.msra.mxu0 %v1818_v25 }
0x34a5   : > { %11819 = vmatprep.subr.mxu0 %v12735_v37 }
0x34a6   : > { %11820 = vmatpush3.msra.mxu0 %v1817_v26 }
0x34a7   : > { %11821 = vmatprep.subr.mxu0 %v12735_v37 }
0x34a8   : > { %11822 = vmatpush3.msra.mxu0 %v1816_v27  ;;  %v1869_v2 = vld [vmem:[%s14463_s0 + $0x78] sm:$0xff]  ;;  %v1868_v6 = vld [vmem:[%s14463_s0 + $0x70] sm:$0xff]  ;;  %v1867_v43 = vld [vmem:[%s14463_s0 + $0x68] sm:$0xff] }
0x34a9   : > { %11823 = vmatprep.subr.mxu0 %v12735_v37  ;;  %v1885_v46 = vld [vmem:[%s14463_s0 + $0xf8] sm:$0xff]  ;;  %v1884_v25 = vld [vmem:[%s14463_s0 + $0xf0] sm:$0xff]  ;;  %v1883_v26 = vld [vmem:[%s14463_s0 + $0xe8] sm:$0xff] }
0x34aa   : > { %11824 = vmatpush3.msra.mxu0 %v1815_v7  ;;  %v1866_v27 = vld [vmem:[%s14463_s0 + $0x60] sm:$0xff] }
0x34ab   : > { %11863 = vmatprep.subr.mxu0 %v12735_v37  ;;  %v1882_v7 = vld [vmem:[%s14463_s0 + $0xe0] sm:$0xff] }
0x3557   : > { %v8815_v59 = vpop.f32.mrf.mxu1 }
0x3559   : > { %v11791_v22 = vpop.f32.mrf.mxu1 }
0x355a   : > { %v1881_v22 = vld [vmem:[%s14463_s0 + $0xd8] sm:$0xff] }
0x355b   : > { %v8742_v31 = vpop.f32.mrf.mxu0 }
0x355c   : > { %v14138_v32 = vadd.f32 %v8815_v59, %v8742_v31  ;;  %v1865_v59 = vld [vmem:[%s14463_s0 + $0x58] sm:$0xff]  ;;  %v1864_v31 = vld [vmem:[%s14463_s0 + $0x50] sm:$0xff] }
0x355d   : > { %v11780_v24 = vpop.f32.mrf.mxu0 }
0x355e   : > { %v1863_v24 = vld [vmem:[%s14463_s0 + $0x48] sm:$0xff] }
0x355f   : > { %v8888_v17 = vpop.f32.mrf.mxu0 }
0x3560   : > { %11808 = vmatmul.mubr.msk.f32.vlgmr.msra.gmra.mxu1 %vm2393_vm0, %v8888_v17  ;;  %v1862_v17 = vld [vmem:[%s14463_s0 + $0x40] sm:$0xff] }
0x3561   : > { %v11798_v34 = vpop.f32.mrf.mxu0  ;;  %11829 = vmatpush3.msra.mxu1 %v1834_v1  ;;  %11860 = vmatprep.mubr.msk.f32.mxu1 %vm12739_vm13, %v12735_v37  ;;  %v1879_v1 = vld [vmem:[%s14463_s0 + $0xc8] sm:$0xff] }
0x3562   : > { %11830 = vmatprep.subr.mxu1 %v12735_v37  ;;  %v1861_v34 = vld [vmem:[%s14463_s0 + $0x38] sm:$0xff] }
0x3563   : > { %v9035_v60 = vpop.f32.mrf.mxu0  ;;  %11831 = vmatpush3.msra.mxu1 %v1833_v0  ;;  %v1878_v0 = vld [vmem:[%s14463_s0 + $0xc0] sm:$0xff] }
0x3564   : > { %11826 = vmatmul.mubr.msk.f32.vlgmr.msra.gmra.mxu0 %vm2393_vm0, %v9035_v60  ;;  %11832 = vmatprep.subr.mxu1 %v12735_v37  ;;  %v1876_v60 = vld [vmem:[%s14463_s0 + $0xb0] sm:$0xff]  ;;  %vm9566_vm0 = vcmask 64512  }
0x3565   : > { %v11816_v41 = vpop.f32.mrf.mxu0  ;;  %11864 = vmatpush3.msra.mxu0 %v1850_v36  ;;  %11833 = vmatpush3.msra.mxu1 %v1832_v16  ;;  %v1877_v36 = vld [vmem:[%s14463_s0 + $0xb8] sm:$0xff]  ;;  %v1860_v16 = vld [vmem:[%s14463_s0 + $0x30] sm:$0xff] }
0x3566   : > { %11865 = vmatprep.subr.mxu0 %v12735_v37  ;;  %11834 = vmatprep.subr.mxu1 %v12735_v37  ;;  %v1858_v41 = vld [vmem:[%s14463_s0 + $0x20] sm:$0xff] }
0x3567   : > { %11866 = vmatpush3.msra.mxu0 %v1849_v30  ;;  %11835 = vmatpush3.msra.mxu1 %v1831_v23  ;;  %v1859_v30 = vld [vmem:[%s14463_s0 + $0x28] sm:$0xff] }
0x3568   : > { %11867 = vmatprep.subr.mxu0 %v12735_v37  ;;  %11836 = vmatprep.subr.mxu1 %v12735_v37  ;;  %v1875_v23 = vld [vmem:[%s14463_s0 + $0xa8] sm:$0xff] }
0x3569   : > { %11868 = vmatpush3.msra.mxu0 %v1848_v39  ;;  %11837 = vmatpush3.msra.mxu1 %v1830_v33  ;;  %v1874_v39 = vld [vmem:[%s14463_s0 + $0xa0] sm:$0xff]  ;;  %v1857_v33 = vld [vmem:[%s14463_s0 + $0x18] sm:$0xff] }
0x356a   : > { %11869 = vmatprep.subr.mxu0 %v12735_v37  ;;  %11838 = vmatprep.subr.mxu1 %v12735_v37 }
0x356b   : > { %11870 = vmatpush3.msra.mxu0 %v1847_v44  ;;  %11839 = vmatpush3.msra.mxu1 %v1829_v45  ;;  %v1873_v44 = vld [vmem:[%s14463_s0 + $0x98] sm:$0xff]  ;;  %v1856_v45 = vld [vmem:[%s14463_s0 + $0x10] sm:$0xff] }
0x356c   : > { %11871 = vmatprep.subr.mxu0 %v12735_v37  ;;  %11840 = vmatprep.subr.mxu1 %v12735_v37 }
0x356d   : > { %11872 = vmatpush3.msra.mxu0 %v1846_v38  ;;  %11841 = vmatpush3.msra.mxu1 %v1828_v47  ;;  %v1872_v38 = vld [vmem:[%s14463_s0 + $0x90] sm:$0xff]  ;;  %v1855_v47 = vld [vmem:[%s14463_s0 + $0x8] sm:$0xff] }
0x356e   : > { %11873 = vmatprep.subr.mxu0 %v12735_v37  ;;  %11842 = vmatprep.subr.mxu1 %v12735_v37 }
0x356f   : > { %11874 = vmatpush3.msra.mxu0 %v1845_v28  ;;  %11843 = vmatpush3.msra.mxu1 %v1827_v49  ;;  %v1871_v28 = vld [vmem:[%s14463_s0 + $0x88] sm:$0xff]  ;;  %v1854_v49 = vld [vmem:[%s14463_s0] sm:$0xff] }
0x3570   : > { %11875 = vmatprep.subr.mxu0 %v12735_v37  ;;  %11844 = vmatprep.subr.mxu1 %v12735_v37 }
0x3571   : > { %11876 = vmatpush3.msra.mxu0 %v1844_v42  ;;  %11845 = vmatpush3.msra.mxu1 %v1826_v50  ;;  %v1870_v42 = vld [vmem:[%s14463_s0 + $0x80] sm:$0xff] }
0x3572   : > { %11877 = vmatprep.subr.mxu0 %v12735_v37  ;;  %11846 = vmatprep.subr.mxu1 %v12735_v37 }
0x3573   : > { %11878 = vmatpush3.msra.mxu0 %v1843_v5  ;;  %11847 = vmatpush3.msra.mxu1 %v1825_v51  ;;  %v10678_v51 = vld [vmem:[#allocation15] ss:$0 sm:$0xff] }
0x3574   : > { %11879 = vmatprep.subr.mxu0 %v12735_v37  ;;  %11848 = vmatprep.subr.mxu1 %v12735_v37 }
0x3575   : > { %11880 = vmatpush3.msra.mxu0 %v1842_v52  ;;  %11849 = vmatpush3.msra.mxu1 %v1824_v53 }
0x3576   : > { %11881 = vmatprep.subr.mxu0 %v12735_v37  ;;  %11850 = vmatprep.subr.mxu1 %v12735_v37 }
0x3577   : > { %11882 = vmatpush3.msra.mxu0 %v1841_v19  ;;  %11851 = vmatpush3.msra.mxu1 %v1823_v54 }
0x3578   : > { %11883 = vmatprep.subr.mxu0 %v12735_v37  ;;  %11852 = vmatprep.subr.mxu1 %v12735_v37 }
0x3579   : > { %11884 = vmatpush3.msra.mxu0 %v1840_v15  ;;  %11895 = vmatprep.mubr.msk.f32.mxu0 %vm12739_vm13, %v12735_v37 }
0x357a   : > { %11885 = vmatprep.subr.mxu0 %v12735_v37  ;;  %11853 = vmatpush3.msra.mxu1 %v1822_v57 }
0x357b   : > { %11886 = vmatpush3.msra.mxu0 %v1839_v55  ;;  %11854 = vmatprep.subr.mxu1 %v12735_v37 }
0x357c   : > { %11887 = vmatprep.subr.mxu0 %v12735_v37  ;;  %11855 = vmatpush3.msra.mxu1 %v1821_v61 }
0x357d   : > { %11888 = vmatpush3.msra.mxu0 %v1838_v58  ;;  %11856 = vmatprep.subr.mxu1 %v12735_v37 }
0x357e   : > { %11889 = vmatprep.subr.mxu0 %v12735_v37  ;;  %11857 = vmatpush3.msra.mxu1 %v1820_v62 }
0x357f   : > { %11890 = vmatpush3.msra.mxu0 %v1837_v56  ;;  %11858 = vmatprep.subr.mxu1 %v12735_v37  ;;  %v9422_v56 = vshrl.u32 %v1916_v35, 7 }
0x3580   : > { %11891 = vmatprep.subr.mxu0 %v12735_v37  ;;  %11859 = vmatpush3.msra.mxu1 %v1819_v11 }
0x3581   : > { %11892 = vmatpush3.msra.mxu0 %v1836_v4  ;;  %11898 = vmatprep.subr.mxu1 %v12735_v37  ;;  %v9423_v11 = vsub.s32 0, %v9422_v56 }
0x3582   : > { %11893 = vmatprep.subr.mxu0 %v12735_v37 }
0x3583   : > { %11894 = vmatpush3.msra.mxu0 %v1835_v63 }
0x3584   : > { %11908 = vmatprep.subr.mxu0 %v12735_v37 }
0x3620   : > { %v8961_v9 = vpop.f32.mrf.mxu1 }
0x3621   : > { %v8965_v10 = vadd.f32 %v8961_v9, %v14138_v32  ;;  %v1880_v32 = vld [vmem:[%s14463_s0 + $0xd0] sm:$0xff]  ;;  %s10703_s0 = sshll.u32 %s14466_s28, 5 }
0x3622   : > { %v11809_v3 = vpop.f32.mrf.mxu1 }
0x3624   : > { %v9108_v48 = vpop.f32.mrf.mxu0 }
0x3625   : > { %v9112_v8 = vadd.f32 %v9108_v48, %v8965_v10 }
0x3626   : > { %v11827_v29 = vpop.f32.mrf.mxu0 }
0x3627   : > { %11861 = vmatmul.mubr.f32.vlgmr.msra.gmra.mxu1 %v9112_v8  ;;  %11896 = vmatmul.mubr.f32.vlgmr.msra.gmra.mxu0 %v9112_v8  ;;  %v1888_v8 = vld [vmem:[%s14464_s1 + $0x10] sm:$0xff]  ;;  %v1886_v29 = vld [vmem:[%s14464_s1] sm:$0xff] }
0x3628   : > { %11900 = vmatprep.mubr.msk.f32.mxu1 %vm12739_vm13, %v12735_v37  ;;  %11940 = vmatprep.mubr.msk.f32.mxu0 %vm12739_vm13, %v12735_v37 }
0x3629   : > { %11909 = vmatpush3.msra.mxu0 %v1869_v2 }
0x362a   : > { %11910 = vmatprep.subr.mxu0 %v12735_v37 }
0x362b   : > { %11911 = vmatpush3.msra.mxu0 %v1868_v6 }
0x362c   : > { %11912 = vmatprep.subr.mxu0 %v12735_v37 }
0x362d   : > { %11913 = vmatpush3.msra.mxu0 %v1867_v43 }
0x362e   : > { %11914 = vmatprep.subr.mxu0 %v12735_v37 }
0x362f   : > { %11915 = vmatpush3.msra.mxu0 %v1866_v27  ;;  %v1892_v27 = vld [vmem:[%s12973_s14] sm:$0xff] }
0x3630   : > { %11916 = vmatprep.subr.mxu0 %v12735_v37 }
0x3631   : > { %11917 = vmatpush3.msra.mxu0 %v1865_v59 }
0x3632   : > { %11918 = vmatprep.subr.mxu0 %v12735_v37 }
0x3633   : > { %11919 = vmatpush3.msra.mxu0 %v1864_v31  ;;  %v1893_v31 = vld [vmem:[%s12973_s14 + $0x8] sm:$0xff] }
0x3634   : > { %11920 = vmatprep.subr.mxu0 %v12735_v37 }
0x3635   : > { %11921 = vmatpush3.msra.mxu0 %v1863_v24  ;;  %v1894_v24 = vld [vmem:[%s12973_s14 + $0x10] sm:$0xff] }
0x3636   : > { %11922 = vmatprep.subr.mxu0 %v12735_v37 }
0x3637   : > { %11923 = vmatpush3.msra.mxu0 %v1862_v17  ;;  %v1915_v17 = vld [vmem:[%s12978_s29 + $0x78] sm:$0xff] }
0x3638   : > { %11924 = vmatprep.subr.mxu0 %v12735_v37 }
0x3639   : > { %11925 = vmatpush3.msra.mxu0 %v1861_v34  ;;  %v1895_v34 = vld [vmem:[%s12973_s14 + $0x18] sm:$0xff] }
0x363a   : > { %11926 = vmatprep.subr.mxu0 %v12735_v37 }
0x363b   : > { %11927 = vmatpush3.msra.mxu0 %v1860_v16  ;;  %v1914_v16 = vld [vmem:[%s12978_s29 + $0x70] sm:$0xff] }
0x363c   : > { %11928 = vmatprep.subr.mxu0 %v12735_v37 }
0x363d   : > { %11929 = vmatpush3.msra.mxu0 %v1859_v30  ;;  %v1913_v30 = vld [vmem:[%s12978_s29 + $0x68] sm:$0xff] }
0x363e   : > { %11930 = vmatprep.subr.mxu0 %v12735_v37 }
0x363f   : > { %11931 = vmatpush3.msra.mxu0 %v1858_v41  ;;  %v1912_v41 = vld [vmem:[%s12978_s29 + $0x60] sm:$0xff] }
0x3640   : > { %11932 = vmatprep.subr.mxu0 %v12735_v37 }
0x3641   : > { %11933 = vmatpush3.msra.mxu0 %v1857_v33  ;;  %v1911_v33 = vld [vmem:[%s12978_s29 + $0x58] sm:$0xff] }
0x3642   : > { %11934 = vmatprep.subr.mxu0 %v12735_v37 }
0x3643   : > { %11935 = vmatpush3.msra.mxu0 %v1856_v45  ;;  %v1910_v45 = vld [vmem:[%s12978_s29 + $0x50] sm:$0xff] }
0x3644   : > { %11936 = vmatprep.subr.mxu0 %v12735_v37 }
0x3645   : > { %11937 = vmatpush3.msra.mxu0 %v1855_v47  ;;  %v1909_v47 = vld [vmem:[%s12978_s29 + $0x48] sm:$0xff] }
0x3646   : > { %11938 = vmatprep.subr.mxu0 %v12735_v37 }
0x3647   : > { %11939 = vmatpush3.msra.mxu0 %v1854_v49  ;;  %v1908_v49 = vld [vmem:[%s12978_s29 + $0x40] sm:$0xff] }
0x36e7   : > { %v9179_v13 = vpop.f32.mrf.mxu1  ;;  %v9249_v14 = vpop.f32.mrf.mxu0 }
0x36e8   : > { %11899 = vmatpush3.msk.msra.mxu1 %vm4248_vm14, %v9249_v14 }
0x36e9   : > { %v11862_v18 = vpop.f32.mrf.mxu1  ;;  %v11897_v20 = vpop.f32.mrf.mxu0  ;;  %11901 = vmatmul.mubr.msk.f32.vlgmr.msra.gmra.mxu1 %vm4244_vm1, %v1852_v12  ;;  %11903 = vmatprep.subr.mxu1 %v12735_v37 }
0x36ea   : > { %11904 = vmatpush3.msk.msra.mxu1 %vm4248_vm14, %v9179_v13  ;;  %11905 = vmatprep.mubr.msk.f32.mxu1 %vm12739_vm13, %v12735_v37  ;;  %v1887_v13 = vld [vmem:[%s14464_s1 + $0x8] sm:$0xff] }
0x36eb   : > { %11943 = vmatprep.subr.mxu1 %v12735_v37  ;;  %v1891_v20 = vld [vmem:[%s12968_s19 + $0x8] sm:$0xff] }
0x36ed   : > { %11906 = vmatmul.mubr.msk.f32.vlgmr.msra.gmra.mxu1 %vm4244_vm1, %v1851_v21  ;;  %v1890_v21 = vld [vmem:[%s12968_s19] sm:$0xff] }
0x36ee   : > { %11975 = vmatprep.mubr.msk.f32.mxu1 %vm12739_vm13, %v12735_v37  ;;  %11944 = vmatpush3.msra.mxu1 %v1885_v46 }
0x36ef   : > { %11945 = vmatprep.subr.mxu1 %v12735_v37 }
0x36f0   : > { %11946 = vmatpush3.msra.mxu1 %v1884_v25 }
0x36f1   : > { %11947 = vmatprep.subr.mxu1 %v12735_v37 }
0x36f2   : > { %11948 = vmatpush3.msra.mxu1 %v1883_v26 }
0x36f3   : > { %11949 = vmatprep.subr.mxu1 %v12735_v37 }
0x36f4   : > { %11950 = vmatpush3.msra.mxu1 %v1882_v7  ;;  %v1896_v7 = vld [vmem:[%s12973_s14 + $0x20] sm:$0xff] }
0x36f5   : > { %11951 = vmatprep.subr.mxu1 %v12735_v37 }
0x36f6   : > { %11952 = vmatpush3.msra.mxu1 %v1881_v22 }
0x36f7   : > { %11953 = vmatprep.subr.mxu1 %v12735_v37 }
0x36f8   : > { %11954 = vmatpush3.msra.mxu1 %v1880_v32  ;;  %v1897_v32 = vld [vmem:[%s12973_s14 + $0x28] sm:$0xff] }
0x36f9   : > { %11955 = vmatprep.subr.mxu1 %v12735_v37 }
0x36fa   : > { %11956 = vmatpush3.msra.mxu1 %v1879_v1  ;;  %v1898_v1 = vld [vmem:[%s12973_s14 + $0x30] sm:$0xff] }
0x36fb   : > { %11957 = vmatprep.subr.mxu1 %v12735_v37 }
0x36fc   : > { %11958 = vmatpush3.msra.mxu1 %v1878_v0  ;;  %v1907_v0 = vld [vmem:[%s12978_s29 + $0x38] sm:$0xff] }
0x36fd   : > { %11959 = vmatprep.subr.mxu1 %v12735_v37 }
0x36fe   : > { %11960 = vmatpush3.msra.mxu1 %v1877_v36  ;;  %v1899_v36 = vld [vmem:[%s12973_s14 + $0x38] sm:$0xff] }
0x36ff   : > { %11961 = vmatprep.subr.mxu1 %v12735_v37 }
0x3700   : > { %11962 = vmatpush3.msra.mxu1 %v1876_v60  ;;  %v1906_v60 = vld [vmem:[%s12978_s29 + $0x30] sm:$0xff] }
0x3701   : > { %11963 = vmatprep.subr.mxu1 %v12735_v37 }
0x3702   : > { %11964 = vmatpush3.msra.mxu1 %v1875_v23  ;;  %v1905_v23 = vld [vmem:[%s12978_s29 + $0x28] sm:$0xff] }
0x3703   : > { %11965 = vmatprep.subr.mxu1 %v12735_v37 }
0x3704   : > { %11966 = vmatpush3.msra.mxu1 %v1874_v39  ;;  %v1904_v39 = vld [vmem:[%s12978_s29 + $0x20] sm:$0xff] }
0x3705   : > { %11967 = vmatprep.subr.mxu1 %v12735_v37 }
0x3706   : > { %11968 = vmatpush3.msra.mxu1 %v1873_v44  ;;  %v1903_v44 = vld [vmem:[%s12978_s29 + $0x18] sm:$0xff] }
0x3707   : > { %11969 = vmatprep.subr.mxu1 %v12735_v37 }
0x3708   : > { %11970 = vmatpush3.msra.mxu1 %v1872_v38  ;;  %v1902_v38 = vld [vmem:[%s12978_s29 + $0x10] sm:$0xff] }
0x3709   : > { %11971 = vmatprep.subr.mxu1 %v12735_v37 }
0x370a   : > { %11972 = vmatpush3.msra.mxu1 %v1871_v28  ;;  %v1901_v28 = vld [vmem:[%s12978_s29 + $0x8] sm:$0xff] }
0x370b   : > { %11973 = vmatprep.subr.mxu1 %v12735_v37  ;;  %v1793_v37 = vld [vmem:[#allocation12] sm:$0x1] }
0x370c   : > { %11974 = vmatpush3.msra.mxu1 %v1870_v42  ;;  %v8425_v4 = vadd.f32 %v14102_v40, %v1793_v37  ;;  %v1889_v40 = vld [vmem:[%s14464_s1 + $0x18] sm:$0xff]  ;;  %v1900_v42 = vld [vmem:[%s12978_s29] sm:$0xff]  ;;  %s1536_s1 = scalar_lea.vmem %s12983_s9, %s10703_s0 }
0x370e   : > { %v9424_v3 = vrot.slane %v8425_v4, %v9423_v11 }
0x37a9   : > { %v9325_v50 = vpop.f32.mrf.mxu1 }
0x37ab   : > { %v11902_v5 = vpop.f32.mrf.mxu1 }
0x37ad   : > { %v9401_v52 = vpop.f32.mrf.mxu1 }
0x37ae   : > { %v9402_v53 = vadd.f32 %v9401_v52, %v9325_v50 }
0x37af   : > { %v11907_v19 = vpop.f32.mrf.mxu1 }
0x37b0   : > { %v9411_v54 = vadd.f32 %v10678_v51, %v9402_v53 }
0x37b2   : > { %v9412_v15 = vmul.f32 %v9411_v54, %v9411_v54 }
0x37b4   : > { %v9413_v55 = vmul.f32 %v9412_v15, %v9411_v54 }
0x37b6   : > { %v9414_v57 = vmul.f32 0.044715, %v9413_v55 }
0x37b8   : > { %v9415_v58 = vadd.f32 %v9414_v57, %v9411_v54 }
0x37ba   : > { %v9416_v61 = vmul.f32 0.7978846, %v9415_v58 }
0x37bc   : > { %12412 = vtanh.f32 %v9416_v61 }
0x37c9   : > { %v12413_v62 = vpop.eup %12412 }
0x37ca   : > { %v9418_v63 = vadd.f32 1.0, %v12413_v62 }
0x37cc   : > { %v9419_v9 = vmul.f32 0.5, %v9418_v63 }
0x37ce   : > { %v9420_v10 = vmul.f32 %v9419_v9, %v9411_v54 }
0x37d0   : > { %v9425_v48 = vmul.f32 %v9424_v3, %v9420_v10 }
0x37d2   : > { %11941 = vmatmul.mubr.f32.vlgmr.msra.gmra.mxu0 %v9425_v48  ;;  %11976 = vmatmul.mubr.f32.vlgmr.msra.gmra.mxu1 %v9425_v48 }
0x37d3   : > { %11980 = vmatprep.mubr.msk.f32.mxu0 %vm9566_vm0, %v1888_v8  ;;  %11985 = vmatprep.mubr.msk.f32.mxu1 %vm9566_vm0, %v1886_v29 }
0x3892   : > { %v9492_v35 = vpop.f32.mrf.mxu0  ;;  %v9562_v12 = vpop.f32.mrf.mxu1 }
0x3893   : > { %11978 = vmatprep.subr.mxu0 %v9562_v12  ;;  %11983 = vmatprep.subr.mxu1 %v9492_v35 }
0x3894   : > { %v11942_v14 = vpop.f32.mrf.mxu0  ;;  %v11977_v18 = vpop.f32.mrf.mxu1  ;;  %11979 = vmatpush3.msra.mxu0 %v9562_v12  ;;  %11984 = vmatpush3.msra.mxu1 %v9492_v35 }
0x3895   : > { %11981 = vmatmul.mubr.msk.f32.vlgmr.msra.gmra.mxu0 %vm9566_vm0, %v1889_v40  ;;  %11986 = vmatmul.mubr.msk.f32.vlgmr.msra.gmra.mxu1 %vm9566_vm0, %v1887_v13 }
0x3896   : > { %11988 = vmatprep.subr.mxu0 %v1891_v20  ;;  %11999 = vmatprep.mubr.msk.f32.mxu1 %vm2623_vm8, %v1892_v27 }
0x3897   : > { %11989 = vmatpush3.msra.mxu0 %v1891_v20 }
0x3898   : > { %11990 = vmatprep.subr.mxu0 %v1890_v21 }
0x3899   : > { %11991 = vmatpush3.msra.mxu0 %v1890_v21 }
0x3955   : > { %v11982_v2 = vpop.f32.mrf.mxu0  ;;  %v11987_v46 = vpop.f32.mrf.mxu1 }
0x3956   : > { %v9726_v26 = vadd.f32 %v11987_v46, %v11982_v2 }
0x3957   : > { %v9639_v6 = vpop.f32.mrf.mxu0  ;;  %v9720_v25 = vpop.f32.mrf.mxu1 }
0x3958   : > { %v9721_v43 = vadd.f32 %v9720_v25, %v9639_v6 }
0x395a   : > { %11992 = vmatprep.mubr.msk.f32.mxu0 %vm2623_vm8, %v9721_v43 }
0x395b   : > { %11993 = vmatmul.mubr.msk.f32.vlgmr.msra.gmra.mxu0 %vm2623_vm8, %v9726_v26 }
0x395c   : > { %12009 = vmatprep.mubr.msk.f32.mxu0 %vm2623_vm8, %v1896_v7 }
0x3a1b   : > { %v11994_v59 = vpop.f32.mrf.mxu0 }
0x3a1c   : > { %11995 = vmatprep.subr.mxu1 %v11994_v59  ;;  %12005 = vmatprep.subr.mxu0 %v11994_v59 }
0x3a1d   : > { %v9801_v22 = vpop.f32.mrf.mxu0  ;;  %11996 = vmatpush3.msra.mxu1 %v11994_v59  ;;  %12006 = vmatpush3.msra.mxu0 %v11994_v59 }
0x3a1e   : > { %11997 = vmatprep.subr.mxu1 %v9801_v22  ;;  %12007 = vmatprep.subr.mxu0 %v9801_v22 }
0x3a1f   : > { %11998 = vmatpush3.msra.mxu1 %v9801_v22  ;;  %12008 = vmatpush3.msra.mxu0 %v9801_v22 }
0x3a20   : > { %12000 = vmatmul.mubr.msk.f32.vlgmr.msra.gmra.mxu1 %vm2623_vm8, %v1893_v31  ;;  %12010 = vmatmul.mubr.msk.f32.vlgmr.msra.gmra.mxu0 %vm2623_vm8, %v1897_v32 }
0x3a21   : > { %12002 = vmatprep.mubr.msk.f32.mxu1 %vm2623_vm8, %v1894_v24  ;;  %12012 = vmatprep.mubr.msk.f32.mxu0 %vm2623_vm8, %v1898_v1 }
0x3a22   : > { %12015 = vmatprep.subr.mxu1 %v1915_v17  ;;  %12037 = vmatprep.subr.mxu0 %v1907_v0 }
0x3a23   : > { %12016 = vmatpush3.msra.mxu1 %v1915_v17  ;;  %12038 = vmatpush3.msra.mxu0 %v1907_v0 }
0x3a24   : > { %12003 = vmatmul.mubr.msk.f32.gmra.mxu1 %vm2623_vm8, %v1895_v34  ;;  %12013 = vmatmul.mubr.msk.f32.gmra.mxu0 %vm2623_vm8, %v1899_v36 }
0x3a25   : > { %12017 = vmatprep.subr.mxu1 %v1914_v16  ;;  %12039 = vmatprep.subr.mxu0 %v1906_v60 }
0x3a26   : > { %12018 = vmatpush3.msra.mxu1 %v1914_v16  ;;  %12040 = vmatpush3.msra.mxu0 %v1906_v60 }
0x3a27   : > { %12019 = vmatprep.subr.mxu1 %v1913_v30  ;;  %12041 = vmatprep.subr.mxu0 %v1905_v23 }
0x3a28   : > { %12020 = vmatpush3.msra.mxu1 %v1913_v30  ;;  %12042 = vmatpush3.msra.mxu0 %v1905_v23 }
0x3a29   : > { %12021 = vmatprep.subr.mxu1 %v1912_v41  ;;  %12043 = vmatprep.subr.mxu0 %v1904_v39 }
0x3a2a   : > { %12022 = vmatpush3.msra.mxu1 %v1912_v41  ;;  %12044 = vmatpush3.msra.mxu0 %v1904_v39 }
0x3a2b   : > { %12023 = vmatprep.subr.mxu1 %v1911_v33  ;;  %12045 = vmatprep.subr.mxu0 %v1903_v44 }
0x3a2c   : > { %12024 = vmatpush3.msra.mxu1 %v1911_v33  ;;  %12046 = vmatpush3.msra.mxu0 %v1903_v44 }
0x3a2d   : > { %12025 = vmatprep.subr.mxu1 %v1910_v45  ;;  %12047 = vmatprep.subr.mxu0 %v1902_v38 }
0x3a2e   : > { %12026 = vmatpush3.msra.mxu1 %v1910_v45  ;;  %12048 = vmatpush3.msra.mxu0 %v1902_v38 }
0x3a2f   : > { %12027 = vmatprep.subr.mxu1 %v1909_v47  ;;  %12049 = vmatprep.subr.mxu0 %v1901_v28 }
0x3a30   : > { %12028 = vmatpush3.msra.mxu1 %v1909_v47  ;;  %12050 = vmatpush3.msra.mxu0 %v1901_v28 }
0x3a31   : > { %12029 = vmatprep.subr.mxu1 %v1908_v49  ;;  %12051 = vmatprep.subr.mxu0 %v1900_v42 }
0x3a32   : > { %12030 = vmatpush3.msra.mxu1 %v1908_v49  ;;  %12052 = vmatpush3.msra.mxu0 %v1900_v42 }
0x3ae0   : > { %v12001_v50 = vpop.f32.mrf.mxu1  ;;  %v12011_v5 = vpop.f32.mrf.mxu0 }
0x3ae2   : > { %v9888_v51 = vpop.f32.mrf.mxu1  ;;  %v9985_v52 = vpop.f32.mrf.mxu0 }
0x3ae3   : > { %12031 = vmatprep.mubr.msk.f32.mxu1 %vm3613_vm12, %v9985_v52  ;;  %12053 = vmatprep.mubr.msk.f32.mxu0 %vm3613_vm12, %v9888_v51 }
0x3ae4   : > { %v12004_v53 = vpop.f32.mrf.mxu1  ;;  %v12014_v19 = vpop.f32.mrf.mxu0  ;;  %12032 = vmatmul.mubr.msk.f32.vlgmr.msra.gmra.mxu1 %vm3613_vm12, %v12011_v5  ;;  %12054 = vmatmul.mubr.msk.f32.vlgmr.msra.gmra.mxu0 %vm3613_vm12, %v12001_v50 }
0x3ae6   : > { %v9898_v54 = vpop.f32.mrf.mxu1  ;;  %v9995_v15 = vpop.f32.mrf.mxu0 }
0x3ae7   : > { %12034 = vmatprep.mubr.msk.f32.mxu1 %vm3613_vm12, %v9995_v15  ;;  %12056 = vmatprep.mubr.msk.f32.mxu0 %vm3613_vm12, %v9898_v54 }
0x3ae8   : > { %12035 = vmatmul.mubr.msk.f32.gmra.mxu1 %vm3613_vm12, %v12014_v19  ;;  %12057 = vmatmul.mubr.msk.f32.gmra.mxu0 %vm3613_vm12, %v12004_v53 }
0x3ba4   : > { %v12033_v55 = vpop.f32.mrf.mxu1  ;;  %v12055_v57 = vpop.f32.mrf.mxu0 }
0x3ba5   : > { %v10185_v58 = vadd.f32 %v12055_v57, %v12033_v55 }
0x3ba6   : > { %v10082_v61 = vpop.f32.mrf.mxu1  ;;  %v10179_v56 = vpop.f32.mrf.mxu0 }
0x3ba7   : > { %10199 = vst [vmem:[%s1536_s1 + $0x8] sm:$0xff] %v10185_v58  ;;  %v10180_v37 = vadd.f32 %v10179_v56, %v10082_v61 }
0x3ba8   : > { %v12036_v62 = vpop.f32.mrf.mxu1  ;;  %v12058_v4 = vpop.f32.mrf.mxu0 }
0x3ba9   : > { %10198 = vst [vmem:[%s1536_s1] sm:$0xff] %v10180_v37  ;;  %v10195_v11 = vadd.f32 %v12058_v4, %v12036_v62 }
0x3baa   : > { %v10092_v63 = vpop.f32.mrf.mxu1  ;;  %v10189_v9 = vpop.f32.mrf.mxu0 }
0x3bab   : > { %10201 = vst [vmem:[%s1536_s1 + $0x18] sm:$0xff] %v10195_v11  ;;  %v10190_v3 = vadd.f32 %v10189_v9, %v10092_v63 }
0x3bad   : > { %10200 = vst [vmem:[%s1536_s1 + $0x10] sm:$0xff] %v10190_v3 }
0x3bae PF: > { %s110_s22 = sadd.s32 1, %s12677_s22  }
0x3baf   : > { %p107_p12 = scmp.ge.s32.totalorder %s110_s22, 4  }
0x3bb1   :  { %109 = sbr.rel (!%p107_p12) target bundleno = 92 (0x5c), region = 325 }
0x3bb6   :  { %10223 = vsyncpa [#allocation3], 1 }
0x3bb7   :  { %10225 = vsyncpa [#allocation3 + $0x1], 1 }
0x3bb8   :  { %10226 = vsyncpa [#allocation5], 1 }
0x3bb9   :  { %10227 = vsyncpa [#allocation8], 1 }
0x3bba   :  { %10228 = vsyncpa [#allocation11], 1 }
0x3bbb   :  { %10229 = vsyncpa [#allocation14], 1 }

</bundles_post_ra>
